<compile_context>
chip_gen: v6e
topology: v6e:2x2x1
jax: 0.10.0
libtpu: 0.0.40
codegen_flags: <defaults>
</compile_context>

<pallas_src>
import functools
import math

import jax
import jax.numpy as jnp
from jax.experimental import pallas as pl
from jax.experimental.pallas import tpu as pltpu


FLAT = 64 * 7 * 7      # 3136 = flatten size after conv3 (84x84 input)
HID = 1024             # fc1_a (512) | fc1_b (512) concatenated


# ----------------------- conv matmul kernel (per image) --------------------- #

def _conv_mm_kernel(p_ref, w_ref, b_ref, o_ref):
    """o[b] = relu(patches[b] @ W + bias); one grid step per batch element."""
    x = p_ref[0]                                                     # (P, K) bf16
    y = jnp.dot(x, w_ref[...], preferred_element_type=jnp.float32)   # f32 accum
    y = jnp.maximum(y + b_ref[...], 0.0)                             # f32 epilogue
    o_ref[0] = y.astype(o_ref.dtype)


def conv2d_relu(x, w_mat, b, *, kh, kw, stride, oc, nchw_in=False):
    """Valid strided conv + ReLU via im2col patches + Pallas matmul.

    x: (B,H,W,C) bf16 NHWC (or NCHW bf16 when nchw_in=True, first layer only).
    w_mat: (C*kh*kw, oc) bf16 with (c, kh, kw) row order.
    Returns (B, OH, OW, oc) bf16 (NHWC).
    """
    dn = ("NCHW", "HWIO", "NHWC") if nchw_in else ("NHWC", "HWIO", "NHWC")
    # Single fused XLA op; output feature order is (c, kh, kw), matching w_mat.
    patches = jax.lax.conv_general_dilated_patches(
        x, (kh, kw), (stride, stride), "VALID", dimension_numbers=dn)
    B, OH, OW, K = patches.shape
    P = OH * OW
    patches = patches.reshape(B, P, K)          # row-major merge: free reshape

    out = pl.pallas_call(
        _conv_mm_kernel,
        out_shape=jax.ShapeDtypeStruct((B, P, oc), jnp.bfloat16),
        grid_spec=pltpu.PrefetchScalarGridSpec(
            num_scalar_prefetch=0,
            grid=(B,),
            in_specs=[
                pl.BlockSpec((1, P, K), lambda bi: (bi, 0, 0)),
                pl.BlockSpec((K, oc), lambda bi: (0, 0)),   # resident: one DMA
                pl.BlockSpec((1, oc), lambda bi: (0, 0)),
            ],
            out_specs=pl.BlockSpec((1, P, oc), lambda bi: (bi, 0, 0)),
        ),
        compiler_params=pltpu.CompilerParams(
            dimension_semantics=("parallel",)),   # batch across v7x's 2 TCs
    )(patches, w_mat, b.reshape(1, oc))
    return out.reshape(B, OH, OW, oc)


# ------------- fused FC tail: fc1_a|fc1_b + fc2_a|fc2_b + dueling ------------ #

def _fc_head_kernel(x_ref, w1_ref, b1_ref, w2_ref, b2_ref, o_ref, *, n_actions):
    # fc1_a | fc1_b fused: (B, 3136) @ (3136, 1024), bf16 in, f32 accumulate.
    h = jnp.dot(x_ref[...], w1_ref[...], preferred_element_type=jnp.float32)
    h = jnp.maximum(h + b1_ref[...], 0.0)                            # (B, 1024)
    # fc2_a / fc2_b packed block-diagonally -> [advantages | value], in f32.
    y = jnp.dot(h, w2_ref[...], preferred_element_type=jnp.float32) + b2_ref[...]
    adv = y[:, :n_actions]                                           # (B, A)
    val = y[:, n_actions:]                                           # (B, 1)
    # Q = V + (A - mean(A)); V broadcast == torch .expand
    o_ref[...] = val + adv - jnp.mean(adv, axis=1, keepdims=True)


def fc_head(xv, w1, b1, w2, b2, n_actions):
    """xv: (B, 3136) bf16 -> Q (B, n_actions) f32 in a single pallas_call.

    All blocks equal the full arrays: the 6.4 MB fc1 weight is fully resident
    in VMEM (one DMA, no K grid). vmem_limit raised for v5e's 16 MiB default.
    """
    B, K = xv.shape
    na1 = n_actions + 1
    return pl.pallas_call(
        functools.partial(_fc_head_kernel, n_actions=n_actions),
        out_shape=jax.ShapeDtypeStruct((B, n_actions), jnp.float32),
        grid_spec=pltpu.PrefetchScalarGridSpec(
            num_scalar_prefetch=0,
            grid=(1,),
            in_specs=[
                pl.BlockSpec((B, K), lambda i: (0, 0)),
                pl.BlockSpec((K, HID), lambda i: (0, 0)),
                pl.BlockSpec((1, HID), lambda i: (0, 0)),
                pl.BlockSpec((HID, na1), lambda i: (0, 0)),
                pl.BlockSpec((1, na1), lambda i: (0, 0)),
            ],
            out_specs=pl.BlockSpec((B, n_actions), lambda i: (0, 0)),
        ),
        compiler_params=pltpu.CompilerParams(
            dimension_semantics=("arbitrary",),
            vmem_limit_bytes=32 * 1024 * 1024),
    )(xv, w1, b1.reshape(1, HID), w2, b2.reshape(1, na1))


# -------------------------------- parameters -------------------------------- #

def _uniform(key, shape, bound):
    return jax.random.uniform(key, shape, jnp.float32, -bound, bound)


def _noisy_linear_params(key, in_f, out_f, std_init):
    """Effective (W, b) of a NoisyLinear (factorized Gaussian noise, one fixed
    sample) — equivalent to a plain linear layer at forward time."""
    k_mu_w, k_mu_b, k_ein, k_eout = jax.random.split(key, 4)
    mu_range = 1.0 / math.sqrt(in_f)
    w_mu = _uniform(k_mu_w, (out_f, in_f), mu_range)
    b_mu = _uniform(k_mu_b, (out_f,), mu_range)
    w_sigma = jnp.full((out_f, in_f), std_init / math.sqrt(in_f), jnp.float32)
    b_sigma = jnp.full((out_f,), std_init / math.sqrt(out_f), jnp.float32)

    def f(v):
        return jnp.sign(v) * jnp.sqrt(jnp.abs(v))

    eps_in = f(jax.random.normal(k_ein, (in_f,), jnp.float32))
    eps_out = f(jax.random.normal(k_eout, (out_f,), jnp.float32))
    w = w_mu + w_sigma * jnp.outer(eps_out, eps_in)
    b = b_mu + b_sigma * eps_out
    return w.T, b                                   # (in_f, out_f), (out_f,)


def _chw_rows_to_hwc(w):
    """Permute fc1 weight rows from torch's NCHW-flatten order to NHWC-flatten."""
    out_f = w.shape[1]
    return w.reshape(64, 7, 7, out_f).transpose(1, 2, 0, 3).reshape(FLAT, out_f)


def init_params(key, n_actions, std_init=0.5):
    ks = jax.random.split(key, 7)

    def conv_init(k, oc, ic, kh, kw):
        kw_, kb_ = jax.random.split(k)
        bound = 1.0 / math.sqrt(ic * kh * kw)          # torch Conv2d default init
        w = _uniform(kw_, (oc, ic, kh, kw), bound)     # OIHW
        b = _uniform(kb_, (oc,), bound)
        return w, b

    c1w, c1b = conv_init(ks[0], 32, 4, 8, 8)
    c2w, c2b = conv_init(ks[1], 64, 32, 4, 4)
    c3w, c3b = conv_init(ks[2], 64, 64, 3, 3)

    w1a, b1a = _noisy_linear_params(ks[3], FLAT, 512, std_init)
    w2a, b2a = _noisy_linear_params(ks[4], 512, n_actions, std_init)
    w1b, b1b = _noisy_linear_params(ks[5], FLAT, 512, std_init)
    w2b, b2b = _noisy_linear_params(ks[6], 512, 1, std_init)

    raw = dict(c1w=c1w, c1b=c1b, c2w=c2w, c2b=c2b, c3w=c3w, c3b=c3b,
               w1a=w1a, b1a=b1a, w2a=w2a, b2a=b2a,
               w1b=w1b, b1b=b1b, w2b=w2b, b2b=b2b)

    def to_matmul(w):
        # OIHW -> (ic*kh*kw, oc) with (c, kh, kw) row order; bf16 for the MXU.
        oc = w.shape[0]
        return w.reshape(oc, -1).T.astype(jnp.bfloat16)

    p = {}
    p["conv1_wm"], p["conv1_b"] = to_matmul(c1w), c1b
    p["conv2_wm"], p["conv2_b"] = to_matmul(c2w), c2b
    p["conv3_wm"], p["conv3_b"] = to_matmul(c3w), c3b

    # fc1_a | fc1_b fused; rows permuted CHW -> HWC to match the NHWC flatten.
    w1 = jnp.concatenate([_chw_rows_to_hwc(w1a), _chw_rows_to_hwc(w1b)], axis=1)
    p["fc1_w"] = w1.astype(jnp.bfloat16)               # (3136, 1024) bf16
    p["fc1_b"] = jnp.concatenate([b1a, b1b])           # (1024,) f32

    # fc2_a / fc2_b packed block-diagonally -> one (1024, A+1) matmul yielding
    # [advantages | value]. Off-diagonal blocks must stay exactly zero.
    w2 = jnp.zeros((HID, n_actions + 1), jnp.float32)
    w2 = w2.at[:512, :n_actions].set(w2a)
    w2 = w2.at[512:, n_actions:].set(w2b)
    p["fc2_w"] = w2                                    # (1024, A+1) f32 (tiny)
    p["fc2_b"] = jnp.concatenate([b2a, b2b])           # (A+1,) f32
    return p, raw


# ---------------------------------- forward --------------------------------- #

def dueling_dqn_forward(params, x, n_actions):
    """x: (B, 4, 84, 84) float32 NCHW -> Q-values (B, n_actions) float32."""
    B = x.shape[0]
    xb = x.astype(jnp.bfloat16)
    h = conv2d_relu(xb, params["conv1_wm"], params["conv1_b"],
                    kh=8, kw=8, stride=4, oc=32, nchw_in=True)   # (B,20,20,32)
    h = conv2d_relu(h, params["conv2_wm"], params["conv2_b"],
                    kh=4, kw=4, stride=2, oc=64)                 # (B, 9, 9,64)
    h = conv2d_relu(h, params["conv3_wm"], params["conv3_b"],
                    kh=3, kw=3, stride=1, oc=64)                 # (B, 7, 7,64)
    xv = h.reshape(B, FLAT)       # NHWC flatten (fc1 rows pre-permuted); free
    return fc_head(xv, params["fc1_w"], params["fc1_b"],
                   params["fc2_w"], params["fc2_b"], n_actions)


def reference_forward(raw, x, n_actions):
    """Pure-JAX f32 reference matching the PyTorch module exactly."""
    def conv(h, w, b, s):
        y = jax.lax.conv_general_dilated(
            h, w, (s, s), "VALID", dimension_numbers=("NCHW", "OIHW", "NCHW"))
        return jax.nn.relu(y + b[None, :, None, None])
    h = conv(x, raw["c1w"], raw["c1b"], 4)
    h = conv(h, raw["c2w"], raw["c2b"], 2)
    h = conv(h, raw["c3w"], raw["c3b"], 1)
    xv = h.reshape(h.shape[0], -1)                              # NCHW flatten
    asa = jax.nn.relu(xv @ raw["w1a"] + raw["b1a"]) @ raw["w2a"] + raw["b2a"]
    vs = jax.nn.relu(xv @ raw["w1b"] + raw["b1b"]) @ raw["w2b"] + raw["b2b"]
    return vs + asa - jnp.mean(asa, axis=1, keepdims=True)


# ------------------------------------ main ----------------------------------- #

if __name__ == "__main__":
    n_actions = 6
    batch = 2
    # 84x84 input is required by the architecture (3 convs -> 64*7*7 flatten).
    x = jax.random.normal(jax.random.PRNGKey(0), (batch, 4, 84, 84),
                          dtype=jnp.float32)
    params, raw = init_params(jax.random.PRNGKey(1), n_actions)

    fwd = jax.jit(functools.partial(dueling_dqn_forward, n_actions=n_actions))
    q = jax.block_until_ready(fwd(params, x))

    assert q.shape == (batch, n_actions) and q.dtype == jnp.float32
    assert bool(jnp.all(jnp.isfinite(q)))

    # Guard against a silent patch-order / weight-permutation bug: compare to a
    # pure-JAX f32 reference (loose bound covers bf16 drift in the Pallas path).
    q_ref = jax.block_until_ready(reference_forward(raw, x, n_actions))
    err = float(jnp.max(jnp.abs(q - q_ref)) / (jnp.max(jnp.abs(q_ref)) + 1e-6))
    assert err < 0.25

    print("KERNEL_OK")
</pallas_src>

<mosaic_0001>
module attributes {stable_mosaic.version = 11 : i64} {
  func.func @_conv_mm_kernel(%arg0: i32, %arg1: memref<1x400x256xbf16, #tpu.memory_space<vmem>>, %arg2: memref<256x32xbf16, #tpu.memory_space<vmem>>, %arg3: memref<1x32xf32, #tpu.memory_space<vmem>>, %arg4: memref<1x400x32xbf16, #tpu.memory_space<vmem>>) attributes {dimension_semantics = [#tpu.dimension_semantics<parallel>], iteration_bounds = array<i64: 2>, scalar_prefetch = 0 : i64, scratch_operands = 0 : i64, tpu.core_type = #tpu.core_type<tc>, window_params = [{transform_indices = @transform_0, window_bounds = array<i64: 1, 400, 256>}, {pipeline_mode = #tpu.pipeline_mode<synchronous>, transform_indices = @transform_1, window_bounds = array<i64: 256, 32>}, {pipeline_mode = #tpu.pipeline_mode<synchronous>, transform_indices = @transform_2, window_bounds = array<i64: 1, 32>}, {transform_indices = @transform_3, window_bounds = array<i64: 1, 400, 32>}]} {
    %c0 = arith.constant 0 : index
    %c0_0 = arith.constant 0 : index
    %c0_1 = arith.constant 0 : index
    %0 = vector.load %arg1[%c0, %c0_0, %c0_1] : memref<1x400x256xbf16, #tpu.memory_space<vmem>>, vector<1x400x256xbf16>
    %1 = vector.shape_cast %0 : vector<1x400x256xbf16> to vector<400x256xbf16>
    %c0_2 = arith.constant 0 : index
    %c0_3 = arith.constant 0 : index
    %2 = vector.load %arg2[%c0_2, %c0_3] : memref<256x32xbf16, #tpu.memory_space<vmem>>, vector<256x32xbf16>
    %cst = arith.constant dense<0.000000e+00> : vector<400x32xf32>
    %3 = tpu.matmul %1, %2, %cst {dimension_numbers = #tpu.dot_dimension_numbers<[1], [0], [0], [1], [0, 0, 1, 1], [], []>} : vector<400x256xbf16>, vector<256x32xbf16>, vector<400x32xf32> -> vector<400x32xf32>
    %c0_4 = arith.constant 0 : index
    %c0_5 = arith.constant 0 : index
    %4 = vector.load %arg3[%c0_4, %c0_5] : memref<1x32xf32, #tpu.memory_space<vmem>>, vector<1x32xf32>
    %5 = vector.broadcast %4 : vector<1x32xf32> to vector<400x32xf32>
    %6 = arith.addf %3, %5 : vector<400x32xf32>
    %cst_6 = arith.constant 0.000000e+00 : f32
    %7 = vector.broadcast %cst_6 : f32 to vector<400x32xf32>
    %8 = arith.maximumf %6, %7 : vector<400x32xf32>
    %9 = arith.truncf %8 : vector<400x32xf32> to vector<400x32xbf16>
    %c0_7 = arith.constant 0 : index
    %c0_8 = arith.constant 0 : index
    %c0_9 = arith.constant 0 : index
    %10 = vector.load %arg4[%c0_7, %c0_8, %c0_9] : memref<1x400x32xbf16, #tpu.memory_space<vmem>>, vector<1x400x32xbf16>
    %11 = vector.shape_cast %10 : vector<1x400x32xbf16> to vector<400x32xbf16>
    %12 = vector.shape_cast %9 : vector<400x32xbf16> to vector<1x400x32xbf16>
    tpu.vector_store %arg4[%c0_7, %c0_8, %c0_9], %12 {strides = array<i32>} : memref<1x400x32xbf16, #tpu.memory_space<vmem>>, vector<1x400x32xbf16>,
    return
  }
  func.func @transform_0(%arg0: i32) -> (i32, i32, i32) {
    %c0_i32 = arith.constant 0 : i32
    %c0_i32_0 = arith.constant 0 : i32
    %c0_i32_1 = arith.constant 0 : i32
    return %arg0, %c0_i32, %c0_i32_0 : i32, i32, i32
  }
  func.func @transform_1(%arg0: i32) -> (i32, i32) {
    %c0_i32 = arith.constant 0 : i32
    %c0_i32_0 = arith.constant 0 : i32
    %c0_i32_1 = arith.constant 0 : i32
    return %c0_i32, %c0_i32_0 : i32, i32
  }
  func.func @transform_2(%arg0: i32) -> (i32, i32) {
    %c0_i32 = arith.constant 0 : i32
    %c0_i32_0 = arith.constant 0 : i32
    %c0_i32_1 = arith.constant 0 : i32
    return %c0_i32, %c0_i32_0 : i32, i32
  }
  func.func @transform_3(%arg0: i32) -> (i32, i32, i32) {
    %c0_i32 = arith.constant 0 : i32
    %c0_i32_0 = arith.constant 0 : i32
    %c0_i32_1 = arith.constant 0 : i32
    return %arg0, %c0_i32, %c0_i32_0 : i32, i32, i32
  }
}

module attributes {stable_mosaic.version = 11 : i64} {
  func.func @_conv_mm_kernel(%arg0: i32, %arg1: memref<1x81x512xbf16, #tpu.memory_space<vmem>>, %arg2: memref<512x64xbf16, #tpu.memory_space<vmem>>, %arg3: memref<1x64xf32, #tpu.memory_space<vmem>>, %arg4: memref<1x81x64xbf16, #tpu.memory_space<vmem>>) attributes {dimension_semantics = [#tpu.dimension_semantics<parallel>], iteration_bounds = array<i64: 2>, scalar_prefetch = 0 : i64, scratch_operands = 0 : i64, tpu.core_type = #tpu.core_type<tc>, window_params = [{transform_indices = @transform_0, window_bounds = array<i64: 1, 81, 512>}, {pipeline_mode = #tpu.pipeline_mode<synchronous>, transform_indices = @transform_1, window_bounds = array<i64: 512, 64>}, {pipeline_mode = #tpu.pipeline_mode<synchronous>, transform_indices = @transform_2, window_bounds = array<i64: 1, 64>}, {transform_indices = @transform_3, window_bounds = array<i64: 1, 81, 64>}]} {
    %c0 = arith.constant 0 : index
    %c0_0 = arith.constant 0 : index
    %c0_1 = arith.constant 0 : index
    %0 = vector.load %arg1[%c0, %c0_0, %c0_1] : memref<1x81x512xbf16, #tpu.memory_space<vmem>>, vector<1x81x512xbf16>
    %1 = vector.shape_cast %0 : vector<1x81x512xbf16> to vector<81x512xbf16>
    %c0_2 = arith.constant 0 : index
    %c0_3 = arith.constant 0 : index
    %2 = vector.load %arg2[%c0_2, %c0_3] : memref<512x64xbf16, #tpu.memory_space<vmem>>, vector<512x64xbf16>
    %cst = arith.constant dense<0.000000e+00> : vector<81x64xf32>
    %3 = tpu.matmul %1, %2, %cst {dimension_numbers = #tpu.dot_dimension_numbers<[1], [0], [0], [1], [0, 0, 1, 1], [], []>} : vector<81x512xbf16>, vector<512x64xbf16>, vector<81x64xf32> -> vector<81x64xf32>
    %c0_4 = arith.constant 0 : index
    %c0_5 = arith.constant 0 : index
    %4 = vector.load %arg3[%c0_4, %c0_5] : memref<1x64xf32, #tpu.memory_space<vmem>>, vector<1x64xf32>
    %5 = vector.broadcast %4 : vector<1x64xf32> to vector<81x64xf32>
    %6 = arith.addf %3, %5 : vector<81x64xf32>
    %cst_6 = arith.constant 0.000000e+00 : f32
    %7 = vector.broadcast %cst_6 : f32 to vector<81x64xf32>
    %8 = arith.maximumf %6, %7 : vector<81x64xf32>
    %9 = arith.truncf %8 : vector<81x64xf32> to vector<81x64xbf16>
    %c0_7 = arith.constant 0 : index
    %c0_8 = arith.constant 0 : index
    %c0_9 = arith.constant 0 : index
    %10 = vector.load %arg4[%c0_7, %c0_8, %c0_9] : memref<1x81x64xbf16, #tpu.memory_space<vmem>>, vector<1x81x64xbf16>
    %11 = vector.shape_cast %10 : vector<1x81x64xbf16> to vector<81x64xbf16>
    %12 = vector.shape_cast %9 : vector<81x64xbf16> to vector<1x81x64xbf16>
    tpu.vector_store %arg4[%c0_7, %c0_8, %c0_9], %12 {strides = array<i32>} : memref<1x81x64xbf16, #tpu.memory_space<vmem>>, vector<1x81x64xbf16>,
    return
  }
  func.func @transform_0(%arg0: i32) -> (i32, i32, i32) {
    %c0_i32 = arith.constant 0 : i32
    %c0_i32_0 = arith.constant 0 : i32
    %c0_i32_1 = arith.constant 0 : i32
    return %arg0, %c0_i32, %c0_i32_0 : i32, i32, i32
  }
  func.func @transform_1(%arg0: i32) -> (i32, i32) {
    %c0_i32 = arith.constant 0 : i32
    %c0_i32_0 = arith.constant 0 : i32
    %c0_i32_1 = arith.constant 0 : i32
    return %c0_i32, %c0_i32_0 : i32, i32
  }
  func.func @transform_2(%arg0: i32) -> (i32, i32) {
    %c0_i32 = arith.constant 0 : i32
    %c0_i32_0 = arith.constant 0 : i32
    %c0_i32_1 = arith.constant 0 : i32
    return %c0_i32, %c0_i32_0 : i32, i32
  }
  func.func @transform_3(%arg0: i32) -> (i32, i32, i32) {
    %c0_i32 = arith.constant 0 : i32
    %c0_i32_0 = arith.constant 0 : i32
    %c0_i32_1 = arith.constant 0 : i32
    return %arg0, %c0_i32, %c0_i32_0 : i32, i32, i32
  }
}

module attributes {stable_mosaic.version = 11 : i64} {
  func.func @_conv_mm_kernel(%arg0: i32, %arg1: memref<1x49x576xbf16, #tpu.memory_space<vmem>>, %arg2: memref<576x64xbf16, #tpu.memory_space<vmem>>, %arg3: memref<1x64xf32, #tpu.memory_space<vmem>>, %arg4: memref<1x49x64xbf16, #tpu.memory_space<vmem>>) attributes {dimension_semantics = [#tpu.dimension_semantics<parallel>], iteration_bounds = array<i64: 2>, scalar_prefetch = 0 : i64, scratch_operands = 0 : i64, tpu.core_type = #tpu.core_type<tc>, window_params = [{transform_indices = @transform_0, window_bounds = array<i64: 1, 49, 576>}, {pipeline_mode = #tpu.pipeline_mode<synchronous>, transform_indices = @transform_1, window_bounds = array<i64: 576, 64>}, {pipeline_mode = #tpu.pipeline_mode<synchronous>, transform_indices = @transform_2, window_bounds = array<i64: 1, 64>}, {transform_indices = @transform_3, window_bounds = array<i64: 1, 49, 64>}]} {
    %c0 = arith.constant 0 : index
    %c0_0 = arith.constant 0 : index
    %c0_1 = arith.constant 0 : index
    %0 = vector.load %arg1[%c0, %c0_0, %c0_1] : memref<1x49x576xbf16, #tpu.memory_space<vmem>>, vector<1x49x576xbf16>
    %1 = vector.shape_cast %0 : vector<1x49x576xbf16> to vector<49x576xbf16>
    %c0_2 = arith.constant 0 : index
    %c0_3 = arith.constant 0 : index
    %2 = vector.load %arg2[%c0_2, %c0_3] : memref<576x64xbf16, #tpu.memory_space<vmem>>, vector<576x64xbf16>
    %cst = arith.constant dense<0.000000e+00> : vector<49x64xf32>
    %3 = tpu.matmul %1, %2, %cst {dimension_numbers = #tpu.dot_dimension_numbers<[1], [0], [0], [1], [0, 0, 1, 1], [], []>} : vector<49x576xbf16>, vector<576x64xbf16>, vector<49x64xf32> -> vector<49x64xf32>
    %c0_4 = arith.constant 0 : index
    %c0_5 = arith.constant 0 : index
    %4 = vector.load %arg3[%c0_4, %c0_5] : memref<1x64xf32, #tpu.memory_space<vmem>>, vector<1x64xf32>
    %5 = vector.broadcast %4 : vector<1x64xf32> to vector<49x64xf32>
    %6 = arith.addf %3, %5 : vector<49x64xf32>
    %cst_6 = arith.constant 0.000000e+00 : f32
    %7 = vector.broadcast %cst_6 : f32 to vector<49x64xf32>
    %8 = arith.maximumf %6, %7 : vector<49x64xf32>
    %9 = arith.truncf %8 : vector<49x64xf32> to vector<49x64xbf16>
    %c0_7 = arith.constant 0 : index
    %c0_8 = arith.constant 0 : index
    %c0_9 = arith.constant 0 : index
    %10 = vector.load %arg4[%c0_7, %c0_8, %c0_9] : memref<1x49x64xbf16, #tpu.memory_space<vmem>>, vector<1x49x64xbf16>
    %11 = vector.shape_cast %10 : vector<1x49x64xbf16> to vector<49x64xbf16>
    %12 = vector.shape_cast %9 : vector<49x64xbf16> to vector<1x49x64xbf16>
    tpu.vector_store %arg4[%c0_7, %c0_8, %c0_9], %12 {strides = array<i32>} : memref<1x49x64xbf16, #tpu.memory_space<vmem>>, vector<1x49x64xbf16>,
    return
  }
  func.func @transform_0(%arg0: i32) -> (i32, i32, i32) {
    %c0_i32 = arith.constant 0 : i32
    %c0_i32_0 = arith.constant 0 : i32
    %c0_i32_1 = arith.constant 0 : i32
    return %arg0, %c0_i32, %c0_i32_0 : i32, i32, i32
  }
  func.func @transform_1(%arg0: i32) -> (i32, i32) {
    %c0_i32 = arith.constant 0 : i32
    %c0_i32_0 = arith.constant 0 : i32
    %c0_i32_1 = arith.constant 0 : i32
    return %c0_i32, %c0_i32_0 : i32, i32
  }
  func.func @transform_2(%arg0: i32) -> (i32, i32) {
    %c0_i32 = arith.constant 0 : i32
    %c0_i32_0 = arith.constant 0 : i32
    %c0_i32_1 = arith.constant 0 : i32
    return %c0_i32, %c0_i32_0 : i32, i32
  }
  func.func @transform_3(%arg0: i32) -> (i32, i32, i32) {
    %c0_i32 = arith.constant 0 : i32
    %c0_i32_0 = arith.constant 0 : i32
    %c0_i32_1 = arith.constant 0 : i32
    return %arg0, %c0_i32, %c0_i32_0 : i32, i32, i32
  }
}

module attributes {stable_mosaic.version = 11 : i64} {
  func.func @_fc_head_kernel(%arg0: i32, %arg1: memref<2x3136xbf16, #tpu.memory_space<vmem>>, %arg2: memref<3136x1024xbf16, #tpu.memory_space<vmem>>, %arg3: memref<1x1024xf32, #tpu.memory_space<vmem>>, %arg4: memref<1024x7xf32, #tpu.memory_space<vmem>>, %arg5: memref<1x7xf32, #tpu.memory_space<vmem>>, %arg6: memref<2x6xf32, #tpu.memory_space<vmem>>) attributes {dimension_semantics = [#tpu.dimension_semantics<arbitrary>], iteration_bounds = array<i64: 1>, scalar_prefetch = 0 : i64, scratch_operands = 0 : i64, tpu.core_type = #tpu.core_type<tc>, window_params = [{pipeline_mode = #tpu.pipeline_mode<synchronous>, transform_indices = @transform_0, window_bounds = array<i64: 2, 3136>}, {pipeline_mode = #tpu.pipeline_mode<synchronous>, transform_indices = @transform_1, window_bounds = array<i64: 3136, 1024>}, {pipeline_mode = #tpu.pipeline_mode<synchronous>, transform_indices = @transform_2, window_bounds = array<i64: 1, 1024>}, {pipeline_mode = #tpu.pipeline_mode<synchronous>, transform_indices = @transform_3, window_bounds = array<i64: 1024, 7>}, {pipeline_mode = #tpu.pipeline_mode<synchronous>, transform_indices = @transform_4, window_bounds = array<i64: 1, 7>}, {pipeline_mode = #tpu.pipeline_mode<synchronous>, transform_indices = @transform_5, window_bounds = array<i64: 2, 6>}]} {
    %c0 = arith.constant 0 : index
    %c0_0 = arith.constant 0 : index
    %0 = vector.load %arg1[%c0, %c0_0] : memref<2x3136xbf16, #tpu.memory_space<vmem>>, vector<2x3136xbf16>
    %c0_1 = arith.constant 0 : index
    %c0_2 = arith.constant 0 : index
    %1 = vector.load %arg2[%c0_1, %c0_2] : memref<3136x1024xbf16, #tpu.memory_space<vmem>>, vector<3136x1024xbf16>
    %cst = arith.constant dense<0.000000e+00> : vector<2x1024xf32>
    %2 = tpu.matmul %0, %1, %cst {dimension_numbers = #tpu.dot_dimension_numbers<[1], [0], [0], [1], [0, 0, 1, 1], [], []>} : vector<2x3136xbf16>, vector<3136x1024xbf16>, vector<2x1024xf32> -> vector<2x1024xf32>
    %c0_3 = arith.constant 0 : index
    %c0_4 = arith.constant 0 : index
    %3 = vector.load %arg3[%c0_3, %c0_4] : memref<1x1024xf32, #tpu.memory_space<vmem>>, vector<1x1024xf32>
    %4 = vector.broadcast %3 : vector<1x1024xf32> to vector<2x1024xf32>
    %5 = arith.addf %2, %4 : vector<2x1024xf32>
    %cst_5 = arith.constant 0.000000e+00 : f32
    %6 = vector.broadcast %cst_5 : f32 to vector<2x1024xf32>
    %7 = arith.maximumf %5, %6 : vector<2x1024xf32>
    %c0_6 = arith.constant 0 : index
    %c0_7 = arith.constant 0 : index
    %8 = vector.load %arg4[%c0_6, %c0_7] : memref<1024x7xf32, #tpu.memory_space<vmem>>, vector<1024x7xf32>
    %cst_8 = arith.constant dense<0.000000e+00> : vector<2x7xf32>
    %9 = tpu.matmul %7, %8, %cst_8 {dimension_numbers = #tpu.dot_dimension_numbers<[1], [0], [0], [1], [0, 0, 1, 1], [], []>} : vector<2x1024xf32>, vector<1024x7xf32>, vector<2x7xf32> -> vector<2x7xf32>
    %c0_9 = arith.constant 0 : index
    %c0_10 = arith.constant 0 : index
    %10 = vector.load %arg5[%c0_9, %c0_10] : memref<1x7xf32, #tpu.memory_space<vmem>>, vector<1x7xf32>
    %11 = vector.broadcast %10 : vector<1x7xf32> to vector<2x7xf32>
    %12 = arith.addf %9, %11 : vector<2x7xf32>
    %13 = vector.extract_strided_slice %12 {offsets = [0, 0], sizes = [2, 6], strides = [1, 1]} : vector<2x7xf32> to vector<2x6xf32>
    %14 = vector.extract_strided_slice %12 {offsets = [0, 6], sizes = [2, 1], strides = [1, 1]} : vector<2x7xf32> to vector<2x1xf32>
    %15 = vector.broadcast %14 : vector<2x1xf32> to vector<2x6xf32>
    %16 = arith.addf %15, %13 : vector<2x6xf32>
    %cst_11 = arith.constant dense<0.000000e+00> : vector<2xf32>
    %17 = vector.multi_reduction <add>, %13, %cst_11 [1] : vector<2x6xf32> to vector<2xf32>
    %18 = vector.shape_cast %17 : vector<2xf32> to vector<2x1xf32>
    %cst_12 = arith.constant 6.000000e+00 : f32
    %19 = vector.broadcast %cst_12 : f32 to vector<2x1xf32>
    %20 = arith.divf %18, %19 : vector<2x1xf32>
    %21 = vector.broadcast %20 : vector<2x1xf32> to vector<2x6xf32>
    %22 = arith.subf %16, %21 : vector<2x6xf32>
    %c0_13 = arith.constant 0 : index
    %c0_14 = arith.constant 0 : index
    %23 = vector.load %arg6[%c0_13, %c0_14] : memref<2x6xf32, #tpu.memory_space<vmem>>, vector<2x6xf32>
    tpu.vector_store %arg6[%c0_13, %c0_14], %22 {strides = array<i32>} : memref<2x6xf32, #tpu.memory_space<vmem>>, vector<2x6xf32>,
    return
  }
  func.func @transform_0(%arg0: i32) -> (i32, i32) {
    %c0_i32 = arith.constant 0 : i32
    %c0_i32_0 = arith.constant 0 : i32
    %c0_i32_1 = arith.constant 0 : i32
    return %c0_i32, %c0_i32_0 : i32, i32
  }
  func.func @transform_1(%arg0: i32) -> (i32, i32) {
    %c0_i32 = arith.constant 0 : i32
    %c0_i32_0 = arith.constant 0 : i32
    %c0_i32_1 = arith.constant 0 : i32
    return %c0_i32, %c0_i32_0 : i32, i32
  }
  func.func @transform_2(%arg0: i32) -> (i32, i32) {
    %c0_i32 = arith.constant 0 : i32
    %c0_i32_0 = arith.constant 0 : i32
    %c0_i32_1 = arith.constant 0 : i32
    return %c0_i32, %c0_i32_0 : i32, i32
  }
  func.func @transform_3(%arg0: i32) -> (i32, i32) {
    %c0_i32 = arith.constant 0 : i32
    %c0_i32_0 = arith.constant 0 : i32
    %c0_i32_1 = arith.constant 0 : i32
    return %c0_i32, %c0_i32_0 : i32, i32
  }
  func.func @transform_4(%arg0: i32) -> (i32, i32) {
    %c0_i32 = arith.constant 0 : i32
    %c0_i32_0 = arith.constant 0 : i32
    %c0_i32_1 = arith.constant 0 : i32
    return %c0_i32, %c0_i32_0 : i32, i32
  }
  func.func @transform_5(%arg0: i32) -> (i32, i32) {
    %c0_i32 = arith.constant 0 : i32
    %c0_i32_0 = arith.constant 0 : i32
    %c0_i32_1 = arith.constant 0 : i32
    return %c0_i32, %c0_i32_0 : i32, i32
  }
}

</mosaic_0001>

<bundles_post_ra>
// kernel: dueling_dqn_forward.4
= control target key start
LH: loop header
LB: loop body
LE: loop exit
PB: predicated region body
PF: predicated region fallthrough
CT: control target
= control target key end

     0   :  { %s1535_s12 = smov 0   ;;  %s1845_s0 = inlined_call_operand.vmem [shape: bf16[2,400,256], index: 0, kind: input, shape index: {}]   ;;  %s1846_s1 = inlined_call_operand.vmem [shape: bf16[256,32], index: 1, kind: input, shape index: {}]   ;;  %s1847_s2 = inlined_call_operand.vmem [shape: f32[1,32], index: 2, kind: input, shape index: {}]   ;;  %s1848_s3 = inlined_call_operand.vmem [shape: bf16[2,400,32], index: 3, kind: output, shape index: {}]  }
   0x1 LB: > { %s1196_s13 = sadd.s32 4294967295, %s1512_s12   ;;  %p1200_p0 = scmp.ge.s32.totalorder %s1512_s12, 1  ;;  %s1512_s12 = sphi %s1535_s12, %s13_s12  }
   0x2   : > { %p137_p1 = scmp.lt.s32.totalorder %s1512_s12, 3 }
   0x4   : > { %p138_p2 = pnand %p1200_p0, %p137_p1 }
   0x5   : > { %p161_p3 = scmp.lt.s32.totalorder (!%p138_p2), %s1196_s13, 1 }
   0x6   : > { %141 = sbr.rel (%p138_p2) target bundleno = 376 (0x178), region = 32 }
   0xb   : > { %v1415_v0 = vld [vmem:[%s1846_s1 + $0x38] sm:$0xff]   ;;  %v1514_v1 = vmov 0   ;;  %v1416_v2 = vld [vmem:[%s1846_s1 + $0x30] sm:$0xff]   ;;  %v1417_v3 = vld [vmem:[%s1846_s1 + $0x28] sm:$0xff]   ;;  %s1850_s13 = smov (!%p161_p3, %s1196_s13), 1  ;;  %vm1090_vm0 = vcmask 257024  }
   0xc   : > { %607 = vmatprep.subr.bf16.mxu0 %v1514_v1  ;;  %1372 = vmatprep.subr.bf16.mxu1 %v1514_v1  ;;  %v1418_v4 = vld [vmem:[%s1846_s1 + $0x20] sm:$0xff]   ;;  %s1404_s22 = smul.u32 400, %s1850_s13  ;;  %v1419_v5 = vld [vmem:[%s1846_s1 + $0x18] sm:$0xff]   ;;  %v1420_v7 = vld [vmem:[%s1846_s1 + $0x10] sm:$0xff]  }
   0xd   : > { %608 = vmatpush1.bf16.msra.mxu0 %v1415_v0  ;;  %1388 = vmatpush1.bf16.msra.mxu1 %v1415_v0  ;;  %v1421_v9 = vld [vmem:[%s1846_s1 + $0x8] sm:$0xff]   ;;  %v1422_v10 = vld [vmem:[%s1846_s1] sm:$0xff]   ;;  %v1423_v11 = vld [vmem:[%s1846_s1 + $0x78] sm:$0xff]   ;;  %s1405_s28 = smul.u32 200, %s1850_s13 }
   0xe   : > { %609 = vmatprep.subr.bf16.mxu0 %v1514_v1  ;;  %1373 = vmatprep.subr.bf16.mxu1 %v1514_v1  ;;  %s1572_s27 = scalar_lea.vmem %s1845_s0, %s1404_s22  ;;  %v1424_v12 = vld [vmem:[%s1846_s1 + $0x70] sm:$0xff]   ;;  %v1425_v13 = vld [vmem:[%s1846_s1 + $0x68] sm:$0xff]   ;;  %v1426_v14 = vld [vmem:[%s1846_s1 + $0x60] sm:$0xff]  }
   0xf   : > { %v1433_v6 = vld [vmem:[%s1572_s27 + $0x4] ss:$8 sps:$4 sm:$0xff]   ;;  %v1436_v8 = vld [vmem:[%s1572_s27 + $0xd4] ss:$8 sps:$4 sm:$0xff]   ;;  %v1431_v19 = vld [vmem:[%s1572_s27] ss:$8 sps:$4 sm:$0xff]  }
  0x10   : > { %639 = vmatprep.mubr.bf16.mxu0 %v1433_v6  ;;  %743 = vmatprep.mubr.bf16.mxu1 %v1436_v8  ;;  %v1427_v15 = vld [vmem:[%s1846_s1 + $0x58] sm:$0xff]   ;;  %v1428_v16 = vld [vmem:[%s1846_s1 + $0x50] sm:$0xff]   ;;  %v1429_v17 = vld [vmem:[%s1846_s1 + $0x48] sm:$0xff]  }
  0x11   : > { %610 = vmatpush1.bf16.msra.mxu0 %v1416_v2  ;;  %1389 = vmatpush1.bf16.msra.mxu1 %v1416_v2  ;;  %v1430_v18 = vld [vmem:[%s1846_s1 + $0x40] sm:$0xff]   ;;  %v1434_v20 = vld [vmem:[%s1572_s27 + $0xd0] ss:$8 sps:$4 sm:$0xff]   ;;  %v1437_v21 = vld [vmem:[%s1572_s27 + $0x14] ss:$8 sps:$4 sm:$0xff]  }
  0x12   : > { %611 = vmatprep.subr.bf16.mxu0 %v1514_v1  ;;  %1374 = vmatprep.subr.bf16.mxu1 %v1514_v1  ;;  %v1440_v22 = vld [vmem:[%s1572_s27 + $0xe4] ss:$8 sps:$4 sm:$0xff]   ;;  %v1439_v23 = vld [vmem:[%s1572_s27 + $0x10] ss:$8 sps:$4 sm:$0xff]   ;;  %v1442_v24 = vld [vmem:[%s1572_s27 + $0xe0] ss:$8 sps:$4 sm:$0xff]  }
  0x13   : > { %v1443_v25 = vld [vmem:[%s1572_s27 + $0x24] ss:$8 sps:$4 sm:$0xff]   ;;  %v1446_v26 = vld [vmem:[%s1572_s27 + $0xf4] ss:$8 sps:$4 sm:$0xff]   ;;  %v1445_v27 = vld [vmem:[%s1572_s27 + $0x20] ss:$8 sps:$4 sm:$0xff]  }
  0x14   : > { %v1448_v28 = vld [vmem:[%s1572_s27 + $0xf0] ss:$8 sps:$4 sm:$0xff]   ;;  %v1449_v29 = vld [vmem:[%s1572_s27 + $0x34] ss:$8 sps:$4 sm:$0xff]   ;;  %v1452_v30 = vld [vmem:[%s1572_s27 + $0x104] ss:$8 sps:$4 sm:$0xff]  }
  0x15   : > { %612 = vmatpush1.bf16.msra.mxu0 %v1417_v3  ;;  %1390 = vmatpush1.bf16.msra.mxu1 %v1417_v3  ;;  %v1451_v31 = vld [vmem:[%s1572_s27 + $0x30] ss:$8 sps:$4 sm:$0xff]   ;;  %v1454_v32 = vld [vmem:[%s1572_s27 + $0x100] ss:$8 sps:$4 sm:$0xff]   ;;  %v1455_v33 = vld [vmem:[%s1572_s27 + $0x44] ss:$8 sps:$4 sm:$0xff]  }
  0x16   : > { %613 = vmatprep.subr.bf16.mxu0 %v1514_v1  ;;  %1375 = vmatprep.subr.bf16.mxu1 %v1514_v1  ;;  %v1458_v34 = vld [vmem:[%s1572_s27 + $0x114] ss:$8 sps:$4 sm:$0xff]   ;;  %v1457_v35 = vld [vmem:[%s1572_s27 + $0x40] ss:$8 sps:$4 sm:$0xff]   ;;  %v1460_v36 = vld [vmem:[%s1572_s27 + $0x110] ss:$8 sps:$4 sm:$0xff]  }
  0x17   : > { %v1461_v37 = vld [vmem:[%s1572_s27 + $0x54] ss:$8 sps:$4 sm:$0xff]   ;;  %v1464_v38 = vld [vmem:[%s1572_s27 + $0x124] ss:$8 sps:$4 sm:$0xff]   ;;  %v1463_v39 = vld [vmem:[%s1572_s27 + $0x50] ss:$8 sps:$4 sm:$0xff]  }
  0x18   : > { %v1466_v40 = vld [vmem:[%s1572_s27 + $0x120] ss:$8 sps:$4 sm:$0xff]   ;;  %v1467_v41 = vld [vmem:[%s1572_s27 + $0x64] ss:$8 sps:$4 sm:$0xff]   ;;  %v1470_v42 = vld [vmem:[%s1572_s27 + $0x134] ss:$8 sps:$4 sm:$0xff]  }
  0x19   : > { %614 = vmatpush1.bf16.msra.mxu0 %v1418_v4  ;;  %1391 = vmatpush1.bf16.msra.mxu1 %v1418_v4  ;;  %v1469_v43 = vld [vmem:[%s1572_s27 + $0x60] ss:$8 sps:$4 sm:$0xff]   ;;  %v1472_v44 = vld [vmem:[%s1572_s27 + $0x130] ss:$8 sps:$4 sm:$0xff]   ;;  %v1473_v45 = vld [vmem:[%s1572_s27 + $0x74] ss:$8 sps:$4 sm:$0xff]  }
  0x1a   : > { %615 = vmatprep.subr.bf16.mxu0 %v1514_v1  ;;  %1376 = vmatprep.subr.bf16.mxu1 %v1514_v1  ;;  %v1476_v46 = vld [vmem:[%s1572_s27 + $0x144] ss:$8 sps:$4 sm:$0xff]   ;;  %v1475_v47 = vld [vmem:[%s1572_s27 + $0x70] ss:$8 sps:$4 sm:$0xff]   ;;  %v1478_v48 = vld [vmem:[%s1572_s27 + $0x140] ss:$8 sps:$4 sm:$0xff]  }
  0x1b   : > { %v1479_v49 = vld [vmem:[%s1572_s27 + $0x84] ss:$8 sps:$4 sm:$0xff]   ;;  %v1482_v50 = vld [vmem:[%s1572_s27 + $0x154] ss:$8 sps:$4 sm:$0xff]   ;;  %v1481_v51 = vld [vmem:[%s1572_s27 + $0x80] ss:$8 sps:$4 sm:$0xff]  }
  0x1c   : > { %v1484_v52 = vld [vmem:[%s1572_s27 + $0x150] ss:$8 sps:$4 sm:$0xff]   ;;  %v1485_v53 = vld [vmem:[%s1572_s27 + $0x94] ss:$8 sps:$4 sm:$0xff]   ;;  %v1488_v54 = vld [vmem:[%s1572_s27 + $0x164] ss:$8 sps:$4 sm:$0xff]  }
  0x1d   : > { %616 = vmatpush1.bf16.msra.mxu0 %v1419_v5  ;;  %1392 = vmatpush1.bf16.msra.mxu1 %v1419_v5  ;;  %v1487_v55 = vld [vmem:[%s1572_s27 + $0x90] ss:$8 sps:$4 sm:$0xff]   ;;  %v1490_v56 = vld [vmem:[%s1572_s27 + $0x160] ss:$8 sps:$4 sm:$0xff]   ;;  %v1491_v57 = vld [vmem:[%s1572_s27 + $0xa4] ss:$8 sps:$4 sm:$0xff]  }
  0x1e   : > { %617 = vmatprep.subr.bf16.mxu0 %v1514_v1  ;;  %1377 = vmatprep.subr.bf16.mxu1 %v1514_v1  ;;  %v1494_v58 = vld [vmem:[%s1572_s27 + $0x174] ss:$8 sps:$4 sm:$0xff]   ;;  %v1493_v59 = vld [vmem:[%s1572_s27 + $0xa0] ss:$8 sps:$4 sm:$0xff]   ;;  %v1496_v60 = vld [vmem:[%s1572_s27 + $0x170] ss:$8 sps:$4 sm:$0xff]  }
  0x1f   : > { %v1497_v61 = vld [vmem:[%s1572_s27 + $0xb4] ss:$8 sps:$4 sm:$0xff]   ;;  %v1500_v62 = vld [vmem:[%s1572_s27 + $0x184] ss:$8 sps:$4 sm:$0xff]   ;;  %v1499_v63 = vld [vmem:[%s1572_s27 + $0xb0] ss:$8 sps:$4 sm:$0xff]  }
  0x20   : > { %v1502_v0 = vld [vmem:[%s1572_s27 + $0x180] ss:$8 sps:$4 sm:$0xff]  }
  0x21   : > { %618 = vmatpush1.bf16.msra.mxu0 %v1420_v7  ;;  %1393 = vmatpush1.bf16.msra.mxu1 %v1420_v7  ;;  %v1505_v2 = vld [vmem:[%s1572_s27 + $0xc0] ss:$8 sps:$4 sm:$0xff]  }
  0x22   : > { %619 = vmatprep.subr.bf16.mxu0 %v1514_v1  ;;  %1378 = vmatprep.subr.bf16.mxu1 %v1514_v1  ;;  %v1684_v3 = vld [vmem:[%s1847_s2] ss:$0 sm:$0xff] }
  0x25   : > { %620 = vmatpush1.bf16.msra.mxu0 %v1421_v9  ;;  %1394 = vmatpush1.bf16.msra.mxu1 %v1421_v9 }
  0x26   : > { %621 = vmatprep.subr.bf16.mxu0 %v1514_v1  ;;  %1379 = vmatprep.subr.bf16.mxu1 %v1514_v1 }
  0x29   : > { %622 = vmatpush1.bf16.msra.mxu0 %v1422_v10  ;;  %1395 = vmatpush1.bf16.msra.mxu1 %v1422_v10 }
  0x2a   : > { %623 = vmatprep.subr.bf16.mxu0 %v1514_v1  ;;  %1380 = vmatprep.subr.bf16.mxu1 %v1514_v1 }
  0x2d   : > { %624 = vmatpush2.bf16.msra.mxu0 %v1423_v11  ;;  %1396 = vmatpush2.bf16.msra.mxu1 %v1423_v11 }
  0x2e   : > { %625 = vmatprep.subr.bf16.mxu0 %v1514_v1  ;;  %1381 = vmatprep.subr.bf16.mxu1 %v1514_v1 }
  0x31   : > { %626 = vmatpush2.bf16.msra.mxu0 %v1424_v12  ;;  %1397 = vmatpush2.bf16.msra.mxu1 %v1424_v12 }
  0x32   : > { %627 = vmatprep.subr.bf16.mxu0 %v1514_v1  ;;  %1382 = vmatprep.subr.bf16.mxu1 %v1514_v1 }
  0x35   : > { %628 = vmatpush2.bf16.msra.mxu0 %v1425_v13  ;;  %1398 = vmatpush2.bf16.msra.mxu1 %v1425_v13 }
  0x36   : > { %629 = vmatprep.subr.bf16.mxu0 %v1514_v1  ;;  %1383 = vmatprep.subr.bf16.mxu1 %v1514_v1 }
  0x39   : > { %630 = vmatpush2.bf16.msra.mxu0 %v1426_v14  ;;  %1399 = vmatpush2.bf16.msra.mxu1 %v1426_v14 }
  0x3a   : > { %631 = vmatprep.subr.bf16.mxu0 %v1514_v1  ;;  %1384 = vmatprep.subr.bf16.mxu1 %v1514_v1 }
  0x3d   : > { %632 = vmatpush2.bf16.msra.mxu0 %v1427_v15  ;;  %1400 = vmatpush2.bf16.msra.mxu1 %v1427_v15 }
  0x3e   : > { %633 = vmatprep.subr.bf16.mxu0 %v1514_v1  ;;  %1385 = vmatprep.subr.bf16.mxu1 %v1514_v1 }
  0x41   : > { %634 = vmatpush2.bf16.msra.mxu0 %v1428_v16  ;;  %1401 = vmatpush2.bf16.msra.mxu1 %v1428_v16 }
  0x42   : > { %635 = vmatprep.subr.bf16.mxu0 %v1514_v1  ;;  %1386 = vmatprep.subr.bf16.mxu1 %v1514_v1 }
  0x45   : > { %636 = vmatpush2.bf16.msra.mxu0 %v1429_v17  ;;  %1402 = vmatpush2.bf16.msra.mxu1 %v1429_v17 }
  0x46   : > { %637 = vmatprep.subr.bf16.mxu0 %v1514_v1  ;;  %1387 = vmatprep.subr.bf16.mxu1 %v1514_v1  ;;  %v1503_v1 = vld [vmem:[%s1572_s27 + $0xc4] ss:$8 sps:$4 sm:$0xff]   ;;  %s1692_s27 = scalar_lea.vmem %s1848_s3, %s1405_s28 }
  0x49   : > { %638 = vmatpush2.bf16.msra.mxu0 %v1430_v18  ;;  %1403 = vmatpush2.bf16.msra.mxu1 %v1430_v18 }
  0x4c   : > { %640 = vmatmul.mubr.bf16.vlgmr.msra.gmra.mxu0 %v1431_v19  ;;  %744 = vmatmul.mubr.bf16.vlgmr.msra.gmra.mxu1 %v1434_v20 }
  0x4d   : > { %647 = vmatprep.mubr.bf16.mxu0 %v1437_v21  ;;  %751 = vmatprep.mubr.bf16.mxu1 %v1440_v22 }
  0x54   : > { %648 = vmatmul.mubr.bf16.gmra.mxu0 %v1439_v23  ;;  %752 = vmatmul.mubr.bf16.gmra.mxu1 %v1442_v24 }
  0x55   : > { %655 = vmatprep.mubr.bf16.mxu0 %v1443_v25  ;;  %759 = vmatprep.mubr.bf16.mxu1 %v1446_v26 }
  0x5c   : > { %656 = vmatmul.mubr.bf16.gmra.mxu0 %v1445_v27  ;;  %760 = vmatmul.mubr.bf16.gmra.mxu1 %v1448_v28 }
  0x5d   : > { %663 = vmatprep.mubr.bf16.mxu0 %v1449_v29  ;;  %767 = vmatprep.mubr.bf16.mxu1 %v1452_v30 }
  0x64   : > { %664 = vmatmul.mubr.bf16.gmra.mxu0 %v1451_v31  ;;  %768 = vmatmul.mubr.bf16.gmra.mxu1 %v1454_v32 }
  0x65   : > { %671 = vmatprep.mubr.bf16.mxu0 %v1455_v33  ;;  %775 = vmatprep.mubr.bf16.mxu1 %v1458_v34 }
  0x6c   : > { %672 = vmatmul.mubr.bf16.gmra.mxu0 %v1457_v35  ;;  %776 = vmatmul.mubr.bf16.gmra.mxu1 %v1460_v36 }
  0x6d   : > { %679 = vmatprep.mubr.bf16.mxu0 %v1461_v37  ;;  %783 = vmatprep.mubr.bf16.mxu1 %v1464_v38 }
  0x74   : > { %680 = vmatmul.mubr.bf16.gmra.mxu0 %v1463_v39  ;;  %784 = vmatmul.mubr.bf16.gmra.mxu1 %v1466_v40 }
  0x75   : > { %687 = vmatprep.mubr.bf16.mxu0 %v1467_v41  ;;  %791 = vmatprep.mubr.bf16.mxu1 %v1470_v42 }
  0x7c   : > { %688 = vmatmul.mubr.bf16.gmra.mxu0 %v1469_v43  ;;  %792 = vmatmul.mubr.bf16.gmra.mxu1 %v1472_v44 }
  0x7d   : > { %695 = vmatprep.mubr.bf16.mxu0 %v1473_v45  ;;  %799 = vmatprep.mubr.bf16.mxu1 %v1476_v46 }
  0x84   : > { %696 = vmatmul.mubr.bf16.gmra.mxu0 %v1475_v47  ;;  %800 = vmatmul.mubr.bf16.gmra.mxu1 %v1478_v48 }
  0x85   : > { %703 = vmatprep.mubr.bf16.mxu0 %v1479_v49  ;;  %807 = vmatprep.mubr.bf16.mxu1 %v1482_v50 }
  0x8c   : > { %704 = vmatmul.mubr.bf16.gmra.mxu0 %v1481_v51  ;;  %808 = vmatmul.mubr.bf16.gmra.mxu1 %v1484_v52 }
  0x8d   : > { %711 = vmatprep.mubr.bf16.mxu0 %v1485_v53  ;;  %815 = vmatprep.mubr.bf16.mxu1 %v1488_v54 }
  0x94   : > { %712 = vmatmul.mubr.bf16.gmra.mxu0 %v1487_v55  ;;  %816 = vmatmul.mubr.bf16.gmra.mxu1 %v1490_v56 }
  0x95   : > { %719 = vmatprep.mubr.bf16.mxu0 %v1491_v57  ;;  %823 = vmatprep.mubr.bf16.mxu1 %v1494_v58 }
  0x9c   : > { %720 = vmatmul.mubr.bf16.gmra.mxu0 %v1493_v59  ;;  %824 = vmatmul.mubr.bf16.gmra.mxu1 %v1496_v60 }
  0x9d   : > { %727 = vmatprep.mubr.bf16.mxu0 %v1497_v61  ;;  %831 = vmatprep.mubr.bf16.mxu1 %v1500_v62 }
  0xa4   : > { %728 = vmatmul.mubr.bf16.gmra.mxu0 %v1499_v63  ;;  %832 = vmatmul.mubr.bf16.gmra.mxu1 %v1502_v0 }
  0xa5   : > { %735 = vmatprep.mubr.bf16.mxu0 %v1503_v1 }
  0xac   : > { %736 = vmatmul.mubr.bf16.gmra.mxu0 %v1505_v2 }
 0x10c   : > { %v641_v4 = vpop.f32.mrf.mxu0  ;;  %v745_v5 = vpop.f32.mrf.mxu1 }
 0x10d   : > { %v642_v6 = vadd.f32 %v1684_v3, %v641_v4  ;;  %v746_v7 = vadd.f32 %v1684_v3, %v745_v5 }
 0x10e   : > { %v643_v8 = vpop.f32.mrf.mxu0  ;;  %v747_v9 = vpop.f32.mrf.mxu1 }
 0x10f   : > { %v840_v10 = vmax.f32 %v642_v6, 0.0  ;;  %v866_v11 = vmax.f32 %v746_v7, 0.0 }
 0x110   : > { %v644_v12 = vpop.f32.mrf.mxu0  ;;  %v748_v13 = vpop.f32.mrf.mxu1 }
 0x111   : > { %v1322_v14 = vpack.c.bf16 %v840_v10, %v840_v10  ;;  %v1348_v15 = vpack.c.bf16 %v866_v11, %v866_v11  ;;  %v645_v16 = vadd.f32 %v1684_v3, %v644_v12  ;;  %v749_v17 = vadd.f32 %v1684_v3, %v748_v13 }
 0x112   : > { %v646_v18 = vpop.f32.mrf.mxu0  ;;  %v750_v19 = vpop.f32.mrf.mxu1 }
 0x113   : > { %1091 = vst.msk [vmem:[%s1692_s27] sm:$0xf] %vm1090_vm0, %v1322_v14  ;;  %1117 = vst.msk [vmem:[%s1692_s27 + $0x68] sm:$0xf] %vm1090_vm0, %v1348_v15  ;;  %v841_v20 = vmax.f32 %v645_v16, 0.0  ;;  %v867_v21 = vmax.f32 %v749_v17, 0.0 }
 0x114   : > { %v649_v22 = vpop.f32.mrf.mxu0  ;;  %v753_v23 = vpop.f32.mrf.mxu1 }
 0x115   : > { %v1323_v24 = vpack.c.bf16 %v841_v20, %v841_v20  ;;  %v1349_v25 = vpack.c.bf16 %v867_v21, %v867_v21  ;;  %v650_v26 = vadd.f32 %v1684_v3, %v649_v22  ;;  %v754_v27 = vadd.f32 %v1684_v3, %v753_v23 }
 0x116   : > { %v651_v28 = vpop.f32.mrf.mxu0  ;;  %v755_v29 = vpop.f32.mrf.mxu1 }
 0x117   : > { %1092 = vst.msk [vmem:[%s1692_s27 + $0x4] sm:$0xf] %vm1090_vm0, %v1323_v24  ;;  %1118 = vst.msk [vmem:[%s1692_s27 + $0x6c] sm:$0xf] %vm1090_vm0, %v1349_v25  ;;  %v842_v30 = vmax.f32 %v650_v26, 0.0  ;;  %v868_v31 = vmax.f32 %v754_v27, 0.0 }
 0x118   : > { %v652_v32 = vpop.f32.mrf.mxu0  ;;  %v756_v33 = vpop.f32.mrf.mxu1 }
 0x119   : > { %v1324_v34 = vpack.c.bf16 %v842_v30, %v842_v30  ;;  %v1350_v35 = vpack.c.bf16 %v868_v31, %v868_v31  ;;  %v653_v36 = vadd.f32 %v1684_v3, %v652_v32  ;;  %v757_v37 = vadd.f32 %v1684_v3, %v756_v33 }
 0x11a   : > { %v654_v38 = vpop.f32.mrf.mxu0  ;;  %v758_v39 = vpop.f32.mrf.mxu1 }
 0x11b   : > { %1093 = vst.msk [vmem:[%s1692_s27 + $0x8] sm:$0xf] %vm1090_vm0, %v1324_v34  ;;  %1119 = vst.msk [vmem:[%s1692_s27 + $0x70] sm:$0xf] %vm1090_vm0, %v1350_v35  ;;  %v843_v40 = vmax.f32 %v653_v36, 0.0  ;;  %v869_v41 = vmax.f32 %v757_v37, 0.0 }
 0x11c   : > { %v657_v42 = vpop.f32.mrf.mxu0  ;;  %v761_v43 = vpop.f32.mrf.mxu1 }
 0x11d   : > { %v1325_v44 = vpack.c.bf16 %v843_v40, %v843_v40  ;;  %v1351_v45 = vpack.c.bf16 %v869_v41, %v869_v41  ;;  %v658_v46 = vadd.f32 %v1684_v3, %v657_v42  ;;  %v762_v47 = vadd.f32 %v1684_v3, %v761_v43 }
 0x11e   : > { %v659_v48 = vpop.f32.mrf.mxu0  ;;  %v763_v49 = vpop.f32.mrf.mxu1 }
 0x11f   : > { %1094 = vst.msk [vmem:[%s1692_s27 + $0xc] sm:$0xf] %vm1090_vm0, %v1325_v44  ;;  %1120 = vst.msk [vmem:[%s1692_s27 + $0x74] sm:$0xf] %vm1090_vm0, %v1351_v45  ;;  %v844_v50 = vmax.f32 %v658_v46, 0.0  ;;  %v870_v51 = vmax.f32 %v762_v47, 0.0 }
 0x120   : > { %v660_v52 = vpop.f32.mrf.mxu0  ;;  %v764_v53 = vpop.f32.mrf.mxu1 }
 0x121   : > { %v1326_v54 = vpack.c.bf16 %v844_v50, %v844_v50  ;;  %v1352_v55 = vpack.c.bf16 %v870_v51, %v870_v51  ;;  %v661_v56 = vadd.f32 %v1684_v3, %v660_v52  ;;  %v765_v57 = vadd.f32 %v1684_v3, %v764_v53 }
 0x122   : > { %v662_v58 = vpop.f32.mrf.mxu0  ;;  %v766_v59 = vpop.f32.mrf.mxu1 }
 0x123   : > { %1095 = vst.msk [vmem:[%s1692_s27 + $0x10] sm:$0xf] %vm1090_vm0, %v1326_v54  ;;  %1121 = vst.msk [vmem:[%s1692_s27 + $0x78] sm:$0xf] %vm1090_vm0, %v1352_v55  ;;  %v845_v60 = vmax.f32 %v661_v56, 0.0  ;;  %v871_v61 = vmax.f32 %v765_v57, 0.0 }
 0x124   : > { %v665_v62 = vpop.f32.mrf.mxu0  ;;  %v769_v63 = vpop.f32.mrf.mxu1 }
 0x125   : > { %v1327_v0 = vpack.c.bf16 %v845_v60, %v845_v60  ;;  %v1353_v1 = vpack.c.bf16 %v871_v61, %v871_v61  ;;  %v666_v2 = vadd.f32 %v1684_v3, %v665_v62  ;;  %v770_v4 = vadd.f32 %v1684_v3, %v769_v63 }
 0x126   : > { %v667_v5 = vpop.f32.mrf.mxu0  ;;  %v771_v6 = vpop.f32.mrf.mxu1 }
 0x127   : > { %1096 = vst.msk [vmem:[%s1692_s27 + $0x14] sm:$0xf] %vm1090_vm0, %v1327_v0  ;;  %1122 = vst.msk [vmem:[%s1692_s27 + $0x7c] sm:$0xf] %vm1090_vm0, %v1353_v1  ;;  %v846_v7 = vmax.f32 %v666_v2, 0.0  ;;  %v872_v8 = vmax.f32 %v770_v4, 0.0 }
 0x128   : > { %v668_v9 = vpop.f32.mrf.mxu0  ;;  %v772_v10 = vpop.f32.mrf.mxu1 }
 0x129   : > { %v1328_v11 = vpack.c.bf16 %v846_v7, %v846_v7  ;;  %v1354_v12 = vpack.c.bf16 %v872_v8, %v872_v8  ;;  %v669_v13 = vadd.f32 %v1684_v3, %v668_v9  ;;  %v773_v14 = vadd.f32 %v1684_v3, %v772_v10 }
 0x12a   : > { %v670_v15 = vpop.f32.mrf.mxu0  ;;  %v774_v16 = vpop.f32.mrf.mxu1 }
 0x12b   : > { %1097 = vst.msk [vmem:[%s1692_s27 + $0x18] sm:$0xf] %vm1090_vm0, %v1328_v11  ;;  %1123 = vst.msk [vmem:[%s1692_s27 + $0x80] sm:$0xf] %vm1090_vm0, %v1354_v12  ;;  %v847_v17 = vmax.f32 %v669_v13, 0.0  ;;  %v873_v18 = vmax.f32 %v773_v14, 0.0 }
 0x12c   : > { %v673_v19 = vpop.f32.mrf.mxu0  ;;  %v777_v20 = vpop.f32.mrf.mxu1 }
 0x12d   : > { %v1329_v21 = vpack.c.bf16 %v847_v17, %v847_v17  ;;  %v1355_v22 = vpack.c.bf16 %v873_v18, %v873_v18  ;;  %v674_v23 = vadd.f32 %v1684_v3, %v673_v19  ;;  %v778_v24 = vadd.f32 %v1684_v3, %v777_v20 }
 0x12e   : > { %v675_v25 = vpop.f32.mrf.mxu0  ;;  %v779_v26 = vpop.f32.mrf.mxu1 }
 0x12f   : > { %1098 = vst.msk [vmem:[%s1692_s27 + $0x1c] sm:$0xf] %vm1090_vm0, %v1329_v21  ;;  %1124 = vst.msk [vmem:[%s1692_s27 + $0x84] sm:$0xf] %vm1090_vm0, %v1355_v22  ;;  %v848_v27 = vmax.f32 %v674_v23, 0.0  ;;  %v874_v28 = vmax.f32 %v778_v24, 0.0 }
 0x130   : > { %v676_v29 = vpop.f32.mrf.mxu0  ;;  %v780_v30 = vpop.f32.mrf.mxu1 }
 0x131   : > { %v1330_v31 = vpack.c.bf16 %v848_v27, %v848_v27  ;;  %v1356_v32 = vpack.c.bf16 %v874_v28, %v874_v28  ;;  %v677_v33 = vadd.f32 %v1684_v3, %v676_v29  ;;  %v781_v34 = vadd.f32 %v1684_v3, %v780_v30 }
 0x132   : > { %v678_v35 = vpop.f32.mrf.mxu0  ;;  %v782_v36 = vpop.f32.mrf.mxu1 }
 0x133   : > { %1099 = vst.msk [vmem:[%s1692_s27 + $0x20] sm:$0xf] %vm1090_vm0, %v1330_v31  ;;  %1125 = vst.msk [vmem:[%s1692_s27 + $0x88] sm:$0xf] %vm1090_vm0, %v1356_v32  ;;  %v849_v37 = vmax.f32 %v677_v33, 0.0  ;;  %v875_v38 = vmax.f32 %v781_v34, 0.0 }
 0x134   : > { %v681_v39 = vpop.f32.mrf.mxu0  ;;  %v785_v40 = vpop.f32.mrf.mxu1 }
 0x135   : > { %v1331_v41 = vpack.c.bf16 %v849_v37, %v849_v37  ;;  %v1357_v42 = vpack.c.bf16 %v875_v38, %v875_v38  ;;  %v682_v43 = vadd.f32 %v1684_v3, %v681_v39  ;;  %v786_v44 = vadd.f32 %v1684_v3, %v785_v40 }
 0x136   : > { %v683_v45 = vpop.f32.mrf.mxu0  ;;  %v787_v46 = vpop.f32.mrf.mxu1 }
 0x137   : > { %1100 = vst.msk [vmem:[%s1692_s27 + $0x24] sm:$0xf] %vm1090_vm0, %v1331_v41  ;;  %1126 = vst.msk [vmem:[%s1692_s27 + $0x8c] sm:$0xf] %vm1090_vm0, %v1357_v42  ;;  %v850_v47 = vmax.f32 %v682_v43, 0.0  ;;  %v876_v48 = vmax.f32 %v786_v44, 0.0 }
 0x138   : > { %v684_v49 = vpop.f32.mrf.mxu0  ;;  %v788_v50 = vpop.f32.mrf.mxu1 }
 0x139   : > { %v1332_v51 = vpack.c.bf16 %v850_v47, %v850_v47  ;;  %v1358_v52 = vpack.c.bf16 %v876_v48, %v876_v48  ;;  %v685_v53 = vadd.f32 %v1684_v3, %v684_v49  ;;  %v789_v54 = vadd.f32 %v1684_v3, %v788_v50 }
 0x13a   : > { %v686_v55 = vpop.f32.mrf.mxu0  ;;  %v790_v56 = vpop.f32.mrf.mxu1 }
 0x13b   : > { %1101 = vst.msk [vmem:[%s1692_s27 + $0x28] sm:$0xf] %vm1090_vm0, %v1332_v51  ;;  %1127 = vst.msk [vmem:[%s1692_s27 + $0x90] sm:$0xf] %vm1090_vm0, %v1358_v52  ;;  %v851_v57 = vmax.f32 %v685_v53, 0.0  ;;  %v877_v58 = vmax.f32 %v789_v54, 0.0 }
 0x13c   : > { %v689_v59 = vpop.f32.mrf.mxu0  ;;  %v793_v60 = vpop.f32.mrf.mxu1 }
 0x13d   : > { %v1333_v61 = vpack.c.bf16 %v851_v57, %v851_v57  ;;  %v1359_v62 = vpack.c.bf16 %v877_v58, %v877_v58  ;;  %v690_v63 = vadd.f32 %v1684_v3, %v689_v59  ;;  %v794_v0 = vadd.f32 %v1684_v3, %v793_v60 }
 0x13e   : > { %v691_v1 = vpop.f32.mrf.mxu0  ;;  %v795_v2 = vpop.f32.mrf.mxu1 }
 0x13f   : > { %1102 = vst.msk [vmem:[%s1692_s27 + $0x2c] sm:$0xf] %vm1090_vm0, %v1333_v61  ;;  %1128 = vst.msk [vmem:[%s1692_s27 + $0x94] sm:$0xf] %vm1090_vm0, %v1359_v62  ;;  %v852_v4 = vmax.f32 %v690_v63, 0.0  ;;  %v878_v5 = vmax.f32 %v794_v0, 0.0 }
 0x140   : > { %v692_v6 = vpop.f32.mrf.mxu0  ;;  %v796_v7 = vpop.f32.mrf.mxu1 }
 0x141   : > { %v1334_v8 = vpack.c.bf16 %v852_v4, %v852_v4  ;;  %v1360_v9 = vpack.c.bf16 %v878_v5, %v878_v5  ;;  %v693_v10 = vadd.f32 %v1684_v3, %v692_v6  ;;  %v797_v11 = vadd.f32 %v1684_v3, %v796_v7 }
 0x142   : > { %v694_v12 = vpop.f32.mrf.mxu0  ;;  %v798_v13 = vpop.f32.mrf.mxu1 }
 0x143   : > { %1103 = vst.msk [vmem:[%s1692_s27 + $0x30] sm:$0xf] %vm1090_vm0, %v1334_v8  ;;  %1129 = vst.msk [vmem:[%s1692_s27 + $0x98] sm:$0xf] %vm1090_vm0, %v1360_v9  ;;  %v853_v14 = vmax.f32 %v693_v10, 0.0  ;;  %v879_v15 = vmax.f32 %v797_v11, 0.0 }
 0x144   : > { %v697_v16 = vpop.f32.mrf.mxu0  ;;  %v801_v17 = vpop.f32.mrf.mxu1 }
 0x145   : > { %v1335_v18 = vpack.c.bf16 %v853_v14, %v853_v14  ;;  %v1361_v19 = vpack.c.bf16 %v879_v15, %v879_v15  ;;  %v698_v20 = vadd.f32 %v1684_v3, %v697_v16  ;;  %v802_v21 = vadd.f32 %v1684_v3, %v801_v17 }
 0x146   : > { %v699_v22 = vpop.f32.mrf.mxu0  ;;  %v803_v23 = vpop.f32.mrf.mxu1 }
 0x147   : > { %1104 = vst.msk [vmem:[%s1692_s27 + $0x34] sm:$0xf] %vm1090_vm0, %v1335_v18  ;;  %1130 = vst.msk [vmem:[%s1692_s27 + $0x9c] sm:$0xf] %vm1090_vm0, %v1361_v19  ;;  %v854_v24 = vmax.f32 %v698_v20, 0.0  ;;  %v880_v25 = vmax.f32 %v802_v21, 0.0 }
 0x148   : > { %v700_v26 = vpop.f32.mrf.mxu0  ;;  %v804_v27 = vpop.f32.mrf.mxu1 }
 0x149   : > { %v1336_v28 = vpack.c.bf16 %v854_v24, %v854_v24  ;;  %v1362_v29 = vpack.c.bf16 %v880_v25, %v880_v25  ;;  %v701_v30 = vadd.f32 %v1684_v3, %v700_v26  ;;  %v805_v31 = vadd.f32 %v1684_v3, %v804_v27 }
 0x14a   : > { %v702_v32 = vpop.f32.mrf.mxu0  ;;  %v806_v33 = vpop.f32.mrf.mxu1 }
 0x14b   : > { %1105 = vst.msk [vmem:[%s1692_s27 + $0x38] sm:$0xf] %vm1090_vm0, %v1336_v28  ;;  %1131 = vst.msk [vmem:[%s1692_s27 + $0xa0] sm:$0xf] %vm1090_vm0, %v1362_v29  ;;  %v855_v34 = vmax.f32 %v701_v30, 0.0  ;;  %v881_v35 = vmax.f32 %v805_v31, 0.0 }
 0x14c   : > { %v705_v36 = vpop.f32.mrf.mxu0  ;;  %v809_v37 = vpop.f32.mrf.mxu1 }
 0x14d   : > { %v1337_v38 = vpack.c.bf16 %v855_v34, %v855_v34  ;;  %v1363_v39 = vpack.c.bf16 %v881_v35, %v881_v35  ;;  %v706_v40 = vadd.f32 %v1684_v3, %v705_v36  ;;  %v810_v41 = vadd.f32 %v1684_v3, %v809_v37 }
 0x14e   : > { %v707_v42 = vpop.f32.mrf.mxu0  ;;  %v811_v43 = vpop.f32.mrf.mxu1 }
 0x14f   : > { %1106 = vst.msk [vmem:[%s1692_s27 + $0x3c] sm:$0xf] %vm1090_vm0, %v1337_v38  ;;  %1132 = vst.msk [vmem:[%s1692_s27 + $0xa4] sm:$0xf] %vm1090_vm0, %v1363_v39  ;;  %v856_v44 = vmax.f32 %v706_v40, 0.0  ;;  %v882_v45 = vmax.f32 %v810_v41, 0.0 }
 0x150   : > { %v708_v46 = vpop.f32.mrf.mxu0  ;;  %v812_v47 = vpop.f32.mrf.mxu1 }
 0x151   : > { %v1338_v48 = vpack.c.bf16 %v856_v44, %v856_v44  ;;  %v1364_v49 = vpack.c.bf16 %v882_v45, %v882_v45  ;;  %v709_v50 = vadd.f32 %v1684_v3, %v708_v46  ;;  %v813_v51 = vadd.f32 %v1684_v3, %v812_v47 }
 0x152   : > { %v710_v52 = vpop.f32.mrf.mxu0  ;;  %v814_v53 = vpop.f32.mrf.mxu1 }
 0x153   : > { %1107 = vst.msk [vmem:[%s1692_s27 + $0x40] sm:$0xf] %vm1090_vm0, %v1338_v48  ;;  %1133 = vst.msk [vmem:[%s1692_s27 + $0xa8] sm:$0xf] %vm1090_vm0, %v1364_v49  ;;  %v857_v54 = vmax.f32 %v709_v50, 0.0  ;;  %v883_v55 = vmax.f32 %v813_v51, 0.0 }
 0x154   : > { %v713_v56 = vpop.f32.mrf.mxu0  ;;  %v817_v57 = vpop.f32.mrf.mxu1 }
 0x155   : > { %v1339_v58 = vpack.c.bf16 %v857_v54, %v857_v54  ;;  %v1365_v59 = vpack.c.bf16 %v883_v55, %v883_v55  ;;  %v714_v60 = vadd.f32 %v1684_v3, %v713_v56  ;;  %v818_v61 = vadd.f32 %v1684_v3, %v817_v57 }
 0x156   : > { %v715_v62 = vpop.f32.mrf.mxu0  ;;  %v819_v63 = vpop.f32.mrf.mxu1 }
 0x157   : > { %1108 = vst.msk [vmem:[%s1692_s27 + $0x44] sm:$0xf] %vm1090_vm0, %v1339_v58  ;;  %1134 = vst.msk [vmem:[%s1692_s27 + $0xac] sm:$0xf] %vm1090_vm0, %v1365_v59  ;;  %v858_v0 = vmax.f32 %v714_v60, 0.0  ;;  %v884_v1 = vmax.f32 %v818_v61, 0.0 }
 0x158   : > { %v716_v2 = vpop.f32.mrf.mxu0  ;;  %v820_v4 = vpop.f32.mrf.mxu1 }
 0x159   : > { %v1340_v5 = vpack.c.bf16 %v858_v0, %v858_v0  ;;  %v1366_v6 = vpack.c.bf16 %v884_v1, %v884_v1  ;;  %v717_v7 = vadd.f32 %v1684_v3, %v716_v2  ;;  %v821_v8 = vadd.f32 %v1684_v3, %v820_v4 }
 0x15a   : > { %v718_v9 = vpop.f32.mrf.mxu0  ;;  %v822_v10 = vpop.f32.mrf.mxu1 }
 0x15b   : > { %1109 = vst.msk [vmem:[%s1692_s27 + $0x48] sm:$0xf] %vm1090_vm0, %v1340_v5  ;;  %1135 = vst.msk [vmem:[%s1692_s27 + $0xb0] sm:$0xf] %vm1090_vm0, %v1366_v6  ;;  %v859_v11 = vmax.f32 %v717_v7, 0.0  ;;  %v885_v12 = vmax.f32 %v821_v8, 0.0 }
 0x15c   : > { %v721_v13 = vpop.f32.mrf.mxu0  ;;  %v825_v14 = vpop.f32.mrf.mxu1 }
 0x15d   : > { %v1341_v15 = vpack.c.bf16 %v859_v11, %v859_v11  ;;  %v1367_v16 = vpack.c.bf16 %v885_v12, %v885_v12  ;;  %v722_v17 = vadd.f32 %v1684_v3, %v721_v13  ;;  %v826_v18 = vadd.f32 %v1684_v3, %v825_v14 }
 0x15e   : > { %v723_v19 = vpop.f32.mrf.mxu0  ;;  %v827_v20 = vpop.f32.mrf.mxu1 }
 0x15f   : > { %1110 = vst.msk [vmem:[%s1692_s27 + $0x4c] sm:$0xf] %vm1090_vm0, %v1341_v15  ;;  %1136 = vst.msk [vmem:[%s1692_s27 + $0xb4] sm:$0xf] %vm1090_vm0, %v1367_v16  ;;  %v860_v21 = vmax.f32 %v722_v17, 0.0  ;;  %v886_v22 = vmax.f32 %v826_v18, 0.0 }
 0x160   : > { %v724_v23 = vpop.f32.mrf.mxu0  ;;  %v828_v24 = vpop.f32.mrf.mxu1 }
 0x161   : > { %v1342_v25 = vpack.c.bf16 %v860_v21, %v860_v21  ;;  %v1368_v26 = vpack.c.bf16 %v886_v22, %v886_v22  ;;  %v725_v27 = vadd.f32 %v1684_v3, %v724_v23  ;;  %v829_v28 = vadd.f32 %v1684_v3, %v828_v24 }
 0x162   : > { %v726_v29 = vpop.f32.mrf.mxu0  ;;  %v830_v30 = vpop.f32.mrf.mxu1 }
 0x163   : > { %1111 = vst.msk [vmem:[%s1692_s27 + $0x50] sm:$0xf] %vm1090_vm0, %v1342_v25  ;;  %1137 = vst.msk [vmem:[%s1692_s27 + $0xb8] sm:$0xf] %vm1090_vm0, %v1368_v26  ;;  %v861_v31 = vmax.f32 %v725_v27, 0.0  ;;  %v887_v32 = vmax.f32 %v829_v28, 0.0 }
 0x164   : > { %v729_v33 = vpop.f32.mrf.mxu0  ;;  %v833_v34 = vpop.f32.mrf.mxu1 }
 0x165   : > { %v1343_v35 = vpack.c.bf16 %v861_v31, %v861_v31  ;;  %v1369_v36 = vpack.c.bf16 %v887_v32, %v887_v32  ;;  %v730_v37 = vadd.f32 %v1684_v3, %v729_v33  ;;  %v834_v38 = vadd.f32 %v1684_v3, %v833_v34 }
 0x166   : > { %v731_v39 = vpop.f32.mrf.mxu0  ;;  %v835_v40 = vpop.f32.mrf.mxu1 }
 0x167   : > { %1112 = vst.msk [vmem:[%s1692_s27 + $0x54] sm:$0xf] %vm1090_vm0, %v1343_v35  ;;  %1138 = vst.msk [vmem:[%s1692_s27 + $0xbc] sm:$0xf] %vm1090_vm0, %v1369_v36  ;;  %v862_v41 = vmax.f32 %v730_v37, 0.0  ;;  %v888_v42 = vmax.f32 %v834_v38, 0.0 }
 0x168   : > { %v732_v43 = vpop.f32.mrf.mxu0  ;;  %v836_v44 = vpop.f32.mrf.mxu1 }
 0x169   : > { %v1344_v45 = vpack.c.bf16 %v862_v41, %v862_v41  ;;  %v1370_v46 = vpack.c.bf16 %v888_v42, %v888_v42  ;;  %v733_v47 = vadd.f32 %v1684_v3, %v732_v43  ;;  %v837_v48 = vadd.f32 %v1684_v3, %v836_v44 }
 0x16a   : > { %v734_v49 = vpop.f32.mrf.mxu0  ;;  %v838_v50 = vpop.f32.mrf.mxu1 }
 0x16b   : > { %1113 = vst.msk [vmem:[%s1692_s27 + $0x58] sm:$0xf] %vm1090_vm0, %v1344_v45  ;;  %1139 = vst.msk [vmem:[%s1692_s27 + $0xc0] sm:$0xf] %vm1090_vm0, %v1370_v46  ;;  %v863_v51 = vmax.f32 %v733_v47, 0.0  ;;  %v889_v52 = vmax.f32 %v837_v48, 0.0 }
 0x16c   : > { %v737_v53 = vpop.f32.mrf.mxu0 }
 0x16d   : > { %v1345_v54 = vpack.c.bf16 %v863_v51, %v863_v51  ;;  %v1371_v55 = vpack.c.bf16 %v889_v52, %v889_v52  ;;  %v738_v56 = vadd.f32 %v1684_v3, %v737_v53 }
 0x16e   : > { %v739_v57 = vpop.f32.mrf.mxu0 }
 0x16f   : > { %1114 = vst.msk [vmem:[%s1692_s27 + $0x5c] sm:$0xf] %vm1090_vm0, %v1345_v54  ;;  %1140 = vst.msk [vmem:[%s1692_s27 + $0xc4] sm:$0xf] %vm1090_vm0, %v1371_v55  ;;  %v864_v58 = vmax.f32 %v738_v56, 0.0 }
 0x170   : > { %v740_v59 = vpop.f32.mrf.mxu0 }
 0x171   : > { %v1346_v60 = vpack.c.bf16 %v864_v58, %v864_v58  ;;  %v741_v61 = vadd.f32 %v1684_v3, %v740_v59 }
 0x172   : > { %v742_v62 = vpop.f32.mrf.mxu0 }
 0x173   : > { %1115 = vst.msk [vmem:[%s1692_s27 + $0x60] sm:$0xf] %vm1090_vm0, %v1346_v60  ;;  %v865_v63 = vmax.f32 %v741_v61, 0.0 }
 0x175   : > { %v1347_v0 = vpack.c.bf16 %v865_v63, %v865_v63 }
 0x177   : > { %1116 = vst.msk [vmem:[%s1692_s27 + $0x64] sm:$0xf] %vm1090_vm0, %v1347_v0 }
 0x178 PF: > { %s13_s12 = sadd.s32 1, %s1512_s12  }
 0x179   : > { %p10_p4 = scmp.ge.s32.totalorder %s13_s12, 4  }
 0x17b   :  { %12 = sbr.rel (!%p10_p4) target bundleno = 1 (0x1), region = 62 }

// kernel: dueling_dqn_forward.5
= control target key start
LH: loop header
LB: loop body
LE: loop exit
PB: predicated region body
PF: predicated region fallthrough
CT: control target
= control target key end

     0   :  { %s1155_s12 = smov 0   ;;  %s1340_s0 = inlined_call_operand.vmem [shape: bf16[2,81,512], index: 0, kind: input, shape index: {}]   ;;  %s1341_s1 = inlined_call_operand.vmem [shape: bf16[512,64], index: 1, kind: input, shape index: {}]   ;;  %s1342_s2 = inlined_call_operand.vmem [shape: f32[1,64], index: 2, kind: input, shape index: {}]   ;;  %s1343_s3 = inlined_call_operand.vmem [shape: bf16[2,81,64], index: 3, kind: output, shape index: {}]  }
   0x1 LB: > { %s859_s13 = sadd.s32 4294967295, %s1133_s12   ;;  %p863_p0 = scmp.ge.s32.totalorder %s1133_s12, 1  ;;  %s1133_s12 = sphi %s1155_s12, %s13_s12  }
   0x2   : > { %p137_p1 = scmp.lt.s32.totalorder %s1133_s12, 3 }
   0x4   : > { %p138_p2 = pnand %p863_p0, %p137_p1 }
   0x5   : > { %p161_p3 = scmp.lt.s32.totalorder (!%p138_p2), %s859_s13, 1 }
   0x6   : > { %141 = sbr.rel (%p138_p2) target bundleno = 292 (0x124), region = 32 }
   0xb   : > { %v1061_v0 = vld [vmem:[%s1341_s1 + $0x78] sm:$0xff]   ;;  %v1065_v4 = vld [vmem:[%s1341_s1 + $0x70] sm:$0xff]   ;;  %v1069_v8 = vld [vmem:[%s1341_s1 + $0x68] sm:$0xff]   ;;  %s1345_s13 = smov (!%p161_p3, %s859_s13), 1  ;;  %vm787_vm0 = vcmask 519168   ;;  %vm798_vm1 = vcmask 516096  }
   0xc   : > { %v1062_v1 = vld [vmem:[%s1341_s1 + $0xf8] sm:$0xff]   ;;  %947 = vmatprep.subr.bf16.mxu0 %v1061_v0  ;;  %v1066_v5 = vld [vmem:[%s1341_s1 + $0xf0] sm:$0xff]   ;;  %v1070_v9 = vld [vmem:[%s1341_s1 + $0xe8] sm:$0xff]   ;;  %s1051_s16 = smul.u32 176, %s1345_s13  ;;  %vm799_vm2 = vsmask.f32 256 }
   0xd   : > { %v1063_v2 = vld [vmem:[%s1341_s1 + $0x38] sm:$0xff]   ;;  %999 = vmatprep.subr.bf16.mxu1 %v1062_v1  ;;  %v1067_v6 = vld [vmem:[%s1341_s1 + $0x30] sm:$0xff]   ;;  %v1071_v10 = vld [vmem:[%s1341_s1 + $0x28] sm:$0xff]   ;;  %s1052_s7 = smul.u32 44, %s1345_s13 }
   0xe   : > { %v1064_v3 = vld [vmem:[%s1341_s1 + $0xb8] sm:$0xff]   ;;  %948 = vmatpush3.bf16.msra.mxu0 %v1063_v2  ;;  %v1068_v7 = vld [vmem:[%s1341_s1 + $0xb0] sm:$0xff]   ;;  %v1072_v11 = vld [vmem:[%s1341_s1 + $0xa8] sm:$0xff]   ;;  %s1263_s27 = scalar_lea.vmem %s1340_s0, %s1051_s16 }
   0xf   : > { %1000 = vmatpush3.bf16.msra.mxu1 %v1064_v3  ;;  %949 = vmatprep.subr.bf16.mxu0 %v1065_v4  ;;  %v1073_v12 = vld [vmem:[%s1341_s1 + $0x60] sm:$0xff]   ;;  %v1077_v16 = vld [vmem:[%s1341_s1 + $0x58] sm:$0xff]   ;;  %v1081_v20 = vld [vmem:[%s1341_s1 + $0x50] sm:$0xff]   ;;  %s1304_s10 = scalar_lea.vmem %s1343_s3, %s1052_s7 }
  0x10   : > { %1001 = vmatprep.subr.bf16.mxu1 %v1066_v5  ;;  %v1074_v13 = vld [vmem:[%s1341_s1 + $0xe0] sm:$0xff]   ;;  %v1078_v17 = vld [vmem:[%s1341_s1 + $0xd8] sm:$0xff]   ;;  %v1082_v21 = vld [vmem:[%s1341_s1 + $0xd0] sm:$0xff]  }
  0x11   : > { %v1075_v14 = vld [vmem:[%s1341_s1 + $0x20] sm:$0xff]   ;;  %v1079_v18 = vld [vmem:[%s1341_s1 + $0x18] sm:$0xff]   ;;  %v1083_v22 = vld [vmem:[%s1341_s1 + $0x10] sm:$0xff]  }
  0x12   : > { %950 = vmatpush3.bf16.msra.mxu0 %v1067_v6  ;;  %v1076_v15 = vld [vmem:[%s1341_s1 + $0xa0] sm:$0xff]   ;;  %v1080_v19 = vld [vmem:[%s1341_s1 + $0x98] sm:$0xff]   ;;  %v1084_v23 = vld [vmem:[%s1341_s1 + $0x90] sm:$0xff]  }
  0x13   : > { %1002 = vmatpush3.bf16.msra.mxu1 %v1068_v7  ;;  %951 = vmatprep.subr.bf16.mxu0 %v1069_v8  ;;  %v1085_v24 = vld [vmem:[%s1341_s1 + $0x48] sm:$0xff]   ;;  %v1089_v28 = vld [vmem:[%s1341_s1 + $0x40] sm:$0xff]   ;;  %vm800_vm3 = vmand %vm798_vm1, %vm799_vm2 }
  0x14   : > { %1003 = vmatprep.subr.bf16.mxu1 %v1070_v9  ;;  %v1086_v25 = vld [vmem:[%s1341_s1 + $0xc8] sm:$0xff]   ;;  %v1090_v29 = vld [vmem:[%s1341_s1 + $0xc0] sm:$0xff]  }
  0x15   : > { %v1087_v26 = vld [vmem:[%s1341_s1 + $0x8] sm:$0xff]   ;;  %v1091_v30 = vld [vmem:[%s1341_s1] sm:$0xff]  }
  0x16   : > { %952 = vmatpush3.bf16.msra.mxu0 %v1071_v10  ;;  %v1088_v27 = vld [vmem:[%s1341_s1 + $0x88] sm:$0xff]   ;;  %v1092_v31 = vld [vmem:[%s1341_s1 + $0x80] sm:$0xff]  }
  0x17   : > { %1004 = vmatpush3.bf16.msra.mxu1 %v1072_v11  ;;  %953 = vmatprep.subr.bf16.mxu0 %v1073_v12  ;;  %v1093_v32 = vld [vmem:[%s1263_s27] ss:$16 sps:$4 sm:$0xff]   ;;  %v1095_v33 = vld [vmem:[%s1263_s27 + $0x4] ss:$16 sps:$4 sm:$0xff]   ;;  %v1096_v34 = vld [vmem:[%s1263_s27 + $0x8] ss:$16 sps:$4 sm:$0xff]  }
  0x18   : > { %1005 = vmatprep.subr.bf16.mxu1 %v1074_v13  ;;  %v1098_v35 = vld [vmem:[%s1263_s27 + $0xc] ss:$16 sps:$4 sm:$0xff]   ;;  %603 = vmatprep.mubr.bf16.mxu0 %v1095_v33  ;;  %v1099_v36 = vld [vmem:[%s1263_s27 + $0x24] ss:$16 sps:$4 sm:$0xff]   ;;  %v1103_v38 = vld [vmem:[%s1263_s27 + $0x20] ss:$16 sps:$4 sm:$0xff]  }
  0x19   : > { %683 = vmatprep.mubr.bf16.mxu1 %v1098_v35  ;;  %v1101_v37 = vld [vmem:[%s1263_s27 + $0x2c] ss:$16 sps:$4 sm:$0xff]   ;;  %v1104_v39 = vld [vmem:[%s1263_s27 + $0x28] ss:$16 sps:$4 sm:$0xff]   ;;  %v1105_v40 = vld [vmem:[%s1263_s27 + $0x44] ss:$16 sps:$4 sm:$0xff]  }
  0x1a   : > { %954 = vmatpush3.bf16.msra.mxu0 %v1075_v14  ;;  %v1107_v41 = vld [vmem:[%s1263_s27 + $0x4c] ss:$16 sps:$4 sm:$0xff]   ;;  %v1109_v42 = vld [vmem:[%s1263_s27 + $0x40] ss:$16 sps:$4 sm:$0xff]   ;;  %v1110_v43 = vld [vmem:[%s1263_s27 + $0x48] ss:$16 sps:$4 sm:$0xff]  }
  0x1b   : > { %1006 = vmatpush3.bf16.msra.mxu1 %v1076_v15  ;;  %955 = vmatprep.subr.bf16.mxu0 %v1077_v16  ;;  %v1111_v44 = vld [vmem:[%s1263_s27 + $0x64] ss:$16 sps:$4 sm:$0xff]   ;;  %v1113_v45 = vld [vmem:[%s1263_s27 + $0x6c] ss:$16 sps:$4 sm:$0xff]   ;;  %v1115_v46 = vld [vmem:[%s1263_s27 + $0x60] ss:$16 sps:$4 sm:$0xff]  }
  0x1c   : > { %1007 = vmatprep.subr.bf16.mxu1 %v1078_v17  ;;  %v1116_v47 = vld [vmem:[%s1263_s27 + $0x68] ss:$16 sps:$4 sm:$0xff]   ;;  %v1117_v48 = vld [vmem:[%s1263_s27 + $0x84] ss:$16 sps:$4 sm:$0xff]   ;;  %v1119_v49 = vld [vmem:[%s1263_s27 + $0x8c] ss:$16 sps:$4 sm:$0xff]  }
  0x1d   : > { %v192_v50 = vld [vmem:[%s1263_s27 + $0xa0] sm:$0x11]  ;;  %v193_v51 = vld [vmem:[%s1263_s27 + $0xa8] sm:$0x11] }
  0x1e   : > { %956 = vmatpush3.bf16.msra.mxu0 %v1079_v18  ;;  %v1121_v52 = vld [vmem:[%s1263_s27 + $0x80] ss:$16 sps:$4 sm:$0xff]   ;;  %v1122_v53 = vld [vmem:[%s1263_s27 + $0x88] ss:$16 sps:$4 sm:$0xff]   ;;  %v888_v54 = vcombine.high %v192_v50, %v192_v50  ;;  %v890_v55 = vcombine.high %v193_v51, %v193_v51  ;;  %v887_v56 = vcombine.low %v192_v50, %v192_v50  ;;  %v889_v57 = vcombine.low %v193_v51, %v193_v51 }
  0x1f   : > { %1008 = vmatpush3.bf16.msra.mxu1 %v1080_v19  ;;  %957 = vmatprep.subr.bf16.mxu0 %v1081_v20  ;;  %v1296_v60 = vld [vmem:[%s1342_s2] ss:$0 sm:$0xff] }
  0x20   : > { %1009 = vmatprep.subr.bf16.mxu1 %v1082_v21 }
  0x22   : > { %958 = vmatpush3.bf16.msra.mxu0 %v1083_v22 }
  0x23   : > { %1010 = vmatpush3.bf16.msra.mxu1 %v1084_v23  ;;  %959 = vmatprep.subr.bf16.mxu0 %v1085_v24 }
  0x24   : > { %1011 = vmatprep.subr.bf16.mxu1 %v1086_v25 }
  0x26   : > { %960 = vmatpush3.bf16.msra.mxu0 %v1087_v26 }
  0x27   : > { %1012 = vmatpush3.bf16.msra.mxu1 %v1088_v27  ;;  %961 = vmatprep.subr.bf16.mxu0 %v1089_v28 }
  0x28   : > { %1013 = vmatprep.subr.bf16.mxu1 %v1090_v29 }
  0x2a   : > { %962 = vmatpush3.bf16.msra.mxu0 %v1091_v30 }
  0x2b   : > { %1014 = vmatpush3.bf16.msra.mxu1 %v1092_v31 }
  0x2d   : > { %604 = vmatmul.mubr.bf16.vlgmr.msra.gmra.mxu0 %v1093_v32 }
  0x2e   : > { %684 = vmatmul.mubr.bf16.vlgmr.msra.gmra.mxu1 %v1096_v34  ;;  %611 = vmatprep.mubr.bf16.mxu0 %v1099_v36 }
  0x2f   : > { %691 = vmatprep.mubr.bf16.mxu1 %v1101_v37 }
  0x35   : > { %612 = vmatmul.mubr.bf16.gmra.mxu0 %v1103_v38 }
  0x36   : > { %692 = vmatmul.mubr.bf16.gmra.mxu1 %v1104_v39  ;;  %619 = vmatprep.mubr.bf16.mxu0 %v1105_v40 }
  0x37   : > { %699 = vmatprep.mubr.bf16.mxu1 %v1107_v41 }
  0x3d   : > { %620 = vmatmul.mubr.bf16.gmra.mxu0 %v1109_v42 }
  0x3e   : > { %700 = vmatmul.mubr.bf16.gmra.mxu1 %v1110_v43  ;;  %627 = vmatprep.mubr.bf16.mxu0 %v1111_v44 }
  0x3f   : > { %707 = vmatprep.mubr.bf16.mxu1 %v1113_v45 }
  0x45   : > { %628 = vmatmul.mubr.bf16.gmra.mxu0 %v1115_v46 }
  0x46   : > { %708 = vmatmul.mubr.bf16.gmra.mxu1 %v1116_v47  ;;  %635 = vmatprep.mubr.bf16.mxu0 %v1117_v48 }
  0x47   : > { %715 = vmatprep.mubr.bf16.mxu1 %v1119_v49 }
  0x4d   : > { %636 = vmatmul.mubr.bf16.gmra.mxu0 %v1121_v52 }
  0x4e   : > { %716 = vmatmul.mubr.bf16.gmra.mxu1 %v1122_v53  ;;  %643 = vmatprep.mubr.bf16.mxu0 %v888_v54 }
  0x4f   : > { %723 = vmatprep.mubr.bf16.mxu1 %v890_v55 }
  0x55   : > { %644 = vmatmul.mubr.bf16.gmra.mxu0 %v887_v56 }
  0x56   : > { %724 = vmatmul.mubr.bf16.gmra.mxu1 %v889_v57 }
  0xed   : > { %v963_v58 = vpop.f32.mrf.mxu0 }
  0xee   : > { %v1015_v59 = vpop.f32.mrf.mxu1 }
  0xef   : > { %v964_v61 = vpop.f32.mrf.mxu0 }
  0xf0   : > { %v965_v62 = vadd.f32 %v964_v61, %v963_v58  ;;  %v1016_v63 = vpop.f32.mrf.mxu1 }
  0xf1   : > { %v966_v0 = vpop.f32.mrf.mxu0  ;;  %v1017_v2 = vadd.f32 %v1016_v63, %v1015_v59 }
  0xf2   : > { %v606_v1 = vadd.f32 %v965_v62, %v1296_v60  ;;  %v1018_v3 = vpop.f32.mrf.mxu1 }
  0xf3   : > { %v967_v4 = vpop.f32.mrf.mxu0 }
  0xf4   : > { %v686_v5 = vadd.f32 %v1017_v2, %v606_v1  ;;  %v968_v6 = vadd.f32 %v967_v4, %v966_v0  ;;  %v1019_v7 = vpop.f32.mrf.mxu1 }
  0xf5   : > { %v969_v8 = vpop.f32.mrf.mxu0  ;;  %v1020_v11 = vadd.f32 %v1019_v7, %v1018_v3 }
  0xf6   : > { %v731_v9 = vmax.f32 %v686_v5, 0.0  ;;  %v609_v10 = vadd.f32 %v968_v6, %v1296_v60  ;;  %v1021_v12 = vpop.f32.mrf.mxu1 }
  0xf7   : > { %v970_v13 = vpop.f32.mrf.mxu0 }
  0xf8   : > { %v936_v14 = vpack.c.bf16 %v731_v9, %v731_v9  ;;  %v689_v15 = vadd.f32 %v1020_v11, %v609_v10  ;;  %v971_v16 = vadd.f32 %v970_v13, %v969_v8  ;;  %v1022_v17 = vpop.f32.mrf.mxu1 }
  0xf9   : > { %v972_v18 = vpop.f32.mrf.mxu0  ;;  %v1023_v21 = vadd.f32 %v1022_v17, %v1021_v12 }
  0xfa   : > { %788 = vst.msk [vmem:[%s1304_s10] sm:$0xf] %vm787_vm0, %v936_v14  ;;  %v732_v19 = vmax.f32 %v689_v15, 0.0  ;;  %v614_v20 = vadd.f32 %v971_v16, %v1296_v60  ;;  %v1024_v22 = vpop.f32.mrf.mxu1 }
  0xfb   : > { %v973_v23 = vpop.f32.mrf.mxu0 }
  0xfc   : > { %v937_v24 = vpack.c.bf16 %v732_v19, %v732_v19  ;;  %v694_v25 = vadd.f32 %v1023_v21, %v614_v20  ;;  %v974_v26 = vadd.f32 %v973_v23, %v972_v18  ;;  %v1025_v27 = vpop.f32.mrf.mxu1 }
  0xfd   : > { %v975_v28 = vpop.f32.mrf.mxu0  ;;  %v1026_v31 = vadd.f32 %v1025_v27, %v1024_v22 }
  0xfe   : > { %789 = vst.msk [vmem:[%s1304_s10 + $0x4] sm:$0xf] %vm787_vm0, %v937_v24  ;;  %v733_v29 = vmax.f32 %v694_v25, 0.0  ;;  %v617_v30 = vadd.f32 %v974_v26, %v1296_v60  ;;  %v1027_v32 = vpop.f32.mrf.mxu1 }
  0xff   : > { %v976_v33 = vpop.f32.mrf.mxu0 }
 0x100   : > { %v938_v34 = vpack.c.bf16 %v733_v29, %v733_v29  ;;  %v697_v35 = vadd.f32 %v1026_v31, %v617_v30  ;;  %v977_v36 = vadd.f32 %v976_v33, %v975_v28  ;;  %v1028_v37 = vpop.f32.mrf.mxu1 }
 0x101   : > { %v978_v38 = vpop.f32.mrf.mxu0  ;;  %v1029_v41 = vadd.f32 %v1028_v37, %v1027_v32 }
 0x102   : > { %790 = vst.msk [vmem:[%s1304_s10 + $0x8] sm:$0xf] %vm787_vm0, %v938_v34  ;;  %v734_v39 = vmax.f32 %v697_v35, 0.0  ;;  %v622_v40 = vadd.f32 %v977_v36, %v1296_v60  ;;  %v1030_v42 = vpop.f32.mrf.mxu1 }
 0x103   : > { %v979_v43 = vpop.f32.mrf.mxu0 }
 0x104   : > { %v939_v44 = vpack.c.bf16 %v734_v39, %v734_v39  ;;  %v702_v45 = vadd.f32 %v1029_v41, %v622_v40  ;;  %v980_v46 = vadd.f32 %v979_v43, %v978_v38  ;;  %v1031_v47 = vpop.f32.mrf.mxu1 }
 0x105   : > { %v981_v48 = vpop.f32.mrf.mxu0  ;;  %v1032_v51 = vadd.f32 %v1031_v47, %v1030_v42 }
 0x106   : > { %791 = vst.msk [vmem:[%s1304_s10 + $0xc] sm:$0xf] %vm787_vm0, %v939_v44  ;;  %v735_v49 = vmax.f32 %v702_v45, 0.0  ;;  %v625_v50 = vadd.f32 %v980_v46, %v1296_v60  ;;  %v1033_v52 = vpop.f32.mrf.mxu1  ;;  %v801_v45 = vld [vmem:[%s1304_s10 + $0x28] sm:$0x1] }
 0x107   : > { %v982_v53 = vpop.f32.mrf.mxu0 }
 0x108   : > { %v940_v54 = vpack.c.bf16 %v735_v49, %v735_v49  ;;  %v705_v55 = vadd.f32 %v1032_v51, %v625_v50  ;;  %v983_v56 = vadd.f32 %v982_v53, %v981_v48  ;;  %v1034_v57 = vpop.f32.mrf.mxu1 }
 0x109   : > { %v984_v58 = vpop.f32.mrf.mxu0  ;;  %v1035_v62 = vadd.f32 %v1034_v57, %v1033_v52 }
 0x10a   : > { %792 = vst.msk [vmem:[%s1304_s10 + $0x10] sm:$0xf] %vm787_vm0, %v940_v54  ;;  %v736_v59 = vmax.f32 %v705_v55, 0.0  ;;  %v630_v61 = vadd.f32 %v983_v56, %v1296_v60  ;;  %v1036_v63 = vpop.f32.mrf.mxu1 }
 0x10b   : > { %v985_v0 = vpop.f32.mrf.mxu0 }
 0x10c   : > { %v941_v1 = vpack.c.bf16 %v736_v59, %v736_v59  ;;  %v710_v2 = vadd.f32 %v1035_v62, %v630_v61  ;;  %v986_v3 = vadd.f32 %v985_v0, %v984_v58  ;;  %v1037_v4 = vpop.f32.mrf.mxu1 }
 0x10d   : > { %v987_v5 = vpop.f32.mrf.mxu0  ;;  %v1038_v8 = vadd.f32 %v1037_v4, %v1036_v63 }
 0x10e   : > { %793 = vst.msk [vmem:[%s1304_s10 + $0x14] sm:$0xf] %vm787_vm0, %v941_v1  ;;  %v737_v6 = vmax.f32 %v710_v2, 0.0  ;;  %v633_v7 = vadd.f32 %v986_v3, %v1296_v60  ;;  %v1039_v9 = vpop.f32.mrf.mxu1 }
 0x10f   : > { %v988_v10 = vpop.f32.mrf.mxu0 }
 0x110   : > { %v942_v11 = vpack.c.bf16 %v737_v6, %v737_v6  ;;  %v713_v12 = vadd.f32 %v1038_v8, %v633_v7  ;;  %v989_v13 = vadd.f32 %v988_v10, %v987_v5  ;;  %v1040_v14 = vpop.f32.mrf.mxu1 }
 0x111   : > { %v990_v15 = vpop.f32.mrf.mxu0  ;;  %v1041_v18 = vadd.f32 %v1040_v14, %v1039_v9 }
 0x112   : > { %794 = vst.msk [vmem:[%s1304_s10 + $0x18] sm:$0xf] %vm787_vm0, %v942_v11  ;;  %v738_v16 = vmax.f32 %v713_v12, 0.0  ;;  %v638_v17 = vadd.f32 %v989_v13, %v1296_v60  ;;  %v1042_v19 = vpop.f32.mrf.mxu1 }
 0x113   : > { %v991_v20 = vpop.f32.mrf.mxu0 }
 0x114   : > { %v943_v21 = vpack.c.bf16 %v738_v16, %v738_v16  ;;  %v718_v22 = vadd.f32 %v1041_v18, %v638_v17  ;;  %v992_v23 = vadd.f32 %v991_v20, %v990_v15  ;;  %v1043_v24 = vpop.f32.mrf.mxu1 }
 0x115   : > { %v993_v25 = vpop.f32.mrf.mxu0  ;;  %v1044_v28 = vadd.f32 %v1043_v24, %v1042_v19 }
 0x116   : > { %795 = vst.msk [vmem:[%s1304_s10 + $0x1c] sm:$0xf] %vm787_vm0, %v943_v21  ;;  %v739_v26 = vmax.f32 %v718_v22, 0.0  ;;  %v641_v27 = vadd.f32 %v992_v23, %v1296_v60  ;;  %v1045_v29 = vpop.f32.mrf.mxu1 }
 0x117   : > { %v994_v30 = vpop.f32.mrf.mxu0 }
 0x118   : > { %v944_v31 = vpack.c.bf16 %v739_v26, %v739_v26  ;;  %v721_v32 = vadd.f32 %v1044_v28, %v641_v27  ;;  %v995_v33 = vadd.f32 %v994_v30, %v993_v25  ;;  %v1046_v34 = vpop.f32.mrf.mxu1 }
 0x119   : > { %v996_v35 = vpop.f32.mrf.mxu0  ;;  %v1047_v38 = vadd.f32 %v1046_v34, %v1045_v29 }
 0x11a   : > { %796 = vst.msk [vmem:[%s1304_s10 + $0x20] sm:$0xf] %vm787_vm0, %v944_v31  ;;  %v740_v36 = vmax.f32 %v721_v32, 0.0  ;;  %v646_v37 = vadd.f32 %v995_v33, %v1296_v60  ;;  %v1048_v39 = vpop.f32.mrf.mxu1 }
 0x11b   : > { %v997_v40 = vpop.f32.mrf.mxu0 }
 0x11c   : > { %v945_v41 = vpack.c.bf16 %v740_v36, %v740_v36  ;;  %v726_v42 = vadd.f32 %v1047_v38, %v646_v37  ;;  %v1049_v43 = vpop.f32.mrf.mxu1 }
 0x11e   : > { %797 = vst.msk [vmem:[%s1304_s10 + $0x24] sm:$0xf] %vm787_vm0, %v945_v41  ;;  %v741_v44 = vmax.f32 %v726_v42, 0.0 }
 0x120   : > { %v946_v46 = vpack.c.bf16 %v741_v44, %v741_v44 }
 0x122   : > { %v802_v47 = vsel %vm800_vm3, %v946_v46, %v801_v45 }
 0x123   : > { %803 = vst [vmem:[%s1304_s10 + $0x28] sm:$0x1] %v802_v47 }
 0x124 PF: > { %s13_s12 = sadd.s32 1, %s1133_s12  }
 0x125   : > { %p10_p4 = scmp.ge.s32.totalorder %s13_s12, 4  }
 0x127   :  { %12 = sbr.rel (!%p10_p4) target bundleno = 1 (0x1), region = 62 }

// kernel: dueling_dqn_forward.6
= control target key start
LH: loop header
LB: loop body
LE: loop exit
PB: predicated region body
PF: predicated region fallthrough
CT: control target
= control target key end

     0   :  { %s1185_s12 = smov 0   ;;  %s1364_s0 = inlined_call_operand.vmem [shape: bf16[2,49,576], index: 0, kind: input, shape index: {}]   ;;  %s1365_s1 = inlined_call_operand.vmem [shape: bf16[576,64], index: 1, kind: input, shape index: {}]   ;;  %s1366_s2 = inlined_call_operand.vmem [shape: f32[1,64], index: 2, kind: input, shape index: {}]   ;;  %s1367_s3 = inlined_call_operand.vmem [shape: bf16[2,49,64], index: 3, kind: output, shape index: {}]  }
   0x1 LB: > { %s889_s13 = sadd.s32 4294967295, %s1163_s12   ;;  %p893_p0 = scmp.ge.s32.totalorder %s1163_s12, 1  ;;  %s1163_s12 = sphi %s1185_s12, %s13_s12  }
   0x2   : > { %p137_p1 = scmp.lt.s32.totalorder %s1163_s12, 3 }
   0x4   : > { %p138_p2 = pnand %p893_p0, %p137_p1 }
   0x5   : > { %p161_p3 = scmp.lt.s32.totalorder (!%p138_p2), %s889_s13, 1 }
   0x6   : > { %141 = sbr.rel (%p138_p2) target bundleno = 284 (0x11c), region = 32 }
   0xb   : > { %v1095_v0 = vld [vmem:[%s1365_s1 + $0x78] sm:$0xff]   ;;  %v1099_v4 = vld [vmem:[%s1365_s1 + $0x70] sm:$0xff]   ;;  %v1103_v8 = vld [vmem:[%s1365_s1 + $0x68] sm:$0xff]   ;;  %s1371_s13 = smov (!%p161_p3, %s889_s13), 1  ;;  %vm580_vm0 = vcmask 523264   ;;  %vm828_vm1 = vcmask 516096  }
   0xc   : > { %v1096_v1 = vld [vmem:[%s1365_s1 + $0xf8] sm:$0xff]   ;;  %973 = vmatprep.subr.bf16.mxu0 %v1095_v0  ;;  %v1100_v5 = vld [vmem:[%s1365_s1 + $0xf0] sm:$0xff]   ;;  %v1104_v9 = vld [vmem:[%s1365_s1 + $0xe8] sm:$0xff]   ;;  %s1085_s16 = smul.u32 140, %s1371_s13  ;;  %vm829_vm2 = vsmask.f32 256 }
   0xd   : > { %v1097_v2 = vld [vmem:[%s1365_s1 + $0x38] sm:$0xff]   ;;  %1013 = vmatprep.subr.bf16.mxu1 %v1096_v1  ;;  %v1101_v6 = vld [vmem:[%s1365_s1 + $0x30] sm:$0xff]   ;;  %v1105_v10 = vld [vmem:[%s1365_s1 + $0x28] sm:$0xff]   ;;  %s1086_s17 = smul.u32 28, %s1371_s13  ;;  %vm821_vm3 = vcmask 519168  }
   0xe   : > { %v1098_v3 = vld [vmem:[%s1365_s1 + $0xb8] sm:$0xff]   ;;  %974 = vmatpush3.bf16.msra.mxu0 %v1097_v2  ;;  %v1102_v7 = vld [vmem:[%s1365_s1 + $0xb0] sm:$0xff]   ;;  %v1106_v11 = vld [vmem:[%s1365_s1 + $0xa8] sm:$0xff]   ;;  %s1293_s27 = scalar_lea.vmem %s1364_s0, %s1085_s16 }
   0xf   : > { %1014 = vmatpush3.bf16.msra.mxu1 %v1098_v3  ;;  %975 = vmatprep.subr.bf16.mxu0 %v1099_v4  ;;  %v1107_v12 = vld [vmem:[%s1365_s1 + $0x60] sm:$0xff]   ;;  %v1111_v16 = vld [vmem:[%s1365_s1 + $0x58] sm:$0xff]   ;;  %v1115_v20 = vld [vmem:[%s1365_s1 + $0x50] sm:$0xff]   ;;  %s1338_s20 = scalar_lea.vmem %s1367_s3, %s1086_s17 }
  0x10   : > { %1015 = vmatprep.subr.bf16.mxu1 %v1100_v5  ;;  %v1108_v13 = vld [vmem:[%s1365_s1 + $0xe0] sm:$0xff]   ;;  %v1112_v17 = vld [vmem:[%s1365_s1 + $0xd8] sm:$0xff]   ;;  %v1116_v21 = vld [vmem:[%s1365_s1 + $0xd0] sm:$0xff]  }
  0x11   : > { %v1109_v14 = vld [vmem:[%s1365_s1 + $0x20] sm:$0xff]   ;;  %v1113_v18 = vld [vmem:[%s1365_s1 + $0x18] sm:$0xff]   ;;  %v1117_v22 = vld [vmem:[%s1365_s1 + $0x10] sm:$0xff]  }
  0x12   : > { %976 = vmatpush3.bf16.msra.mxu0 %v1101_v6  ;;  %v1110_v15 = vld [vmem:[%s1365_s1 + $0xa0] sm:$0xff]   ;;  %v1114_v19 = vld [vmem:[%s1365_s1 + $0x98] sm:$0xff]   ;;  %v1118_v23 = vld [vmem:[%s1365_s1 + $0x90] sm:$0xff]  }
  0x13   : > { %1016 = vmatpush3.bf16.msra.mxu1 %v1102_v7  ;;  %977 = vmatprep.subr.bf16.mxu0 %v1103_v8  ;;  %v1119_v24 = vld [vmem:[%s1365_s1 + $0x48] sm:$0xff]   ;;  %v1123_v28 = vld [vmem:[%s1365_s1 + $0x40] sm:$0xff]   ;;  %v1133_v36 = vld [vmem:[%s1365_s1 + $0x118] sm:$0xff]  }
  0x14   : > { %1017 = vmatprep.subr.bf16.mxu1 %v1104_v9  ;;  %v1120_v25 = vld [vmem:[%s1365_s1 + $0xc8] sm:$0xff]   ;;  %v1124_v29 = vld [vmem:[%s1365_s1 + $0xc0] sm:$0xff]   ;;  %v1140_v39 = vld [vmem:[%s1365_s1 + $0x110] sm:$0xff]  }
  0x15   : > { %v1121_v26 = vld [vmem:[%s1365_s1 + $0x8] sm:$0xff]   ;;  %v1125_v30 = vld [vmem:[%s1365_s1] sm:$0xff]   ;;  %v1143_v43 = vld [vmem:[%s1293_s27 + $0x5c] ss:$20 sps:$4 sm:$0xff]  }
  0x16   : > { %978 = vmatpush3.bf16.msra.mxu0 %v1105_v10  ;;  %v1122_v27 = vld [vmem:[%s1365_s1 + $0x88] sm:$0xff]   ;;  %v1126_v31 = vld [vmem:[%s1365_s1 + $0x80] sm:$0xff]   ;;  %v190_v46 = vld [vmem:[%s1293_s27 + $0x78] sm:$0x11] }
  0x17   : > { %1018 = vmatpush3.bf16.msra.mxu1 %v1106_v11  ;;  %979 = vmatprep.subr.bf16.mxu0 %v1107_v12  ;;  %v1127_v32 = vld [vmem:[%s1293_s27] ss:$20 sps:$4 sm:$0xff]   ;;  %v1129_v33 = vld [vmem:[%s1293_s27 + $0x4] ss:$20 sps:$4 sm:$0xff]   ;;  %v1130_v34 = vld [vmem:[%s1293_s27 + $0x8] ss:$20 sps:$4 sm:$0xff]   ;;  %v913_v50 = vcombine.high %v190_v46, %v190_v46  ;;  %v912_v52 = vcombine.low %v190_v46, %v190_v46 }
  0x18   : > { %1019 = vmatprep.subr.bf16.mxu1 %v1108_v13  ;;  %v1132_v35 = vld [vmem:[%s1293_s27 + $0xc] ss:$20 sps:$4 sm:$0xff]   ;;  %625 = vmatprep.mubr.bf16.mxu0 %v1129_v33  ;;  %v1136_v38 = vld [vmem:[%s1293_s27 + $0x34] ss:$20 sps:$4 sm:$0xff]   ;;  %v1139_v41 = vld [vmem:[%s1293_s27 + $0x30] ss:$20 sps:$4 sm:$0xff]  }
  0x19   : > { %689 = vmatprep.mubr.bf16.mxu1 %v1132_v35  ;;  %v1134_v37 = vld [vmem:[%s1293_s27 + $0x2c] ss:$20 sps:$4 sm:$0xff]   ;;  %v1138_v40 = vld [vmem:[%s1293_s27 + $0x28] ss:$20 sps:$4 sm:$0xff]   ;;  %v1145_v48 = vld [vmem:[%s1293_s27 + $0x50] ss:$20 sps:$4 sm:$0xff]  }
  0x1a   : > { %980 = vmatpush3.bf16.msra.mxu0 %v1109_v14  ;;  %v1141_v42 = vld [vmem:[%s1293_s27 + $0x54] ss:$20 sps:$4 sm:$0xff]   ;;  %v1152_v45 = vld [vmem:[%s1365_s1 + $0x100] sm:$0xff]   ;;  %v1146_v49 = vld [vmem:[%s1293_s27 + $0x58] ss:$20 sps:$4 sm:$0xff]  }
  0x1b   : > { %1020 = vmatpush3.bf16.msra.mxu1 %v1110_v15  ;;  %981 = vmatprep.subr.bf16.mxu0 %v1111_v16  ;;  %v1147_v44 = vld [vmem:[%s1365_s1 + $0x108] sm:$0xff]   ;;  %v191_v47 = vld [vmem:[%s1293_s27 + $0x80] sm:$0x11]  ;;  %vm1341_vm4 = vmand %vm828_vm1, %vm829_vm2 }
  0x1c   : > { %1021 = vmatprep.subr.bf16.mxu1 %v1112_v17  ;;  %v915_v51 = vcombine.high %v191_v47, %v191_v47  ;;  %v914_v53 = vcombine.low %v191_v47, %v191_v47  ;;  %v1153_v54 = vld [vmem:[%s1293_s27 + $0x10] ss:$20 sps:$4 sm:$0xff]   ;;  %v1154_v55 = vld [vmem:[%s1293_s27 + $0x60] ss:$20 sps:$4 sm:$0xff]   ;;  %v1155_v56 = vld [vmem:[%s1293_s27 + $0x38] ss:$20 sps:$4 sm:$0xff]  }
  0x1d   : > { %v1156_v57 = vld [vmem:[%s1293_s27 + $0x88] ss:$0 sps:$4 sm:$0x11]  }
  0x1e   : > { %982 = vmatpush3.bf16.msra.mxu0 %v1113_v18 }
  0x1f   : > { %1022 = vmatpush3.bf16.msra.mxu1 %v1114_v19  ;;  %983 = vmatprep.subr.bf16.mxu0 %v1115_v20 }
  0x20   : > { %1023 = vmatprep.subr.bf16.mxu1 %v1116_v21  ;;  %v896_v21 = vld [vmem:[%s1366_s2] ss:$0 sm:$0xff] }
  0x22   : > { %984 = vmatpush3.bf16.msra.mxu0 %v1117_v22 }
  0x23   : > { %1024 = vmatpush3.bf16.msra.mxu1 %v1118_v23  ;;  %985 = vmatprep.subr.bf16.mxu0 %v1119_v24 }
  0x24   : > { %1025 = vmatprep.subr.bf16.mxu1 %v1120_v25 }
  0x26   : > { %986 = vmatpush3.bf16.msra.mxu0 %v1121_v26 }
  0x27   : > { %1026 = vmatpush3.bf16.msra.mxu1 %v1122_v27  ;;  %987 = vmatprep.subr.bf16.mxu0 %v1123_v28 }
  0x28   : > { %1027 = vmatprep.subr.bf16.mxu1 %v1124_v29 }
  0x2a   : > { %988 = vmatpush3.bf16.msra.mxu0 %v1125_v30 }
  0x2b   : > { %1028 = vmatpush3.bf16.msra.mxu1 %v1126_v31  ;;  %1061 = vmatprep.subr.bf16.mxu0 %v1133_v36 }
  0x2c   : > { %1077 = vmatprep.subr.bf16.mxu1 %v1133_v36 }
  0x2d   : > { %626 = vmatmul.mubr.bf16.vlgmr.msra.gmra.mxu0 %v1127_v32 }
  0x2e   : > { %690 = vmatmul.mubr.bf16.vlgmr.msra.gmra.mxu1 %v1130_v34  ;;  %1062 = vmatpush3.bf16.msra.mxu0 %v1133_v36 }
  0x2f   : > { %1081 = vmatpush3.bf16.msra.mxu1 %v1133_v36  ;;  %633 = vmatprep.mubr.bf16.mxu0 %v1134_v37 }
  0x30   : > { %697 = vmatprep.mubr.bf16.mxu1 %v1136_v38  ;;  %1063 = vmatprep.subr.bf16.mxu0 %v1140_v39 }
  0x31   : > { %1078 = vmatprep.subr.bf16.mxu1 %v1140_v39 }
  0x32   : > { %1064 = vmatpush3.bf16.msra.mxu0 %v1140_v39 }
  0x33   : > { %1082 = vmatpush3.bf16.msra.mxu1 %v1140_v39  ;;  %1065 = vmatprep.subr.bf16.mxu0 %v1147_v44 }
  0x34   : > { %1079 = vmatprep.subr.bf16.mxu1 %v1147_v44 }
  0x35   : > { %634 = vmatmul.mubr.bf16.gmra.mxu0 %v1138_v40 }
  0x36   : > { %698 = vmatmul.mubr.bf16.gmra.mxu1 %v1139_v41  ;;  %641 = vmatprep.mubr.bf16.mxu0 %v1141_v42 }
  0x37   : > { %705 = vmatprep.mubr.bf16.mxu1 %v1143_v43  ;;  %1066 = vmatpush3.bf16.msra.mxu0 %v1147_v44 }
  0x38   : > { %1083 = vmatpush3.bf16.msra.mxu1 %v1147_v44  ;;  %1067 = vmatprep.subr.bf16.mxu0 %v1152_v45 }
  0x39   : > { %1080 = vmatprep.subr.bf16.mxu1 %v1152_v45 }
  0x3b   : > { %1068 = vmatpush3.bf16.msra.mxu0 %v1152_v45 }
  0x3c   : > { %1084 = vmatpush3.bf16.msra.mxu1 %v1152_v45 }
  0x3d   : > { %642 = vmatmul.mubr.bf16.gmra.mxu0 %v1145_v48 }
  0x3e   : > { %706 = vmatmul.mubr.bf16.gmra.mxu1 %v1146_v49  ;;  %649 = vmatprep.mubr.bf16.mxu0 %v913_v50 }
  0x3f   : > { %713 = vmatprep.mubr.bf16.mxu1 %v915_v51 }
  0x45   : > { %650 = vmatmul.mubr.bf16.gmra.mxu0 %v912_v52 }
  0x46   : > { %714 = vmatmul.mubr.bf16.gmra.mxu1 %v914_v53  ;;  %1069 = vmatprep.mubr.msk.bf16.mxu0 %vm580_vm0, %v1153_v54 }
  0x47   : > { %1073 = vmatprep.mubr.msk.bf16.mxu1 %vm580_vm0, %v1154_v55 }
  0x4d   : > { %1070 = vmatmul.mubr.msk.bf16.vlgmr.msra.gmra.mxu0 %vm580_vm0, %v1155_v56 }
  0x4e   : > { %1074 = vmatmul.mubr.msk.bf16.vlgmr.msra.gmra.mxu1 %vm580_vm0, %v1156_v57 }
  0xed   : > { %v989_v58 = vpop.f32.mrf.mxu0 }
  0xee   : > { %v1029_v59 = vpop.f32.mrf.mxu1 }
  0xef   : > { %v990_v60 = vpop.f32.mrf.mxu0 }
  0xf0   : > { %v1030_v61 = vpop.f32.mrf.mxu1  ;;  %v991_v19 = vadd.f32 %v990_v60, %v989_v58 }
  0xf1   : > { %v992_v62 = vpop.f32.mrf.mxu0  ;;  %v1031_v39 = vadd.f32 %v1030_v61, %v1029_v59 }
  0xf2   : > { %v1032_v63 = vpop.f32.mrf.mxu1  ;;  %v628_v29 = vadd.f32 %v991_v19, %v896_v21 }
  0xf3   : > { %v993_v0 = vpop.f32.mrf.mxu0 }
  0xf4   : > { %v1033_v1 = vpop.f32.mrf.mxu1  ;;  %v994_v31 = vadd.f32 %v993_v0, %v992_v62  ;;  %v692_v50 = vadd.f32 %v1031_v39, %v628_v29 }
  0xf5   : > { %v995_v2 = vpop.f32.mrf.mxu0  ;;  %v1034_v55 = vadd.f32 %v1033_v1, %v1032_v63 }
  0xf6   : > { %v1035_v3 = vpop.f32.mrf.mxu1  ;;  %v631_v46 = vadd.f32 %v994_v31, %v896_v21 }
  0xf7   : > { %v996_v4 = vpop.f32.mrf.mxu0 }
  0xf8   : > { %v1036_v5 = vpop.f32.mrf.mxu1  ;;  %v997_v17 = vadd.f32 %v996_v4, %v995_v2  ;;  %v831_v4 = vld [vmem:[%s1338_s20 + $0x18] sm:$0x1] }
  0xf9   : > { %v998_v6 = vpop.f32.mrf.mxu0  ;;  %v1037_v32 = vadd.f32 %v1036_v5, %v1035_v3 }
  0xfa   : > { %v1038_v7 = vpop.f32.mrf.mxu1  ;;  %v636_v25 = vadd.f32 %v997_v17, %v896_v21 }
  0xfb   : > { %v999_v8 = vpop.f32.mrf.mxu0 }
  0xfc   : > { %v1039_v9 = vpop.f32.mrf.mxu1  ;;  %v1000_v26 = vadd.f32 %v999_v8, %v998_v6  ;;  %v700_v42 = vadd.f32 %v1037_v32, %v636_v25  ;;  %v695_v6 = vadd.f32 %v1034_v55, %v631_v46 }
  0xfd   : > { %v1001_v10 = vpop.f32.mrf.mxu0  ;;  %v1040_v47 = vadd.f32 %v1039_v9, %v1038_v7 }
  0xfe   : > { %v1041_v11 = vpop.f32.mrf.mxu1  ;;  %v639_v40 = vadd.f32 %v1000_v26, %v896_v21 }
  0xff   : > { %v1002_v12 = vpop.f32.mrf.mxu0 }
 0x100   : > { %v1042_v13 = vpop.f32.mrf.mxu1  ;;  %v1003_v23 = vadd.f32 %v1002_v12, %v1001_v10  ;;  %v703_v59 = vadd.f32 %v1040_v47, %v639_v40 }
 0x101   : > { %v1004_v14 = vpop.f32.mrf.mxu0  ;;  %v1043_v44 = vadd.f32 %v1042_v13, %v1041_v11 }
 0x102   : > { %v1044_v15 = vpop.f32.mrf.mxu1  ;;  %v644_v36 = vadd.f32 %v1003_v23, %v896_v21 }
 0x103   : > { %v1005_v16 = vpop.f32.mrf.mxu0 }
 0x104   : > { %v1045_v18 = vpop.f32.mrf.mxu1  ;;  %v1006_v37 = vadd.f32 %v1005_v16, %v1004_v14  ;;  %v708_v54 = vadd.f32 %v1043_v44, %v644_v36 }
 0x105   : > { %v1007_v20 = vpop.f32.mrf.mxu0  ;;  %v1046_v60 = vadd.f32 %v1045_v18, %v1044_v15 }
 0x106   : > { %v1047_v22 = vpop.f32.mrf.mxu1  ;;  %v647_v51 = vadd.f32 %v1006_v37, %v896_v21 }
 0x107   : > { %v1008_v24 = vpop.f32.mrf.mxu0 }
 0x108   : > { %v1009_v27 = vadd.f32 %v1008_v24, %v1007_v20  ;;  %v1048_v28 = vpop.f32.mrf.mxu1  ;;  %v711_v10 = vadd.f32 %v1046_v60, %v647_v51 }
 0x109   : > { %v1010_v30 = vpop.f32.mrf.mxu0  ;;  %v1049_v34 = vadd.f32 %v1048_v28, %v1047_v22 }
 0x10a   : > { %v652_v33 = vadd.f32 %v1009_v27, %v896_v21  ;;  %v1050_v35 = vpop.f32.mrf.mxu1 }
 0x10b   : > { %v1011_v38 = vpop.f32.mrf.mxu0 }
 0x10c   : > { %v1051_v41 = vpop.f32.mrf.mxu1  ;;  %v716_v43 = vadd.f32 %v1049_v34, %v652_v33 }
 0x10d   : > { %v1071_v45 = vpop.f32.mrf.mxu0 }
 0x10e   : > { %v764_v48 = vadd.f32 %v1071_v45, %v700_v42  ;;  %v1075_v49 = vpop.f32.mrf.mxu1 }
 0x10f   : > { %v780_v52 = vadd.f32 %v1075_v49, %v716_v43  ;;  %v755_v53 = vpop.f32.mrf.mxu0 }
 0x110   : > { %v787_v56 = vmax.f32 %v764_v48, 0.0  ;;  %v756_v57 = vadd.f32 %v755_v53, %v692_v50  ;;  %v771_v58 = vpop.f32.mrf.mxu1 }
 0x111   : > { %v791_v61 = vmax.f32 %v780_v52, 0.0  ;;  %v772_v62 = vadd.f32 %v771_v58, %v708_v54  ;;  %v1072_v0 = vpop.f32.mrf.mxu0 }
 0x112   : > { %v968_v2 = vpack.c.bf16 %v787_v56, %v787_v56  ;;  %v785_v5 = vmax.f32 %v756_v57, 0.0  ;;  %v767_v63 = vadd.f32 %v1072_v0, %v703_v59  ;;  %v1076_v1 = vpop.f32.mrf.mxu1 }
 0x113   : > { %v972_v7 = vpack.c.bf16 %v791_v61, %v791_v61  ;;  %v789_v8 = vmax.f32 %v772_v62, 0.0  ;;  %v758_v9 = vpop.f32.mrf.mxu0 }
 0x114   : > { %824 = vst.msk [vmem:[%s1338_s20 + $0x8] sm:$0xf] %vm821_vm3, %v968_v2  ;;  %v966_v11 = vpack.c.bf16 %v785_v5, %v785_v5  ;;  %v788_v12 = vmax.f32 %v767_v63, 0.0  ;;  %v759_v13 = vadd.f32 %v758_v9, %v695_v6  ;;  %v774_v14 = vpop.f32.mrf.mxu1 }
 0x115   : > { %v832_v15 = vsel %vm1341_vm4, %v972_v7, %v831_v4  ;;  %v970_v16 = vpack.c.bf16 %v789_v8, %v789_v8  ;;  %v775_v17 = vadd.f32 %v774_v14, %v711_v10 }
 0x116   : > { %833 = vst [vmem:[%s1338_s20 + $0x18] sm:$0x1] %v832_v15  ;;  %822 = vst.msk [vmem:[%s1338_s20] sm:$0xf] %vm821_vm3, %v966_v11  ;;  %v969_v18 = vpack.c.bf16 %v788_v12, %v788_v12  ;;  %v786_v19 = vmax.f32 %v759_v13, 0.0 }
 0x117   : > { %826 = vst.msk [vmem:[%s1338_s20 + $0x10] sm:$0xf] %vm821_vm3, %v970_v16  ;;  %v790_v20 = vmax.f32 %v775_v17, 0.0 }
 0x118   : > { %825 = vst.msk [vmem:[%s1338_s20 + $0xc] sm:$0xf] %vm821_vm3, %v969_v18  ;;  %v967_v21 = vpack.c.bf16 %v786_v19, %v786_v19 }
 0x119   : > { %v971_v22 = vpack.c.bf16 %v790_v20, %v790_v20 }
 0x11a   : > { %823 = vst.msk [vmem:[%s1338_s20 + $0x4] sm:$0xf] %vm821_vm3, %v967_v21 }
 0x11b   : > { %827 = vst.msk [vmem:[%s1338_s20 + $0x14] sm:$0xf] %vm821_vm3, %v971_v22 }
 0x11c PF: > { %s13_s12 = sadd.s32 1, %s1163_s12  }
 0x11d   : > { %p10_p4 = scmp.ge.s32.totalorder %s13_s12, 4  }
 0x11f   :  { %12 = sbr.rel (!%p10_p4) target bundleno = 1 (0x1), region = 62 }

// kernel: dueling_dqn_forward.7
= control target key start
LH: loop header
LB: loop body
LE: loop exit
PB: predicated region body
PF: predicated region fallthrough
CT: control target
= control target key end

     0   :  { %v1596_v32 = vlaneseq  ;;  %v13999_v33 = vmov 1966171168   ;;  %s19542_s0 = inlined_call_operand.vmem [shape: bf16[2,3136], index: 0, kind: input, shape index: {}]   ;;  %s19543_s1 = inlined_call_operand.vmem [shape: bf16[3136,1024], index: 1, kind: input, shape index: {}]   ;;  %s19544_s2 = inlined_call_operand.vmem [shape: f32[1,1024], index: 2, kind: input, shape index: {}]   ;;  %s19545_s3 = inlined_call_operand.vmem [shape: f32[1024,7], index: 3, kind: input, shape index: {}]   ;;  %s19546_s4 = inlined_call_operand.vmem [shape: f32[1,7], index: 4, kind: input, shape index: {}]   ;;  %s19547_s5 = inlined_call_operand.hbm [shape: f32[2,6], index: 5, kind: output, shape index: {}]  }
   0x1   :  { %v82_v0 = vld [vmem:[%s19543_s1 + $0x1c0] sm:$0xff]  ;;  %v1642_v34 = vunpack.c.l.s4 %v13999_v33 }
   0x2   :  { %v86_v1 = vld [vmem:[%s19543_s1 + $0x1e0] sm:$0xff]  ;;  %v14099_v43 = vshrl.u32 %v1596_v32, 7 }
   0x3   :  { %v210_v2 = vld [vmem:[%s19543_s1 + $0x5c0] sm:$0xff]  ;;  %v12310_v3 = vcombine.high %v82_v0, %v86_v1  ;;  %v12309_v5 = vcombine.low %v82_v0, %v86_v1  ;;  %v1643_v44 = vunpack.c.0.s8 %v1642_v34 }
   0x4   :  { %v214_v4 = vld [vmem:[%s19543_s1 + $0x5e0] sm:$0xff] }
   0x5   :  { %v74_v6 = vld [vmem:[%s19543_s1 + $0x180] sm:$0xff]  ;;  %v12438_v8 = vcombine.high %v210_v2, %v214_v4  ;;  %v12437_v9 = vcombine.low %v210_v2, %v214_v4  ;;  %9669 = vmatprep.subr.bf16.mxu0 %v12310_v3  ;;  %v14114_v53 = vsub.s32 %v1643_v44, %v14099_v43 }
   0x6   :  { %v78_v7 = vld [vmem:[%s19543_s1 + $0x1a0] sm:$0xff]  ;;  %9670 = vmatpush1.bf16.msra.mxu0 %v12309_v5 }
   0x7   :  { %v12302_v10 = vcombine.high %v74_v6, %v78_v7  ;;  %v202_v11 = vld [vmem:[%s19543_s1 + $0x580] sm:$0xff]  ;;  %9710 = vmatprep.subr.bf16.mxu1 %v12438_v8  ;;  %v12301_v18 = vcombine.low %v74_v6, %v78_v7 }
   0x8   :  { %v206_v12 = vld [vmem:[%s19543_s1 + $0x5a0] sm:$0xff]  ;;  %9711 = vmatpush1.bf16.msra.mxu1 %v12437_v9 }
   0x9   :  { %v66_v13 = vld [vmem:[%s19543_s1 + $0x140] sm:$0xff]  ;;  %v12430_v14 = vcombine.high %v202_v11, %v206_v12  ;;  %9671 = vmatprep.subr.bf16.mxu0 %v12302_v10  ;;  %v12429_v19 = vcombine.low %v202_v11, %v206_v12 }
   0xa   :  { %v70_v15 = vld [vmem:[%s19543_s1 + $0x160] sm:$0xff]  ;;  %9672 = vmatpush1.bf16.msra.mxu0 %v12301_v18 }
   0xb   :  { %v194_v16 = vld [vmem:[%s19543_s1 + $0x540] sm:$0xff]  ;;  %v12294_v20 = vcombine.high %v66_v13, %v70_v15  ;;  %9712 = vmatprep.subr.bf16.mxu1 %v12430_v14  ;;  %v12293_v26 = vcombine.low %v66_v13, %v70_v15 }
   0xc   :  { %v198_v17 = vld [vmem:[%s19543_s1 + $0x560] sm:$0xff]  ;;  %9713 = vmatpush1.bf16.msra.mxu1 %v12429_v19 }
   0xd   :  { %v12422_v21 = vcombine.high %v194_v16, %v198_v17  ;;  %v58_v22 = vld [vmem:[%s19543_s1 + $0x100] sm:$0xff]  ;;  %9673 = vmatprep.subr.bf16.mxu0 %v12294_v20  ;;  %v12421_v27 = vcombine.low %v194_v16, %v198_v17 }
   0xe   :  { %v62_v23 = vld [vmem:[%s19543_s1 + $0x120] sm:$0xff]  ;;  %9674 = vmatpush1.bf16.msra.mxu0 %v12293_v26 }
   0xf   :  { %v186_v24 = vld [vmem:[%s19543_s1 + $0x500] sm:$0xff]  ;;  %v12286_v28 = vcombine.high %v58_v22, %v62_v23  ;;  %9714 = vmatprep.subr.bf16.mxu1 %v12422_v21  ;;  %v12285_v37 = vcombine.low %v58_v22, %v62_v23 }
  0x10   :  { %v190_v25 = vld [vmem:[%s19543_s1 + $0x520] sm:$0xff]  ;;  %9715 = vmatpush1.bf16.msra.mxu1 %v12421_v27 }
  0x11   :  { %v12414_v29 = vcombine.high %v186_v24, %v190_v25  ;;  %v50_v30 = vld [vmem:[%s19543_s1 + $0xc0] sm:$0xff]  ;;  %9675 = vmatprep.subr.bf16.mxu0 %v12286_v28  ;;  %v12413_v38 = vcombine.low %v186_v24, %v190_v25 }
  0x12   :  { %v54_v31 = vld [vmem:[%s19543_s1 + $0xe0] sm:$0xff]  ;;  %9676 = vmatpush1.bf16.msra.mxu0 %v12285_v37 }
  0x13   :  { %v178_v35 = vld [vmem:[%s19543_s1 + $0x4c0] sm:$0xff]  ;;  %v12278_v39 = vcombine.high %v50_v30, %v54_v31  ;;  %9716 = vmatprep.subr.bf16.mxu1 %v12414_v29  ;;  %v12277_v47 = vcombine.low %v50_v30, %v54_v31 }
  0x14   :  { %v182_v36 = vld [vmem:[%s19543_s1 + $0x4e0] sm:$0xff]  ;;  %9717 = vmatpush1.bf16.msra.mxu1 %v12413_v38 }
  0x15   :  { %v12406_v40 = vcombine.high %v178_v35, %v182_v36  ;;  %v42_v41 = vld [vmem:[%s19543_s1 + $0x80] sm:$0xff]  ;;  %9677 = vmatprep.subr.bf16.mxu0 %v12278_v39  ;;  %v12405_v48 = vcombine.low %v178_v35, %v182_v36 }
  0x16   :  { %v46_v42 = vld [vmem:[%s19543_s1 + $0xa0] sm:$0xff]  ;;  %9678 = vmatpush1.bf16.msra.mxu0 %v12277_v47 }
  0x17   :  { %v170_v45 = vld [vmem:[%s19543_s1 + $0x480] sm:$0xff]  ;;  %v12270_v49 = vcombine.high %v42_v41, %v46_v42  ;;  %9718 = vmatprep.subr.bf16.mxu1 %v12406_v40  ;;  %v12269_v56 = vcombine.low %v42_v41, %v46_v42 }
  0x18   :  { %v174_v46 = vld [vmem:[%s19543_s1 + $0x4a0] sm:$0xff]  ;;  %9719 = vmatpush1.bf16.msra.mxu1 %v12405_v48 }
  0x19   :  { %v12398_v50 = vcombine.high %v170_v45, %v174_v46  ;;  %v34_v51 = vld [vmem:[%s19543_s1 + $0x40] sm:$0xff]  ;;  %9679 = vmatprep.subr.bf16.mxu0 %v12270_v49  ;;  %v12397_v57 = vcombine.low %v170_v45, %v174_v46 }
  0x1a   :  { %v38_v52 = vld [vmem:[%s19543_s1 + $0x60] sm:$0xff]  ;;  %9680 = vmatpush1.bf16.msra.mxu0 %v12269_v56 }
  0x1b   :  { %v162_v54 = vld [vmem:[%s19543_s1 + $0x440] sm:$0xff]  ;;  %v12262_v58 = vcombine.high %v34_v51, %v38_v52  ;;  %9720 = vmatprep.subr.bf16.mxu1 %v12398_v50  ;;  %v12261_v2 = vcombine.low %v34_v51, %v38_v52 }
  0x1c   :  { %v166_v55 = vld [vmem:[%s19543_s1 + $0x460] sm:$0xff]  ;;  %9721 = vmatpush1.bf16.msra.mxu1 %v12397_v57 }
  0x1d   :  { %v14125_v59 = vld [vmem:[%s19542_s0] sm:$0xff]  ;;  %v12390_v60 = vcombine.high %v162_v54, %v166_v55  ;;  %9681 = vmatprep.subr.bf16.mxu0 %v12262_v58  ;;  %v12389_v4 = vcombine.low %v162_v54, %v166_v55 }
  0x1e   :  { %v26_v61 = vld [vmem:[%s19543_s1] sm:$0xff]  ;;  %v14135_v63 = vrot.slane %v14125_v59, %v14114_v53  ;;  %9682 = vmatpush1.bf16.msra.mxu0 %v12261_v2 }
  0x1f   :  { %v30_v62 = vld [vmem:[%s19543_s1 + $0x20] sm:$0xff]  ;;  %9722 = vmatprep.subr.bf16.mxu1 %v12390_v60 }
  0x20   :  { %v154_v0 = vld [vmem:[%s19543_s1 + $0x400] sm:$0xff]  ;;  %v1655_v3 = vcombine.high %v14135_v63, %v14135_v63  ;;  %v12254_v5 = vcombine.high %v26_v61, %v30_v62  ;;  %v12253_v12 = vcombine.low %v26_v61, %v30_v62  ;;  %9723 = vmatpush1.bf16.msra.mxu1 %v12389_v4 }
  0x21   :  { %v158_v1 = vld [vmem:[%s19543_s1 + $0x420] sm:$0xff] }
  0x22   :  { %v12382_v6 = vcombine.high %v154_v0, %v158_v1  ;;  %v146_v7 = vld [vmem:[%s19543_s1 + $0x3c0] sm:$0xff]  ;;  %v14152_v9 = vrot.slane %v1655_v3, %v14114_v53  ;;  %9683 = vmatprep.subr.bf16.mxu0 %v12254_v5  ;;  %v12381_v14 = vcombine.low %v154_v0, %v158_v1  ;;  %v1640_v1 = vcombine.high %v14125_v59, %v14125_v59 }
  0x23   :  { %v150_v8 = vld [vmem:[%s19543_s1 + $0x3e0] sm:$0xff]  ;;  %9684 = vmatpush1.bf16.msra.mxu0 %v12253_v12 }
  0x24   :  { %v274_v10 = vld [vmem:[%s19543_s1 + $0x7c0] sm:$0xff]  ;;  %9701 = vmatprep.mubr.bf16.mxu0 %v14152_v9  ;;  %v14163_v13 = vcombine.high %v14152_v9, %v14152_v9  ;;  %v12374_v15 = vcombine.high %v146_v7, %v150_v8  ;;  %9724 = vmatprep.subr.bf16.mxu1 %v12382_v6  ;;  %v12373_v21 = vcombine.low %v146_v7, %v150_v8 }
  0x25   :  { %v278_v11 = vld [vmem:[%s19543_s1 + $0x7e0] sm:$0xff]  ;;  %9725 = vmatpush1.bf16.msra.mxu1 %v12381_v14 }
  0x26   :  { %v12502_v16 = vcombine.high %v274_v10, %v278_v11  ;;  %v138_v17 = vld [vmem:[%s19543_s1 + $0x380] sm:$0xff]  ;;  %9742 = vmatprep.mubr.bf16.mxu1 %v14163_v13  ;;  %9685 = vmatprep.subr.bf16.mxu0 %v12374_v15  ;;  %v12501_v22 = vcombine.low %v274_v10, %v278_v11  ;;  %v14253_v10 = vrot.slane %v1640_v1, %v14114_v53 }
  0x27   :  { %v142_v18 = vld [vmem:[%s19543_s1 + $0x3a0] sm:$0xff]  ;;  %9686 = vmatpush2.bf16.msra.mxu0 %v12373_v21 }
  0x28   :  { %v266_v19 = vld [vmem:[%s19543_s1 + $0x780] sm:$0xff]  ;;  %v12366_v23 = vcombine.high %v138_v17, %v142_v18  ;;  %9726 = vmatprep.subr.bf16.mxu1 %v12502_v16  ;;  %v12365_v29 = vcombine.low %v138_v17, %v142_v18 }
  0x29   :  { %v270_v20 = vld [vmem:[%s19543_s1 + $0x7a0] sm:$0xff]  ;;  %9727 = vmatpush2.bf16.msra.mxu1 %v12501_v22  ;;  %v14271_v22 = vrot.slane %v14135_v63, %v14114_v53 }
  0x2a   :  { %v12494_v24 = vcombine.high %v266_v19, %v270_v20  ;;  %v130_v25 = vld [vmem:[%s19543_s1 + $0x340] sm:$0xff]  ;;  %9687 = vmatprep.subr.bf16.mxu0 %v12366_v23  ;;  %v12493_v30 = vcombine.low %v266_v19, %v270_v20  ;;  %v1656_v20 = vcombine.high %v14253_v10, %v14253_v10 }
  0x2b   :  { %v134_v26 = vld [vmem:[%s19543_s1 + $0x360] sm:$0xff]  ;;  %9688 = vmatpush2.bf16.msra.mxu0 %v12365_v29 }
  0x2c   :  { %v258_v27 = vld [vmem:[%s19543_s1 + $0x740] sm:$0xff]  ;;  %v12358_v31 = vcombine.high %v130_v25, %v134_v26  ;;  %9728 = vmatprep.subr.bf16.mxu1 %v12494_v24  ;;  %v12357_v37 = vcombine.low %v130_v25, %v134_v26  ;;  %v14286_v29 = vrot.slane %v1656_v20, %v14114_v53 }
  0x2d   :  { %v262_v28 = vld [vmem:[%s19543_s1 + $0x760] sm:$0xff]  ;;  %9729 = vmatpush2.bf16.msra.mxu1 %v12493_v30  ;;  %v14290_v30 = vcombine.high %v14271_v22, %v14271_v22 }
  0x2e   :  { %v12486_v32 = vcombine.high %v258_v27, %v262_v28  ;;  %v122_v33 = vld [vmem:[%s19543_s1 + $0x300] sm:$0xff]  ;;  %9689 = vmatprep.subr.bf16.mxu0 %v12358_v31  ;;  %v12485_v38 = vcombine.low %v258_v27, %v262_v28 }
  0x2f   :  { %v126_v34 = vld [vmem:[%s19543_s1 + $0x320] sm:$0xff]  ;;  %9690 = vmatpush2.bf16.msra.mxu0 %v12357_v37 }
  0x30   :  { %v250_v35 = vld [vmem:[%s19543_s1 + $0x700] sm:$0xff]  ;;  %v12350_v39 = vcombine.high %v122_v33, %v126_v34  ;;  %9730 = vmatprep.subr.bf16.mxu1 %v12486_v32  ;;  %v12349_v46 = vcombine.low %v122_v33, %v126_v34 }
  0x31   :  { %v254_v36 = vld [vmem:[%s19543_s1 + $0x720] sm:$0xff]  ;;  %9731 = vmatpush2.bf16.msra.mxu1 %v12485_v38 }
  0x32   :  { %v12478_v40 = vcombine.high %v250_v35, %v254_v36  ;;  %v114_v41 = vld [vmem:[%s19543_s1 + $0x2c0] sm:$0xff]  ;;  %9691 = vmatprep.subr.bf16.mxu0 %v12350_v39  ;;  %v12477_v47 = vcombine.low %v250_v35, %v254_v36 }
  0x33   :  { %v118_v42 = vld [vmem:[%s19543_s1 + $0x2e0] sm:$0xff]  ;;  %9692 = vmatpush2.bf16.msra.mxu0 %v12349_v46 }
  0x34   :  { %v242_v44 = vld [vmem:[%s19543_s1 + $0x6c0] sm:$0xff]  ;;  %v12342_v48 = vcombine.high %v114_v41, %v118_v42  ;;  %9732 = vmatprep.subr.bf16.mxu1 %v12478_v40  ;;  %v12341_v55 = vcombine.low %v114_v41, %v118_v42 }
  0x35   :  { %v246_v45 = vld [vmem:[%s19543_s1 + $0x6e0] sm:$0xff]  ;;  %9733 = vmatpush2.bf16.msra.mxu1 %v12477_v47 }
  0x36   :  { %v12470_v49 = vcombine.high %v242_v44, %v246_v45  ;;  %v106_v50 = vld [vmem:[%s19543_s1 + $0x280] sm:$0xff]  ;;  %9693 = vmatprep.subr.bf16.mxu0 %v12342_v48  ;;  %v12469_v56 = vcombine.low %v242_v44, %v246_v45 }
  0x37   :  { %v110_v51 = vld [vmem:[%s19543_s1 + $0x2a0] sm:$0xff]  ;;  %9694 = vmatpush2.bf16.msra.mxu0 %v12341_v55 }
  0x38   :  { %v234_v52 = vld [vmem:[%s19543_s1 + $0x680] sm:$0xff]  ;;  %v12334_v57 = vcombine.high %v106_v50, %v110_v51  ;;  %9734 = vmatprep.subr.bf16.mxu1 %v12470_v49  ;;  %v12333_v2 = vcombine.low %v106_v50, %v110_v51 }
  0x39   :  { %v238_v54 = vld [vmem:[%s19543_s1 + $0x6a0] sm:$0xff]  ;;  %9735 = vmatpush2.bf16.msra.mxu1 %v12469_v56 }
  0x3a   :  { %v12462_v58 = vcombine.high %v234_v52, %v238_v54  ;;  %v98_v60 = vld [vmem:[%s19543_s1 + $0x240] sm:$0xff]  ;;  %9695 = vmatprep.subr.bf16.mxu0 %v12334_v57  ;;  %v12461_v3 = vcombine.low %v234_v52, %v238_v54 }
  0x3b   :  { %v102_v61 = vld [vmem:[%s19543_s1 + $0x260] sm:$0xff]  ;;  %9696 = vmatpush2.bf16.msra.mxu0 %v12333_v2 }
  0x3c   :  { %v226_v62 = vld [vmem:[%s19543_s1 + $0x640] sm:$0xff]  ;;  %v12326_v4 = vcombine.high %v98_v60, %v102_v61  ;;  %9736 = vmatprep.subr.bf16.mxu1 %v12462_v58  ;;  %v12325_v11 = vcombine.low %v98_v60, %v102_v61 }
  0x3d   :  { %v230_v0 = vld [vmem:[%s19543_s1 + $0x660] sm:$0xff]  ;;  %9737 = vmatpush2.bf16.msra.mxu1 %v12461_v3 }
  0x3e   :  { %v12454_v5 = vcombine.high %v226_v62, %v230_v0  ;;  %v90_v6 = vld [vmem:[%s19543_s1 + $0x200] sm:$0xff]  ;;  %9697 = vmatprep.subr.bf16.mxu0 %v12326_v4  ;;  %v12453_v12 = vcombine.low %v226_v62, %v230_v0 }
  0x3f   :  { %v94_v7 = vld [vmem:[%s19543_s1 + $0x220] sm:$0xff]  ;;  %9698 = vmatpush2.bf16.msra.mxu0 %v12325_v11 }
  0x40   :  { %v218_v59 = vld [vmem:[%s19543_s1 + $0x600] sm:$0xff]  ;;  %v12318_v14 = vcombine.high %v90_v6, %v94_v7  ;;  %9738 = vmatprep.subr.bf16.mxu1 %v12454_v5  ;;  %v12317_v21 = vcombine.low %v90_v6, %v94_v7 }
  0x41   :  { %v222_v8 = vld [vmem:[%s19543_s1 + $0x620] sm:$0xff]  ;;  %9739 = vmatpush2.bf16.msra.mxu1 %v12453_v12 }
  0x42   :  { %v12446_v15 = vcombine.high %v218_v59, %v222_v8  ;;  %v338_v16 = vld [vmem:[%s19543_s1 + $0x9c0] sm:$0xff]  ;;  %9699 = vmatprep.subr.bf16.mxu0 %v12318_v14  ;;  %v12445_v23 = vcombine.low %v218_v59, %v222_v8 }
  0x43   :  { %v342_v17 = vld [vmem:[%s19543_s1 + $0x9e0] sm:$0xff]  ;;  %9700 = vmatpush2.bf16.msra.mxu0 %v12317_v21 }
  0x44   :  { %v466_v18 = vld [vmem:[%s19543_s1 + $0xdc0] sm:$0xff]  ;;  %v12566_v24 = vcombine.high %v338_v16, %v342_v17  ;;  %9740 = vmatprep.subr.bf16.mxu1 %v12446_v15  ;;  %v12565_v31 = vcombine.low %v338_v16, %v342_v17 }
  0x45   :  { %v470_v19 = vld [vmem:[%s19543_s1 + $0xde0] sm:$0xff] }
  0x46   :  { %v12694_v25 = vcombine.high %v466_v18, %v470_v19  ;;  %v330_v26 = vld [vmem:[%s19543_s1 + $0x980] sm:$0xff] }
  0x47   :  { %v334_v27 = vld [vmem:[%s19543_s1 + $0x9a0] sm:$0xff] }
  0x48   :  { %v458_v28 = vld [vmem:[%s19543_s1 + $0xd80] sm:$0xff] }
  0x49   :  { %v462_v63 = vld [vmem:[%s19543_s1 + $0xda0] sm:$0xff] }
  0x4a   :  { %10 = vsyncpa [#allocation3], 0  ;;  %9741 = vmatpush2.bf16.msra.mxu1 %v12445_v23  ;;  %9751 = vmatprep.subr.bf16.mxu0 %v12566_v24  ;;  %v12693_v32 = vcombine.low %v466_v18, %v470_v19  ;;  %v12558_v33 = vcombine.high %v330_v26, %v334_v27  ;;  %v12686_v34 = vcombine.high %v458_v28, %v462_v63  ;;  %v322_v35 = vld [vmem:[%s19543_s1 + $0x940] sm:$0xff]  ;;  %vm9665_vm0 = vcmask 523264   ;;  %s14002_s24 = smov [#allocation2]  }
  0x4b   :  { %9792 = vmatprep.subr.bf16.mxu1 %v12694_v25  ;;  %v326_v36 = vld [vmem:[%s19543_s1 + $0x960] sm:$0xff]  ;;  %9702 = vmatmul.mubr.bf16.vlgmr.msra.gmra.mxu0 %v14271_v22  ;;  %v14307_v39 = vcombine.high %v14286_v29, %v14286_v29  ;;  %v12557_v40 = vcombine.low %v330_v26, %v334_v27  ;;  %v12685_v41 = vcombine.low %v458_v28, %v462_v63  ;;  %vm12230_vm1 = vcmask 41984   ;;  %s12244_s25 = sshll.u32 %s14002_s24, 4  ;;  %s12245_s25 = int_to_ptr.vmem [resolvable:$true] %s12244_s25 }
  0x4c   :  { %v450_v37 = vld [vmem:[%s19543_s1 + $0xd40] sm:$0xff]  ;;  %9752 = vmatpush1.bf16.msra.mxu0 %v12565_v31  ;;  %v12550_v42 = vcombine.high %v322_v35, %v326_v36  ;;  %9783 = vmatprep.mubr.bf16.mxu0 %v14286_v29  ;;  %v12549_v49 = vcombine.low %v322_v35, %v326_v36  ;;  %p13982_p1 = scmp.lt.s32.totalorder %s12245_s25, %s12245_s25 }
  0x4d   :  { %v454_v38 = vld [vmem:[%s19543_s1 + $0xd60] sm:$0xff]  ;;  %9743 = vmatmul.mubr.bf16.vlgmr.msra.gmra.mxu1 %v14290_v30  ;;  %9753 = vmatprep.subr.bf16.mxu0 %v12558_v33 }
  0x4e   :  { %9793 = vmatpush1.bf16.msra.mxu1 %v12693_v32  ;;  %v12678_v44 = vcombine.high %v450_v37, %v454_v38  ;;  %v314_v45 = vld [vmem:[%s19543_s1 + $0x900] sm:$0xff]  ;;  %9824 = vmatprep.mubr.bf16.mxu1 %v14307_v39  ;;  %v12677_v50 = vcombine.low %v450_v37, %v454_v38 }
  0x4f   :  { %9794 = vmatprep.subr.bf16.mxu1 %v12686_v34  ;;  %v318_v46 = vld [vmem:[%s19543_s1 + $0x920] sm:$0xff] }
  0x50   :  { %v442_v47 = vld [vmem:[%s19543_s1 + $0xd00] sm:$0xff]  ;;  %9754 = vmatpush1.bf16.msra.mxu0 %v12557_v40  ;;  %v12542_v51 = vcombine.high %v314_v45, %v318_v46  ;;  %v12541_v58 = vcombine.low %v314_v45, %v318_v46 }
  0x51   :  { %v446_v48 = vld [vmem:[%s19543_s1 + $0xd20] sm:$0xff]  ;;  %9755 = vmatprep.subr.bf16.mxu0 %v12550_v42 }
  0x52   :  { %9795 = vmatpush1.bf16.msra.mxu1 %v12685_v41  ;;  %v12670_v52 = vcombine.high %v442_v47, %v446_v48  ;;  %v306_v54 = vld [vmem:[%s19543_s1 + $0x8c0] sm:$0xff]  ;;  %v12669_v60 = vcombine.low %v442_v47, %v446_v48 }
  0x53   :  { %9796 = vmatprep.subr.bf16.mxu1 %v12678_v44  ;;  %v310_v55 = vld [vmem:[%s19543_s1 + $0x8e0] sm:$0xff] }
  0x54   :  { %v434_v56 = vld [vmem:[%s19543_s1 + $0xcc0] sm:$0xff]  ;;  %9756 = vmatpush1.bf16.msra.mxu0 %v12549_v49  ;;  %v12534_v61 = vcombine.high %v306_v54, %v310_v55  ;;  %v12533_v4 = vcombine.low %v306_v54, %v310_v55 }
  0x55   :  { %v438_v57 = vld [vmem:[%s19543_s1 + $0xce0] sm:$0xff]  ;;  %9757 = vmatprep.subr.bf16.mxu0 %v12542_v51 }
  0x56   :  { %9797 = vmatpush1.bf16.msra.mxu1 %v12677_v50  ;;  %v12662_v62 = vcombine.high %v434_v56, %v438_v57  ;;  %v298_v0 = vld [vmem:[%s19543_s1 + $0x880] sm:$0xff]  ;;  %v12661_v5 = vcombine.low %v434_v56, %v438_v57 }
  0x57   :  { %9798 = vmatprep.subr.bf16.mxu1 %v12670_v52  ;;  %v302_v1 = vld [vmem:[%s19543_s1 + $0x8a0] sm:$0xff] }
  0x58   :  { %v426_v2 = vld [vmem:[%s19543_s1 + $0xc80] sm:$0xff]  ;;  %9758 = vmatpush1.bf16.msra.mxu0 %v12541_v58  ;;  %v12526_v6 = vcombine.high %v298_v0, %v302_v1  ;;  %v12525_v14 = vcombine.low %v298_v0, %v302_v1 }
  0x59   :  { %v430_v3 = vld [vmem:[%s19543_s1 + $0xca0] sm:$0xff]  ;;  %9759 = vmatprep.subr.bf16.mxu0 %v12534_v61 }
  0x5a   :  { %9799 = vmatpush1.bf16.msra.mxu1 %v12669_v60  ;;  %v12654_v7 = vcombine.high %v426_v2, %v430_v3  ;;  %v290_v59 = vld [vmem:[%s19543_s1 + $0x840] sm:$0xff]  ;;  %v12653_v15 = vcombine.low %v426_v2, %v430_v3 }
  0x5b   :  { %9800 = vmatprep.subr.bf16.mxu1 %v12662_v62  ;;  %v294_v8 = vld [vmem:[%s19543_s1 + $0x860] sm:$0xff] }
  0x5c   :  { %v418_v11 = vld [vmem:[%s19543_s1 + $0xc40] sm:$0xff]  ;;  %9760 = vmatpush1.bf16.msra.mxu0 %v12533_v4  ;;  %v12518_v16 = vcombine.high %v290_v59, %v294_v8  ;;  %v12517_v23 = vcombine.low %v290_v59, %v294_v8 }
  0x5d   :  { %v422_v12 = vld [vmem:[%s19543_s1 + $0xc60] sm:$0xff]  ;;  %9761 = vmatprep.subr.bf16.mxu0 %v12526_v6 }
  0x5e   :  { %9801 = vmatpush1.bf16.msra.mxu1 %v12661_v5  ;;  %v12646_v17 = vcombine.high %v418_v11, %v422_v12  ;;  %v282_v18 = vld [vmem:[%s19543_s1 + $0x800] sm:$0xff]  ;;  %v12645_v24 = vcombine.low %v418_v11, %v422_v12 }
  0x5f   :  { %9802 = vmatprep.subr.bf16.mxu1 %v12654_v7  ;;  %v286_v19 = vld [vmem:[%s19543_s1 + $0x820] sm:$0xff] }
  0x60   :  { %v410_v20 = vld [vmem:[%s19543_s1 + $0xc00] sm:$0xff]  ;;  %9762 = vmatpush1.bf16.msra.mxu0 %v12525_v14  ;;  %v12510_v25 = vcombine.high %v282_v18, %v286_v19  ;;  %v12509_v32 = vcombine.low %v282_v18, %v286_v19 }
  0x61   :  { %v414_v21 = vld [vmem:[%s19543_s1 + $0xc20] sm:$0xff]  ;;  %9763 = vmatprep.subr.bf16.mxu0 %v12518_v16 }
  0x62   :  { %9803 = vmatpush1.bf16.msra.mxu1 %v12653_v15  ;;  %v12638_v26 = vcombine.high %v410_v20, %v414_v21  ;;  %v402_v27 = vld [vmem:[%s19543_s1 + $0xbc0] sm:$0xff]  ;;  %v12637_v33 = vcombine.low %v410_v20, %v414_v21 }
  0x63   :  { %9804 = vmatprep.subr.bf16.mxu1 %v12646_v17  ;;  %v406_v28 = vld [vmem:[%s19543_s1 + $0xbe0] sm:$0xff] }
  0x64   :  { %v530_v63 = vld [vmem:[%s19543_s1 + $0xfc0] sm:$0xff]  ;;  %9764 = vmatpush1.bf16.msra.mxu0 %v12517_v23  ;;  %v12630_v34 = vcombine.high %v402_v27, %v406_v28  ;;  %v12629_v41 = vcombine.low %v402_v27, %v406_v28 }
  0x65   :  { %v534_v31 = vld [vmem:[%s19543_s1 + $0xfe0] sm:$0xff]  ;;  %9765 = vmatprep.subr.bf16.mxu0 %v12510_v25  ;;  %v14459_v25 = vld [vmem:[%s19542_s0 + $0x8] sm:$0xff] }
  0x66   :  { %9805 = vmatpush1.bf16.msra.mxu1 %v12645_v24  ;;  %v12758_v35 = vcombine.high %v530_v63, %v534_v31  ;;  %v394_v36 = vld [vmem:[%s19543_s1 + $0xb80] sm:$0xff]  ;;  %v12757_v42 = vcombine.low %v530_v63, %v534_v31 }
  0x67   :  { %9806 = vmatprep.subr.bf16.mxu1 %v12638_v26  ;;  %v398_v37 = vld [vmem:[%s19543_s1 + $0xba0] sm:$0xff] }
  0x68   :  { %v522_v38 = vld [vmem:[%s19543_s1 + $0xf80] sm:$0xff]  ;;  %9766 = vmatpush1.bf16.msra.mxu0 %v12509_v32  ;;  %v12622_v44 = vcombine.high %v394_v36, %v398_v37  ;;  %v12621_v50 = vcombine.low %v394_v36, %v398_v37 }
  0x69   :  { %v526_v40 = vld [vmem:[%s19543_s1 + $0xfa0] sm:$0xff]  ;;  %9767 = vmatprep.subr.bf16.mxu0 %v12630_v34  ;;  %v14475_v34 = vrot.slane %v14459_v25, %v14114_v53 }
  0x6a   :  { %9807 = vmatpush1.bf16.msra.mxu1 %v12637_v33  ;;  %v12750_v45 = vcombine.high %v522_v38, %v526_v40  ;;  %v386_v46 = vld [vmem:[%s19543_s1 + $0xb40] sm:$0xff]  ;;  %v12749_v51 = vcombine.low %v522_v38, %v526_v40 }
  0x6b   :  { %9808 = vmatprep.subr.bf16.mxu1 %v12758_v35  ;;  %v390_v47 = vld [vmem:[%s19543_s1 + $0xb60] sm:$0xff] }
  0x6c   :  { %v514_v48 = vld [vmem:[%s19543_s1 + $0xf40] sm:$0xff]  ;;  %9768 = vmatpush2.bf16.msra.mxu0 %v12629_v41  ;;  %v12614_v52 = vcombine.high %v386_v46, %v390_v47  ;;  %v12613_v60 = vcombine.low %v386_v46, %v390_v47  ;;  %v14493_v47 = vrot.slane %v14253_v10, %v14114_v53 }
  0x6d   :  { %v518_v49 = vld [vmem:[%s19543_s1 + $0xf60] sm:$0xff]  ;;  %9769 = vmatprep.subr.bf16.mxu0 %v12622_v44 }
  0x6e   :  { %9809 = vmatpush2.bf16.msra.mxu1 %v12757_v42  ;;  %v12742_v54 = vcombine.high %v514_v48, %v518_v49  ;;  %v378_v55 = vld [vmem:[%s19543_s1 + $0xb00] sm:$0xff]  ;;  %v12741_v61 = vcombine.low %v514_v48, %v518_v49 }
  0x6f   :  { %9810 = vmatprep.subr.bf16.mxu1 %v12750_v45  ;;  %v382_v56 = vld [vmem:[%s19543_s1 + $0xb20] sm:$0xff]  ;;  %v1704_v45 = vcombine.high %v14475_v34, %v14475_v34 }
  0x70   :  { %v506_v57 = vld [vmem:[%s19543_s1 + $0xf00] sm:$0xff]  ;;  %9770 = vmatpush2.bf16.msra.mxu0 %v12621_v50  ;;  %v12606_v62 = vcombine.high %v378_v55, %v382_v56  ;;  %v12605_v5 = vcombine.low %v378_v55, %v382_v56  ;;  %v14512_v56 = vcombine.high %v14493_v47, %v14493_v47 }
  0x71   :  { %v510_v58 = vld [vmem:[%s19543_s1 + $0xf20] sm:$0xff]  ;;  %9771 = vmatprep.subr.bf16.mxu0 %v12614_v52  ;;  %v14508_v55 = vrot.slane %v1704_v45, %v14114_v53 }
  0x72   :  { %9811 = vmatpush2.bf16.msra.mxu1 %v12749_v51  ;;  %v12734_v0 = vcombine.high %v506_v57, %v510_v58  ;;  %v370_v1 = vld [vmem:[%s19543_s1 + $0xac0] sm:$0xff]  ;;  %v12733_v6 = vcombine.low %v506_v57, %v510_v58 }
  0x73   :  { %9812 = vmatprep.subr.bf16.mxu1 %v12742_v54  ;;  %v374_v2 = vld [vmem:[%s19543_s1 + $0xae0] sm:$0xff] }
  0x74   :  { %v498_v3 = vld [vmem:[%s19543_s1 + $0xec0] sm:$0xff]  ;;  %9772 = vmatpush2.bf16.msra.mxu0 %v12613_v60  ;;  %v12598_v7 = vcombine.high %v370_v1, %v374_v2  ;;  %v12597_v15 = vcombine.low %v370_v1, %v374_v2 }
  0x75   :  { %v502_v4 = vld [vmem:[%s19543_s1 + $0xee0] sm:$0xff]  ;;  %9773 = vmatprep.subr.bf16.mxu0 %v12606_v62 }
  0x76   :  { %9813 = vmatpush2.bf16.msra.mxu1 %v12741_v61  ;;  %v12726_v59 = vcombine.high %v498_v3, %v502_v4  ;;  %v362_v8 = vld [vmem:[%s19543_s1 + $0xa80] sm:$0xff]  ;;  %v12725_v16 = vcombine.low %v498_v3, %v502_v4  ;;  %v14529_v3 = vcombine.high %v14508_v55, %v14508_v55 }
  0x77   :  { %9814 = vmatprep.subr.bf16.mxu1 %v12734_v0  ;;  %v366_v11 = vld [vmem:[%s19543_s1 + $0xaa0] sm:$0xff] }
  0x78   :  { %v490_v12 = vld [vmem:[%s19543_s1 + $0xe80] sm:$0xff]  ;;  %9774 = vmatpush2.bf16.msra.mxu0 %v12605_v5  ;;  %v12590_v17 = vcombine.high %v362_v8, %v366_v11  ;;  %v12589_v24 = vcombine.low %v362_v8, %v366_v11 }
  0x79   :  { %v494_v14 = vld [vmem:[%s19543_s1 + $0xea0] sm:$0xff]  ;;  %9775 = vmatprep.subr.bf16.mxu0 %v12598_v7 }
  0x7a   :  { %9815 = vmatpush2.bf16.msra.mxu1 %v12733_v6  ;;  %v12718_v18 = vcombine.high %v490_v12, %v494_v14  ;;  %v354_v19 = vld [vmem:[%s19543_s1 + $0xa40] sm:$0xff]  ;;  %v12717_v26 = vcombine.low %v490_v12, %v494_v14 }
  0x7b   :  { %9816 = vmatprep.subr.bf16.mxu1 %v12726_v59  ;;  %v358_v20 = vld [vmem:[%s19543_s1 + $0xa60] sm:$0xff] }
  0x7c   :  { %v482_v21 = vld [vmem:[%s19543_s1 + $0xe40] sm:$0xff]  ;;  %9776 = vmatpush2.bf16.msra.mxu0 %v12597_v15  ;;  %v12582_v27 = vcombine.high %v354_v19, %v358_v20  ;;  %v12581_v35 = vcombine.low %v354_v19, %v358_v20 }
  0x7d   :  { %v486_v23 = vld [vmem:[%s19543_s1 + $0xe60] sm:$0xff]  ;;  %9777 = vmatprep.subr.bf16.mxu0 %v12590_v17 }
  0x7e   :  { %9817 = vmatpush2.bf16.msra.mxu1 %v12725_v16  ;;  %v12710_v28 = vcombine.high %v482_v21, %v486_v23  ;;  %v346_v63 = vld [vmem:[%s19543_s1 + $0xa00] sm:$0xff]  ;;  %v12709_v36 = vcombine.low %v482_v21, %v486_v23 }
  0x7f   :  { %9818 = vmatprep.subr.bf16.mxu1 %v12718_v18  ;;  %v350_v31 = vld [vmem:[%s19543_s1 + $0xa20] sm:$0xff] }
  0x80   :  { %v474_v32 = vld [vmem:[%s19543_s1 + $0xe00] sm:$0xff]  ;;  %9778 = vmatpush2.bf16.msra.mxu0 %v12589_v24  ;;  %v12574_v37 = vcombine.high %v346_v63, %v350_v31  ;;  %v12573_v46 = vcombine.low %v346_v63, %v350_v31 }
  0x81   :  { %v478_v33 = vld [vmem:[%s19543_s1 + $0xe20] sm:$0xff]  ;;  %9779 = vmatprep.subr.bf16.mxu0 %v12582_v27 }
  0x82   :  { %9819 = vmatpush2.bf16.msra.mxu1 %v12717_v26  ;;  %v12702_v38 = vcombine.high %v474_v32, %v478_v33  ;;  %v594_v40 = vld [vmem:[%s19543_s1 + $0x11c0] sm:$0xff]  ;;  %v12701_v48 = vcombine.low %v474_v32, %v478_v33 }
  0x83   :  { %9820 = vmatprep.subr.bf16.mxu1 %v12710_v28  ;;  %v598_v41 = vld [vmem:[%s19543_s1 + $0x11e0] sm:$0xff] }
  0x84   :  { %v722_v42 = vld [vmem:[%s19543_s1 + $0x15c0] sm:$0xff]  ;;  %9780 = vmatpush2.bf16.msra.mxu0 %v12581_v35  ;;  %v12822_v49 = vcombine.high %v594_v40, %v598_v41  ;;  %v12821_v57 = vcombine.low %v594_v40, %v598_v41 }
  0x85   :  { %v726_v44 = vld [vmem:[%s19543_s1 + $0x15e0] sm:$0xff]  ;;  %9781 = vmatprep.subr.bf16.mxu0 %v12574_v37 }
  0x86   :  { %9821 = vmatpush2.bf16.msra.mxu1 %v12709_v36  ;;  %v12950_v50 = vcombine.high %v722_v42, %v726_v44  ;;  %v586_v51 = vld [vmem:[%s19543_s1 + $0x1180] sm:$0xff]  ;;  %v12949_v58 = vcombine.low %v722_v42, %v726_v44 }
  0x87   :  { %9822 = vmatprep.subr.bf16.mxu1 %v12702_v38  ;;  %v590_v52 = vld [vmem:[%s19543_s1 + $0x11a0] sm:$0xff] }
  0x88   :  { %v714_v54 = vld [vmem:[%s19543_s1 + $0x1580] sm:$0xff]  ;;  %9782 = vmatpush2.bf16.msra.mxu0 %v12573_v46  ;;  %v12814_v60 = vcombine.high %v586_v51, %v590_v52  ;;  %v12813_v4 = vcombine.low %v586_v51, %v590_v52 }
  0x89   :  { %v718_v10 = vld [vmem:[%s19543_s1 + $0x15a0] sm:$0xff]  ;;  %9833 = vmatprep.subr.bf16.mxu0 %v12822_v49 }
  0x8a   :  { %9823 = vmatpush2.bf16.msra.mxu1 %v12701_v48  ;;  %v12942_v61 = vcombine.high %v714_v54, %v718_v10  ;;  %v578_v62 = vld [vmem:[%s19543_s1 + $0x1140] sm:$0xff]  ;;  %v12941_v5 = vcombine.low %v714_v54, %v718_v10 }
  0x8b   :  { %9874 = vmatprep.subr.bf16.mxu1 %v12950_v50  ;;  %v582_v0 = vld [vmem:[%s19543_s1 + $0x1160] sm:$0xff]  ;;  %9784 = vmatmul.mubr.bf16.vlgmr.msra.gmra.mxu0 %v14493_v47 }
  0x8c   :  { %v706_v1 = vld [vmem:[%s19543_s1 + $0x1540] sm:$0xff]  ;;  %9834 = vmatpush1.bf16.msra.mxu0 %v12821_v57  ;;  %v12806_v6 = vcombine.high %v578_v62, %v582_v0  ;;  %9865 = vmatprep.mubr.bf16.mxu0 %v14508_v55  ;;  %v12805_v14 = vcombine.low %v578_v62, %v582_v0 }
  0x8d   :  { %v710_v2 = vld [vmem:[%s19543_s1 + $0x1560] sm:$0xff]  ;;  %9825 = vmatmul.mubr.bf16.vlgmr.msra.gmra.mxu1 %v14512_v56  ;;  %9835 = vmatprep.subr.bf16.mxu0 %v12814_v60 }
  0x8e   :  { %9875 = vmatpush1.bf16.msra.mxu1 %v12949_v58  ;;  %v12934_v7 = vcombine.high %v706_v1, %v710_v2  ;;  %v570_v59 = vld [vmem:[%s19543_s1 + $0x1100] sm:$0xff]  ;;  %9906 = vmatprep.mubr.bf16.mxu1 %v14529_v3  ;;  %v12933_v15 = vcombine.low %v706_v1, %v710_v2 }
  0x8f   :  { %9876 = vmatprep.subr.bf16.mxu1 %v12942_v61  ;;  %v574_v8 = vld [vmem:[%s19543_s1 + $0x1120] sm:$0xff] }
  0x90   :  { %v698_v11 = vld [vmem:[%s19543_s1 + $0x1500] sm:$0xff]  ;;  %9836 = vmatpush1.bf16.msra.mxu0 %v12813_v4  ;;  %v12798_v16 = vcombine.high %v570_v59, %v574_v8  ;;  %v12797_v23 = vcombine.low %v570_v59, %v574_v8 }
  0x91   :  { %v702_v12 = vld [vmem:[%s19543_s1 + $0x1520] sm:$0xff]  ;;  %9837 = vmatprep.subr.bf16.mxu0 %v12806_v6 }
  0x92   :  { %9877 = vmatpush1.bf16.msra.mxu1 %v12941_v5  ;;  %v12926_v17 = vcombine.high %v698_v11, %v702_v12  ;;  %v562_v18 = vld [vmem:[%s19543_s1 + $0x10c0] sm:$0xff]  ;;  %v12925_v24 = vcombine.low %v698_v11, %v702_v12 }
  0x93   :  { %9878 = vmatprep.subr.bf16.mxu1 %v12934_v7  ;;  %v566_v19 = vld [vmem:[%s19543_s1 + $0x10e0] sm:$0xff] }
  0x94   :  { %v690_v20 = vld [vmem:[%s19543_s1 + $0x14c0] sm:$0xff]  ;;  %9838 = vmatpush1.bf16.msra.mxu0 %v12805_v14  ;;  %v12790_v26 = vcombine.high %v562_v18, %v566_v19  ;;  %v12789_v33 = vcombine.low %v562_v18, %v566_v19 }
  0x95   :  { %v694_v21 = vld [vmem:[%s19543_s1 + $0x14e0] sm:$0xff]  ;;  %9839 = vmatprep.subr.bf16.mxu0 %v12798_v16 }
  0x96   :  { %9879 = vmatpush1.bf16.msra.mxu1 %v12933_v15  ;;  %v12918_v27 = vcombine.high %v690_v20, %v694_v21  ;;  %v554_v28 = vld [vmem:[%s19543_s1 + $0x1080] sm:$0xff]  ;;  %v12917_v35 = vcombine.low %v690_v20, %v694_v21 }
  0x97   :  { %9880 = vmatprep.subr.bf16.mxu1 %v12926_v17  ;;  %v558_v63 = vld [vmem:[%s19543_s1 + $0x10a0] sm:$0xff] }
  0x98   :  { %v682_v31 = vld [vmem:[%s19543_s1 + $0x1480] sm:$0xff]  ;;  %9840 = vmatpush1.bf16.msra.mxu0 %v12797_v23  ;;  %v12782_v36 = vcombine.high %v554_v28, %v558_v63  ;;  %v12781_v44 = vcombine.low %v554_v28, %v558_v63 }
  0x99   :  { %v686_v32 = vld [vmem:[%s19543_s1 + $0x14a0] sm:$0xff]  ;;  %9841 = vmatprep.subr.bf16.mxu0 %v12790_v26 }
  0x9a   :  { %9881 = vmatpush1.bf16.msra.mxu1 %v12925_v24  ;;  %v12910_v37 = vcombine.high %v682_v31, %v686_v32  ;;  %v546_v38 = vld [vmem:[%s19543_s1 + $0x1040] sm:$0xff]  ;;  %v12909_v45 = vcombine.low %v682_v31, %v686_v32 }
  0x9b   :  { %9882 = vmatprep.subr.bf16.mxu1 %v12918_v27  ;;  %v550_v40 = vld [vmem:[%s19543_s1 + $0x1060] sm:$0xff] }
  0x9c   :  { %v674_v41 = vld [vmem:[%s19543_s1 + $0x1440] sm:$0xff]  ;;  %9842 = vmatpush1.bf16.msra.mxu0 %v12789_v33  ;;  %v12774_v46 = vcombine.high %v546_v38, %v550_v40  ;;  %v12773_v54 = vcombine.low %v546_v38, %v550_v40 }
  0x9d   :  { %v678_v42 = vld [vmem:[%s19543_s1 + $0x1460] sm:$0xff]  ;;  %9843 = vmatprep.subr.bf16.mxu0 %v12782_v36 }
  0x9e   :  { %9883 = vmatpush1.bf16.msra.mxu1 %v12917_v35  ;;  %v12902_v48 = vcombine.high %v674_v41, %v678_v42  ;;  %v538_v49 = vld [vmem:[%s19543_s1 + $0x1000] sm:$0xff]  ;;  %v12901_v10 = vcombine.low %v674_v41, %v678_v42 }
  0x9f   :  { %9884 = vmatprep.subr.bf16.mxu1 %v12910_v37  ;;  %v542_v50 = vld [vmem:[%s19543_s1 + $0x1020] sm:$0xff] }
  0xa0   :  { %v666_v51 = vld [vmem:[%s19543_s1 + $0x1400] sm:$0xff]  ;;  %9844 = vmatpush1.bf16.msra.mxu0 %v12781_v44  ;;  %v12766_v57 = vcombine.high %v538_v49, %v542_v50  ;;  %v12765_v1 = vcombine.low %v538_v49, %v542_v50 }
  0xa1   :  { %v670_v52 = vld [vmem:[%s19543_s1 + $0x1420] sm:$0xff]  ;;  %9845 = vmatprep.subr.bf16.mxu0 %v12774_v46 }
  0xa2   :  { %9885 = vmatpush1.bf16.msra.mxu1 %v12909_v45  ;;  %v12894_v58 = vcombine.high %v666_v51, %v670_v52  ;;  %v658_v60 = vld [vmem:[%s19543_s1 + $0x13c0] sm:$0xff]  ;;  %v12893_v2 = vcombine.low %v666_v51, %v670_v52 }
  0xa3   :  { %9886 = vmatprep.subr.bf16.mxu1 %v12902_v48  ;;  %v662_v61 = vld [vmem:[%s19543_s1 + $0x13e0] sm:$0xff] }
  0xa4   :  { %v786_v62 = vld [vmem:[%s19543_s1 + $0x17c0] sm:$0xff]  ;;  %9846 = vmatpush1.bf16.msra.mxu0 %v12773_v54  ;;  %v12886_v4 = vcombine.high %v658_v60, %v662_v61  ;;  %v12885_v11 = vcombine.low %v658_v60, %v662_v61 }
  0xa5   :  { %v790_v0 = vld [vmem:[%s19543_s1 + $0x17e0] sm:$0xff]  ;;  %9847 = vmatprep.subr.bf16.mxu0 %v12766_v57 }
  0xa6   :  { %9887 = vmatpush1.bf16.msra.mxu1 %v12901_v10  ;;  %v13014_v5 = vcombine.high %v786_v62, %v790_v0  ;;  %v650_v6 = vld [vmem:[%s19543_s1 + $0x1380] sm:$0xff]  ;;  %v13013_v12 = vcombine.low %v786_v62, %v790_v0  ;;  %v1689_v62 = vcombine.high %v14459_v25, %v14459_v25 }
  0xa7   :  { %9888 = vmatprep.subr.bf16.mxu1 %v12894_v58  ;;  %v654_v7 = vld [vmem:[%s19543_s1 + $0x13a0] sm:$0xff] }
  0xa8   :  { %v778_v59 = vld [vmem:[%s19543_s1 + $0x1780] sm:$0xff]  ;;  %9848 = vmatpush1.bf16.msra.mxu0 %v12765_v1  ;;  %v12878_v14 = vcombine.high %v650_v6, %v654_v7  ;;  %v12877_v20 = vcombine.low %v650_v6, %v654_v7 }
  0xa9   :  { %v782_v8 = vld [vmem:[%s19543_s1 + $0x17a0] sm:$0xff]  ;;  %9849 = vmatprep.subr.bf16.mxu0 %v12886_v4 }
  0xaa   :  { %9889 = vmatpush1.bf16.msra.mxu1 %v12893_v2  ;;  %v13006_v15 = vcombine.high %v778_v59, %v782_v8  ;;  %v642_v16 = vld [vmem:[%s19543_s1 + $0x1340] sm:$0xff]  ;;  %v13005_v21 = vcombine.low %v778_v59, %v782_v8  ;;  %v14693_v59 = vrot.slane %v1689_v62, %v14114_v53 }
  0xab   :  { %9890 = vmatprep.subr.bf16.mxu1 %v13014_v5  ;;  %v646_v17 = vld [vmem:[%s19543_s1 + $0x1360] sm:$0xff] }
  0xac   :  { %v770_v18 = vld [vmem:[%s19543_s1 + $0x1740] sm:$0xff]  ;;  %9850 = vmatpush2.bf16.msra.mxu0 %v12885_v11  ;;  %v12870_v23 = vcombine.high %v642_v16, %v646_v17  ;;  %v12869_v31 = vcombine.low %v642_v16, %v646_v17 }
  0xad   :  { %v774_v19 = vld [vmem:[%s19543_s1 + $0x1760] sm:$0xff]  ;;  %9851 = vmatprep.subr.bf16.mxu0 %v12878_v14 }
  0xae   :  { %9891 = vmatpush2.bf16.msra.mxu1 %v13013_v12  ;;  %v12998_v24 = vcombine.high %v770_v18, %v774_v19  ;;  %v634_v26 = vld [vmem:[%s19543_s1 + $0x1300] sm:$0xff]  ;;  %v12997_v32 = vcombine.low %v770_v18, %v774_v19  ;;  %v1705_v19 = vcombine.high %v14693_v59, %v14693_v59 }
  0xaf   :  { %9892 = vmatprep.subr.bf16.mxu1 %v13006_v15  ;;  %v638_v27 = vld [vmem:[%s19543_s1 + $0x1320] sm:$0xff] }
  0xb0   :  { %v762_v28 = vld [vmem:[%s19543_s1 + $0x1700] sm:$0xff]  ;;  %9852 = vmatpush2.bf16.msra.mxu0 %v12877_v20  ;;  %v12862_v33 = vcombine.high %v634_v26, %v638_v27  ;;  %v12861_v41 = vcombine.low %v634_v26, %v638_v27 }
  0xb1   :  { %v766_v63 = vld [vmem:[%s19543_s1 + $0x1720] sm:$0xff]  ;;  %9853 = vmatprep.subr.bf16.mxu0 %v12870_v23 }
  0xb2   :  { %9893 = vmatpush2.bf16.msra.mxu1 %v13005_v21  ;;  %v12990_v35 = vcombine.high %v762_v28, %v766_v63  ;;  %v626_v36 = vld [vmem:[%s19543_s1 + $0x12c0] sm:$0xff]  ;;  %v12989_v42 = vcombine.low %v762_v28, %v766_v63  ;;  %v14711_v21 = vrot.slane %v14475_v34, %v14114_v53 }
  0xb3   :  { %9894 = vmatprep.subr.bf16.mxu1 %v12998_v24  ;;  %v630_v37 = vld [vmem:[%s19543_s1 + $0x12e0] sm:$0xff] }
  0xb4   :  { %v754_v38 = vld [vmem:[%s19543_s1 + $0x16c0] sm:$0xff]  ;;  %9854 = vmatpush2.bf16.msra.mxu0 %v12869_v31  ;;  %v12854_v44 = vcombine.high %v626_v36, %v630_v37  ;;  %v12853_v51 = vcombine.low %v626_v36, %v630_v37  ;;  %v14726_v31 = vrot.slane %v1705_v19, %v14114_v53 }
  0xb5   :  { %v758_v40 = vld [vmem:[%s19543_s1 + $0x16e0] sm:$0xff]  ;;  %9855 = vmatprep.subr.bf16.mxu0 %v12862_v33 }
  0xb6   :  { %9895 = vmatpush2.bf16.msra.mxu1 %v12997_v32  ;;  %v12982_v45 = vcombine.high %v754_v38, %v758_v40  ;;  %v618_v46 = vld [vmem:[%s19543_s1 + $0x1280] sm:$0xff]  ;;  %v12981_v52 = vcombine.low %v754_v38, %v758_v40  ;;  %v14730_v32 = vcombine.high %v14711_v21, %v14711_v21 }
  0xb7   :  { %9896 = vmatprep.subr.bf16.mxu1 %v12990_v35  ;;  %v622_v48 = vld [vmem:[%s19543_s1 + $0x12a0] sm:$0xff] }
  0xb8   :  { %v746_v49 = vld [vmem:[%s19543_s1 + $0x1680] sm:$0xff]  ;;  %9856 = vmatpush2.bf16.msra.mxu0 %v12861_v41  ;;  %v12846_v54 = vcombine.high %v618_v46, %v622_v48  ;;  %v12845_v0 = vcombine.low %v618_v46, %v622_v48 }
  0xb9   :  { %v750_v50 = vld [vmem:[%s19543_s1 + $0x16a0] sm:$0xff]  ;;  %9857 = vmatprep.subr.bf16.mxu0 %v12854_v44  ;;  %v14747_v44 = vcombine.high %v14726_v31, %v14726_v31 }
  0xba   :  { %9897 = vmatpush2.bf16.msra.mxu1 %v12989_v42  ;;  %v12974_v10 = vcombine.high %v746_v49, %v750_v50  ;;  %v610_v57 = vld [vmem:[%s19543_s1 + $0x1240] sm:$0xff]  ;;  %v12973_v1 = vcombine.low %v746_v49, %v750_v50 }
  0xbb   :  { %9898 = vmatprep.subr.bf16.mxu1 %v12982_v45  ;;  %v614_v58 = vld [vmem:[%s19543_s1 + $0x1260] sm:$0xff] }
  0xbc   :  { %v738_v60 = vld [vmem:[%s19543_s1 + $0x1640] sm:$0xff]  ;;  %9858 = vmatpush2.bf16.msra.mxu0 %v12853_v51  ;;  %v12838_v2 = vcombine.high %v610_v57, %v614_v58  ;;  %v12837_v8 = vcombine.low %v610_v57, %v614_v58 }
  0xbd   :  { %v742_v61 = vld [vmem:[%s19543_s1 + $0x1660] sm:$0xff]  ;;  %9859 = vmatprep.subr.bf16.mxu0 %v12846_v54 }
  0xbe   :  { %9899 = vmatpush2.bf16.msra.mxu1 %v12981_v52  ;;  %v12966_v4 = vcombine.high %v738_v60, %v742_v61  ;;  %v602_v5 = vld [vmem:[%s19543_s1 + $0x1200] sm:$0xff]  ;;  %v12965_v11 = vcombine.low %v738_v60, %v742_v61 }
  0xbf   :  { %9900 = vmatprep.subr.bf16.mxu1 %v12974_v10  ;;  %v606_v6 = vld [vmem:[%s19543_s1 + $0x1220] sm:$0xff] }
  0xc0   :  { %v730_v25 = vld [vmem:[%s19543_s1 + $0x1600] sm:$0xff]  ;;  %9860 = vmatpush2.bf16.msra.mxu0 %v12845_v0  ;;  %v12830_v12 = vcombine.high %v602_v5, %v606_v6  ;;  %v12829_v20 = vcombine.low %v602_v5, %v606_v6 }
  0xc1   :  { %v734_v7 = vld [vmem:[%s19543_s1 + $0x1620] sm:$0xff]  ;;  %9861 = vmatprep.subr.bf16.mxu0 %v12838_v2 }
  0xc2   :  { %9901 = vmatpush2.bf16.msra.mxu1 %v12973_v1  ;;  %v12958_v14 = vcombine.high %v730_v25, %v734_v7  ;;  %v850_v15 = vld [vmem:[%s19543_s1 + $0x19c0] sm:$0xff]  ;;  %v12957_v23 = vcombine.low %v730_v25, %v734_v7 }
  0xc3   :  { %9902 = vmatprep.subr.bf16.mxu1 %v12966_v4  ;;  %v854_v16 = vld [vmem:[%s19543_s1 + $0x19e0] sm:$0xff] }
  0xc4   :  { %v978_v17 = vld [vmem:[%s19543_s1 + $0x1dc0] sm:$0xff]  ;;  %9862 = vmatpush2.bf16.msra.mxu0 %v12837_v8  ;;  %v13078_v24 = vcombine.high %v850_v15, %v854_v16  ;;  %v13077_v33 = vcombine.low %v850_v15, %v854_v16 }
  0xc5   :  { %v982_v18 = vld [vmem:[%s19543_s1 + $0x1de0] sm:$0xff]  ;;  %9863 = vmatprep.subr.bf16.mxu0 %v12830_v12 }
  0xc6   :  { %9903 = vmatpush2.bf16.msra.mxu1 %v12965_v11  ;;  %v13206_v26 = vcombine.high %v978_v17, %v982_v18  ;;  %v842_v27 = vld [vmem:[%s19543_s1 + $0x1980] sm:$0xff]  ;;  %v13205_v35 = vcombine.low %v978_v17, %v982_v18 }
  0xc7   :  { %9904 = vmatprep.subr.bf16.mxu1 %v12958_v14  ;;  %v846_v28 = vld [vmem:[%s19543_s1 + $0x19a0] sm:$0xff] }
  0xc8   :  { %v970_v63 = vld [vmem:[%s19543_s1 + $0x1d80] sm:$0xff]  ;;  %9864 = vmatpush2.bf16.msra.mxu0 %v12829_v20  ;;  %v13070_v36 = vcombine.high %v842_v27, %v846_v28  ;;  %v13069_v45 = vcombine.low %v842_v27, %v846_v28 }
  0xc9   :  { %v974_v34 = vld [vmem:[%s19543_s1 + $0x1da0] sm:$0xff]  ;;  %9915 = vmatprep.subr.bf16.mxu0 %v13078_v24 }
  0xca   :  { %9905 = vmatpush2.bf16.msra.mxu1 %v12957_v23  ;;  %v13198_v37 = vcombine.high %v970_v63, %v974_v34  ;;  %v834_v38 = vld [vmem:[%s19543_s1 + $0x1940] sm:$0xff]  ;;  %v13197_v46 = vcombine.low %v970_v63, %v974_v34 }
  0xcb   :  { %9956 = vmatprep.subr.bf16.mxu1 %v13206_v26  ;;  %v838_v40 = vld [vmem:[%s19543_s1 + $0x1960] sm:$0xff]  ;;  %9866 = vmatmul.mubr.bf16.vlgmr.msra.gmra.mxu0 %v14711_v21 }
  0xcc   :  { %v962_v41 = vld [vmem:[%s19543_s1 + $0x1d40] sm:$0xff]  ;;  %9916 = vmatpush1.bf16.msra.mxu0 %v13077_v33  ;;  %v13062_v48 = vcombine.high %v834_v38, %v838_v40  ;;  %9947 = vmatprep.mubr.bf16.mxu0 %v14726_v31  ;;  %v13061_v10 = vcombine.low %v834_v38, %v838_v40 }
  0xcd   :  { %v966_v42 = vld [vmem:[%s19543_s1 + $0x1d60] sm:$0xff]  ;;  %9907 = vmatmul.mubr.bf16.vlgmr.msra.gmra.mxu1 %v14730_v32  ;;  %9917 = vmatprep.subr.bf16.mxu0 %v13070_v36 }
  0xce   :  { %9957 = vmatpush1.bf16.msra.mxu1 %v13205_v35  ;;  %v13190_v49 = vcombine.high %v962_v41, %v966_v42  ;;  %v826_v50 = vld [vmem:[%s19543_s1 + $0x1900] sm:$0xff]  ;;  %9988 = vmatprep.mubr.bf16.mxu1 %v14747_v44  ;;  %v13189_v57 = vcombine.low %v962_v41, %v966_v42 }
  0xcf   :  { %9958 = vmatprep.subr.bf16.mxu1 %v13198_v37  ;;  %v830_v51 = vld [vmem:[%s19543_s1 + $0x1920] sm:$0xff] }
  0xd0   :  { %v954_v52 = vld [vmem:[%s19543_s1 + $0x1d00] sm:$0xff]  ;;  %9918 = vmatpush1.bf16.msra.mxu0 %v13069_v45  ;;  %v13054_v58 = vcombine.high %v826_v50, %v830_v51  ;;  %v13053_v2 = vcombine.low %v826_v50, %v830_v51 }
  0xd1   :  { %v958_v54 = vld [vmem:[%s19543_s1 + $0x1d20] sm:$0xff]  ;;  %9919 = vmatprep.subr.bf16.mxu0 %v13062_v48 }
  0xd2   :  { %9959 = vmatpush1.bf16.msra.mxu1 %v13197_v46  ;;  %v13182_v60 = vcombine.high %v954_v52, %v958_v54  ;;  %v818_v61 = vld [vmem:[%s19543_s1 + $0x18c0] sm:$0xff]  ;;  %v13181_v4 = vcombine.low %v954_v52, %v958_v54 }
  0xd3   :  { %9960 = vmatprep.subr.bf16.mxu1 %v13190_v49  ;;  %v822_v62 = vld [vmem:[%s19543_s1 + $0x18e0] sm:$0xff] }
  0xd4   :  { %v946_v0 = vld [vmem:[%s19543_s1 + $0x1cc0] sm:$0xff]  ;;  %9920 = vmatpush1.bf16.msra.mxu0 %v13061_v10  ;;  %v13046_v5 = vcombine.high %v818_v61, %v822_v62  ;;  %v13045_v12 = vcombine.low %v818_v61, %v822_v62 }
  0xd5   :  { %v950_v1 = vld [vmem:[%s19543_s1 + $0x1ce0] sm:$0xff]  ;;  %9921 = vmatprep.subr.bf16.mxu0 %v13054_v58 }
  0xd6   :  { %9961 = vmatpush1.bf16.msra.mxu1 %v13189_v57  ;;  %v13174_v6 = vcombine.high %v946_v0, %v950_v1  ;;  %v810_v25 = vld [vmem:[%s19543_s1 + $0x1880] sm:$0xff]  ;;  %v13173_v14 = vcombine.low %v946_v0, %v950_v1 }
  0xd7   :  { %9962 = vmatprep.subr.bf16.mxu1 %v13182_v60  ;;  %v814_v7 = vld [vmem:[%s19543_s1 + $0x18a0] sm:$0xff] }
  0xd8   :  { %v938_v8 = vld [vmem:[%s19543_s1 + $0x1c80] sm:$0xff]  ;;  %9922 = vmatpush1.bf16.msra.mxu0 %v13053_v2  ;;  %v13038_v15 = vcombine.high %v810_v25, %v814_v7  ;;  %v13037_v23 = vcombine.low %v810_v25, %v814_v7 }
  0xd9   :  { %v942_v11 = vld [vmem:[%s19543_s1 + $0x1ca0] sm:$0xff]  ;;  %9923 = vmatprep.subr.bf16.mxu0 %v13046_v5 }
  0xda   :  { %9963 = vmatpush1.bf16.msra.mxu1 %v13181_v4  ;;  %v13166_v16 = vcombine.high %v938_v8, %v942_v11  ;;  %v802_v17 = vld [vmem:[%s19543_s1 + $0x1840] sm:$0xff]  ;;  %v13165_v24 = vcombine.low %v938_v8, %v942_v11 }
  0xdb   :  { %9964 = vmatprep.subr.bf16.mxu1 %v13174_v6  ;;  %v806_v18 = vld [vmem:[%s19543_s1 + $0x1860] sm:$0xff] }
  0xdc   :  { %v930_v19 = vld [vmem:[%s19543_s1 + $0x1c40] sm:$0xff]  ;;  %9924 = vmatpush1.bf16.msra.mxu0 %v13045_v12  ;;  %v13030_v26 = vcombine.high %v802_v17, %v806_v18  ;;  %v13029_v35 = vcombine.low %v802_v17, %v806_v18 }
  0xdd   :  { %v934_v20 = vld [vmem:[%s19543_s1 + $0x1c60] sm:$0xff]  ;;  %9925 = vmatprep.subr.bf16.mxu0 %v13038_v15 }
  0xde   :  { %9965 = vmatpush1.bf16.msra.mxu1 %v13173_v14  ;;  %v13158_v27 = vcombine.high %v930_v19, %v934_v20  ;;  %v794_v28 = vld [vmem:[%s19543_s1 + $0x1800] sm:$0xff]  ;;  %v13157_v36 = vcombine.low %v930_v19, %v934_v20 }
  0xdf   :  { %9966 = vmatprep.subr.bf16.mxu1 %v13166_v16  ;;  %v798_v63 = vld [vmem:[%s19543_s1 + $0x1820] sm:$0xff] }
  0xe0   :  { %v922_v34 = vld [vmem:[%s19543_s1 + $0x1c00] sm:$0xff]  ;;  %9926 = vmatpush1.bf16.msra.mxu0 %v13037_v23  ;;  %v13022_v37 = vcombine.high %v794_v28, %v798_v63  ;;  %v13021_v46 = vcombine.low %v794_v28, %v798_v63 }
  0xe1   :  { %v926_v33 = vld [vmem:[%s19543_s1 + $0x1c20] sm:$0xff]  ;;  %9927 = vmatprep.subr.bf16.mxu0 %v13030_v26 }
  0xe2   :  { %9967 = vmatpush1.bf16.msra.mxu1 %v13165_v24  ;;  %v13150_v38 = vcombine.high %v922_v34, %v926_v33  ;;  %v914_v40 = vld [vmem:[%s19543_s1 + $0x1bc0] sm:$0xff]  ;;  %v13149_v48 = vcombine.low %v922_v34, %v926_v33 }
  0xe3   :  { %9968 = vmatprep.subr.bf16.mxu1 %v13158_v27  ;;  %v918_v41 = vld [vmem:[%s19543_s1 + $0x1be0] sm:$0xff] }
  0xe4   :  { %v1042_v42 = vld [vmem:[%s19543_s1 + $0x1fc0] sm:$0xff]  ;;  %9928 = vmatpush1.bf16.msra.mxu0 %v13029_v35  ;;  %v13142_v49 = vcombine.high %v914_v40, %v918_v41  ;;  %v13141_v57 = vcombine.low %v914_v40, %v918_v41 }
  0xe5   :  { %v1046_v45 = vld [vmem:[%s19543_s1 + $0x1fe0] sm:$0xff]  ;;  %9929 = vmatprep.subr.bf16.mxu0 %v13022_v37 }
  0xe6   :  { %9969 = vmatpush1.bf16.msra.mxu1 %v13157_v36  ;;  %v13270_v50 = vcombine.high %v1042_v42, %v1046_v45  ;;  %v906_v51 = vld [vmem:[%s19543_s1 + $0x1b80] sm:$0xff]  ;;  %v13269_v58 = vcombine.low %v1042_v42, %v1046_v45 }
  0xe7   :  { %9970 = vmatprep.subr.bf16.mxu1 %v13150_v38  ;;  %v910_v52 = vld [vmem:[%s19543_s1 + $0x1ba0] sm:$0xff] }
  0xe8   :  { %v1034_v54 = vld [vmem:[%s19543_s1 + $0x1f80] sm:$0xff]  ;;  %9930 = vmatpush1.bf16.msra.mxu0 %v13021_v46  ;;  %v13134_v60 = vcombine.high %v906_v51, %v910_v52  ;;  %v13133_v4 = vcombine.low %v906_v51, %v910_v52 }
  0xe9   :  { %v1038_v10 = vld [vmem:[%s19543_s1 + $0x1fa0] sm:$0xff]  ;;  %9931 = vmatprep.subr.bf16.mxu0 %v13142_v49  ;;  %v14899_v49 = vld [vmem:[%s19542_s0 + $0x10] sm:$0xff] }
  0xea   :  { %9971 = vmatpush1.bf16.msra.mxu1 %v13149_v48  ;;  %v13262_v61 = vcombine.high %v1034_v54, %v1038_v10  ;;  %v898_v62 = vld [vmem:[%s19543_s1 + $0x1b40] sm:$0xff]  ;;  %v13261_v5 = vcombine.low %v1034_v54, %v1038_v10 }
  0xeb   :  { %9972 = vmatprep.subr.bf16.mxu1 %v13270_v50  ;;  %v902_v0 = vld [vmem:[%s19543_s1 + $0x1b60] sm:$0xff] }
  0xec   :  { %v1026_v1 = vld [vmem:[%s19543_s1 + $0x1f40] sm:$0xff]  ;;  %9932 = vmatpush2.bf16.msra.mxu0 %v13141_v57  ;;  %v13126_v6 = vcombine.high %v898_v62, %v902_v0  ;;  %v13125_v14 = vcombine.low %v898_v62, %v902_v0 }
  0xed   :  { %v1030_v2 = vld [vmem:[%s19543_s1 + $0x1f60] sm:$0xff]  ;;  %9933 = vmatprep.subr.bf16.mxu0 %v13134_v60  ;;  %v14915_v60 = vrot.slane %v14899_v49, %v14114_v53 }
  0xee   :  { %9973 = vmatpush2.bf16.msra.mxu1 %v13269_v58  ;;  %v13254_v25 = vcombine.high %v1026_v1, %v1030_v2  ;;  %v890_v7 = vld [vmem:[%s19543_s1 + $0x1b00] sm:$0xff]  ;;  %v13253_v15 = vcombine.low %v1026_v1, %v1030_v2 }
  0xef   :  { %9974 = vmatprep.subr.bf16.mxu1 %v13262_v61  ;;  %v894_v8 = vld [vmem:[%s19543_s1 + $0x1b20] sm:$0xff] }
  0xf0   :  { %v1018_v11 = vld [vmem:[%s19543_s1 + $0x1f00] sm:$0xff]  ;;  %9934 = vmatpush2.bf16.msra.mxu0 %v13133_v4  ;;  %v13118_v16 = vcombine.high %v890_v7, %v894_v8  ;;  %v13117_v24 = vcombine.low %v890_v7, %v894_v8  ;;  %v1598_v8 = vsub.s32 0, %v14099_v43 }
  0xf1   :  { %v1022_v12 = vld [vmem:[%s19543_s1 + $0x1f20] sm:$0xff]  ;;  %9935 = vmatprep.subr.bf16.mxu0 %v13126_v6 }
  0xf2   :  { %9975 = vmatpush2.bf16.msra.mxu1 %v13261_v5  ;;  %v13246_v17 = vcombine.high %v1018_v11, %v1022_v12  ;;  %v882_v18 = vld [vmem:[%s19543_s1 + $0x1ac0] sm:$0xff]  ;;  %v13245_v26 = vcombine.low %v1018_v11, %v1022_v12  ;;  %v14934_v11 = vrot.slane %v14693_v59, %v14114_v53 }
  0xf3   :  { %9976 = vmatprep.subr.bf16.mxu1 %v13254_v25  ;;  %v886_v19 = vld [vmem:[%s19543_s1 + $0x1ae0] sm:$0xff]  ;;  %v1753_v25 = vcombine.high %v14915_v60, %v14915_v60 }
  0xf4   :  { %v1010_v20 = vld [vmem:[%s19543_s1 + $0x1ec0] sm:$0xff]  ;;  %9936 = vmatpush2.bf16.msra.mxu0 %v13125_v14  ;;  %v13110_v27 = vcombine.high %v882_v18, %v886_v19  ;;  %v13109_v36 = vcombine.low %v882_v18, %v886_v19 }
  0xf5   :  { %v1014_v23 = vld [vmem:[%s19543_s1 + $0x1ee0] sm:$0xff]  ;;  %9937 = vmatprep.subr.bf16.mxu0 %v13118_v16 }
  0xf6   :  { %9977 = vmatpush2.bf16.msra.mxu1 %v13253_v15  ;;  %v13238_v28 = vcombine.high %v1010_v20, %v1014_v23  ;;  %v874_v63 = vld [vmem:[%s19543_s1 + $0x1a80] sm:$0xff]  ;;  %v13237_v37 = vcombine.low %v1010_v20, %v1014_v23  ;;  %v14953_v23 = vrot.slane %v1753_v25, %v14114_v53 }
  0xf7   :  { %9978 = vmatprep.subr.bf16.mxu1 %v13246_v17  ;;  %v878_v34 = vld [vmem:[%s19543_s1 + $0x1aa0] sm:$0xff]  ;;  %v1602_v17 = vsub.s32 1, %v14099_v43 }
  0xf8   :  { %v1002_v33 = vld [vmem:[%s19543_s1 + $0x1e80] sm:$0xff]  ;;  %9938 = vmatpush2.bf16.msra.mxu0 %v13117_v24  ;;  %v13102_v38 = vcombine.high %v874_v63, %v878_v34  ;;  %v13101_v48 = vcombine.low %v874_v63, %v878_v34 }
  0xf9   :  { %v1006_v35 = vld [vmem:[%s19543_s1 + $0x1ea0] sm:$0xff]  ;;  %9939 = vmatprep.subr.bf16.mxu0 %v13110_v27 }
  0xfa   :  { %9979 = vmatpush2.bf16.msra.mxu1 %v13245_v26  ;;  %v13230_v40 = vcombine.high %v1002_v33, %v1006_v35  ;;  %v866_v41 = vld [vmem:[%s19543_s1 + $0x1a40] sm:$0xff]  ;;  %v13229_v50 = vcombine.low %v1002_v33, %v1006_v35  ;;  %v14957_v26 = vcombine.high %v14934_v11, %v14934_v11 }
  0xfb   :  { %9980 = vmatprep.subr.bf16.mxu1 %v13238_v28  ;;  %v870_v42 = vld [vmem:[%s19543_s1 + $0x1a60] sm:$0xff] }
  0xfc   :  { %v994_v45 = vld [vmem:[%s19543_s1 + $0x1e40] sm:$0xff]  ;;  %9940 = vmatpush2.bf16.msra.mxu0 %v13109_v36  ;;  %v13094_v51 = vcombine.high %v866_v41, %v870_v42  ;;  %v13093_v61 = vcombine.low %v866_v41, %v870_v42  ;;  %v14974_v41 = vcombine.high %v14953_v23, %v14953_v23 }
  0xfd   :  { %v998_v46 = vld [vmem:[%s19543_s1 + $0x1e60] sm:$0xff]  ;;  %9941 = vmatprep.subr.bf16.mxu0 %v13102_v38 }
  0xfe   :  { %9981 = vmatpush2.bf16.msra.mxu1 %v13237_v37  ;;  %v13222_v52 = vcombine.high %v994_v45, %v998_v46  ;;  %v858_v54 = vld [vmem:[%s19543_s1 + $0x1a00] sm:$0xff]  ;;  %v13221_v62 = vcombine.low %v994_v45, %v998_v46 }
  0xff   :  { %9982 = vmatprep.subr.bf16.mxu1 %v13230_v40  ;;  %v862_v10 = vld [vmem:[%s19543_s1 + $0x1a20] sm:$0xff] }
 0x100   :  { %v986_v57 = vld [vmem:[%s19543_s1 + $0x1e00] sm:$0xff]  ;;  %9942 = vmatpush2.bf16.msra.mxu0 %v13101_v48  ;;  %v13086_v0 = vcombine.high %v858_v54, %v862_v10  ;;  %v13085_v7 = vcombine.low %v858_v54, %v862_v10 }
 0x101   :  { %v990_v58 = vld [vmem:[%s19543_s1 + $0x1e20] sm:$0xff]  ;;  %9943 = vmatprep.subr.bf16.mxu0 %v13094_v51 }
 0x102   :  { %9983 = vmatpush2.bf16.msra.mxu1 %v13229_v50  ;;  %v13214_v1 = vcombine.high %v986_v57, %v990_v58  ;;  %v1106_v2 = vld [vmem:[%s19543_s1 + $0x21c0] sm:$0xff]  ;;  %v13213_v12 = vcombine.low %v986_v57, %v990_v58 }
 0x103   :  { %9984 = vmatprep.subr.bf16.mxu1 %v13222_v52  ;;  %v1110_v4 = vld [vmem:[%s19543_s1 + $0x21e0] sm:$0xff] }
 0x104   :  { %v1234_v5 = vld [vmem:[%s19543_s1 + $0x25c0] sm:$0xff]  ;;  %9944 = vmatpush2.bf16.msra.mxu0 %v13093_v61  ;;  %v13334_v15 = vcombine.high %v1106_v2, %v1110_v4  ;;  %v13333_v27 = vcombine.low %v1106_v2, %v1110_v4 }
 0x105   :  { %v1238_v6 = vld [vmem:[%s19543_s1 + $0x25e0] sm:$0xff]  ;;  %9945 = vmatprep.subr.bf16.mxu0 %v13086_v0 }
 0x106   :  { %9985 = vmatpush2.bf16.msra.mxu1 %v13221_v62  ;;  %v1594_v14 = vld [vmem:[%s19544_s2] sm:$0xff]  ;;  %v13462_v16 = vcombine.high %v1234_v5, %v1238_v6  ;;  %v13461_v28 = vcombine.low %v1234_v5, %v1238_v6 }
 0x107   :  { %9986 = vmatprep.subr.bf16.mxu1 %v13214_v1  ;;  %v1098_v18 = vld [vmem:[%s19543_s1 + $0x2180] sm:$0xff]  ;;  %v1599_v24 = vrot.slane %v1594_v14, %v1598_v8  ;;  %v1603_v34 = vrot.slane %v1594_v14, %v1602_v17 }
 0x108   :  { %v1102_v59 = vld [vmem:[%s19543_s1 + $0x21a0] sm:$0xff]  ;;  %9946 = vmatpush2.bf16.msra.mxu0 %v13085_v7 }
 0x109   :  { %v1226_v19 = vld [vmem:[%s19543_s1 + $0x2580] sm:$0xff]  ;;  %9997 = vmatprep.subr.bf16.mxu0 %v13334_v15  ;;  %v13326_v63 = vcombine.high %v1098_v18, %v1102_v59  ;;  %v13325_v46 = vcombine.low %v1098_v18, %v1102_v59 }
 0x10a   :  { %v1230_v20 = vld [vmem:[%s19543_s1 + $0x25a0] sm:$0xff]  ;;  %9987 = vmatpush2.bf16.msra.mxu1 %v13213_v12 }
 0x10b   :  { %10038 = vmatprep.subr.bf16.mxu1 %v13462_v16  ;;  %v13454_v33 = vcombine.high %v1226_v19, %v1230_v20  ;;  %v1090_v35 = vld [vmem:[%s19543_s1 + $0x2140] sm:$0xff]  ;;  %v9703_v37 = vpop.f32.mrf.mxu0  ;;  %9948 = vmatmul.mubr.bf16.vlgmr.msra.gmra.mxu0 %v14934_v11  ;;  %v13453_v50 = vcombine.low %v1226_v19, %v1230_v20 }
 0x10c   :  { %v1094_v36 = vld [vmem:[%s19543_s1 + $0x2160] sm:$0xff]  ;;  %v9704_v42 = vadd.f32 %v9703_v37, %v1599_v24  ;;  %9998 = vmatpush1.bf16.msra.mxu0 %v13333_v27  ;;  %10029 = vmatprep.mubr.bf16.mxu0 %v14953_v23 }
 0x10d   :  { %v1218_v38 = vld [vmem:[%s19543_s1 + $0x2540] sm:$0xff]  ;;  %v9744_v45 = vpop.f32.mrf.mxu1  ;;  %9989 = vmatmul.mubr.bf16.vlgmr.msra.gmra.mxu1 %v14957_v26  ;;  %v9705_v48 = vpop.f32.mrf.mxu0  ;;  %9999 = vmatprep.subr.bf16.mxu0 %v13326_v63  ;;  %v13318_v51 = vcombine.high %v1090_v35, %v1094_v36  ;;  %v13317_v5 = vcombine.low %v1090_v35, %v1094_v36 }
 0x10e   :  { %v1222_v40 = vld [vmem:[%s19543_s1 + $0x2560] sm:$0xff]  ;;  %10039 = vmatpush1.bf16.msra.mxu1 %v13461_v28  ;;  %v14977_v52 = vadd.f32 %v9744_v45, %v9704_v42  ;;  %v9706_v54 = vadd.f32 %v9705_v48, %v1603_v34  ;;  %10070 = vmatprep.mubr.bf16.mxu1 %v14974_v41 }
 0x10f   :  { %v9746_v10 = vpop.f32.mrf.mxu1  ;;  %10040 = vmatprep.subr.bf16.mxu1 %v13454_v33  ;;  %v13446_v57 = vcombine.high %v1218_v38, %v1222_v40  ;;  %v1082_v58 = vld [vmem:[%s19543_s1 + $0x2100] sm:$0xff]  ;;  %v9707_v62 = vpop.f32.mrf.mxu0  ;;  %v13445_v25 = vcombine.low %v1218_v38, %v1222_v40 }
 0x110   :  { %v1086_v61 = vld [vmem:[%s19543_s1 + $0x2120] sm:$0xff]  ;;  %v14993_v2 = vadd.f32 %v9746_v10, %v9706_v54  ;;  %10000 = vmatpush1.bf16.msra.mxu0 %v13325_v46 }
 0x111   :  { %v1210_v0 = vld [vmem:[%s19543_s1 + $0x2500] sm:$0xff]  ;;  %v9748_v4 = vpop.f32.mrf.mxu1  ;;  %v9708_v6 = vpop.f32.mrf.mxu0  ;;  %10001 = vmatprep.subr.bf16.mxu0 %v13318_v51  ;;  %v13310_v7 = vcombine.high %v1082_v58, %v1086_v61  ;;  %v13309_v18 = vcombine.low %v1082_v58, %v1086_v61 }
 0x112   :  { %v1214_v1 = vld [vmem:[%s19543_s1 + $0x2520] sm:$0xff]  ;;  %10041 = vmatpush1.bf16.msra.mxu1 %v13453_v50 }
 0x113   :  { %v9749_v8 = vpop.f32.mrf.mxu1  ;;  %10042 = vmatprep.subr.bf16.mxu1 %v13446_v57  ;;  %v13438_v12 = vcombine.high %v1210_v0, %v1214_v1  ;;  %v1074_v14 = vld [vmem:[%s19543_s1 + $0x20c0] sm:$0xff]  ;;  %v13437_v59 = vcombine.low %v1210_v0, %v1214_v1 }
 0x114   :  { %v1078_v15 = vld [vmem:[%s19543_s1 + $0x20e0] sm:$0xff]  ;;  %10002 = vmatpush1.bf16.msra.mxu0 %v13317_v5 }
 0x115   :  { %v1202_v16 = vld [vmem:[%s19543_s1 + $0x24c0] sm:$0xff]  ;;  %10003 = vmatprep.subr.bf16.mxu0 %v13310_v7  ;;  %v13302_v19 = vcombine.high %v1074_v14, %v1078_v15  ;;  %v13301_v34 = vcombine.low %v1074_v14, %v1078_v15 }
 0x116   :  { %v1206_v17 = vld [vmem:[%s19543_s1 + $0x24e0] sm:$0xff]  ;;  %10043 = vmatpush1.bf16.msra.mxu1 %v13445_v25 }
 0x117   :  { %10044 = vmatprep.subr.bf16.mxu1 %v13438_v12  ;;  %v13430_v20 = vcombine.high %v1202_v16, %v1206_v17  ;;  %v1066_v24 = vld [vmem:[%s19543_s1 + $0x2080] sm:$0xff]  ;;  %v13429_v33 = vcombine.low %v1202_v16, %v1206_v17 }
 0x118   :  { %v1070_v27 = vld [vmem:[%s19543_s1 + $0x20a0] sm:$0xff]  ;;  %10004 = vmatpush1.bf16.msra.mxu0 %v13309_v18 }
 0x119   :  { %v1194_v28 = vld [vmem:[%s19543_s1 + $0x2480] sm:$0xff]  ;;  %10005 = vmatprep.subr.bf16.mxu0 %v13302_v19  ;;  %v13294_v35 = vcombine.high %v1066_v24, %v1070_v27  ;;  %v13293_v45 = vcombine.low %v1066_v24, %v1070_v27 }
 0x11a   :  { %v1198_v63 = vld [vmem:[%s19543_s1 + $0x24a0] sm:$0xff]  ;;  %10045 = vmatpush1.bf16.msra.mxu1 %v13437_v59 }
 0x11b   :  { %10046 = vmatprep.subr.bf16.mxu1 %v13430_v20  ;;  %v13422_v36 = vcombine.high %v1194_v28, %v1198_v63  ;;  %v1058_v37 = vld [vmem:[%s19543_s1 + $0x2040] sm:$0xff]  ;;  %v13421_v46 = vcombine.low %v1194_v28, %v1198_v63 }
 0x11c   :  { %v1062_v38 = vld [vmem:[%s19543_s1 + $0x2060] sm:$0xff]  ;;  %10006 = vmatpush1.bf16.msra.mxu0 %v13301_v34 }
 0x11d   :  { %v1186_v40 = vld [vmem:[%s19543_s1 + $0x2440] sm:$0xff]  ;;  %10007 = vmatprep.subr.bf16.mxu0 %v13294_v35  ;;  %v13286_v48 = vcombine.high %v1058_v37, %v1062_v38  ;;  %v13285_v58 = vcombine.low %v1058_v37, %v1062_v38 }
 0x11e   :  { %v1190_v42 = vld [vmem:[%s19543_s1 + $0x2460] sm:$0xff]  ;;  %10047 = vmatpush1.bf16.msra.mxu1 %v13429_v33 }
 0x11f   :  { %10048 = vmatprep.subr.bf16.mxu1 %v13422_v36  ;;  %v13414_v50 = vcombine.high %v1186_v40, %v1190_v42  ;;  %v1050_v51 = vld [vmem:[%s19543_s1 + $0x2000] sm:$0xff]  ;;  %v13413_v61 = vcombine.low %v1186_v40, %v1190_v42 }
 0x120   :  { %v1054_v54 = vld [vmem:[%s19543_s1 + $0x2020] sm:$0xff]  ;;  %10008 = vmatpush1.bf16.msra.mxu0 %v13293_v45 }
 0x121   :  { %v1178_v10 = vld [vmem:[%s19543_s1 + $0x2400] sm:$0xff]  ;;  %10009 = vmatprep.subr.bf16.mxu0 %v13286_v48  ;;  %v13278_v62 = vcombine.high %v1050_v51, %v1054_v54  ;;  %v13277_v25 = vcombine.low %v1050_v51, %v1054_v54 }
 0x122   :  { %v1182_v57 = vld [vmem:[%s19543_s1 + $0x2420] sm:$0xff]  ;;  %10049 = vmatpush1.bf16.msra.mxu1 %v13421_v46 }
 0x123   :  { %10050 = vmatprep.subr.bf16.mxu1 %v13414_v50  ;;  %v13406_v0 = vcombine.high %v1178_v10, %v1182_v57  ;;  %v1170_v1 = vld [vmem:[%s19543_s1 + $0x23c0] sm:$0xff]  ;;  %v13405_v7 = vcombine.low %v1178_v10, %v1182_v57 }
 0x124   :  { %v1174_v4 = vld [vmem:[%s19543_s1 + $0x23e0] sm:$0xff]  ;;  %10010 = vmatpush1.bf16.msra.mxu0 %v13285_v58 }
 0x125   :  { %v1298_v5 = vld [vmem:[%s19543_s1 + $0x27c0] sm:$0xff]  ;;  %10011 = vmatprep.subr.bf16.mxu0 %v13278_v62  ;;  %v13398_v8 = vcombine.high %v1170_v1, %v1174_v4  ;;  %v13397_v18 = vcombine.low %v1170_v1, %v1174_v4 }
 0x126   :  { %v1302_v6 = vld [vmem:[%s19543_s1 + $0x27e0] sm:$0xff]  ;;  %10051 = vmatpush1.bf16.msra.mxu1 %v13413_v61 }
 0x127   :  { %10052 = vmatprep.subr.bf16.mxu1 %v13406_v0  ;;  %v13526_v12 = vcombine.high %v1298_v5, %v1302_v6  ;;  %v1162_v14 = vld [vmem:[%s19543_s1 + $0x2380] sm:$0xff]  ;;  %v13525_v59 = vcombine.low %v1298_v5, %v1302_v6 }
 0x128   :  { %v1166_v15 = vld [vmem:[%s19543_s1 + $0x23a0] sm:$0xff]  ;;  %10012 = vmatpush1.bf16.msra.mxu0 %v13277_v25 }
 0x129   :  { %v1290_v16 = vld [vmem:[%s19543_s1 + $0x2780] sm:$0xff]  ;;  %10013 = vmatprep.subr.bf16.mxu0 %v13398_v8  ;;  %v13390_v19 = vcombine.high %v1162_v14, %v1166_v15  ;;  %v13389_v34 = vcombine.low %v1162_v14, %v1166_v15 }
 0x12a   :  { %v1294_v17 = vld [vmem:[%s19543_s1 + $0x27a0] sm:$0xff]  ;;  %10053 = vmatpush1.bf16.msra.mxu1 %v13405_v7 }
 0x12b   :  { %10054 = vmatprep.subr.bf16.mxu1 %v13526_v12  ;;  %v13518_v20 = vcombine.high %v1290_v16, %v1294_v17  ;;  %v1154_v24 = vld [vmem:[%s19543_s1 + $0x2340] sm:$0xff]  ;;  %v13517_v33 = vcombine.low %v1290_v16, %v1294_v17 }
 0x12c   :  { %v1158_v27 = vld [vmem:[%s19543_s1 + $0x2360] sm:$0xff]  ;;  %10014 = vmatpush2.bf16.msra.mxu0 %v13397_v18  ;;  %v1738_v18 = vcombine.high %v14899_v49, %v14899_v49 }
 0x12d   :  { %v1282_v28 = vld [vmem:[%s19543_s1 + $0x2740] sm:$0xff]  ;;  %10015 = vmatprep.subr.bf16.mxu0 %v13390_v19  ;;  %v13382_v35 = vcombine.high %v1154_v24, %v1158_v27  ;;  %v13381_v45 = vcombine.low %v1154_v24, %v1158_v27 }
 0x12e   :  { %v1286_v63 = vld [vmem:[%s19543_s1 + $0x2760] sm:$0xff]  ;;  %10055 = vmatpush2.bf16.msra.mxu1 %v13525_v59 }
 0x12f   :  { %10056 = vmatprep.subr.bf16.mxu1 %v13518_v20  ;;  %v13510_v36 = vcombine.high %v1282_v28, %v1286_v63  ;;  %v1146_v37 = vld [vmem:[%s19543_s1 + $0x2300] sm:$0xff]  ;;  %v13509_v46 = vcombine.low %v1282_v28, %v1286_v63 }
 0x130   :  { %v1150_v38 = vld [vmem:[%s19543_s1 + $0x2320] sm:$0xff]  ;;  %10016 = vmatpush2.bf16.msra.mxu0 %v13389_v34  ;;  %v15142_v34 = vrot.slane %v1738_v18, %v14114_v53 }
 0x131   :  { %v1274_v40 = vld [vmem:[%s19543_s1 + $0x2700] sm:$0xff]  ;;  %10017 = vmatprep.subr.bf16.mxu0 %v13382_v35  ;;  %v13374_v48 = vcombine.high %v1146_v37, %v1150_v38  ;;  %v13373_v58 = vcombine.low %v1146_v37, %v1150_v38 }
 0x132   :  { %v1278_v42 = vld [vmem:[%s19543_s1 + $0x2720] sm:$0xff]  ;;  %10057 = vmatpush2.bf16.msra.mxu1 %v13517_v33 }
 0x133   :  { %10058 = vmatprep.subr.bf16.mxu1 %v13510_v36  ;;  %v13502_v50 = vcombine.high %v1274_v40, %v1278_v42  ;;  %v1138_v51 = vld [vmem:[%s19543_s1 + $0x22c0] sm:$0xff]  ;;  %v13501_v61 = vcombine.low %v1274_v40, %v1278_v42 }
 0x134   :  { %v1142_v54 = vld [vmem:[%s19543_s1 + $0x22e0] sm:$0xff]  ;;  %10018 = vmatpush2.bf16.msra.mxu0 %v13381_v45 }
 0x135   :  { %v1266_v10 = vld [vmem:[%s19543_s1 + $0x26c0] sm:$0xff]  ;;  %10019 = vmatprep.subr.bf16.mxu0 %v13374_v48  ;;  %v13366_v62 = vcombine.high %v1138_v51, %v1142_v54  ;;  %v13365_v25 = vcombine.low %v1138_v51, %v1142_v54 }
 0x136   :  { %v1270_v57 = vld [vmem:[%s19543_s1 + $0x26e0] sm:$0xff]  ;;  %10059 = vmatpush2.bf16.msra.mxu1 %v13509_v46  ;;  %v1754_v46 = vcombine.high %v15142_v34, %v15142_v34 }
 0x137   :  { %10060 = vmatprep.subr.bf16.mxu1 %v13502_v50  ;;  %v13494_v0 = vcombine.high %v1266_v10, %v1270_v57  ;;  %v1130_v1 = vld [vmem:[%s19543_s1 + $0x2280] sm:$0xff]  ;;  %v13493_v7 = vcombine.low %v1266_v10, %v1270_v57  ;;  %v15160_v50 = vrot.slane %v14915_v60, %v14114_v53 }
 0x138   :  { %v1134_v4 = vld [vmem:[%s19543_s1 + $0x22a0] sm:$0xff]  ;;  %10020 = vmatpush2.bf16.msra.mxu0 %v13373_v58 }
 0x139   :  { %v1258_v5 = vld [vmem:[%s19543_s1 + $0x2680] sm:$0xff]  ;;  %10021 = vmatprep.subr.bf16.mxu0 %v13366_v62  ;;  %v13358_v8 = vcombine.high %v1130_v1, %v1134_v4  ;;  %v13357_v59 = vcombine.low %v1130_v1, %v1134_v4  ;;  %v15175_v62 = vrot.slane %v1754_v46, %v14114_v53 }
 0x13a   :  { %v1262_v6 = vld [vmem:[%s19543_s1 + $0x26a0] sm:$0xff]  ;;  %10061 = vmatpush2.bf16.msra.mxu1 %v13501_v61 }
 0x13b   :  { %10062 = vmatprep.subr.bf16.mxu1 %v13494_v0  ;;  %v13486_v12 = vcombine.high %v1258_v5, %v1262_v6  ;;  %v1122_v14 = vld [vmem:[%s19543_s1 + $0x2240] sm:$0xff]  ;;  %v13485_v19 = vcombine.low %v1258_v5, %v1262_v6  ;;  %v15179_v0 = vcombine.high %v15160_v50, %v15160_v50 }
 0x13c   :  { %v1126_v15 = vld [vmem:[%s19543_s1 + $0x2260] sm:$0xff]  ;;  %10022 = vmatpush2.bf16.msra.mxu0 %v13365_v25 }
 0x13d   :  { %v1250_v16 = vld [vmem:[%s19543_s1 + $0x2640] sm:$0xff]  ;;  %10023 = vmatprep.subr.bf16.mxu0 %v13358_v8  ;;  %v13350_v20 = vcombine.high %v1122_v14, %v1126_v15  ;;  %v13349_v33 = vcombine.low %v1122_v14, %v1126_v15  ;;  %v15196_v15 = vcombine.high %v15175_v62, %v15175_v62 }
 0x13e   :  { %v1254_v17 = vld [vmem:[%s19543_s1 + $0x2660] sm:$0xff]  ;;  %10063 = vmatpush2.bf16.msra.mxu1 %v13493_v7 }
 0x13f   :  { %10064 = vmatprep.subr.bf16.mxu1 %v13486_v12  ;;  %v13478_v24 = vcombine.high %v1250_v16, %v1254_v17  ;;  %v1114_v27 = vld [vmem:[%s19543_s1 + $0x2200] sm:$0xff]  ;;  %v13477_v35 = vcombine.low %v1250_v16, %v1254_v17 }
 0x140   :  { %v1118_v28 = vld [vmem:[%s19543_s1 + $0x2220] sm:$0xff]  ;;  %10024 = vmatpush2.bf16.msra.mxu0 %v13357_v59 }
 0x141   :  { %v1242_v49 = vld [vmem:[%s19543_s1 + $0x2600] sm:$0xff]  ;;  %10025 = vmatprep.subr.bf16.mxu0 %v13350_v20  ;;  %v13342_v36 = vcombine.high %v1114_v27, %v1118_v28  ;;  %v13341_v48 = vcombine.low %v1114_v27, %v1118_v28 }
 0x142   :  { %v1246_v63 = vld [vmem:[%s19543_s1 + $0x2620] sm:$0xff]  ;;  %10065 = vmatpush2.bf16.msra.mxu1 %v13485_v19 }
 0x143   :  { %10066 = vmatprep.subr.bf16.mxu1 %v13478_v24  ;;  %v13470_v37 = vcombine.high %v1242_v49, %v1246_v63  ;;  %v1362_v38 = vld [vmem:[%s19543_s1 + $0x29c0] sm:$0xff]  ;;  %v13469_v51 = vcombine.low %v1242_v49, %v1246_v63 }
 0x144   :  { %v1366_v40 = vld [vmem:[%s19543_s1 + $0x29e0] sm:$0xff]  ;;  %10026 = vmatpush2.bf16.msra.mxu0 %v13349_v33 }
 0x145   :  { %v1490_v42 = vld [vmem:[%s19543_s1 + $0x2dc0] sm:$0xff]  ;;  %10027 = vmatprep.subr.bf16.mxu0 %v13342_v36  ;;  %v13590_v54 = vcombine.high %v1362_v38, %v1366_v40  ;;  %v13589_v1 = vcombine.low %v1362_v38, %v1366_v40 }
 0x146   :  { %v1494_v45 = vld [vmem:[%s19543_s1 + $0x2de0] sm:$0xff]  ;;  %10067 = vmatpush2.bf16.msra.mxu1 %v13477_v35 }
 0x147   :  { %10068 = vmatprep.subr.bf16.mxu1 %v13470_v37  ;;  %v13718_v10 = vcombine.high %v1490_v42, %v1494_v45  ;;  %v1354_v57 = vld [vmem:[%s19543_s1 + $0x2980] sm:$0xff]  ;;  %v13717_v4 = vcombine.low %v1490_v42, %v1494_v45 }
 0x148   :  { %v1358_v58 = vld [vmem:[%s19543_s1 + $0x29a0] sm:$0xff]  ;;  %10028 = vmatpush2.bf16.msra.mxu0 %v13341_v48 }
 0x149   :  { %v1482_v61 = vld [vmem:[%s19543_s1 + $0x2d80] sm:$0xff]  ;;  %10079 = vmatprep.subr.bf16.mxu0 %v13590_v54  ;;  %v13582_v5 = vcombine.high %v1354_v57, %v1358_v58  ;;  %v13581_v18 = vcombine.low %v1354_v57, %v1358_v58 }
 0x14a   :  { %v1486_v60 = vld [vmem:[%s19543_s1 + $0x2da0] sm:$0xff]  ;;  %10069 = vmatpush2.bf16.msra.mxu1 %v13469_v51 }
 0x14b   :  { %10120 = vmatprep.subr.bf16.mxu1 %v13718_v10  ;;  %v13710_v6 = vcombine.high %v1482_v61, %v1486_v60  ;;  %v1346_v25 = vld [vmem:[%s19543_s1 + $0x2940] sm:$0xff]  ;;  %v9785_v8 = vpop.f32.mrf.mxu0  ;;  %10030 = vmatmul.mubr.bf16.vlgmr.msra.gmra.mxu0 %v15160_v50  ;;  %v13709_v19 = vcombine.low %v1482_v61, %v1486_v60 }
 0x14c   :  { %v1350_v7 = vld [vmem:[%s19543_s1 + $0x2960] sm:$0xff]  ;;  %v9786_v16 = vadd.f32 %v9785_v8, %v14977_v52  ;;  %10080 = vmatpush1.bf16.msra.mxu0 %v13589_v1  ;;  %10111 = vmatprep.mubr.bf16.mxu0 %v15175_v62 }
 0x14d   :  { %v1474_v12 = vld [vmem:[%s19543_s1 + $0x2d40] sm:$0xff]  ;;  %v9826_v17 = vpop.f32.mrf.mxu1  ;;  %10071 = vmatmul.mubr.bf16.vlgmr.msra.gmra.mxu1 %v15179_v0  ;;  %v9787_v59 = vpop.f32.mrf.mxu0  ;;  %10081 = vmatprep.subr.bf16.mxu0 %v13582_v5  ;;  %v13574_v20 = vcombine.high %v1346_v25, %v1350_v7  ;;  %v13573_v38 = vcombine.low %v1346_v25, %v1350_v7 }
 0x14e   :  { %v1478_v14 = vld [vmem:[%s19543_s1 + $0x2d60] sm:$0xff]  ;;  %10121 = vmatpush1.bf16.msra.mxu1 %v13717_v4  ;;  %v15200_v24 = vadd.f32 %v9826_v17, %v9786_v16  ;;  %v9788_v27 = vadd.f32 %v9787_v59, %v14993_v2  ;;  %10152 = vmatprep.mubr.bf16.mxu1 %v15196_v15 }
 0x14f   :  { %v9828_v28 = vpop.f32.mrf.mxu1  ;;  %10122 = vmatprep.subr.bf16.mxu1 %v13710_v6  ;;  %v13702_v49 = vcombine.high %v1474_v12, %v1478_v14  ;;  %v1338_v52 = vld [vmem:[%s19543_s1 + $0x2900] sm:$0xff]  ;;  %v9789_v33 = vpop.f32.mrf.mxu0  ;;  %v13701_v42 = vcombine.low %v1474_v12, %v1478_v14 }
 0x150   :  { %v1342_v63 = vld [vmem:[%s19543_s1 + $0x2920] sm:$0xff]  ;;  %v15217_v36 = vadd.f32 %v9828_v28, %v9788_v27  ;;  %10082 = vmatpush1.bf16.msra.mxu0 %v13581_v18 }
 0x151   :  { %v1466_v35 = vld [vmem:[%s19543_s1 + $0x2d00] sm:$0xff]  ;;  %v9830_v37 = vpop.f32.mrf.mxu1  ;;  %v9790_v40 = vpop.f32.mrf.mxu0  ;;  %10083 = vmatprep.subr.bf16.mxu0 %v13574_v20  ;;  %v13566_v45 = vcombine.high %v1338_v52, %v1342_v63  ;;  %v13565_v58 = vcombine.low %v1338_v52, %v1342_v63 }
 0x152   :  { %v1470_v2 = vld [vmem:[%s19543_s1 + $0x2d20] sm:$0xff]  ;;  %10123 = vmatpush1.bf16.msra.mxu1 %v13709_v19 }
 0x153   :  { %v9831_v46 = vpop.f32.mrf.mxu1  ;;  %10124 = vmatprep.subr.bf16.mxu1 %v13702_v49  ;;  %v13694_v48 = vcombine.high %v1466_v35, %v1470_v2  ;;  %v1330_v51 = vld [vmem:[%s19543_s1 + $0x28c0] sm:$0xff]  ;;  %v13693_v61 = vcombine.low %v1466_v35, %v1470_v2 }
 0x154   :  { %v1334_v54 = vld [vmem:[%s19543_s1 + $0x28e0] sm:$0xff]  ;;  %10084 = vmatpush1.bf16.msra.mxu0 %v13573_v38 }
 0x155   :  { %v1458_v10 = vld [vmem:[%s19543_s1 + $0x2cc0] sm:$0xff]  ;;  %10085 = vmatprep.subr.bf16.mxu0 %v13566_v45  ;;  %v13558_v60 = vcombine.high %v1330_v51, %v1334_v54  ;;  %v13557_v7 = vcombine.low %v1330_v51, %v1334_v54 }
 0x156   :  { %v1462_v57 = vld [vmem:[%s19543_s1 + $0x2ce0] sm:$0xff]  ;;  %10125 = vmatpush1.bf16.msra.mxu1 %v13701_v42 }
 0x157   :  { %10126 = vmatprep.subr.bf16.mxu1 %v13694_v48  ;;  %v13686_v1 = vcombine.high %v1458_v10, %v1462_v57  ;;  %v1322_v4 = vld [vmem:[%s19543_s1 + $0x2880] sm:$0xff]  ;;  %v13685_v8 = vcombine.low %v1458_v10, %v1462_v57 }
 0x158   :  { %v1326_v5 = vld [vmem:[%s19543_s1 + $0x28a0] sm:$0xff]  ;;  %10086 = vmatpush1.bf16.msra.mxu0 %v13565_v58 }
 0x159   :  { %v1450_v6 = vld [vmem:[%s19543_s1 + $0x2c80] sm:$0xff]  ;;  %10087 = vmatprep.subr.bf16.mxu0 %v13558_v60  ;;  %v13550_v12 = vcombine.high %v1322_v4, %v1326_v5  ;;  %v13549_v19 = vcombine.low %v1322_v4, %v1326_v5 }
 0x15a   :  { %v1454_v25 = vld [vmem:[%s19543_s1 + $0x2ca0] sm:$0xff]  ;;  %10127 = vmatpush1.bf16.msra.mxu1 %v13693_v61 }
 0x15b   :  { %10128 = vmatprep.subr.bf16.mxu1 %v13686_v1  ;;  %v13678_v14 = vcombine.high %v1450_v6, %v1454_v25  ;;  %v1314_v16 = vld [vmem:[%s19543_s1 + $0x2840] sm:$0xff]  ;;  %v13677_v20 = vcombine.low %v1450_v6, %v1454_v25 }
 0x15c   :  { %v1318_v17 = vld [vmem:[%s19543_s1 + $0x2860] sm:$0xff]  ;;  %10088 = vmatpush1.bf16.msra.mxu0 %v13557_v7 }
 0x15d   :  { %v1442_v18 = vld [vmem:[%s19543_s1 + $0x2c40] sm:$0xff]  ;;  %10089 = vmatprep.subr.bf16.mxu0 %v13550_v12  ;;  %v13542_v27 = vcombine.high %v1314_v16, %v1318_v17  ;;  %v13541_v35 = vcombine.low %v1314_v16, %v1318_v17 }
 0x15e   :  { %v1446_v59 = vld [vmem:[%s19543_s1 + $0x2c60] sm:$0xff]  ;;  %10129 = vmatpush1.bf16.msra.mxu1 %v13685_v8 }
 0x15f   :  { %10130 = vmatprep.subr.bf16.mxu1 %v13678_v14  ;;  %v13670_v28 = vcombine.high %v1442_v18, %v1446_v59  ;;  %v1306_v49 = vld [vmem:[%s19543_s1 + $0x2800] sm:$0xff]  ;;  %v13669_v2 = vcombine.low %v1442_v18, %v1446_v59 }
 0x160   :  { %v1310_v52 = vld [vmem:[%s19543_s1 + $0x2820] sm:$0xff]  ;;  %10090 = vmatpush1.bf16.msra.mxu0 %v13549_v19 }
 0x161   :  { %v1434_v63 = vld [vmem:[%s19543_s1 + $0x2c00] sm:$0xff]  ;;  %10091 = vmatprep.subr.bf16.mxu0 %v13542_v27  ;;  %v13534_v37 = vcombine.high %v1306_v49, %v1310_v52  ;;  %v13533_v48 = vcombine.low %v1306_v49, %v1310_v52 }
 0x162   :  { %v1438_v33 = vld [vmem:[%s19543_s1 + $0x2c20] sm:$0xff]  ;;  %10131 = vmatpush1.bf16.msra.mxu1 %v13677_v20 }
 0x163   :  { %10132 = vmatprep.subr.bf16.mxu1 %v13670_v28  ;;  %v13662_v38 = vcombine.high %v1434_v63, %v1438_v33  ;;  %v1426_v40 = vld [vmem:[%s19543_s1 + $0x2bc0] sm:$0xff]  ;;  %v13661_v51 = vcombine.low %v1434_v63, %v1438_v33 }
 0x164   :  { %v1430_v42 = vld [vmem:[%s19543_s1 + $0x2be0] sm:$0xff]  ;;  %10092 = vmatpush1.bf16.msra.mxu0 %v13541_v35 }
 0x165   :  { %v1554_v45 = vld [vmem:[%s19543_s1 + $0x2fc0] sm:$0xff]  ;;  %10093 = vmatprep.subr.bf16.mxu0 %v13534_v37  ;;  %v13654_v54 = vcombine.high %v1426_v40, %v1430_v42  ;;  %v13653_v1 = vcombine.low %v1426_v40, %v1430_v42 }
 0x166   :  { %v1558_v46 = vld [vmem:[%s19543_s1 + $0x2fe0] sm:$0xff]  ;;  %10133 = vmatpush1.bf16.msra.mxu1 %v13669_v2 }
 0x167   :  { %10134 = vmatprep.subr.bf16.mxu1 %v13662_v38  ;;  %v13782_v10 = vcombine.high %v1554_v45, %v1558_v46  ;;  %v1418_v57 = vld [vmem:[%s19543_s1 + $0x2b80] sm:$0xff]  ;;  %v13781_v4 = vcombine.low %v1554_v45, %v1558_v46 }
 0x168   :  { %v1422_v58 = vld [vmem:[%s19543_s1 + $0x2ba0] sm:$0xff]  ;;  %10094 = vmatpush1.bf16.msra.mxu0 %v13533_v48 }
 0x169   :  { %v1546_v61 = vld [vmem:[%s19543_s1 + $0x2f80] sm:$0xff]  ;;  %10095 = vmatprep.subr.bf16.mxu0 %v13654_v54  ;;  %v13646_v5 = vcombine.high %v1418_v57, %v1422_v58  ;;  %v13645_v14 = vcombine.low %v1418_v57, %v1422_v58 }
 0x16a   :  { %v1550_v60 = vld [vmem:[%s19543_s1 + $0x2fa0] sm:$0xff]  ;;  %10135 = vmatpush1.bf16.msra.mxu1 %v13661_v51 }
 0x16b   :  { %10136 = vmatprep.subr.bf16.mxu1 %v13782_v10  ;;  %v13774_v6 = vcombine.high %v1546_v61, %v1550_v60  ;;  %v1410_v25 = vld [vmem:[%s19543_s1 + $0x2b40] sm:$0xff]  ;;  %v13773_v16 = vcombine.low %v1546_v61, %v1550_v60 }
 0x16c   :  { %v1414_v7 = vld [vmem:[%s19543_s1 + $0x2b60] sm:$0xff]  ;;  %10096 = vmatpush2.bf16.msra.mxu0 %v13653_v1 }
 0x16d   :  { %v1538_v8 = vld [vmem:[%s19543_s1 + $0x2f40] sm:$0xff]  ;;  %10097 = vmatprep.subr.bf16.mxu0 %v13646_v5  ;;  %v13638_v17 = vcombine.high %v1410_v25, %v1414_v7  ;;  %v13637_v28 = vcombine.low %v1410_v25, %v1414_v7 }
 0x16e   :  { %v1542_v12 = vld [vmem:[%s19543_s1 + $0x2f60] sm:$0xff]  ;;  %10137 = vmatpush2.bf16.msra.mxu1 %v13781_v4 }
 0x16f   :  { %10138 = vmatprep.subr.bf16.mxu1 %v13774_v6  ;;  %v13766_v18 = vcombine.high %v1538_v8, %v1542_v12  ;;  %v1402_v59 = vld [vmem:[%s19543_s1 + $0x2b00] sm:$0xff]  ;;  %v13765_v49 = vcombine.low %v1538_v8, %v1542_v12 }
 0x170   :  { %v1406_v19 = vld [vmem:[%s19543_s1 + $0x2b20] sm:$0xff]  ;;  %10098 = vmatpush2.bf16.msra.mxu0 %v13645_v14 }
 0x171   :  { %v1530_v20 = vld [vmem:[%s19543_s1 + $0x2f00] sm:$0xff]  ;;  %10099 = vmatprep.subr.bf16.mxu0 %v13638_v17  ;;  %v13630_v52 = vcombine.high %v1402_v59, %v1406_v19  ;;  %v13629_v38 = vcombine.low %v1402_v59, %v1406_v19 }
 0x172   :  { %v1534_v27 = vld [vmem:[%s19543_s1 + $0x2f20] sm:$0xff]  ;;  %10139 = vmatpush2.bf16.msra.mxu1 %v13773_v16 }
 0x173   :  { %10140 = vmatprep.subr.bf16.mxu1 %v13766_v18  ;;  %v13758_v63 = vcombine.high %v1530_v20, %v1534_v27  ;;  %v1394_v33 = vld [vmem:[%s19543_s1 + $0x2ac0] sm:$0xff]  ;;  %v13757_v40 = vcombine.low %v1530_v20, %v1534_v27 }
 0x174   :  { %v1398_v35 = vld [vmem:[%s19543_s1 + $0x2ae0] sm:$0xff]  ;;  %10100 = vmatpush2.bf16.msra.mxu0 %v13637_v28 }
 0x175   :  { %v1522_v2 = vld [vmem:[%s19543_s1 + $0x2ec0] sm:$0xff]  ;;  %10101 = vmatprep.subr.bf16.mxu0 %v13630_v52  ;;  %v13622_v42 = vcombine.high %v1394_v33, %v1398_v35  ;;  %v13621_v10 = vcombine.low %v1394_v33, %v1398_v35  ;;  %v87_v52 = vld [vmem:[%s19543_s1 + $0x1e8] sm:$0xff]  ;;  %v15377_v33 = vrot.slane %v15142_v34, %v14114_v53 }
 0x176   :  { %v1526_v37 = vld [vmem:[%s19543_s1 + $0x2ee0] sm:$0xff]  ;;  %10141 = vmatpush2.bf16.msra.mxu1 %v13765_v49  ;;  %v83_v49 = vld [vmem:[%s19543_s1 + $0x1c8] sm:$0xff] }
 0x177   :  { %10142 = vmatprep.subr.bf16.mxu1 %v13758_v63  ;;  %v13750_v45 = vcombine.high %v1522_v2, %v1526_v37  ;;  %v1386_v46 = vld [vmem:[%s19543_s1 + $0x2a80] sm:$0xff]  ;;  %v13749_v57 = vcombine.low %v1522_v2, %v1526_v37  ;;  %v12312_v37 = vcombine.high %v83_v49, %v87_v52  ;;  %v79_v34 = vld [vmem:[%s19543_s1 + $0x1a8] sm:$0xff] }
 0x178   :  { %v1390_v48 = vld [vmem:[%s19543_s1 + $0x2aa0] sm:$0xff]  ;;  %10102 = vmatpush2.bf16.msra.mxu0 %v13629_v38 }
 0x179   :  { %v1514_v51 = vld [vmem:[%s19543_s1 + $0x2e80] sm:$0xff]  ;;  %10103 = vmatprep.subr.bf16.mxu0 %v13622_v42  ;;  %v13614_v58 = vcombine.high %v1386_v46, %v1390_v48  ;;  %v13613_v6 = vcombine.low %v1386_v46, %v1390_v48  ;;  %v75_v42 = vld [vmem:[%s19543_s1 + $0x188] sm:$0xff]  ;;  %v12311_v48 = vcombine.low %v83_v49, %v87_v52 }
 0x17a   :  { %v1518_v54 = vld [vmem:[%s19543_s1 + $0x2ea0] sm:$0xff]  ;;  %10143 = vmatpush2.bf16.msra.mxu1 %v13757_v40 }
 0x17b   :  { %10144 = vmatprep.subr.bf16.mxu1 %v13750_v45  ;;  %v13742_v61 = vcombine.high %v1514_v51, %v1518_v54  ;;  %v1378_v60 = vld [vmem:[%s19543_s1 + $0x2a40] sm:$0xff]  ;;  %v13741_v25 = vcombine.low %v1514_v51, %v1518_v54  ;;  %v15393_v45 = vcombine.high %v15377_v33, %v15377_v33  ;;  %v12304_v54 = vcombine.high %v75_v42, %v79_v34 }
 0x17c   :  { %v1382_v1 = vld [vmem:[%s19543_s1 + $0x2a60] sm:$0xff]  ;;  %10104 = vmatpush2.bf16.msra.mxu0 %v13621_v10 }
 0x17d   :  { %v1506_v4 = vld [vmem:[%s19543_s1 + $0x2e40] sm:$0xff]  ;;  %10105 = vmatprep.subr.bf16.mxu0 %v13614_v58  ;;  %v13606_v7 = vcombine.high %v1378_v60, %v1382_v1  ;;  %v13605_v18 = vcombine.low %v1378_v60, %v1382_v1  ;;  %v71_v60 = vld [vmem:[%s19543_s1 + $0x168] sm:$0xff] }
 0x17e   :  { %v1510_v5 = vld [vmem:[%s19543_s1 + $0x2e60] sm:$0xff]  ;;  %10145 = vmatpush2.bf16.msra.mxu1 %v13749_v57 }
 0x17f   :  { %10146 = vmatprep.subr.bf16.mxu1 %v13742_v61  ;;  %v13734_v8 = vcombine.high %v1506_v4, %v1510_v5  ;;  %v1370_v12 = vld [vmem:[%s19543_s1 + $0x2a00] sm:$0xff]  ;;  %v13733_v59 = vcombine.low %v1506_v4, %v1510_v5  ;;  %v67_v61 = vld [vmem:[%s19543_s1 + $0x148] sm:$0xff] }
 0x180   :  { %v1374_v14 = vld [vmem:[%s19543_s1 + $0x2a20] sm:$0xff]  ;;  %10106 = vmatpush2.bf16.msra.mxu0 %v13613_v6  ;;  %v12295_v52 = vcombine.low %v67_v61, %v71_v60 }
 0x181   :  { %v1498_v16 = vld [vmem:[%s19543_s1 + $0x2e00] sm:$0xff]  ;;  %10107 = vmatprep.subr.bf16.mxu0 %v13606_v7  ;;  %v13598_v19 = vcombine.high %v1370_v12, %v1374_v14  ;;  %v13597_v63 = vcombine.low %v1370_v12, %v1374_v14 }
 0x182   :  { %v1502_v17 = vld [vmem:[%s19543_s1 + $0x2e20] sm:$0xff]  ;;  %10147 = vmatpush2.bf16.msra.mxu1 %v13741_v25  ;;  %v12303_v25 = vcombine.low %v75_v42, %v79_v34  ;;  %v55_v42 = vld [vmem:[%s19543_s1 + $0xe8] sm:$0xff] }
 0x183   :  { %10148 = vmatprep.subr.bf16.mxu1 %v13734_v8  ;;  %v13726_v20 = vcombine.high %v1498_v16, %v1502_v17  ;;  %v1586_v27 = vld [vmem:[%s19543_s1 + $0x30c0] sm:$0xff]  ;;  %v13725_v35 = vcombine.low %v1498_v16, %v1502_v17  ;;  %v12296_v16 = vcombine.high %v67_v61, %v71_v60  ;;  %v43_v61 = vld [vmem:[%s19543_s1 + $0x88] sm:$0xff] }
 0x184   :  { %v1590_v28 = vld [vmem:[%s19543_s1 + $0x30e0] sm:$0xff]  ;;  %10108 = vmatpush2.bf16.msra.mxu0 %v13605_v18  ;;  %v14000_v18 = vmov 0   ;;  %v47_v60 = vld [vmem:[%s19543_s1 + $0xa8] sm:$0xff] }
 0x185   :  { %10109 = vmatprep.subr.bf16.mxu0 %v13598_v19  ;;  %v13814_v2 = vcombine.high %v1586_v27, %v1590_v28  ;;  %v1578_v38 = vld [vmem:[%s19543_s1 + $0x3080] sm:$0xff]  ;;  %v13813_v46 = vcombine.low %v1586_v27, %v1590_v28  ;;  %v59_v19 = vld [vmem:[%s19543_s1 + $0x108] sm:$0xff] }
 0x186   :  { %10149 = vmatpush2.bf16.msra.mxu1 %v13733_v59  ;;  %v1582_v40 = vld [vmem:[%s19543_s1 + $0x30a0] sm:$0xff] }
 0x187   :  { %10150 = vmatprep.subr.bf16.mxu1 %v13726_v20  ;;  %v13806_v51 = vcombine.high %v1578_v38, %v1582_v40  ;;  %v1570_v10 = vld [vmem:[%s19543_s1 + $0x3040] sm:$0xff]  ;;  %v13805_v5 = vcombine.low %v1578_v38, %v1582_v40  ;;  %v215_v38 = vld [vmem:[%s19543_s1 + $0x5e8] sm:$0xff] }
 0x188   :  { %10110 = vmatpush2.bf16.msra.mxu0 %v13597_v63  ;;  %v1574_v57 = vld [vmem:[%s19543_s1 + $0x3060] sm:$0xff]  ;;  %v51_v40 = vld [vmem:[%s19543_s1 + $0xc8] sm:$0xff] }
 0x189   :  { %10169 = vmatprep.subr.bf16.mxu0 %v13814_v2  ;;  %v13798_v7 = vcombine.high %v1570_v10, %v1574_v57  ;;  %v1566_v17 = vld [vmem:[%s19543_s1 + $0x3020] sm:$0xff]  ;;  %v13797_v28 = vcombine.low %v1570_v10, %v1574_v57  ;;  %v203_v10 = vld [vmem:[%s19543_s1 + $0x588] sm:$0xff] }
 0x18a   :  { %10151 = vmatpush2.bf16.msra.mxu1 %v13725_v35  ;;  %v207_v57 = vld [vmem:[%s19543_s1 + $0x5a8] sm:$0xff] }
 0x18b   :  { %10202 = vmatprep.subr.bf16.mxu1 %v12312_v37  ;;  %v9867_v58 = vpop.f32.mrf.mxu0  ;;  %10112 = vmatmul.mubr.bf16.vlgmr.msra.gmra.mxu0 %v15377_v33  ;;  %v211_v37 = vld [vmem:[%s19543_s1 + $0x5c8] sm:$0xff] }
 0x18c   :  { %v9868_v1 = vadd.f32 %v9867_v58, %v15200_v24  ;;  %10170 = vmatpush1.bf16.msra.mxu0 %v13813_v46  ;;  %v1562_v24 = vld [vmem:[%s19543_s1 + $0x3000] sm:$0xff]  ;;  %10193 = vmatprep.mubr.bf16.mxu0 %v14000_v18  ;;  %v12252_v46 = vld.sshfl [vmem:[%s19542_s0 + $0x18] sm:$0x1 pattern:$0x75316420] }
 0x18d   :  { %v9908_v4 = vpop.f32.mrf.mxu1  ;;  %10153 = vmatmul.mubr.bf16.vlgmr.msra.gmra.mxu1 %v15393_v45  ;;  %v9869_v6 = vpop.f32.mrf.mxu0  ;;  %10171 = vmatprep.subr.bf16.mxu0 %v13806_v51  ;;  %v13790_v63 = vcombine.high %v1562_v24, %v1566_v17  ;;  %v13789_v34 = vcombine.low %v1562_v24, %v1566_v17  ;;  %v12440_v51 = vcombine.high %v211_v37, %v215_v38 }
 0x18e   :  { %10203 = vmatpush1.bf16.msra.mxu1 %v12311_v48  ;;  %v15410_v8 = vadd.f32 %v9908_v4, %v9868_v1  ;;  %v9870_v12 = vadd.f32 %v9869_v6, %v15217_v36  ;;  %v63_v36 = vld [vmem:[%s19543_s1 + $0x128] sm:$0xff]  ;;  %10234 = vmatprep.mubr.bf16.mxu1 %v14152_v9  ;;  %v15451_v58 = vrot.slane %v12252_v46, %v14114_v53 }
 0x18f   :  { %v9910_v14 = vpop.f32.mrf.mxu1  ;;  %10204 = vmatprep.subr.bf16.mxu1 %v12304_v54  ;;  %v9871_v59 = vpop.f32.mrf.mxu0  ;;  %v12288_v2 = vcombine.high %v59_v19, %v63_v36  ;;  %v12287_v48 = vcombine.low %v59_v19, %v63_v36  ;;  %v12280_v54 = vcombine.high %v51_v40, %v55_v42  ;;  %v12439_v1 = vcombine.low %v211_v37, %v215_v38  ;;  %v195_v53 = vld [vmem:[%s19543_s1 + $0x548] sm:$0xff] }
 0x190   :  { %v15427_v20 = vadd.f32 %v9910_v14, %v9870_v12  ;;  %10172 = vmatpush1.bf16.msra.mxu0 %v13805_v5  ;;  %v12279_v4 = vcombine.low %v51_v40, %v55_v42  ;;  %v12432_v5 = vcombine.high %v203_v10, %v207_v57  ;;  %v12272_v6 = vcombine.high %v43_v61, %v47_v60  ;;  %v39_v12 = vld [vmem:[%s19543_s1 + $0x68] sm:$0xff] }
 0x191   :  { %v9912_v27 = vpop.f32.mrf.mxu1  ;;  %v9872_v49 = vpop.f32.mrf.mxu0  ;;  %10173 = vmatprep.subr.bf16.mxu0 %v13798_v7  ;;  %v35_v7 = vld [vmem:[%s19543_s1 + $0x48] sm:$0xff]  ;;  %v12431_v14 = vcombine.low %v203_v10, %v207_v57 }
 0x192   :  { %10205 = vmatpush1.bf16.msra.mxu1 %v12303_v25  ;;  %v199_v25 = vld [vmem:[%s19543_s1 + $0x568] sm:$0xff]  ;;  %v12264_v17 = vcombine.high %v35_v7, %v39_v12  ;;  %v12263_v49 = vcombine.low %v35_v7, %v39_v12 }
 0x193   :  { %v9913_v35 = vpop.f32.mrf.mxu1  ;;  %10206 = vmatprep.subr.bf16.mxu1 %v12296_v16  ;;  %v12271_v16 = vcombine.low %v43_v61, %v47_v60  ;;  %v12424_v24 = vcombine.high %v195_v53, %v199_v25  ;;  %v187_v59 = vld [vmem:[%s19543_s1 + $0x508] sm:$0xff] }
 0x194   :  { %10174 = vmatpush1.bf16.msra.mxu0 %v13797_v28  ;;  %v191_v19 = vld [vmem:[%s19543_s1 + $0x528] sm:$0xff]  ;;  %v12423_v28 = vcombine.low %v195_v53, %v199_v25 }
 0x195   :  { %10175 = vmatprep.subr.bf16.mxu0 %v13790_v63  ;;  %v27_v36 = vld [vmem:[%s19543_s1 + $0x8] sm:$0xff]  ;;  %v12415_v40 = vcombine.low %v187_v59, %v191_v19 }
 0x196   :  { %10207 = vmatpush1.bf16.msra.mxu1 %v12295_v52  ;;  %v31_v27 = vld [vmem:[%s19543_s1 + $0x28] sm:$0xff]  ;;  %v12416_v52 = vcombine.high %v187_v59, %v191_v19 }
 0x197   :  { %10208 = vmatprep.subr.bf16.mxu1 %v12288_v2  ;;  %v12256_v63 = vcombine.high %v27_v36, %v31_v27  ;;  %v179_v35 = vld [vmem:[%s19543_s1 + $0x4c8] sm:$0xff]  ;;  %v12255_v42 = vcombine.low %v27_v36, %v31_v27 }
 0x198   :  { %10176 = vmatpush1.bf16.msra.mxu0 %v13789_v34  ;;  %v183_v2 = vld [vmem:[%s19543_s1 + $0x4e8] sm:$0xff] }
 0x199   :  { %10243 = vmatprep.subr.bf16.mxu0 %v12440_v51  ;;  %v147_v37 = vld [vmem:[%s19543_s1 + $0x3c8] sm:$0xff]  ;;  %v12408_v34 = vcombine.high %v179_v35, %v183_v2  ;;  %v12407_v57 = vcombine.low %v179_v35, %v183_v2 }
 0x19a   :  { %10209 = vmatpush1.bf16.msra.mxu1 %v12287_v48  ;;  %v151_v38 = vld [vmem:[%s19543_s1 + $0x3e8] sm:$0xff] }
 0x19b   :  { %10210 = vmatprep.subr.bf16.mxu1 %v12280_v54  ;;  %13821 = vmatmul.mubr.msk.bf16.vlgmr.msra.gmra.mxu0 %vm9665_vm0, %v15451_v58  ;;  %v12376_v46 = vcombine.high %v147_v37, %v151_v38  ;;  %v171_v48 = vld [vmem:[%s19543_s1 + $0x488] sm:$0xff]  ;;  %v12375_v61 = vcombine.low %v147_v37, %v151_v38 }
 0x19c   :  { %10244 = vmatpush1.bf16.msra.mxu0 %v12439_v1  ;;  %10275 = vmatprep.mubr.bf16.mxu0 %v14163_v13  ;;  %v175_v51 = vld [vmem:[%s19543_s1 + $0x4a8] sm:$0xff] }
 0x19d   :  { %10245 = vmatprep.subr.bf16.mxu0 %v12432_v5  ;;  %v139_v54 = vld [vmem:[%s19543_s1 + $0x388] sm:$0xff]  ;;  %v12400_v60 = vcombine.high %v171_v48, %v175_v51  ;;  %v12399_v25 = vcombine.low %v171_v48, %v175_v51 }
 0x19e   :  { %10211 = vmatpush1.bf16.msra.mxu1 %v12279_v4  ;;  %v143_v10 = vld [vmem:[%s19543_s1 + $0x3a8] sm:$0xff] }
 0x19f   :  { %10212 = vmatprep.subr.bf16.mxu1 %v12272_v6  ;;  %v12368_v1 = vcombine.high %v139_v54, %v143_v10  ;;  %v163_v4 = vld [vmem:[%s19543_s1 + $0x448] sm:$0xff]  ;;  %v12367_v7 = vcombine.low %v139_v54, %v143_v10 }
 0x1a0   :  { %10246 = vmatpush1.bf16.msra.mxu0 %v12431_v14  ;;  %v167_v5 = vld [vmem:[%s19543_s1 + $0x468] sm:$0xff] }
 0x1a1   :  { %10247 = vmatprep.subr.bf16.mxu0 %v12424_v24  ;;  %v131_v6 = vld [vmem:[%s19543_s1 + $0x348] sm:$0xff]  ;;  %v12392_v12 = vcombine.high %v163_v4, %v167_v5  ;;  %v12391_v19 = vcombine.low %v163_v4, %v167_v5 }
 0x1a2   :  { %10213 = vmatpush1.bf16.msra.mxu1 %v12271_v16  ;;  %v135_v53 = vld [vmem:[%s19543_s1 + $0x368] sm:$0xff] }
 0x1a3   :  { %10214 = vmatprep.subr.bf16.mxu1 %v12264_v17  ;;  %v12360_v14 = vcombine.high %v131_v6, %v135_v53  ;;  %v155_v16 = vld [vmem:[%s19543_s1 + $0x408] sm:$0xff]  ;;  %v12359_v36 = vcombine.low %v131_v6, %v135_v53 }
 0x1a4   :  { %10248 = vmatpush1.bf16.msra.mxu0 %v12423_v28  ;;  %v159_v24 = vld [vmem:[%s19543_s1 + $0x428] sm:$0xff] }
 0x1a5   :  { %10249 = vmatprep.subr.bf16.mxu0 %v12416_v52  ;;  %v123_v17 = vld [vmem:[%s19543_s1 + $0x308] sm:$0xff]  ;;  %v12384_v27 = vcombine.high %v155_v16, %v159_v24  ;;  %v12383_v2 = vcombine.low %v155_v16, %v159_v24 }
 0x1a6   :  { %10215 = vmatpush1.bf16.msra.mxu1 %v12263_v49  ;;  %v127_v59 = vld [vmem:[%s19543_s1 + $0x328] sm:$0xff] }
 0x1a7   :  { %10216 = vmatprep.subr.bf16.mxu1 %v12256_v63  ;;  %v12352_v28 = vcombine.high %v123_v17, %v127_v59  ;;  %v275_v49 = vld [vmem:[%s19543_s1 + $0x7c8] sm:$0xff]  ;;  %v12351_v37 = vcombine.low %v123_v17, %v127_v59 }
 0x1a8   :  { %10250 = vmatpush1.bf16.msra.mxu0 %v12415_v40  ;;  %v279_v52 = vld [vmem:[%s19543_s1 + $0x7e8] sm:$0xff] }
 0x1a9   :  { %10251 = vmatprep.subr.bf16.mxu0 %v12408_v34  ;;  %v115_v63 = vld [vmem:[%s19543_s1 + $0x2c8] sm:$0xff]  ;;  %v12504_v38 = vcombine.high %v275_v49, %v279_v52  ;;  %v12503_v51 = vcombine.low %v275_v49, %v279_v52 }
 0x1aa   :  { %10217 = vmatpush1.bf16.msra.mxu1 %v12255_v42  ;;  %v119_v35 = vld [vmem:[%s19543_s1 + $0x2e8] sm:$0xff] }
 0x1ab   :  { %10218 = vmatprep.subr.bf16.mxu1 %v12376_v46  ;;  %v12344_v40 = vcombine.high %v115_v63, %v119_v35  ;;  %v267_v42 = vld [vmem:[%s19543_s1 + $0x788] sm:$0xff]  ;;  %v12343_v54 = vcombine.low %v115_v63, %v119_v35 }
 0x1ac   :  { %10252 = vmatpush1.bf16.msra.mxu0 %v12407_v57  ;;  %v271_v34 = vld [vmem:[%s19543_s1 + $0x7a8] sm:$0xff] }
 0x1ad   :  { %10253 = vmatprep.subr.bf16.mxu0 %v12400_v60  ;;  %v107_v46 = vld [vmem:[%s19543_s1 + $0x288] sm:$0xff]  ;;  %v12496_v10 = vcombine.high %v267_v42, %v271_v34  ;;  %v12495_v5 = vcombine.low %v267_v42, %v271_v34 }
 0x1ae   :  { %10219 = vmatpush2.bf16.msra.mxu1 %v12375_v61  ;;  %v111_v48 = vld [vmem:[%s19543_s1 + $0x2a8] sm:$0xff] }
 0x1af   :  { %10220 = vmatprep.subr.bf16.mxu1 %v12368_v1  ;;  %v12336_v57 = vcombine.high %v107_v46, %v111_v48  ;;  %v259_v61 = vld [vmem:[%s19543_s1 + $0x748] sm:$0xff]  ;;  %v12335_v6 = vcombine.low %v107_v46, %v111_v48 }
 0x1b0   :  { %10254 = vmatpush1.bf16.msra.mxu0 %v12399_v25  ;;  %v263_v60 = vld [vmem:[%s19543_s1 + $0x768] sm:$0xff] }
 0x1b1   :  { %10255 = vmatprep.subr.bf16.mxu0 %v12392_v12  ;;  %v99_v1 = vld [vmem:[%s19543_s1 + $0x248] sm:$0xff]  ;;  %v12488_v53 = vcombine.high %v259_v61, %v263_v60  ;;  %v12487_v24 = vcombine.low %v259_v61, %v263_v60 }
 0x1b2   :  { %10221 = vmatpush2.bf16.msra.mxu1 %v12367_v7  ;;  %v103_v4 = vld [vmem:[%s19543_s1 + $0x268] sm:$0xff] }
 0x1b3   :  { %10222 = vmatprep.subr.bf16.mxu1 %v12360_v14  ;;  %v12328_v25 = vcombine.high %v99_v1, %v103_v4  ;;  %v251_v7 = vld [vmem:[%s19543_s1 + $0x708] sm:$0xff]  ;;  %v12327_v17 = vcombine.low %v99_v1, %v103_v4 }
 0x1b4   :  { %10256 = vmatpush1.bf16.msra.mxu0 %v12391_v19  ;;  %v255_v12 = vld [vmem:[%s19543_s1 + $0x728] sm:$0xff] }
 0x1b5   :  { %10257 = vmatprep.subr.bf16.mxu0 %v12384_v27  ;;  %v91_v14 = vld [vmem:[%s19543_s1 + $0x208] sm:$0xff]  ;;  %v12480_v59 = vcombine.high %v251_v7, %v255_v12  ;;  %v12479_v52 = vcombine.low %v251_v7, %v255_v12 }
 0x1b6   :  { %10223 = vmatpush2.bf16.msra.mxu1 %v12359_v36  ;;  %v95_v16 = vld [vmem:[%s19543_s1 + $0x228] sm:$0xff] }
 0x1b7   :  { %10224 = vmatprep.subr.bf16.mxu1 %v12352_v28  ;;  %v12320_v19 = vcombine.high %v91_v14, %v95_v16  ;;  %v243_v36 = vld [vmem:[%s19543_s1 + $0x6c8] sm:$0xff]  ;;  %v12319_v63 = vcombine.low %v91_v14, %v95_v16 }
 0x1b8   :  { %10258 = vmatpush1.bf16.msra.mxu0 %v12383_v2  ;;  %v247_v27 = vld [vmem:[%s19543_s1 + $0x6e8] sm:$0xff] }
 0x1b9   :  { %10259 = vmatprep.subr.bf16.mxu0 %v12504_v38  ;;  %v339_v28 = vld [vmem:[%s19543_s1 + $0x9c8] sm:$0xff]  ;;  %v12472_v35 = vcombine.high %v243_v36, %v247_v27  ;;  %v12471_v34 = vcombine.low %v243_v36, %v247_v27 }
 0x1ba   :  { %10225 = vmatpush2.bf16.msra.mxu1 %v12351_v37  ;;  %v343_v49 = vld [vmem:[%s19543_s1 + $0x9e8] sm:$0xff] }
 0x1bb   :  { %10226 = vmatprep.subr.bf16.mxu1 %v12344_v40  ;;  %v12568_v2 = vcombine.high %v339_v28, %v343_v49  ;;  %v235_v37 = vld [vmem:[%s19543_s1 + $0x688] sm:$0xff]  ;;  %v12567_v46 = vcombine.low %v339_v28, %v343_v49 }
 0x1bc   :  { %10260 = vmatpush2.bf16.msra.mxu0 %v12503_v51  ;;  %v239_v38 = vld [vmem:[%s19543_s1 + $0x6a8] sm:$0xff] }
 0x1bd   :  { %10261 = vmatprep.subr.bf16.mxu0 %v12496_v10  ;;  %v331_v40 = vld [vmem:[%s19543_s1 + $0x988] sm:$0xff]  ;;  %v12464_v48 = vcombine.high %v235_v37, %v239_v38 }
 0x1be   :  { %10227 = vmatpush2.bf16.msra.mxu1 %v12343_v54  ;;  %v335_v42 = vld [vmem:[%s19543_s1 + $0x9a8] sm:$0xff] }
 0x1bf   :  { %10228 = vmatprep.subr.bf16.mxu1 %v12336_v57  ;;  %v12560_v51 = vcombine.high %v331_v40, %v335_v42  ;;  %v227_v54 = vld [vmem:[%s19543_s1 + $0x648] sm:$0xff] }
 0x1c0   :  { %10262 = vmatpush2.bf16.msra.mxu0 %v12495_v5  ;;  %v231_v10 = vld [vmem:[%s19543_s1 + $0x668] sm:$0xff]  ;;  %v12463_v5 = vcombine.low %v235_v37, %v239_v38 }
 0x1c1   :  { %10263 = vmatprep.subr.bf16.mxu0 %v12488_v53  ;;  %v323_v61 = vld [vmem:[%s19543_s1 + $0x948] sm:$0xff]  ;;  %v12559_v53 = vcombine.low %v331_v40, %v335_v42  ;;  %v12455_v27 = vcombine.low %v227_v54, %v231_v10 }
 0x1c2   :  { %10229 = vmatpush2.bf16.msra.mxu1 %v12335_v6  ;;  %v327_v60 = vld [vmem:[%s19543_s1 + $0x968] sm:$0xff] }
 0x1c3   :  { %10230 = vmatprep.subr.bf16.mxu1 %v12328_v25  ;;  %v12456_v25 = vcombine.high %v227_v54, %v231_v10  ;;  %v12552_v16 = vcombine.high %v323_v61, %v327_v60  ;;  %v12551_v49 = vcombine.low %v323_v61, %v327_v60  ;;  %v471_v37 = vld [vmem:[%s19543_s1 + $0xde8] sm:$0xff] }
 0x1c4   :  { %10264 = vmatpush2.bf16.msra.mxu0 %v12487_v24  ;;  %v223_v24 = vld [vmem:[%s19543_s1 + $0x628] sm:$0xff] }
 0x1c5   :  { %10265 = vmatprep.subr.bf16.mxu0 %v12480_v59  ;;  %v315_v59 = vld [vmem:[%s19543_s1 + $0x908] sm:$0xff] }
 0x1c6   :  { %10231 = vmatpush2.bf16.msra.mxu1 %v12327_v17  ;;  %v307_v38 = vld [vmem:[%s19543_s1 + $0x8c8] sm:$0xff] }
 0x1c7   :  { %10232 = vmatprep.subr.bf16.mxu1 %v12320_v19  ;;  %v311_v40 = vld [vmem:[%s19543_s1 + $0x8e8] sm:$0xff] }
 0x1c8   :  { %10266 = vmatpush2.bf16.msra.mxu0 %v12479_v52  ;;  %v463_v54 = vld [vmem:[%s19543_s1 + $0xda8] sm:$0xff]  ;;  %v12535_v60 = vcombine.low %v307_v38, %v311_v40 }
 0x1c9   :  { %10267 = vmatprep.subr.bf16.mxu0 %v12472_v35  ;;  %v299_v10 = vld [vmem:[%s19543_s1 + $0x888] sm:$0xff] }
 0x1ca   :  { %10233 = vmatpush2.bf16.msra.mxu1 %v12319_v63 }
 0x1cb   :  { %10284 = vmatprep.subr.bf16.mxu1 %v12568_v2  ;;  %v9949_v57 = vpop.f32.mrf.mxu0  ;;  %v467_v2 = vld [vmem:[%s19543_s1 + $0xdc8] sm:$0xff] }
 0x1cc   :  { %v9950_v1 = vadd.f32 %v9949_v57, %v15410_v8  ;;  %10268 = vmatpush2.bf16.msra.mxu0 %v12471_v34  ;;  %v219_v8 = vld [vmem:[%s19543_s1 + $0x608] sm:$0xff]  ;;  %v12695_v61 = vcombine.low %v467_v2, %v471_v37 }
 0x1cd   :  { %v9990_v4 = vpop.f32.mrf.mxu1  ;;  %10235 = vmatmul.mubr.bf16.vlgmr.msra.gmra.mxu1 %v14271_v22  ;;  %v9951_v6 = vpop.f32.mrf.mxu0  ;;  %10269 = vmatprep.subr.bf16.mxu0 %v12464_v48  ;;  %v12448_v52 = vcombine.high %v219_v8, %v223_v24  ;;  %v12447_v42 = vcombine.low %v219_v8, %v223_v24  ;;  %v12536_v48 = vcombine.high %v307_v38, %v311_v40  ;;  %v303_v57 = vld [vmem:[%s19543_s1 + $0x8a8] sm:$0xff] }
 0x1ce   :  { %10285 = vmatpush1.bf16.msra.mxu1 %v12567_v46  ;;  %v15620_v7 = vadd.f32 %v9990_v4, %v9950_v1  ;;  %v9952_v12 = vadd.f32 %v9951_v6, %v15427_v20  ;;  %10316 = vmatprep.mubr.bf16.mxu1 %v14286_v29  ;;  %v319_v20 = vld [vmem:[%s19543_s1 + $0x928] sm:$0xff]  ;;  %v12696_v46 = vcombine.high %v467_v2, %v471_v37 }
 0x1cf   :  { %v9992_v14 = vpop.f32.mrf.mxu1  ;;  %10286 = vmatprep.subr.bf16.mxu1 %v12560_v51  ;;  %v9953_v17 = vpop.f32.mrf.mxu0  ;;  %v12544_v35 = vcombine.high %v315_v59, %v319_v20  ;;  %v12543_v34 = vcombine.low %v315_v59, %v319_v20  ;;  %v459_v51 = vld [vmem:[%s19543_s1 + $0xd88] sm:$0xff]  ;;  %v12528_v4 = vcombine.high %v299_v10, %v303_v57 }
 0x1d0   :  { %v15636_v19 = vadd.f32 %v9992_v14, %v9952_v12  ;;  %10270 = vmatpush2.bf16.msra.mxu0 %v12463_v5  ;;  %v12688_v1 = vcombine.high %v459_v51, %v463_v54  ;;  %v451_v5 = vld [vmem:[%s19543_s1 + $0xd48] sm:$0xff]  ;;  %v12687_v12 = vcombine.low %v459_v51, %v463_v54  ;;  %v12527_v14 = vcombine.low %v299_v10, %v303_v57 }
 0x1d1   :  { %v9994_v36 = vpop.f32.mrf.mxu1  ;;  %v9954_v28 = vpop.f32.mrf.mxu0  ;;  %10271 = vmatprep.subr.bf16.mxu0 %v12456_v25  ;;  %v455_v6 = vld [vmem:[%s19543_s1 + $0xd68] sm:$0xff] }
 0x1d2   :  { %10287 = vmatpush1.bf16.msra.mxu1 %v12559_v53  ;;  %v291_v53 = vld [vmem:[%s19543_s1 + $0x848] sm:$0xff]  ;;  %v12679_v36 = vcombine.low %v451_v5, %v455_v6 }
 0x1d3   :  { %v9995_v63 = vpop.f32.mrf.mxu1  ;;  %10288 = vmatprep.subr.bf16.mxu1 %v12552_v16  ;;  %v295_v25 = vld [vmem:[%s19543_s1 + $0x868] sm:$0xff]  ;;  %v12680_v16 = vcombine.high %v451_v5, %v455_v6 }
 0x1d4   :  { %10272 = vmatpush2.bf16.msra.mxu0 %v12455_v27  ;;  %v12520_v8 = vcombine.high %v291_v53, %v295_v25  ;;  %v443_v24 = vld [vmem:[%s19543_s1 + $0xd08] sm:$0xff]  ;;  %v12519_v27 = vcombine.low %v291_v53, %v295_v25 }
 0x1d5   :  { %10273 = vmatprep.subr.bf16.mxu0 %v12448_v52  ;;  %v447_v17 = vld [vmem:[%s19543_s1 + $0xd28] sm:$0xff] }
 0x1d6   :  { %10289 = vmatpush1.bf16.msra.mxu1 %v12551_v49  ;;  %v283_v59 = vld [vmem:[%s19543_s1 + $0x808] sm:$0xff]  ;;  %v12672_v28 = vcombine.high %v443_v24, %v447_v17  ;;  %v12671_v37 = vcombine.low %v443_v24, %v447_v17 }
 0x1d7   :  { %10290 = vmatprep.subr.bf16.mxu1 %v12544_v35  ;;  %v287_v20 = vld [vmem:[%s19543_s1 + $0x828] sm:$0xff] }
 0x1d8   :  { %10274 = vmatpush2.bf16.msra.mxu0 %v12447_v42  ;;  %v12512_v49 = vcombine.high %v283_v59, %v287_v20  ;;  %v435_v52 = vld [vmem:[%s19543_s1 + $0xcc8] sm:$0xff]  ;;  %v12511_v38 = vcombine.low %v283_v59, %v287_v20 }
 0x1d9   :  { %10325 = vmatprep.subr.bf16.mxu0 %v12696_v46  ;;  %v439_v63 = vld [vmem:[%s19543_s1 + $0xce8] sm:$0xff] }
 0x1da   :  { %10291 = vmatpush1.bf16.msra.mxu1 %v12543_v34  ;;  %v403_v35 = vld [vmem:[%s19543_s1 + $0xbc8] sm:$0xff]  ;;  %v12664_v40 = vcombine.high %v435_v52, %v439_v63  ;;  %v12663_v54 = vcombine.low %v435_v52, %v439_v63 }
 0x1db   :  { %10292 = vmatprep.subr.bf16.mxu1 %v12536_v48  ;;  %10276 = vmatmul.mubr.bf16.vlgmr.msra.gmra.mxu0 %v14290_v30  ;;  %v407_v2 = vld [vmem:[%s19543_s1 + $0xbe8] sm:$0xff] }
 0x1dc   :  { %10326 = vmatpush1.bf16.msra.mxu0 %v12695_v61  ;;  %10357 = vmatprep.mubr.bf16.mxu0 %v14307_v39  ;;  %v12632_v42 = vcombine.high %v403_v35, %v407_v2  ;;  %v427_v34 = vld [vmem:[%s19543_s1 + $0xc88] sm:$0xff]  ;;  %v12631_v10 = vcombine.low %v403_v35, %v407_v2 }
 0x1dd   :  { %10327 = vmatprep.subr.bf16.mxu0 %v12688_v1  ;;  %v431_v46 = vld [vmem:[%s19543_s1 + $0xca8] sm:$0xff] }
 0x1de   :  { %10293 = vmatpush1.bf16.msra.mxu1 %v12535_v60  ;;  %v395_v48 = vld [vmem:[%s19543_s1 + $0xb88] sm:$0xff]  ;;  %v12656_v57 = vcombine.high %v427_v34, %v431_v46  ;;  %v12655_v6 = vcombine.low %v427_v34, %v431_v46 }
 0x1df   :  { %10294 = vmatprep.subr.bf16.mxu1 %v12528_v4  ;;  %v399_v51 = vld [vmem:[%s19543_s1 + $0xba8] sm:$0xff] }
 0x1e0   :  { %10328 = vmatpush1.bf16.msra.mxu0 %v12687_v12  ;;  %v12624_v61 = vcombine.high %v395_v48, %v399_v51  ;;  %v419_v60 = vld [vmem:[%s19543_s1 + $0xc48] sm:$0xff]  ;;  %v12623_v53 = vcombine.low %v395_v48, %v399_v51 }
 0x1e1   :  { %10329 = vmatprep.subr.bf16.mxu0 %v12680_v16  ;;  %v423_v1 = vld [vmem:[%s19543_s1 + $0xc68] sm:$0xff] }
 0x1e2   :  { %10295 = vmatpush1.bf16.msra.mxu1 %v12527_v14  ;;  %v387_v4 = vld [vmem:[%s19543_s1 + $0xb48] sm:$0xff]  ;;  %v12648_v25 = vcombine.high %v419_v60, %v423_v1  ;;  %v12647_v17 = vcombine.low %v419_v60, %v423_v1 }
 0x1e3   :  { %10296 = vmatprep.subr.bf16.mxu1 %v12520_v8  ;;  %v391_v5 = vld [vmem:[%s19543_s1 + $0xb68] sm:$0xff] }
 0x1e4   :  { %10330 = vmatpush1.bf16.msra.mxu0 %v12679_v36  ;;  %v12616_v12 = vcombine.high %v387_v4, %v391_v5  ;;  %v411_v14 = vld [vmem:[%s19543_s1 + $0xc08] sm:$0xff]  ;;  %v12615_v59 = vcombine.low %v387_v4, %v391_v5 }
 0x1e5   :  { %10331 = vmatprep.subr.bf16.mxu0 %v12672_v28  ;;  %v415_v16 = vld [vmem:[%s19543_s1 + $0xc28] sm:$0xff] }
 0x1e6   :  { %10297 = vmatpush1.bf16.msra.mxu1 %v12519_v27  ;;  %v379_v8 = vld [vmem:[%s19543_s1 + $0xb08] sm:$0xff]  ;;  %v12640_v20 = vcombine.high %v411_v14, %v415_v16  ;;  %v12639_v63 = vcombine.low %v411_v14, %v415_v16 }
 0x1e7   :  { %10298 = vmatprep.subr.bf16.mxu1 %v12512_v49  ;;  %v383_v24 = vld [vmem:[%s19543_s1 + $0xb28] sm:$0xff] }
 0x1e8   :  { %10332 = vmatpush1.bf16.msra.mxu0 %v12671_v37  ;;  %v12608_v36 = vcombine.high %v379_v8, %v383_v24  ;;  %v531_v27 = vld [vmem:[%s19543_s1 + $0xfc8] sm:$0xff]  ;;  %v12607_v35 = vcombine.low %v379_v8, %v383_v24 }
 0x1e9   :  { %10333 = vmatprep.subr.bf16.mxu0 %v12664_v40  ;;  %v535_v28 = vld [vmem:[%s19543_s1 + $0xfe8] sm:$0xff] }
 0x1ea   :  { %10299 = vmatpush1.bf16.msra.mxu1 %v12511_v38  ;;  %v371_v49 = vld [vmem:[%s19543_s1 + $0xac8] sm:$0xff]  ;;  %v12760_v2 = vcombine.high %v531_v27, %v535_v28  ;;  %v12759_v46 = vcombine.low %v531_v27, %v535_v28 }
 0x1eb   :  { %10300 = vmatprep.subr.bf16.mxu1 %v12632_v42  ;;  %v375_v52 = vld [vmem:[%s19543_s1 + $0xae8] sm:$0xff] }
 0x1ec   :  { %10334 = vmatpush1.bf16.msra.mxu0 %v12663_v54  ;;  %v12600_v37 = vcombine.high %v371_v49, %v375_v52  ;;  %v523_v38 = vld [vmem:[%s19543_s1 + $0xf88] sm:$0xff]  ;;  %v12599_v48 = vcombine.low %v371_v49, %v375_v52 }
 0x1ed   :  { %10335 = vmatprep.subr.bf16.mxu0 %v12656_v57  ;;  %v527_v40 = vld [vmem:[%s19543_s1 + $0xfa8] sm:$0xff] }
 0x1ee   :  { %10301 = vmatpush2.bf16.msra.mxu1 %v12631_v10  ;;  %v363_v42 = vld [vmem:[%s19543_s1 + $0xa88] sm:$0xff]  ;;  %v12752_v51 = vcombine.high %v523_v38, %v527_v40  ;;  %v12751_v1 = vcombine.low %v523_v38, %v527_v40 }
 0x1ef   :  { %10302 = vmatprep.subr.bf16.mxu1 %v12624_v61  ;;  %v367_v34 = vld [vmem:[%s19543_s1 + $0xaa8] sm:$0xff] }
 0x1f0   :  { %10336 = vmatpush1.bf16.msra.mxu0 %v12655_v6  ;;  %v12592_v54 = vcombine.high %v363_v42, %v367_v34  ;;  %v515_v10 = vld [vmem:[%s19543_s1 + $0xf48] sm:$0xff]  ;;  %v12591_v4 = vcombine.low %v363_v42, %v367_v34 }
 0x1f1   :  { %10337 = vmatprep.subr.bf16.mxu0 %v12648_v25  ;;  %v519_v57 = vld [vmem:[%s19543_s1 + $0xf68] sm:$0xff] }
 0x1f2   :  { %10303 = vmatpush2.bf16.msra.mxu1 %v12623_v53  ;;  %v355_v61 = vld [vmem:[%s19543_s1 + $0xa48] sm:$0xff]  ;;  %v12744_v5 = vcombine.high %v515_v10, %v519_v57  ;;  %v12743_v16 = vcombine.low %v515_v10, %v519_v57 }
 0x1f3   :  { %10304 = vmatprep.subr.bf16.mxu1 %v12616_v12  ;;  %v359_v60 = vld [vmem:[%s19543_s1 + $0xa68] sm:$0xff] }
 0x1f4   :  { %10338 = vmatpush1.bf16.msra.mxu0 %v12647_v17  ;;  %v12584_v6 = vcombine.high %v355_v61, %v359_v60  ;;  %v507_v53 = vld [vmem:[%s19543_s1 + $0xf08] sm:$0xff]  ;;  %v12583_v8 = vcombine.low %v355_v61, %v359_v60 }
 0x1f5   :  { %10339 = vmatprep.subr.bf16.mxu0 %v12640_v20  ;;  %v511_v25 = vld [vmem:[%s19543_s1 + $0xf28] sm:$0xff] }
 0x1f6   :  { %10305 = vmatpush2.bf16.msra.mxu1 %v12615_v59  ;;  %v347_v12 = vld [vmem:[%s19543_s1 + $0xa08] sm:$0xff]  ;;  %v12736_v24 = vcombine.high %v507_v53, %v511_v25  ;;  %v12735_v28 = vcombine.low %v507_v53, %v511_v25 }
 0x1f7   :  { %10306 = vmatprep.subr.bf16.mxu1 %v12608_v36  ;;  %v351_v14 = vld [vmem:[%s19543_s1 + $0xa28] sm:$0xff] }
 0x1f8   :  { %10340 = vmatpush1.bf16.msra.mxu0 %v12639_v63  ;;  %v12576_v17 = vcombine.high %v347_v12, %v351_v14  ;;  %v499_v59 = vld [vmem:[%s19543_s1 + $0xec8] sm:$0xff]  ;;  %v12575_v49 = vcombine.low %v347_v12, %v351_v14 }
 0x1f9   :  { %10341 = vmatprep.subr.bf16.mxu0 %v12760_v2  ;;  %v503_v20 = vld [vmem:[%s19543_s1 + $0xee8] sm:$0xff] }
 0x1fa   :  { %10307 = vmatpush2.bf16.msra.mxu1 %v12607_v35  ;;  %v595_v36 = vld [vmem:[%s19543_s1 + $0x11c8] sm:$0xff]  ;;  %v12728_v52 = vcombine.high %v499_v59, %v503_v20  ;;  %v12727_v40 = vcombine.low %v499_v59, %v503_v20 }
 0x1fb   :  { %10308 = vmatprep.subr.bf16.mxu1 %v12600_v37  ;;  %v599_v27 = vld [vmem:[%s19543_s1 + $0x11e8] sm:$0xff] }
 0x1fc   :  { %10342 = vmatpush2.bf16.msra.mxu0 %v12759_v46  ;;  %v12824_v63 = vcombine.high %v595_v36, %v599_v27  ;;  %v491_v35 = vld [vmem:[%s19543_s1 + $0xe88] sm:$0xff]  ;;  %v12823_v42 = vcombine.low %v595_v36, %v599_v27 }
 0x1fd   :  { %10343 = vmatprep.subr.bf16.mxu0 %v12752_v51  ;;  %v495_v2 = vld [vmem:[%s19543_s1 + $0xea8] sm:$0xff] }
 0x1fe   :  { %10309 = vmatpush2.bf16.msra.mxu1 %v12599_v48  ;;  %v587_v37 = vld [vmem:[%s19543_s1 + $0x1188] sm:$0xff]  ;;  %v12720_v34 = vcombine.high %v491_v35, %v495_v2 }
 0x1ff   :  { %10310 = vmatprep.subr.bf16.mxu1 %v12592_v54  ;;  %v591_v38 = vld [vmem:[%s19543_s1 + $0x11a8] sm:$0xff] }
 0x200   :  { %10344 = vmatpush2.bf16.msra.mxu0 %v12751_v1  ;;  %v12816_v46 = vcombine.high %v587_v37, %v591_v38  ;;  %v483_v48 = vld [vmem:[%s19543_s1 + $0xe48] sm:$0xff]  ;;  %v12719_v1 = vcombine.low %v491_v35, %v495_v2 }
 0x201   :  { %10345 = vmatprep.subr.bf16.mxu0 %v12744_v5  ;;  %v487_v51 = vld [vmem:[%s19543_s1 + $0xe68] sm:$0xff]  ;;  %v12815_v5 = vcombine.low %v587_v37, %v591_v38 }
 0x202   :  { %10311 = vmatpush2.bf16.msra.mxu1 %v12591_v4  ;;  %v579_v10 = vld [vmem:[%s19543_s1 + $0x1148] sm:$0xff]  ;;  %v12711_v20 = vcombine.low %v483_v48, %v487_v51 }
 0x203   :  { %10312 = vmatprep.subr.bf16.mxu1 %v12584_v6  ;;  %v583_v57 = vld [vmem:[%s19543_s1 + $0x1168] sm:$0xff]  ;;  %v12712_v6 = vcombine.high %v483_v48, %v487_v51 }
 0x204   :  { %10346 = vmatpush2.bf16.msra.mxu0 %v12743_v16  ;;  %v12808_v14 = vcombine.high %v579_v10, %v583_v57  ;;  %v479_v16 = vld [vmem:[%s19543_s1 + $0xe28] sm:$0xff]  ;;  %v12807_v27 = vcombine.low %v579_v10, %v583_v57 }
 0x205   :  { %10347 = vmatprep.subr.bf16.mxu0 %v12736_v24  ;;  %v571_v24 = vld [vmem:[%s19543_s1 + $0x1108] sm:$0xff] }
 0x206   :  { %10313 = vmatpush2.bf16.msra.mxu1 %v12583_v8  ;;  %v727_v35 = vld [vmem:[%s19543_s1 + $0x15e8] sm:$0xff] }
 0x207   :  { %10314 = vmatprep.subr.bf16.mxu1 %v12576_v17  ;;  %v563_v2 = vld [vmem:[%s19543_s1 + $0x10c8] sm:$0xff] }
 0x208   :  { %10348 = vmatpush2.bf16.msra.mxu0 %v12735_v28  ;;  %v567_v37 = vld [vmem:[%s19543_s1 + $0x10e8] sm:$0xff] }
 0x209   :  { %10349 = vmatprep.subr.bf16.mxu0 %v12728_v52  ;;  %v719_v48 = vld [vmem:[%s19543_s1 + $0x15a8] sm:$0xff]  ;;  %v12791_v57 = vcombine.low %v563_v2, %v567_v37 }
 0x20a   :  { %10315 = vmatpush2.bf16.msra.mxu1 %v12575_v49  ;;  %v555_v51 = vld [vmem:[%s19543_s1 + $0x1088] sm:$0xff] }
 0x20b   :  { %10366 = vmatprep.subr.bf16.mxu1 %v12824_v63  ;;  %v10031_v54 = vpop.f32.mrf.mxu0  ;;  %v723_v63 = vld [vmem:[%s19543_s1 + $0x15c8] sm:$0xff] }
 0x20c   :  { %v10032_v61 = vadd.f32 %v10031_v54, %v15620_v7  ;;  %10350 = vmatpush2.bf16.msra.mxu0 %v12727_v40  ;;  %v475_v7 = vld [vmem:[%s19543_s1 + $0xe08] sm:$0xff]  ;;  %v12951_v10 = vcombine.low %v723_v63, %v727_v35 }
 0x20d   :  { %v10072_v60 = vpop.f32.mrf.mxu1  ;;  %10317 = vmatmul.mubr.bf16.vlgmr.msra.gmra.mxu1 %v14493_v47  ;;  %v10033_v4 = vpop.f32.mrf.mxu0  ;;  %10351 = vmatprep.subr.bf16.mxu0 %v12720_v34  ;;  %v12704_v28 = vcombine.high %v475_v7, %v479_v16  ;;  %v12703_v38 = vcombine.low %v475_v7, %v479_v16  ;;  %v12792_v34 = vcombine.high %v563_v2, %v567_v37  ;;  %v559_v54 = vld [vmem:[%s19543_s1 + $0x10a8] sm:$0xff] }
 0x20e   :  { %10367 = vmatpush1.bf16.msra.mxu1 %v12823_v42  ;;  %v15822_v53 = vadd.f32 %v10072_v60, %v10032_v61  ;;  %v10034_v25 = vadd.f32 %v10033_v4, %v15636_v19  ;;  %10398 = vmatprep.mubr.bf16.mxu1 %v14508_v55  ;;  %v575_v19 = vld [vmem:[%s19543_s1 + $0x1128] sm:$0xff]  ;;  %v12952_v42 = vcombine.high %v723_v63, %v727_v35 }
 0x20f   :  { %v10074_v12 = vpop.f32.mrf.mxu1  ;;  %10368 = vmatprep.subr.bf16.mxu1 %v12816_v46  ;;  %v10035_v8 = vpop.f32.mrf.mxu0  ;;  %v12800_v52 = vcombine.high %v571_v24, %v575_v19  ;;  %v12799_v40 = vcombine.low %v571_v24, %v575_v19  ;;  %v715_v46 = vld [vmem:[%s19543_s1 + $0x1588] sm:$0xff]  ;;  %v12784_v60 = vcombine.high %v555_v51, %v559_v54 }
 0x210   :  { %v15838_v17 = vadd.f32 %v10074_v12, %v10034_v25  ;;  %10352 = vmatpush2.bf16.msra.mxu0 %v12719_v1  ;;  %v12944_v61 = vcombine.high %v715_v46, %v719_v48  ;;  %v707_v1 = vld [vmem:[%s19543_s1 + $0x1548] sm:$0xff]  ;;  %v12943_v25 = vcombine.low %v715_v46, %v719_v48  ;;  %v12783_v12 = vcombine.low %v555_v51, %v559_v54 }
 0x211   :  { %v10076_v59 = vpop.f32.mrf.mxu1  ;;  %v10036_v36 = vpop.f32.mrf.mxu0  ;;  %10353 = vmatprep.subr.bf16.mxu0 %v12712_v6  ;;  %v711_v4 = vld [vmem:[%s19543_s1 + $0x1568] sm:$0xff] }
 0x212   :  { %10369 = vmatpush1.bf16.msra.mxu1 %v12815_v5  ;;  %v547_v5 = vld [vmem:[%s19543_s1 + $0x1048] sm:$0xff]  ;;  %v12935_v59 = vcombine.low %v707_v1, %v711_v4 }
 0x213   :  { %v10077_v49 = vpop.f32.mrf.mxu1  ;;  %10370 = vmatprep.subr.bf16.mxu1 %v12808_v14  ;;  %v551_v6 = vld [vmem:[%s19543_s1 + $0x1068] sm:$0xff]  ;;  %v12936_v14 = vcombine.high %v707_v1, %v711_v4 }
 0x214   :  { %10354 = vmatpush2.bf16.msra.mxu0 %v12711_v20  ;;  %v12776_v7 = vcombine.high %v547_v5, %v551_v6  ;;  %v699_v16 = vld [vmem:[%s19543_s1 + $0x1508] sm:$0xff]  ;;  %v12775_v20 = vcombine.low %v547_v5, %v551_v6 }
 0x215   :  { %10355 = vmatprep.subr.bf16.mxu0 %v12704_v28  ;;  %v703_v8 = vld [vmem:[%s19543_s1 + $0x1528] sm:$0xff] }
 0x216   :  { %10371 = vmatpush1.bf16.msra.mxu1 %v12807_v27  ;;  %v539_v24 = vld [vmem:[%s19543_s1 + $0x1008] sm:$0xff]  ;;  %v12928_v36 = vcombine.high %v699_v16, %v703_v8  ;;  %v12927_v35 = vcombine.low %v699_v16, %v703_v8 }
 0x217   :  { %10372 = vmatprep.subr.bf16.mxu1 %v12800_v52  ;;  %v543_v19 = vld [vmem:[%s19543_s1 + $0x1028] sm:$0xff] }
 0x218   :  { %10356 = vmatpush2.bf16.msra.mxu0 %v12703_v38  ;;  %v12768_v27 = vcombine.high %v539_v24, %v543_v19  ;;  %v691_v28 = vld [vmem:[%s19543_s1 + $0x14c8] sm:$0xff]  ;;  %v12767_v2 = vcombine.low %v539_v24, %v543_v19 }
 0x219   :  { %10407 = vmatprep.subr.bf16.mxu0 %v12952_v42  ;;  %v695_v49 = vld [vmem:[%s19543_s1 + $0x14e8] sm:$0xff] }
 0x21a   :  { %10373 = vmatpush1.bf16.msra.mxu1 %v12799_v40  ;;  %v659_v52 = vld [vmem:[%s19543_s1 + $0x13c8] sm:$0xff]  ;;  %v12920_v37 = vcombine.high %v691_v28, %v695_v49  ;;  %v12919_v48 = vcombine.low %v691_v28, %v695_v49 }
 0x21b   :  { %10374 = vmatprep.subr.bf16.mxu1 %v12792_v34  ;;  %10358 = vmatmul.mubr.bf16.vlgmr.msra.gmra.mxu0 %v14512_v56  ;;  %v663_v63 = vld [vmem:[%s19543_s1 + $0x13e8] sm:$0xff] }
 0x21c   :  { %10408 = vmatpush1.bf16.msra.mxu0 %v12951_v10  ;;  %10439 = vmatprep.mubr.bf16.mxu0 %v14529_v3  ;;  %v12888_v38 = vcombine.high %v659_v52, %v663_v63  ;;  %v683_v40 = vld [vmem:[%s19543_s1 + $0x1488] sm:$0xff]  ;;  %v12887_v51 = vcombine.low %v659_v52, %v663_v63 }
 0x21d   :  { %10409 = vmatprep.subr.bf16.mxu0 %v12944_v61  ;;  %v687_v42 = vld [vmem:[%s19543_s1 + $0x14a8] sm:$0xff] }
 0x21e   :  { %10375 = vmatpush1.bf16.msra.mxu1 %v12791_v57  ;;  %v651_v34 = vld [vmem:[%s19543_s1 + $0x1388] sm:$0xff]  ;;  %v12912_v54 = vcombine.high %v683_v40, %v687_v42  ;;  %v12911_v4 = vcombine.low %v683_v40, %v687_v42 }
 0x21f   :  { %10376 = vmatprep.subr.bf16.mxu1 %v12784_v60  ;;  %v655_v46 = vld [vmem:[%s19543_s1 + $0x13a8] sm:$0xff] }
 0x220   :  { %10410 = vmatpush1.bf16.msra.mxu0 %v12943_v25  ;;  %v12880_v10 = vcombine.high %v651_v34, %v655_v46  ;;  %v675_v57 = vld [vmem:[%s19543_s1 + $0x1448] sm:$0xff]  ;;  %v12879_v5 = vcombine.low %v651_v34, %v655_v46 }
 0x221   :  { %10411 = vmatprep.subr.bf16.mxu0 %v12936_v14  ;;  %v679_v61 = vld [vmem:[%s19543_s1 + $0x1468] sm:$0xff] }
 0x222   :  { %10377 = vmatpush1.bf16.msra.mxu1 %v12783_v12  ;;  %v643_v60 = vld [vmem:[%s19543_s1 + $0x1348] sm:$0xff]  ;;  %v12904_v6 = vcombine.high %v675_v57, %v679_v61  ;;  %v12903_v8 = vcombine.low %v675_v57, %v679_v61 }
 0x223   :  { %10378 = vmatprep.subr.bf16.mxu1 %v12776_v7  ;;  %v647_v1 = vld [vmem:[%s19543_s1 + $0x1368] sm:$0xff] }
 0x224   :  { %10412 = vmatpush1.bf16.msra.mxu0 %v12935_v59  ;;  %v12872_v25 = vcombine.high %v643_v60, %v647_v1  ;;  %v667_v12 = vld [vmem:[%s19543_s1 + $0x1408] sm:$0xff]  ;;  %v12871_v24 = vcombine.low %v643_v60, %v647_v1 }
 0x225   :  { %10413 = vmatprep.subr.bf16.mxu0 %v12928_v36  ;;  %v671_v14 = vld [vmem:[%s19543_s1 + $0x1428] sm:$0xff] }
 0x226   :  { %10379 = vmatpush1.bf16.msra.mxu1 %v12775_v20  ;;  %v635_v7 = vld [vmem:[%s19543_s1 + $0x1308] sm:$0xff]  ;;  %v12896_v19 = vcombine.high %v667_v12, %v671_v14  ;;  %v12895_v49 = vcombine.low %v667_v12, %v671_v14 }
 0x227   :  { %10380 = vmatprep.subr.bf16.mxu1 %v12768_v27  ;;  %v639_v16 = vld [vmem:[%s19543_s1 + $0x1328] sm:$0xff] }
 0x228   :  { %10414 = vmatpush1.bf16.msra.mxu0 %v12927_v35  ;;  %v12864_v59 = vcombine.high %v635_v7, %v639_v16  ;;  %v787_v20 = vld [vmem:[%s19543_s1 + $0x17c8] sm:$0xff]  ;;  %v12863_v52 = vcombine.low %v635_v7, %v639_v16 }
 0x229   :  { %10415 = vmatprep.subr.bf16.mxu0 %v12920_v37  ;;  %v791_v36 = vld [vmem:[%s19543_s1 + $0x17e8] sm:$0xff] }
 0x22a   :  { %10381 = vmatpush1.bf16.msra.mxu1 %v12767_v2  ;;  %v627_v27 = vld [vmem:[%s19543_s1 + $0x12c8] sm:$0xff]  ;;  %v13016_v63 = vcombine.high %v787_v20, %v791_v36  ;;  %v13015_v42 = vcombine.low %v787_v20, %v791_v36 }
 0x22b   :  { %10382 = vmatprep.subr.bf16.mxu1 %v12888_v38  ;;  %v631_v28 = vld [vmem:[%s19543_s1 + $0x12e8] sm:$0xff] }
 0x22c   :  { %10416 = vmatpush1.bf16.msra.mxu0 %v12919_v48  ;;  %v12856_v35 = vcombine.high %v627_v27, %v631_v28  ;;  %v779_v2 = vld [vmem:[%s19543_s1 + $0x1788] sm:$0xff]  ;;  %v12855_v34 = vcombine.low %v627_v27, %v631_v28 }
 0x22d   :  { %10417 = vmatprep.subr.bf16.mxu0 %v12912_v54  ;;  %v783_v37 = vld [vmem:[%s19543_s1 + $0x17a8] sm:$0xff] }
 0x22e   :  { %10383 = vmatpush2.bf16.msra.mxu1 %v12887_v51  ;;  %v619_v38 = vld [vmem:[%s19543_s1 + $0x1288] sm:$0xff]  ;;  %v13008_v46 = vcombine.high %v779_v2, %v783_v37  ;;  %v13007_v61 = vcombine.low %v779_v2, %v783_v37 }
 0x22f   :  { %10384 = vmatprep.subr.bf16.mxu1 %v12880_v10  ;;  %v623_v40 = vld [vmem:[%s19543_s1 + $0x12a8] sm:$0xff] }
 0x230   :  { %10418 = vmatpush1.bf16.msra.mxu0 %v12911_v4  ;;  %v12848_v48 = vcombine.high %v619_v38, %v623_v40  ;;  %v771_v51 = vld [vmem:[%s19543_s1 + $0x1748] sm:$0xff]  ;;  %v12847_v60 = vcombine.low %v619_v38, %v623_v40 }
 0x231   :  { %10419 = vmatprep.subr.bf16.mxu0 %v12904_v6  ;;  %v775_v54 = vld [vmem:[%s19543_s1 + $0x1768] sm:$0xff] }
 0x232   :  { %10385 = vmatpush2.bf16.msra.mxu1 %v12879_v5  ;;  %v611_v10 = vld [vmem:[%s19543_s1 + $0x1248] sm:$0xff]  ;;  %v13000_v1 = vcombine.high %v771_v51, %v775_v54  ;;  %v12999_v14 = vcombine.low %v771_v51, %v775_v54 }
 0x233   :  { %10386 = vmatprep.subr.bf16.mxu1 %v12872_v25  ;;  %v615_v57 = vld [vmem:[%s19543_s1 + $0x1268] sm:$0xff] }
 0x234   :  { %10420 = vmatpush1.bf16.msra.mxu0 %v12903_v8  ;;  %v12840_v4 = vcombine.high %v611_v10, %v615_v57  ;;  %v763_v5 = vld [vmem:[%s19543_s1 + $0x1708] sm:$0xff]  ;;  %v12839_v7 = vcombine.low %v611_v10, %v615_v57 }
 0x235   :  { %10421 = vmatprep.subr.bf16.mxu0 %v12896_v19  ;;  %v767_v6 = vld [vmem:[%s19543_s1 + $0x1728] sm:$0xff] }
 0x236   :  { %10387 = vmatpush2.bf16.msra.mxu1 %v12871_v24  ;;  %v603_v25 = vld [vmem:[%s19543_s1 + $0x1208] sm:$0xff]  ;;  %v12992_v16 = vcombine.high %v763_v5, %v767_v6  ;;  %v12991_v36 = vcombine.low %v763_v5, %v767_v6 }
 0x237   :  { %10388 = vmatprep.subr.bf16.mxu1 %v12864_v59  ;;  %v607_v12 = vld [vmem:[%s19543_s1 + $0x1228] sm:$0xff] }
 0x238   :  { %10422 = vmatpush1.bf16.msra.mxu0 %v12895_v49  ;;  %v12832_v8 = vcombine.high %v603_v25, %v607_v12  ;;  %v755_v24 = vld [vmem:[%s19543_s1 + $0x16c8] sm:$0xff]  ;;  %v12831_v27 = vcombine.low %v603_v25, %v607_v12 }
 0x239   :  { %10423 = vmatprep.subr.bf16.mxu0 %v13016_v63  ;;  %v759_v19 = vld [vmem:[%s19543_s1 + $0x16e8] sm:$0xff] }
 0x23a   :  { %10389 = vmatpush2.bf16.msra.mxu1 %v12863_v52  ;;  %v851_v59 = vld [vmem:[%s19543_s1 + $0x19c8] sm:$0xff]  ;;  %v12984_v28 = vcombine.high %v755_v24, %v759_v19  ;;  %v12983_v37 = vcombine.low %v755_v24, %v759_v19 }
 0x23b   :  { %10390 = vmatprep.subr.bf16.mxu1 %v12856_v35  ;;  %v855_v20 = vld [vmem:[%s19543_s1 + $0x19e8] sm:$0xff] }
 0x23c   :  { %10424 = vmatpush2.bf16.msra.mxu0 %v13015_v42  ;;  %v13080_v49 = vcombine.high %v851_v59, %v855_v20  ;;  %v747_v52 = vld [vmem:[%s19543_s1 + $0x1688] sm:$0xff]  ;;  %v13079_v38 = vcombine.low %v851_v59, %v855_v20 }
 0x23d   :  { %10425 = vmatprep.subr.bf16.mxu0 %v13008_v46  ;;  %v751_v63 = vld [vmem:[%s19543_s1 + $0x16a8] sm:$0xff] }
 0x23e   :  { %10391 = vmatpush2.bf16.msra.mxu1 %v12855_v34  ;;  %v843_v35 = vld [vmem:[%s19543_s1 + $0x1988] sm:$0xff]  ;;  %v12976_v40 = vcombine.high %v747_v52, %v751_v63 }
 0x23f   :  { %10392 = vmatprep.subr.bf16.mxu1 %v12848_v48  ;;  %v847_v2 = vld [vmem:[%s19543_s1 + $0x19a8] sm:$0xff] }
 0x240   :  { %10426 = vmatpush2.bf16.msra.mxu0 %v13007_v61  ;;  %v13072_v42 = vcombine.high %v843_v35, %v847_v2  ;;  %v739_v34 = vld [vmem:[%s19543_s1 + $0x1648] sm:$0xff]  ;;  %v12975_v61 = vcombine.low %v747_v52, %v751_v63 }
 0x241   :  { %10427 = vmatprep.subr.bf16.mxu0 %v13000_v1  ;;  %v743_v46 = vld [vmem:[%s19543_s1 + $0x1668] sm:$0xff]  ;;  %v13071_v1 = vcombine.low %v843_v35, %v847_v2 }
 0x242   :  { %10393 = vmatpush2.bf16.msra.mxu1 %v12847_v60  ;;  %v835_v51 = vld [vmem:[%s19543_s1 + $0x1948] sm:$0xff]  ;;  %v12967_v19 = vcombine.low %v739_v34, %v743_v46 }
 0x243   :  { %10394 = vmatprep.subr.bf16.mxu1 %v12840_v4  ;;  %v839_v54 = vld [vmem:[%s19543_s1 + $0x1968] sm:$0xff]  ;;  %v12968_v4 = vcombine.high %v739_v34, %v743_v46 }
 0x244   :  { %10428 = vmatpush2.bf16.msra.mxu0 %v12999_v14  ;;  %v13064_v12 = vcombine.high %v835_v51, %v839_v54  ;;  %v735_v14 = vld [vmem:[%s19543_s1 + $0x1628] sm:$0xff]  ;;  %v13063_v20 = vcombine.low %v835_v51, %v839_v54 }
 0x245   :  { %10429 = vmatprep.subr.bf16.mxu0 %v12992_v16  ;;  %v827_v16 = vld [vmem:[%s19543_s1 + $0x1908] sm:$0xff] }
 0x246   :  { %10395 = vmatpush2.bf16.msra.mxu1 %v12839_v7  ;;  %v983_v52 = vld [vmem:[%s19543_s1 + $0x1de8] sm:$0xff] }
 0x247   :  { %10396 = vmatprep.subr.bf16.mxu1 %v12832_v8  ;;  %v819_v63 = vld [vmem:[%s19543_s1 + $0x18c8] sm:$0xff] }
 0x248   :  { %10430 = vmatpush2.bf16.msra.mxu0 %v12991_v36  ;;  %v823_v35 = vld [vmem:[%s19543_s1 + $0x18e8] sm:$0xff] }
 0x249   :  { %10431 = vmatprep.subr.bf16.mxu0 %v12984_v28  ;;  %v975_v34 = vld [vmem:[%s19543_s1 + $0x1da8] sm:$0xff]  ;;  %v13047_v54 = vcombine.low %v819_v63, %v823_v35 }
 0x24a   :  { %10397 = vmatpush2.bf16.msra.mxu1 %v12831_v27  ;;  %v811_v46 = vld [vmem:[%s19543_s1 + $0x1888] sm:$0xff] }
 0x24b   :  { %10448 = vmatprep.subr.bf16.mxu1 %v13080_v49  ;;  %v10113_v48 = vpop.f32.mrf.mxu0  ;;  %v979_v49 = vld [vmem:[%s19543_s1 + $0x1dc8] sm:$0xff] }
 0x24c   :  { %v10114_v10 = vadd.f32 %v10113_v48, %v15822_v53  ;;  %10432 = vmatpush2.bf16.msra.mxu0 %v12983_v37  ;;  %v731_v53 = vld [vmem:[%s19543_s1 + $0x1608] sm:$0xff]  ;;  %v13207_v51 = vcombine.low %v979_v49, %v983_v52 }
 0x24d   :  { %v10154_v57 = vpop.f32.mrf.mxu1  ;;  %10399 = vmatmul.mubr.bf16.vlgmr.msra.gmra.mxu1 %v14711_v21  ;;  %v10115_v60 = vpop.f32.mrf.mxu0  ;;  %10433 = vmatprep.subr.bf16.mxu0 %v12976_v40  ;;  %v12960_v36 = vcombine.high %v731_v53, %v735_v14  ;;  %v12959_v2 = vcombine.low %v731_v53, %v735_v14  ;;  %v13048_v40 = vcombine.high %v819_v63, %v823_v35  ;;  %v815_v48 = vld [vmem:[%s19543_s1 + $0x18a8] sm:$0xff] }
 0x24e   :  { %10449 = vmatpush1.bf16.msra.mxu1 %v13079_v38  ;;  %v10155_v5 = vadd.f32 %v10154_v57, %v10114_v10  ;;  %v10116_v6 = vadd.f32 %v10115_v60, %v15838_v17  ;;  %10480 = vmatprep.mubr.bf16.mxu1 %v14726_v31  ;;  %v831_v17 = vld [vmem:[%s19543_s1 + $0x1928] sm:$0xff]  ;;  %v13208_v38 = vcombine.high %v979_v49, %v983_v52 }
 0x24f   :  { %v10156_v25 = vpop.f32.mrf.mxu1  ;;  %10450 = vmatprep.subr.bf16.mxu1 %v13072_v42  ;;  %v10117_v7 = vpop.f32.mrf.mxu0  ;;  %v13056_v28 = vcombine.high %v827_v16, %v831_v17  ;;  %v13055_v37 = vcombine.low %v827_v16, %v831_v17  ;;  %v971_v42 = vld [vmem:[%s19543_s1 + $0x1d88] sm:$0xff]  ;;  %v13040_v57 = vcombine.high %v811_v46, %v815_v48  ;;  %v13039_v14 = vcombine.low %v811_v46, %v815_v48 }
 0x250   :  { %v10157_v8 = vadd.f32 %v10156_v25, %v10116_v6  ;;  %10434 = vmatpush2.bf16.msra.mxu0 %v12975_v61  ;;  %v13200_v10 = vcombine.high %v971_v42, %v975_v34  ;;  %v963_v61 = vld [vmem:[%s19543_s1 + $0x1d48] sm:$0xff] }
 0x251   :  { %v10158_v24 = vpop.f32.mrf.mxu1  ;;  %v10118_v59 = vpop.f32.mrf.mxu0  ;;  %10435 = vmatprep.subr.bf16.mxu0 %v12968_v4  ;;  %v967_v60 = vld [vmem:[%s19543_s1 + $0x1d68] sm:$0xff] }
 0x252   :  { %10451 = vmatpush1.bf16.msra.mxu1 %v13071_v1  ;;  %v803_v4 = vld [vmem:[%s19543_s1 + $0x1848] sm:$0xff]  ;;  %v13192_v7 = vcombine.high %v963_v61, %v967_v60 }
 0x253   :  { %v10159_v27 = vpop.f32.mrf.mxu1  ;;  %10452 = vmatprep.subr.bf16.mxu1 %v13064_v12  ;;  %v807_v6 = vld [vmem:[%s19543_s1 + $0x1868] sm:$0xff]  ;;  %v13199_v12 = vcombine.low %v971_v42, %v975_v34 }
 0x254   :  { %10436 = vmatpush2.bf16.msra.mxu0 %v12967_v19  ;;  %v13032_v17 = vcombine.high %v803_v4, %v807_v6  ;;  %v955_v24 = vld [vmem:[%s19543_s1 + $0x1d08] sm:$0xff]  ;;  %v13031_v27 = vcombine.low %v803_v4, %v807_v6 }
 0x255   :  { %10437 = vmatprep.subr.bf16.mxu0 %v12960_v36  ;;  %v795_v59 = vld [vmem:[%s19543_s1 + $0x1808] sm:$0xff] }
 0x256   :  { %10453 = vmatpush1.bf16.msra.mxu1 %v13063_v20  ;;  %v13191_v20 = vcombine.low %v963_v61, %v967_v60  ;;  %v947_v52 = vld [vmem:[%s19543_s1 + $0x1cc8] sm:$0xff] }
 0x257   :  { %10454 = vmatprep.subr.bf16.mxu1 %v13056_v28  ;;  %v951_v63 = vld [vmem:[%s19543_s1 + $0x1ce8] sm:$0xff] }
 0x258   :  { %10438 = vmatpush2.bf16.msra.mxu0 %v12959_v2  ;;  %v915_v35 = vld [vmem:[%s19543_s1 + $0x1bc8] sm:$0xff] }
 0x259   :  { %10489 = vmatprep.subr.bf16.mxu0 %v13208_v38  ;;  %v919_v2 = vld [vmem:[%s19543_s1 + $0x1be8] sm:$0xff] }
 0x25a   :  { %10455 = vmatpush1.bf16.msra.mxu1 %v13055_v37  ;;  %v13144_v42 = vcombine.high %v915_v35, %v919_v2  ;;  %v939_v34 = vld [vmem:[%s19543_s1 + $0x1c88] sm:$0xff] }
 0x25b   :  { %10456 = vmatprep.subr.bf16.mxu1 %v13048_v40  ;;  %v10195_v1 = vpop.f32.mrf.mxu0  ;;  %10440 = vmatmul.mubr.bf16.vlgmr.msra.gmra.mxu0 %v14730_v32  ;;  %v13176_v40 = vcombine.high %v947_v52, %v951_v63  ;;  %v943_v46 = vld [vmem:[%s19543_s1 + $0x1ca8] sm:$0xff] }
 0x25c   :  { %v16075_v25 = vadd.f32 %v10195_v1, %v10155_v5  ;;  %10490 = vmatpush1.bf16.msra.mxu0 %v13207_v51  ;;  %10521 = vmatprep.mubr.bf16.mxu0 %v14747_v44  ;;  %v959_v5 = vld [vmem:[%s19543_s1 + $0x1d28] sm:$0xff] }
 0x25d   :  { %v10197_v53 = vpop.f32.mrf.mxu0  ;;  %10491 = vmatprep.subr.bf16.mxu0 %v13200_v10  ;;  %v13184_v28 = vcombine.high %v955_v24, %v959_v5  ;;  %v13183_v37 = vcombine.low %v955_v24, %v959_v5  ;;  %v907_v48 = vld [vmem:[%s19543_s1 + $0x1b88] sm:$0xff]  ;;  %v13143_v10 = vcombine.low %v915_v35, %v919_v2 }
 0x25e   :  { %10457 = vmatpush1.bf16.msra.mxu1 %v13047_v54  ;;  %v16078_v16 = vadd.f32 %v10197_v53, %v10157_v8  ;;  %v799_v8 = vld [vmem:[%s19543_s1 + $0x1828] sm:$0xff]  ;;  %v13175_v54 = vcombine.low %v947_v52, %v951_v63 }
 0x25f   :  { %10458 = vmatprep.subr.bf16.mxu1 %v13040_v57  ;;  %v10199_v19 = vpop.f32.mrf.mxu0  ;;  %v13024_v49 = vcombine.high %v795_v59, %v799_v8  ;;  %v13023_v38 = vcombine.low %v795_v59, %v799_v8  ;;  %v911_v51 = vld [vmem:[%s19543_s1 + $0x1ba8] sm:$0xff]  ;;  %v13168_v57 = vcombine.high %v939_v34, %v943_v46 }
 0x260   :  { %10492 = vmatpush1.bf16.msra.mxu0 %v13199_v12  ;;  %v13136_v61 = vcombine.high %v907_v48, %v911_v51  ;;  %v931_v60 = vld [vmem:[%s19543_s1 + $0x1c48] sm:$0xff]  ;;  %v13167_v12 = vcombine.low %v939_v34, %v943_v46  ;;  %v13135_v53 = vcombine.low %v907_v48, %v911_v51 }
 0x261   :  { %v10200_v36 = vpop.f32.mrf.mxu0  ;;  %10493 = vmatprep.subr.bf16.mxu0 %v13192_v7  ;;  %v935_v1 = vld [vmem:[%s19543_s1 + $0x1c68] sm:$0xff] }
 0x262   :  { %10459 = vmatpush1.bf16.msra.mxu1 %v13039_v14  ;;  %v899_v4 = vld [vmem:[%s19543_s1 + $0x1b48] sm:$0xff]  ;;  %v13160_v14 = vcombine.high %v931_v60, %v935_v1  ;;  %v13159_v59 = vcombine.low %v931_v60, %v935_v1 }
 0x263   :  { %10460 = vmatprep.subr.bf16.mxu1 %v13032_v17  ;;  %v903_v6 = vld [vmem:[%s19543_s1 + $0x1b68] sm:$0xff] }
 0x264   :  { %10494 = vmatpush1.bf16.msra.mxu0 %v13191_v20  ;;  %v13128_v7 = vcombine.high %v899_v4, %v903_v6  ;;  %v923_v17 = vld [vmem:[%s19543_s1 + $0x1c08] sm:$0xff]  ;;  %v13127_v8 = vcombine.low %v899_v4, %v903_v6 }
 0x265   :  { %10495 = vmatprep.subr.bf16.mxu0 %v13184_v28  ;;  %v927_v24 = vld [vmem:[%s19543_s1 + $0x1c28] sm:$0xff] }
 0x266   :  { %10461 = vmatpush1.bf16.msra.mxu1 %v13031_v27  ;;  %v891_v5 = vld [vmem:[%s19543_s1 + $0x1b08] sm:$0xff]  ;;  %v13152_v20 = vcombine.high %v923_v17, %v927_v24  ;;  %v13151_v63 = vcombine.low %v923_v17, %v927_v24 }
 0x267   :  { %10462 = vmatprep.subr.bf16.mxu1 %v13024_v49  ;;  %v895_v19 = vld [vmem:[%s19543_s1 + $0x1b28] sm:$0xff] }
 0x268   :  { %10496 = vmatpush1.bf16.msra.mxu0 %v13183_v37  ;;  %v13120_v36 = vcombine.high %v891_v5, %v895_v19  ;;  %v1043_v27 = vld [vmem:[%s19543_s1 + $0x1fc8] sm:$0xff]  ;;  %v13119_v35 = vcombine.low %v891_v5, %v895_v19 }
 0x269   :  { %10497 = vmatprep.subr.bf16.mxu0 %v13176_v40  ;;  %v1047_v28 = vld [vmem:[%s19543_s1 + $0x1fe8] sm:$0xff] }
 0x26a   :  { %10463 = vmatpush1.bf16.msra.mxu1 %v13023_v38  ;;  %v883_v49 = vld [vmem:[%s19543_s1 + $0x1ac8] sm:$0xff]  ;;  %v13272_v2 = vcombine.high %v1043_v27, %v1047_v28  ;;  %v13271_v46 = vcombine.low %v1043_v27, %v1047_v28 }
 0x26b   :  { %10464 = vmatprep.subr.bf16.mxu1 %v13144_v42  ;;  %v887_v52 = vld [vmem:[%s19543_s1 + $0x1ae8] sm:$0xff] }
 0x26c   :  { %10498 = vmatpush1.bf16.msra.mxu0 %v13175_v54  ;;  %v13112_v37 = vcombine.high %v883_v49, %v887_v52  ;;  %v1035_v38 = vld [vmem:[%s19543_s1 + $0x1f88] sm:$0xff]  ;;  %v13111_v48 = vcombine.low %v883_v49, %v887_v52 }
 0x26d   :  { %10499 = vmatprep.subr.bf16.mxu0 %v13168_v57  ;;  %v1039_v40 = vld [vmem:[%s19543_s1 + $0x1fa8] sm:$0xff] }
 0x26e   :  { %10465 = vmatpush2.bf16.msra.mxu1 %v13143_v10  ;;  %v875_v42 = vld [vmem:[%s19543_s1 + $0x1a88] sm:$0xff]  ;;  %v13264_v51 = vcombine.high %v1035_v38, %v1039_v40  ;;  %v13263_v1 = vcombine.low %v1035_v38, %v1039_v40 }
 0x26f   :  { %10466 = vmatprep.subr.bf16.mxu1 %v13136_v61  ;;  %v879_v34 = vld [vmem:[%s19543_s1 + $0x1aa8] sm:$0xff] }
 0x270   :  { %10500 = vmatpush1.bf16.msra.mxu0 %v13167_v12  ;;  %v13104_v54 = vcombine.high %v875_v42, %v879_v34  ;;  %v1027_v10 = vld [vmem:[%s19543_s1 + $0x1f48] sm:$0xff]  ;;  %v13103_v4 = vcombine.low %v875_v42, %v879_v34 }
 0x271   :  { %10501 = vmatprep.subr.bf16.mxu0 %v13160_v14  ;;  %v1031_v57 = vld [vmem:[%s19543_s1 + $0x1f68] sm:$0xff] }
 0x272   :  { %10467 = vmatpush2.bf16.msra.mxu1 %v13135_v53  ;;  %v867_v61 = vld [vmem:[%s19543_s1 + $0x1a48] sm:$0xff]  ;;  %v13256_v6 = vcombine.high %v1027_v10, %v1031_v57  ;;  %v13255_v24 = vcombine.low %v1027_v10, %v1031_v57 }
 0x273   :  { %10468 = vmatprep.subr.bf16.mxu1 %v13128_v7  ;;  %v871_v60 = vld [vmem:[%s19543_s1 + $0x1a68] sm:$0xff] }
 0x274   :  { %10502 = vmatpush1.bf16.msra.mxu0 %v13159_v59  ;;  %v13096_v12 = vcombine.high %v867_v61, %v871_v60  ;;  %v1019_v53 = vld [vmem:[%s19543_s1 + $0x1f08] sm:$0xff]  ;;  %v13095_v5 = vcombine.low %v867_v61, %v871_v60 }
 0x275   :  { %10503 = vmatprep.subr.bf16.mxu0 %v13152_v20  ;;  %v1023_v14 = vld [vmem:[%s19543_s1 + $0x1f28] sm:$0xff] }
 0x276   :  { %10469 = vmatpush2.bf16.msra.mxu1 %v13127_v8  ;;  %v859_v7 = vld [vmem:[%s19543_s1 + $0x1a08] sm:$0xff]  ;;  %v13248_v19 = vcombine.high %v1019_v53, %v1023_v14  ;;  %v13247_v28 = vcombine.low %v1019_v53, %v1023_v14 }
 0x277   :  { %10470 = vmatprep.subr.bf16.mxu1 %v13120_v36  ;;  %v863_v17 = vld [vmem:[%s19543_s1 + $0x1a28] sm:$0xff] }
 0x278   :  { %10504 = vmatpush1.bf16.msra.mxu0 %v13151_v63  ;;  %v13088_v59 = vcombine.high %v859_v7, %v863_v17  ;;  %v1011_v8 = vld [vmem:[%s19543_s1 + $0x1ec8] sm:$0xff]  ;;  %v13087_v49 = vcombine.low %v859_v7, %v863_v17 }
 0x279   :  { %10505 = vmatprep.subr.bf16.mxu0 %v13272_v2  ;;  %v1015_v20 = vld [vmem:[%s19543_s1 + $0x1ee8] sm:$0xff] }
 0x27a   :  { %10471 = vmatpush2.bf16.msra.mxu1 %v13119_v35  ;;  %v1107_v36 = vld [vmem:[%s19543_s1 + $0x21c8] sm:$0xff]  ;;  %v13240_v52 = vcombine.high %v1011_v8, %v1015_v20  ;;  %v13239_v40 = vcombine.low %v1011_v8, %v1015_v20 }
 0x27b   :  { %10472 = vmatprep.subr.bf16.mxu1 %v13112_v37  ;;  %v1111_v27 = vld [vmem:[%s19543_s1 + $0x21e8] sm:$0xff] }
 0x27c   :  { %10506 = vmatpush2.bf16.msra.mxu0 %v13271_v46  ;;  %v13336_v63 = vcombine.high %v1107_v36, %v1111_v27  ;;  %v1003_v35 = vld [vmem:[%s19543_s1 + $0x1e88] sm:$0xff]  ;;  %v13335_v42 = vcombine.low %v1107_v36, %v1111_v27 }
 0x27d   :  { %10507 = vmatprep.subr.bf16.mxu0 %v13264_v51  ;;  %v1007_v2 = vld [vmem:[%s19543_s1 + $0x1ea8] sm:$0xff] }
 0x27e   :  { %10473 = vmatpush2.bf16.msra.mxu1 %v13111_v48  ;;  %v1099_v37 = vld [vmem:[%s19543_s1 + $0x2188] sm:$0xff]  ;;  %v13232_v34 = vcombine.high %v1003_v35, %v1007_v2  ;;  %v13231_v61 = vcombine.low %v1003_v35, %v1007_v2 }
 0x27f   :  { %10474 = vmatprep.subr.bf16.mxu1 %v13104_v54  ;;  %v1103_v38 = vld [vmem:[%s19543_s1 + $0x21a8] sm:$0xff] }
 0x280   :  { %10508 = vmatpush2.bf16.msra.mxu0 %v13263_v1  ;;  %v13328_v46 = vcombine.high %v1099_v37, %v1103_v38  ;;  %v995_v48 = vld [vmem:[%s19543_s1 + $0x1e48] sm:$0xff]  ;;  %v13327_v60 = vcombine.low %v1099_v37, %v1103_v38  ;;  %v13974_v37 = vld [vmem:[%s19544_s2] sm:$0xff] }
 0x281   :  { %10509 = vmatprep.subr.bf16.mxu0 %v13256_v6  ;;  %v999_v51 = vld [vmem:[%s19543_s1 + $0x1e68] sm:$0xff] }
 0x282   :  { %10475 = vmatpush2.bf16.msra.mxu1 %v13103_v4  ;;  %v1091_v54 = vld [vmem:[%s19543_s1 + $0x2148] sm:$0xff]  ;;  %v13224_v1 = vcombine.high %v995_v48, %v999_v51 }
 0x283   :  { %10476 = vmatprep.subr.bf16.mxu1 %v13096_v12  ;;  %v1095_v10 = vld [vmem:[%s19543_s1 + $0x2168] sm:$0xff] }
 0x284   :  { %10510 = vmatpush2.bf16.msra.mxu0 %v13255_v24  ;;  %v13320_v6 = vcombine.high %v1091_v54, %v1095_v10  ;;  %v987_v12 = vld [vmem:[%s19543_s1 + $0x1e08] sm:$0xff]  ;;  %v13223_v24 = vcombine.low %v995_v48, %v999_v51 }
 0x285   :  { %10511 = vmatprep.subr.bf16.mxu0 %v13248_v19  ;;  %v991_v53 = vld [vmem:[%s19543_s1 + $0x1e28] sm:$0xff] }
 0x286   :  { %10477 = vmatpush2.bf16.msra.mxu1 %v13095_v5  ;;  %v1083_v14 = vld [vmem:[%s19543_s1 + $0x2108] sm:$0xff]  ;;  %v13319_v5 = vcombine.low %v1091_v54, %v1095_v10  ;;  %v13216_v19 = vcombine.high %v987_v12, %v991_v53 }
 0x287   :  { %10478 = vmatprep.subr.bf16.mxu1 %v13088_v59  ;;  %v1087_v7 = vld [vmem:[%s19543_s1 + $0x2128] sm:$0xff]  ;;  %v1606_v59 = vsub.s32 2, %v14099_v43 }
 0x288   :  { %10512 = vmatpush2.bf16.msra.mxu0 %v13247_v28  ;;  %v13312_v20 = vcombine.high %v1083_v14, %v1087_v7  ;;  %v1235_v36 = vld [vmem:[%s19543_s1 + $0x25c8] sm:$0xff]  ;;  %v13311_v35 = vcombine.low %v1083_v14, %v1087_v7 }
 0x289   :  { %10513 = vmatprep.subr.bf16.mxu0 %v13240_v52  ;;  %v1239_v27 = vld [vmem:[%s19543_s1 + $0x25e8] sm:$0xff]  ;;  %v1610_v52 = vsub.s32 3, %v14099_v43  ;;  %v1607_v38 = vrot.slane %v13974_v37, %v1606_v59 }
 0x28a   :  { %10479 = vmatpush2.bf16.msra.mxu1 %v13087_v49  ;;  %v1075_v28 = vld [vmem:[%s19543_s1 + $0x20c8] sm:$0xff]  ;;  %v13464_v2 = vcombine.high %v1235_v36, %v1239_v27  ;;  %v13463_v54 = vcombine.low %v1235_v36, %v1239_v27 }
 0x28b   :  { %10530 = vmatprep.subr.bf16.mxu1 %v13336_v63  ;;  %v1079_v49 = vld [vmem:[%s19543_s1 + $0x20e8] sm:$0xff]  ;;  %v13215_v63 = vcombine.low %v987_v12, %v991_v53  ;;  %v1611_v51 = vrot.slane %v13974_v37, %v1610_v52 }
 0x28c   :  { %10514 = vmatpush2.bf16.msra.mxu0 %v13239_v40  ;;  %v13304_v40 = vcombine.high %v1075_v28, %v1079_v49  ;;  %v1071_v48 = vld [vmem:[%s19543_s1 + $0x20a8] sm:$0xff]  ;;  %v13303_v10 = vcombine.low %v1075_v28, %v1079_v49 }
 0x28d   :  { %v10236_v57 = vpop.f32.mrf.mxu1  ;;  %10481 = vmatmul.mubr.bf16.vlgmr.msra.gmra.mxu1 %v14934_v11  ;;  %10515 = vmatprep.subr.bf16.mxu0 %v13232_v34  ;;  %v1231_v34 = vld [vmem:[%s19543_s1 + $0x25a8] sm:$0xff] }
 0x28e   :  { %10531 = vmatpush1.bf16.msra.mxu1 %v13335_v42  ;;  %10562 = vmatprep.mubr.bf16.mxu1 %v14953_v23  ;;  %v1227_v42 = vld [vmem:[%s19543_s1 + $0x2588] sm:$0xff] }
 0x28f   :  { %v10238_v4 = vpop.f32.mrf.mxu1  ;;  %10532 = vmatprep.subr.bf16.mxu1 %v13328_v46  ;;  %v1067_v46 = vld [vmem:[%s19543_s1 + $0x2088] sm:$0xff] }
 0x290   :  { %10516 = vmatpush2.bf16.msra.mxu0 %v13231_v61  ;;  %v13456_v61 = vcombine.high %v1227_v42, %v1231_v34  ;;  %v1223_v12 = vld [vmem:[%s19543_s1 + $0x2568] sm:$0xff]  ;;  %v10239_v7 = vadd.f32 %v10238_v4, %v1611_v51 }
 0x291   :  { %v10240_v17 = vpop.f32.mrf.mxu1  ;;  %10517 = vmatprep.subr.bf16.mxu0 %v13224_v1  ;;  %v13296_v1 = vcombine.high %v1067_v46, %v1071_v48  ;;  %v1059_v14 = vld [vmem:[%s19543_s1 + $0x2048] sm:$0xff] }
 0x292   :  { %10533 = vmatpush1.bf16.msra.mxu1 %v13327_v60  ;;  %v10237_v60 = vadd.f32 %v10236_v57, %v1607_v38  ;;  %v1063_v57 = vld [vmem:[%s19543_s1 + $0x2068] sm:$0xff] }
 0x293   :  { %v10241_v8 = vpop.f32.mrf.mxu1  ;;  %10534 = vmatprep.subr.bf16.mxu1 %v13320_v6  ;;  %v1219_v6 = vld [vmem:[%s19543_s1 + $0x2548] sm:$0xff] }
 0x294   :  { %10518 = vmatpush2.bf16.msra.mxu0 %v13223_v24  ;;  %v13455_v24 = vcombine.low %v1227_v42, %v1231_v34  ;;  %v13448_v59 = vcombine.high %v1219_v6, %v1223_v12  ;;  %v1211_v36 = vld [vmem:[%s19543_s1 + $0x2508] sm:$0xff]  ;;  %v13447_v52 = vcombine.low %v1219_v6, %v1223_v12 }
 0x295   :  { %10519 = vmatprep.subr.bf16.mxu0 %v13216_v19  ;;  %v13295_v19 = vcombine.low %v1067_v46, %v1071_v48  ;;  %v1215_v4 = vld [vmem:[%s19543_s1 + $0x2528] sm:$0xff] }
 0x296   :  { %10535 = vmatpush1.bf16.msra.mxu1 %v13319_v5  ;;  %v1051_v28 = vld [vmem:[%s19543_s1 + $0x2008] sm:$0xff]  ;;  %v13439_v46 = vcombine.low %v1211_v36, %v1215_v4 }
 0x297   :  { %10536 = vmatprep.subr.bf16.mxu1 %v13312_v20  ;;  %v13288_v20 = vcombine.high %v1059_v14, %v1063_v57  ;;  %v1055_v49 = vld [vmem:[%s19543_s1 + $0x2028] sm:$0xff] }
 0x298   :  { %10520 = vmatpush2.bf16.msra.mxu0 %v13215_v63  ;;  %v13280_v37 = vcombine.high %v1051_v28, %v1055_v49  ;;  %v1203_v38 = vld [vmem:[%s19543_s1 + $0x24c8] sm:$0xff]  ;;  %v13279_v48 = vcombine.low %v1051_v28, %v1055_v49 }
 0x299   :  { %10571 = vmatprep.subr.bf16.mxu0 %v13464_v2  ;;  %v13440_v2 = vcombine.high %v1211_v36, %v1215_v4  ;;  %v1171_v42 = vld [vmem:[%s19543_s1 + $0x23c8] sm:$0xff] }
 0x29a   :  { %10537 = vmatpush1.bf16.msra.mxu1 %v13311_v35  ;;  %v13287_v35 = vcombine.low %v1059_v14, %v1063_v57  ;;  %v1175_v34 = vld [vmem:[%s19543_s1 + $0x23e8] sm:$0xff] }
 0x29b   :  { %10538 = vmatprep.subr.bf16.mxu1 %v13304_v40  ;;  %v10277_v53 = vpop.f32.mrf.mxu0  ;;  %10522 = vmatmul.mubr.bf16.vlgmr.msra.gmra.mxu0 %v14957_v26  ;;  %v1207_v40 = vld [vmem:[%s19543_s1 + $0x24e8] sm:$0xff]  ;;  %v13399_v12 = vcombine.low %v1171_v42, %v1175_v34 }
 0x29c   :  { %v16280_v17 = vadd.f32 %v10277_v53, %v10237_v60  ;;  %10572 = vmatpush1.bf16.msra.mxu0 %v13463_v54  ;;  %10603 = vmatprep.mubr.bf16.mxu0 %v14974_v41  ;;  %v13432_v51 = vcombine.high %v1203_v38, %v1207_v40  ;;  %v13400_v54 = vcombine.high %v1171_v42, %v1175_v34  ;;  %v1163_v60 = vld [vmem:[%s19543_s1 + $0x2388] sm:$0xff] }
 0x29d   :  { %v10279_v5 = vpop.f32.mrf.mxu0  ;;  %10573 = vmatprep.subr.bf16.mxu0 %v13456_v61  ;;  %v1199_v61 = vld [vmem:[%s19543_s1 + $0x24a8] sm:$0xff]  ;;  %v13431_v6 = vcombine.low %v1203_v38, %v1207_v40 }
 0x29e   :  { %10539 = vmatpush1.bf16.msra.mxu1 %v13303_v10  ;;  %v16283_v8 = vadd.f32 %v10279_v5, %v10239_v7  ;;  %v1195_v10 = vld [vmem:[%s19543_s1 + $0x2488] sm:$0xff] }
 0x29f   :  { %10540 = vmatprep.subr.bf16.mxu1 %v13296_v1  ;;  %v10281_v27 = vpop.f32.mrf.mxu0  ;;  %v1167_v1 = vld [vmem:[%s19543_s1 + $0x23a8] sm:$0xff]  ;;  %v13424_v53 = vcombine.high %v1195_v10, %v1199_v61 }
 0x2a0   :  { %10574 = vmatpush1.bf16.msra.mxu0 %v13455_v24  ;;  %v13392_v14 = vcombine.high %v1163_v60, %v1167_v1  ;;  %v1187_v57 = vld [vmem:[%s19543_s1 + $0x2448] sm:$0xff] }
 0x2a1   :  { %v10282_v63 = vpop.f32.mrf.mxu0  ;;  %10575 = vmatprep.subr.bf16.mxu0 %v13448_v59  ;;  %v1191_v7 = vld [vmem:[%s19543_s1 + $0x2468] sm:$0xff]  ;;  %v13391_v59 = vcombine.low %v1163_v60, %v1167_v1 }
 0x2a2   :  { %10541 = vmatpush1.bf16.msra.mxu1 %v13295_v19  ;;  %v1155_v24 = vld [vmem:[%s19543_s1 + $0x2348] sm:$0xff]  ;;  %v13423_v19 = vcombine.low %v1195_v10, %v1199_v61 }
 0x2a3   :  { %10542 = vmatprep.subr.bf16.mxu1 %v13288_v20  ;;  %v1159_v5 = vld [vmem:[%s19543_s1 + $0x2368] sm:$0xff]  ;;  %v13416_v20 = vcombine.high %v1187_v57, %v1191_v7 }
 0x2a4   :  { %10576 = vmatpush1.bf16.msra.mxu0 %v13447_v52  ;;  %v13384_v36 = vcombine.high %v1155_v24, %v1159_v5  ;;  %v1179_v4 = vld [vmem:[%s19543_s1 + $0x2408] sm:$0xff]  ;;  %v13415_v52 = vcombine.low %v1187_v57, %v1191_v7  ;;  %v13383_v63 = vcombine.low %v1155_v24, %v1159_v5 }
 0x2a5   :  { %10577 = vmatprep.subr.bf16.mxu0 %v13440_v2  ;;  %v1183_v27 = vld [vmem:[%s19543_s1 + $0x2428] sm:$0xff] }
 0x2a6   :  { %10543 = vmatpush1.bf16.msra.mxu1 %v13287_v35  ;;  %v1147_v28 = vld [vmem:[%s19543_s1 + $0x2308] sm:$0xff]  ;;  %v13408_v35 = vcombine.high %v1179_v4, %v1183_v27  ;;  %v13407_v34 = vcombine.low %v1179_v4, %v1183_v27 }
 0x2a7   :  { %10544 = vmatprep.subr.bf16.mxu1 %v13280_v37  ;;  %v1151_v49 = vld [vmem:[%s19543_s1 + $0x2328] sm:$0xff] }
 0x2a8   :  { %10578 = vmatpush1.bf16.msra.mxu0 %v13439_v46  ;;  %v13376_v2 = vcombine.high %v1147_v28, %v1151_v49  ;;  %v1299_v37 = vld [vmem:[%s19543_s1 + $0x27c8] sm:$0xff]  ;;  %v13375_v46 = vcombine.low %v1147_v28, %v1151_v49 }
 0x2a9   :  { %10579 = vmatprep.subr.bf16.mxu0 %v13432_v51  ;;  %v1303_v38 = vld [vmem:[%s19543_s1 + $0x27e8] sm:$0xff] }
 0x2aa   :  { %10545 = vmatpush1.bf16.msra.mxu1 %v13279_v48  ;;  %v1139_v40 = vld [vmem:[%s19543_s1 + $0x22c8] sm:$0xff]  ;;  %v13528_v48 = vcombine.high %v1299_v37, %v1303_v38  ;;  %v13527_v1 = vcombine.low %v1299_v37, %v1303_v38 }
 0x2ab   :  { %10546 = vmatprep.subr.bf16.mxu1 %v13400_v54  ;;  %v1143_v42 = vld [vmem:[%s19543_s1 + $0x22e8] sm:$0xff] }
 0x2ac   :  { %10580 = vmatpush1.bf16.msra.mxu0 %v13431_v6  ;;  %v13368_v51 = vcombine.high %v1139_v40, %v1143_v42  ;;  %v1291_v54 = vld [vmem:[%s19543_s1 + $0x2788] sm:$0xff]  ;;  %v13367_v6 = vcombine.low %v1139_v40, %v1143_v42 }
 0x2ad   :  { %10581 = vmatprep.subr.bf16.mxu0 %v13424_v53  ;;  %v1295_v10 = vld [vmem:[%s19543_s1 + $0x27a8] sm:$0xff] }
 0x2ae   :  { %10547 = vmatpush2.bf16.msra.mxu1 %v13399_v12  ;;  %v1131_v61 = vld [vmem:[%s19543_s1 + $0x2288] sm:$0xff]  ;;  %v13520_v12 = vcombine.high %v1291_v54, %v1295_v10  ;;  %v13519_v5 = vcombine.low %v1291_v54, %v1295_v10 }
 0x2af   :  { %10548 = vmatprep.subr.bf16.mxu1 %v13392_v14  ;;  %v1135_v60 = vld [vmem:[%s19543_s1 + $0x22a8] sm:$0xff] }
 0x2b0   :  { %10582 = vmatpush1.bf16.msra.mxu0 %v13423_v19  ;;  %v13360_v53 = vcombine.high %v1131_v61, %v1135_v60  ;;  %v1283_v14 = vld [vmem:[%s19543_s1 + $0x2748] sm:$0xff]  ;;  %v13359_v19 = vcombine.low %v1131_v61, %v1135_v60 }
 0x2b1   :  { %10583 = vmatprep.subr.bf16.mxu0 %v13416_v20  ;;  %v1287_v57 = vld [vmem:[%s19543_s1 + $0x2768] sm:$0xff] }
 0x2b2   :  { %10549 = vmatpush2.bf16.msra.mxu1 %v13391_v59  ;;  %v1123_v7 = vld [vmem:[%s19543_s1 + $0x2248] sm:$0xff]  ;;  %v13512_v59 = vcombine.high %v1283_v14, %v1287_v57  ;;  %v13511_v49 = vcombine.low %v1283_v14, %v1287_v57 }
 0x2b3   :  { %10550 = vmatprep.subr.bf16.mxu1 %v13384_v36  ;;  %v1127_v24 = vld [vmem:[%s19543_s1 + $0x2268] sm:$0xff] }
 0x2b4   :  { %10584 = vmatpush1.bf16.msra.mxu0 %v13415_v52  ;;  %v13352_v20 = vcombine.high %v1123_v7, %v1127_v24  ;;  %v1275_v36 = vld [vmem:[%s19543_s1 + $0x2708] sm:$0xff]  ;;  %v13351_v52 = vcombine.low %v1123_v7, %v1127_v24 }
 0x2b5   :  { %10585 = vmatprep.subr.bf16.mxu0 %v13408_v35  ;;  %v1279_v4 = vld [vmem:[%s19543_s1 + $0x2728] sm:$0xff] }
 0x2b6   :  { %10551 = vmatpush2.bf16.msra.mxu1 %v13383_v63  ;;  %v1115_v27 = vld [vmem:[%s19543_s1 + $0x2208] sm:$0xff]  ;;  %v13504_v63 = vcombine.high %v1275_v36, %v1279_v4  ;;  %v13503_v42 = vcombine.low %v1275_v36, %v1279_v4 }
 0x2b7   :  { %10552 = vmatprep.subr.bf16.mxu1 %v13376_v2  ;;  %v1119_v28 = vld [vmem:[%s19543_s1 + $0x2228] sm:$0xff] }
 0x2b8   :  { %10586 = vmatpush1.bf16.msra.mxu0 %v13407_v34  ;;  %v13344_v35 = vcombine.high %v1115_v27, %v1119_v28  ;;  %v1267_v2 = vld [vmem:[%s19543_s1 + $0x26c8] sm:$0xff]  ;;  %v13343_v34 = vcombine.low %v1115_v27, %v1119_v28 }
 0x2b9   :  { %10587 = vmatprep.subr.bf16.mxu0 %v13528_v48  ;;  %v1271_v37 = vld [vmem:[%s19543_s1 + $0x26e8] sm:$0xff] }
 0x2ba   :  { %10553 = vmatpush2.bf16.msra.mxu1 %v13375_v46  ;;  %v1363_v38 = vld [vmem:[%s19543_s1 + $0x29c8] sm:$0xff]  ;;  %v13496_v46 = vcombine.high %v1267_v2, %v1271_v37  ;;  %v13495_v60 = vcombine.low %v1267_v2, %v1271_v37 }
 0x2bb   :  { %10554 = vmatprep.subr.bf16.mxu1 %v13368_v51  ;;  %v1367_v40 = vld [vmem:[%s19543_s1 + $0x29e8] sm:$0xff] }
 0x2bc   :  { %10588 = vmatpush2.bf16.msra.mxu0 %v13527_v1  ;;  %v13592_v48 = vcombine.high %v1363_v38, %v1367_v40  ;;  %v1259_v51 = vld [vmem:[%s19543_s1 + $0x2688] sm:$0xff]  ;;  %v13591_v1 = vcombine.low %v1363_v38, %v1367_v40 }
 0x2bd   :  { %10589 = vmatprep.subr.bf16.mxu0 %v13520_v12  ;;  %v1263_v54 = vld [vmem:[%s19543_s1 + $0x26a8] sm:$0xff] }
 0x2be   :  { %10555 = vmatpush2.bf16.msra.mxu1 %v13367_v6  ;;  %v1355_v10 = vld [vmem:[%s19543_s1 + $0x2988] sm:$0xff]  ;;  %v13488_v6 = vcombine.high %v1259_v51, %v1263_v54 }
 0x2bf   :  { %10556 = vmatprep.subr.bf16.mxu1 %v13360_v53  ;;  %v1359_v61 = vld [vmem:[%s19543_s1 + $0x29a8] sm:$0xff] }
 0x2c0   :  { %10590 = vmatpush2.bf16.msra.mxu0 %v13519_v5  ;;  %v13584_v12 = vcombine.high %v1355_v10, %v1359_v61  ;;  %v1251_v53 = vld [vmem:[%s19543_s1 + $0x2648] sm:$0xff]  ;;  %v13487_v5 = vcombine.low %v1259_v51, %v1263_v54 }
 0x2c1   :  { %10591 = vmatprep.subr.bf16.mxu0 %v13512_v59  ;;  %v1255_v14 = vld [vmem:[%s19543_s1 + $0x2668] sm:$0xff]  ;;  %v13583_v59 = vcombine.low %v1355_v10, %v1359_v61 }
 0x2c2   :  { %10557 = vmatpush2.bf16.msra.mxu1 %v13359_v19  ;;  %v1347_v57 = vld [vmem:[%s19543_s1 + $0x2948] sm:$0xff] }
 0x2c3   :  { %10558 = vmatprep.subr.bf16.mxu1 %v13352_v20  ;;  %v1351_v7 = vld [vmem:[%s19543_s1 + $0x2968] sm:$0xff]  ;;  %v13480_v20 = vcombine.high %v1251_v53, %v1255_v14 }
 0x2c4   :  { %10592 = vmatpush2.bf16.msra.mxu0 %v13511_v49  ;;  %v13576_v4 = vcombine.high %v1347_v57, %v1351_v7  ;;  %v1243_v27 = vld [vmem:[%s19543_s1 + $0x2608] sm:$0xff]  ;;  %v13575_v2 = vcombine.low %v1347_v57, %v1351_v7 }
 0x2c5   :  { %10593 = vmatprep.subr.bf16.mxu0 %v13504_v63  ;;  %v1247_v28 = vld [vmem:[%s19543_s1 + $0x2628] sm:$0xff] }
 0x2c6   :  { %10559 = vmatpush2.bf16.msra.mxu1 %v13351_v52  ;;  %v1343_v52 = vld [vmem:[%s19543_s1 + $0x2928] sm:$0xff]  ;;  %v13472_v37 = vcombine.high %v1243_v27, %v1247_v28 }
 0x2c7   :  { %10560 = vmatprep.subr.bf16.mxu1 %v13344_v35  ;;  %v13479_v35 = vcombine.low %v1251_v53, %v1255_v14  ;;  %v1483_v61 = vld [vmem:[%s19543_s1 + $0x2d88] sm:$0xff] }
 0x2c8   :  { %10594 = vmatpush2.bf16.msra.mxu0 %v13503_v42  ;;  %v1495_v42 = vld [vmem:[%s19543_s1 + $0x2de8] sm:$0xff] }
 0x2c9   :  { %10595 = vmatprep.subr.bf16.mxu0 %v13496_v46  ;;  %v1335_v46 = vld [vmem:[%s19543_s1 + $0x28e8] sm:$0xff] }
 0x2ca   :  { %10561 = vmatpush2.bf16.msra.mxu1 %v13343_v34  ;;  %v1331_v34 = vld [vmem:[%s19543_s1 + $0x28c8] sm:$0xff] }
 0x2cb   :  { %10612 = vmatprep.subr.bf16.mxu1 %v13592_v48  ;;  %v13471_v48 = vcombine.low %v1243_v27, %v1247_v28  ;;  %v13560_v10 = vcombine.high %v1331_v34, %v1335_v46  ;;  %v13559_v53 = vcombine.low %v1331_v34, %v1335_v46  ;;  %v1475_v7 = vld [vmem:[%s19543_s1 + $0x2d48] sm:$0xff] }
 0x2cc   :  { %10596 = vmatpush2.bf16.msra.mxu0 %v13495_v60  ;;  %v1487_v60 = vld [vmem:[%s19543_s1 + $0x2da8] sm:$0xff] }
 0x2cd   :  { %v10318_v24 = vpop.f32.mrf.mxu1  ;;  %10563 = vmatmul.mubr.bf16.vlgmr.msra.gmra.mxu1 %v15160_v50  ;;  %10597 = vmatprep.subr.bf16.mxu0 %v13488_v6  ;;  %v1327_v6 = vld [vmem:[%s19543_s1 + $0x28a8] sm:$0xff]  ;;  %v13712_v14 = vcombine.high %v1483_v61, %v1487_v60 }
 0x2ce   :  { %v10319_v19 = vadd.f32 %v10318_v24, %v16280_v17  ;;  %10613 = vmatpush1.bf16.msra.mxu1 %v13591_v1  ;;  %10644 = vmatprep.mubr.bf16.mxu1 %v15175_v62  ;;  %v1339_v17 = vld [vmem:[%s19543_s1 + $0x2908] sm:$0xff] }
 0x2cf   :  { %v10320_v36 = vpop.f32.mrf.mxu1  ;;  %10614 = vmatprep.subr.bf16.mxu1 %v13584_v12  ;;  %v13568_v40 = vcombine.high %v1339_v17, %v1343_v52  ;;  %v13567_v51 = vcombine.low %v1339_v17, %v1343_v52  ;;  %v1323_v1 = vld [vmem:[%s19543_s1 + $0x2888] sm:$0xff] }
 0x2d0   :  { %v10321_v49 = vadd.f32 %v10320_v36, %v16283_v8  ;;  %10598 = vmatpush2.bf16.msra.mxu0 %v13487_v5  ;;  %v1491_v8 = vld [vmem:[%s19543_s1 + $0x2dc8] sm:$0xff]  ;;  %v13552_v57 = vcombine.high %v1323_v1, %v1327_v6  ;;  %v13551_v28 = vcombine.low %v1323_v1, %v1327_v6 }
 0x2d1   :  { %v10322_v63 = vpop.f32.mrf.mxu1  ;;  %10599 = vmatprep.subr.bf16.mxu0 %v13480_v20  ;;  %v13720_v54 = vcombine.high %v1491_v8, %v1495_v42  ;;  %v13719_v12 = vcombine.low %v1491_v8, %v1495_v42  ;;  %v1479_v24 = vld [vmem:[%s19543_s1 + $0x2d68] sm:$0xff] }
 0x2d2   :  { %10615 = vmatpush1.bf16.msra.mxu1 %v13583_v59  ;;  %v1315_v59 = vld [vmem:[%s19543_s1 + $0x2848] sm:$0xff]  ;;  %v13704_v17 = vcombine.high %v1475_v7, %v1479_v24 }
 0x2d3   :  { %v10323_v38 = vpop.f32.mrf.mxu1  ;;  %10616 = vmatprep.subr.bf16.mxu1 %v13576_v4  ;;  %v1319_v20 = vld [vmem:[%s19543_s1 + $0x2868] sm:$0xff]  ;;  %v13711_v4 = vcombine.low %v1483_v61, %v1487_v60 }
 0x2d4   :  { %10600 = vmatpush2.bf16.msra.mxu0 %v13479_v35  ;;  %v13544_v63 = vcombine.high %v1315_v59, %v1319_v20  ;;  %v1467_v35 = vld [vmem:[%s19543_s1 + $0x2d08] sm:$0xff]  ;;  %v13703_v38 = vcombine.low %v1475_v7, %v1479_v24  ;;  %v13543_v8 = vcombine.low %v1315_v59, %v1319_v20 }
 0x2d5   :  { %10601 = vmatprep.subr.bf16.mxu0 %v13472_v37  ;;  %v1307_v37 = vld [vmem:[%s19543_s1 + $0x2808] sm:$0xff] }
 0x2d6   :  { %10617 = vmatpush1.bf16.msra.mxu1 %v13575_v2  ;;  %v1459_v46 = vld [vmem:[%s19543_s1 + $0x2cc8] sm:$0xff] }
 0x2d7   :  { %10618 = vmatprep.subr.bf16.mxu1 %v13568_v40  ;;  %v1451_v6 = vld [vmem:[%s19543_s1 + $0x2c88] sm:$0xff] }
 0x2d8   :  { %10602 = vmatpush2.bf16.msra.mxu0 %v13471_v48  ;;  %v1463_v48 = vld [vmem:[%s19543_s1 + $0x2ce8] sm:$0xff] }
 0x2d9   :  { %10653 = vmatprep.subr.bf16.mxu0 %v13720_v54  ;;  %v1431_v54 = vld [vmem:[%s19543_s1 + $0x2be8] sm:$0xff]  ;;  %v13688_v60 = vcombine.high %v1459_v46, %v1463_v48 }
 0x2da   :  { %10619 = vmatpush1.bf16.msra.mxu1 %v13567_v51  ;;  %v1427_v51 = vld [vmem:[%s19543_s1 + $0x2bc8] sm:$0xff] }
 0x2db   :  { %10620 = vmatprep.subr.bf16.mxu1 %v13560_v10  ;;  %v10359_v5 = vpop.f32.mrf.mxu0  ;;  %10604 = vmatmul.mubr.bf16.vlgmr.msra.gmra.mxu0 %v15179_v0  ;;  %v13656_v1 = vcombine.high %v1427_v51, %v1431_v54  ;;  %v13655_v7 = vcombine.low %v1427_v51, %v1431_v54  ;;  %v1443_v59 = vld [vmem:[%s19543_s1 + $0x2c48] sm:$0xff] }
 0x2dc   :  { %v16482_v36 = vadd.f32 %v10359_v5, %v10319_v19  ;;  %10654 = vmatpush1.bf16.msra.mxu0 %v13719_v12  ;;  %10685 = vmatprep.mubr.bf16.mxu0 %v15196_v15  ;;  %v1471_v19 = vld [vmem:[%s19543_s1 + $0x2d28] sm:$0xff] }
 0x2dd   :  { %v10361_v27 = vpop.f32.mrf.mxu0  ;;  %10655 = vmatprep.subr.bf16.mxu0 %v13712_v14  ;;  %v13696_v42 = vcombine.high %v1467_v35, %v1471_v19  ;;  %v13695_v10 = vcombine.low %v1467_v35, %v1471_v19  ;;  %v1455_v12 = vld [vmem:[%s19543_s1 + $0x2ca8] sm:$0xff] }
 0x2de   :  { %10621 = vmatpush1.bf16.msra.mxu1 %v13559_v53  ;;  %v16485_v52 = vadd.f32 %v10361_v27, %v10321_v49  ;;  %v1311_v49 = vld [vmem:[%s19543_s1 + $0x2828] sm:$0xff]  ;;  %v13680_v24 = vcombine.high %v1451_v6, %v1455_v12 }
 0x2df   :  { %10622 = vmatprep.subr.bf16.mxu1 %v13552_v57  ;;  %v10363_v2 = vpop.f32.mrf.mxu0  ;;  %v13536_v34 = vcombine.high %v1307_v37, %v1311_v49  ;;  %v13535_v61 = vcombine.low %v1307_v37, %v1311_v49  ;;  %v1419_v53 = vld [vmem:[%s19543_s1 + $0x2b88] sm:$0xff]  ;;  %v13687_v57 = vcombine.low %v1459_v46, %v1463_v48 }
 0x2e0   :  { %10656 = vmatpush1.bf16.msra.mxu0 %v13711_v4  ;;  %v1423_v14 = vld [vmem:[%s19543_s1 + $0x2ba8] sm:$0xff] }
 0x2e1   :  { %v10364_v40 = vpop.f32.mrf.mxu0  ;;  %10657 = vmatprep.subr.bf16.mxu0 %v13704_v17  ;;  %v13648_v5 = vcombine.high %v1419_v53, %v1423_v14  ;;  %v1447_v20 = vld [vmem:[%s19543_s1 + $0x2c68] sm:$0xff]  ;;  %v13647_v17 = vcombine.low %v1419_v53, %v1423_v14 }
 0x2e2   :  { %10623 = vmatpush1.bf16.msra.mxu1 %v13551_v28  ;;  %v1411_v4 = vld [vmem:[%s19543_s1 + $0x2b48] sm:$0xff]  ;;  %v13679_v28 = vcombine.low %v1451_v6, %v1455_v12 }
 0x2e3   :  { %10624 = vmatprep.subr.bf16.mxu1 %v13544_v63  ;;  %v1415_v27 = vld [vmem:[%s19543_s1 + $0x2b68] sm:$0xff]  ;;  %v13672_v63 = vcombine.high %v1443_v59, %v1447_v20 }
 0x2e4   :  { %10658 = vmatpush1.bf16.msra.mxu0 %v13703_v38  ;;  %v13640_v35 = vcombine.high %v1411_v4, %v1415_v27  ;;  %v1435_v19 = vld [vmem:[%s19543_s1 + $0x2c08] sm:$0xff]  ;;  %v13671_v38 = vcombine.low %v1443_v59, %v1447_v20  ;;  %v13639_v40 = vcombine.low %v1411_v4, %v1415_v27 }
 0x2e5   :  { %10659 = vmatprep.subr.bf16.mxu0 %v13696_v42  ;;  %v1439_v2 = vld [vmem:[%s19543_s1 + $0x2c28] sm:$0xff] }
 0x2e6   :  { %10625 = vmatpush1.bf16.msra.mxu1 %v13543_v8  ;;  %v1403_v37 = vld [vmem:[%s19543_s1 + $0x2b08] sm:$0xff]  ;;  %v13664_v8 = vcombine.high %v1435_v19, %v1439_v2  ;;  %v13663_v54 = vcombine.low %v1435_v19, %v1439_v2 }
 0x2e7   :  { %10626 = vmatprep.subr.bf16.mxu1 %v13536_v34  ;;  %v1407_v49 = vld [vmem:[%s19543_s1 + $0x2b28] sm:$0xff] }
 0x2e8   :  { %10660 = vmatpush1.bf16.msra.mxu0 %v13695_v10  ;;  %v13632_v42 = vcombine.high %v1403_v37, %v1407_v49  ;;  %v1555_v34 = vld [vmem:[%s19543_s1 + $0x2fc8] sm:$0xff]  ;;  %v13631_v10 = vcombine.low %v1403_v37, %v1407_v49 }
 0x2e9   :  { %10661 = vmatprep.subr.bf16.mxu0 %v13688_v60  ;;  %v1559_v46 = vld [vmem:[%s19543_s1 + $0x2fe8] sm:$0xff] }
 0x2ea   :  { %10627 = vmatpush1.bf16.msra.mxu1 %v13535_v61  ;;  %v1395_v48 = vld [vmem:[%s19543_s1 + $0x2ac8] sm:$0xff]  ;;  %v13784_v61 = vcombine.high %v1555_v34, %v1559_v46  ;;  %v13783_v14 = vcombine.low %v1555_v34, %v1559_v46 }
 0x2eb   :  { %10628 = vmatprep.subr.bf16.mxu1 %v13656_v1  ;;  %v1399_v51 = vld [vmem:[%s19543_s1 + $0x2ae8] sm:$0xff] }
 0x2ec   :  { %10662 = vmatpush1.bf16.msra.mxu0 %v13687_v57  ;;  %v13624_v60 = vcombine.high %v1395_v48, %v1399_v51  ;;  %v1547_v1 = vld [vmem:[%s19543_s1 + $0x2f88] sm:$0xff]  ;;  %v13623_v57 = vcombine.low %v1395_v48, %v1399_v51 }
 0x2ed   :  { %10663 = vmatprep.subr.bf16.mxu0 %v13680_v24  ;;  %v1551_v6 = vld [vmem:[%s19543_s1 + $0x2fa8] sm:$0xff] }
 0x2ee   :  { %10629 = vmatpush2.bf16.msra.mxu1 %v13655_v7  ;;  %v1387_v12 = vld [vmem:[%s19543_s1 + $0x2a88] sm:$0xff]  ;;  %v13776_v7 = vcombine.high %v1547_v1, %v1551_v6  ;;  %v13775_v27 = vcombine.low %v1547_v1, %v1551_v6 }
 0x2ef   :  { %10630 = vmatprep.subr.bf16.mxu1 %v13648_v5  ;;  %v1391_v53 = vld [vmem:[%s19543_s1 + $0x2aa8] sm:$0xff] }
 0x2f0   :  { %10664 = vmatpush1.bf16.msra.mxu0 %v13679_v28  ;;  %v13616_v24 = vcombine.high %v1387_v12, %v1391_v53  ;;  %v1539_v5 = vld [vmem:[%s19543_s1 + $0x2f48] sm:$0xff]  ;;  %v13615_v28 = vcombine.low %v1387_v12, %v1391_v53 }
 0x2f1   :  { %10665 = vmatprep.subr.bf16.mxu0 %v13672_v63  ;;  %v1543_v59 = vld [vmem:[%s19543_s1 + $0x2f68] sm:$0xff] }
 0x2f2   :  { %10631 = vmatpush2.bf16.msra.mxu1 %v13647_v17  ;;  %v1379_v20 = vld [vmem:[%s19543_s1 + $0x2a48] sm:$0xff]  ;;  %v13768_v17 = vcombine.high %v1539_v5, %v1543_v59  ;;  %v13767_v49 = vcombine.low %v1539_v5, %v1543_v59 }
 0x2f3   :  { %10632 = vmatprep.subr.bf16.mxu1 %v13640_v35  ;;  %v1383_v4 = vld [vmem:[%s19543_s1 + $0x2a68] sm:$0xff] }
 0x2f4   :  { %10666 = vmatpush1.bf16.msra.mxu0 %v13671_v38  ;;  %v13608_v63 = vcombine.high %v1379_v20, %v1383_v4  ;;  %v1531_v35 = vld [vmem:[%s19543_s1 + $0x2f08] sm:$0xff]  ;;  %v13607_v38 = vcombine.low %v1379_v20, %v1383_v4 }
 0x2f5   :  { %10667 = vmatprep.subr.bf16.mxu0 %v13664_v8  ;;  %v1535_v19 = vld [vmem:[%s19543_s1 + $0x2f28] sm:$0xff] }
 0x2f6   :  { %10633 = vmatpush2.bf16.msra.mxu1 %v13639_v40  ;;  %v1371_v2 = vld [vmem:[%s19543_s1 + $0x2a08] sm:$0xff]  ;;  %v13760_v40 = vcombine.high %v1531_v35, %v1535_v19  ;;  %v13759_v51 = vcombine.low %v1531_v35, %v1535_v19 }
 0x2f7   :  { %10634 = vmatprep.subr.bf16.mxu1 %v13632_v42  ;;  %v1375_v37 = vld [vmem:[%s19543_s1 + $0x2a28] sm:$0xff] }
 0x2f8   :  { %10668 = vmatpush1.bf16.msra.mxu0 %v13663_v54  ;;  %v13600_v8 = vcombine.high %v1371_v2, %v1375_v37  ;;  %v1523_v42 = vld [vmem:[%s19543_s1 + $0x2ec8] sm:$0xff]  ;;  %v13599_v54 = vcombine.low %v1371_v2, %v1375_v37 }
 0x2f9   :  { %10669 = vmatprep.subr.bf16.mxu0 %v13784_v61  ;;  %v1527_v34 = vld [vmem:[%s19543_s1 + $0x2ee8] sm:$0xff] }
 0x2fa   :  { %10635 = vmatpush2.bf16.msra.mxu1 %v13631_v10  ;;  %v1587_v46 = vld [vmem:[%s19543_s1 + $0x30c8] sm:$0xff]  ;;  %v13752_v10 = vcombine.high %v1523_v42, %v1527_v34  ;;  %v13751_v53 = vcombine.low %v1523_v42, %v1527_v34 }
 0x2fb   :  { %10636 = vmatprep.subr.bf16.mxu1 %v13624_v60  ;;  %v1591_v48 = vld [vmem:[%s19543_s1 + $0x30e8] sm:$0xff] }
 0x2fc   :  { %10670 = vmatpush2.bf16.msra.mxu0 %v13783_v14  ;;  %v13816_v61 = vcombine.high %v1587_v46, %v1591_v48  ;;  %v1515_v60 = vld [vmem:[%s19543_s1 + $0x2e88] sm:$0xff]  ;;  %v13815_v14 = vcombine.low %v1587_v46, %v1591_v48 }
 0x2fd   :  { %10671 = vmatprep.subr.bf16.mxu0 %v13776_v7  ;;  %v1519_v1 = vld [vmem:[%s19543_s1 + $0x2ea8] sm:$0xff] }
 0x2fe   :  { %10637 = vmatpush2.bf16.msra.mxu1 %v13623_v57  ;;  %v1579_v6 = vld [vmem:[%s19543_s1 + $0x3088] sm:$0xff]  ;;  %v13744_v57 = vcombine.high %v1515_v60, %v1519_v1 }
 0x2ff   :  { %10638 = vmatprep.subr.bf16.mxu1 %v13616_v24  ;;  %v1583_v12 = vld [vmem:[%s19543_s1 + $0x30a8] sm:$0xff] }
 0x300   :  { %10672 = vmatpush2.bf16.msra.mxu0 %v13775_v27  ;;  %v13808_v7 = vcombine.high %v1579_v6, %v1583_v12  ;;  %v1507_v24 = vld [vmem:[%s19543_s1 + $0x2e48] sm:$0xff]  ;;  %v13743_v27 = vcombine.low %v1515_v60, %v1519_v1 }
 0x301   :  { %10673 = vmatprep.subr.bf16.mxu0 %v13768_v17  ;;  %v1511_v5 = vld [vmem:[%s19543_s1 + $0x2e68] sm:$0xff]  ;;  %v13807_v17 = vcombine.low %v1579_v6, %v1583_v12  ;;  %v76_v12 = vld [vmem:[%s19543_s1 + $0x190] sm:$0xff] }
 0x302   :  { %10639 = vmatpush2.bf16.msra.mxu1 %v13615_v28  ;;  %v1571_v59 = vld [vmem:[%s19543_s1 + $0x3048] sm:$0xff] }
 0x303   :  { %10640 = vmatprep.subr.bf16.mxu1 %v13608_v63  ;;  %v1575_v20 = vld [vmem:[%s19543_s1 + $0x3068] sm:$0xff]  ;;  %v13736_v63 = vcombine.high %v1507_v24, %v1511_v5 }
 0x304   :  { %10674 = vmatpush2.bf16.msra.mxu0 %v13767_v49  ;;  %v13800_v19 = vcombine.high %v1571_v59, %v1575_v20  ;;  %v1499_v2 = vld [vmem:[%s19543_s1 + $0x2e08] sm:$0xff]  ;;  %v13799_v42 = vcombine.low %v1571_v59, %v1575_v20  ;;  %v68_v20 = vld [vmem:[%s19543_s1 + $0x150] sm:$0xff] }
 0x305   :  { %10675 = vmatprep.subr.bf16.mxu0 %v13760_v40  ;;  %v1503_v37 = vld [vmem:[%s19543_s1 + $0x2e28] sm:$0xff] }
 0x306   :  { %10641 = vmatpush2.bf16.msra.mxu1 %v13607_v38  ;;  %v1567_v38 = vld [vmem:[%s19543_s1 + $0x3028] sm:$0xff]  ;;  %v13728_v34 = vcombine.high %v1499_v2, %v1503_v37 }
 0x307   :  { %10642 = vmatprep.subr.bf16.mxu1 %v13600_v8  ;;  %v13735_v8 = vcombine.low %v1507_v24, %v1511_v5 }
 0x308   :  { %10676 = vmatpush2.bf16.msra.mxu0 %v13759_v51  ;;  %v88_v51 = vld [vmem:[%s19543_s1 + $0x1f0] sm:$0xff] }
 0x309   :  { %10677 = vmatprep.subr.bf16.mxu0 %v13752_v10  ;;  %v216_v10 = vld [vmem:[%s19543_s1 + $0x5f0] sm:$0xff] }
 0x30a   :  { %10643 = vmatpush2.bf16.msra.mxu1 %v13599_v54  ;;  %v212_v54 = vld [vmem:[%s19543_s1 + $0x5d0] sm:$0xff] }
 0x30b   :  { %10702 = vmatprep.subr.bf16.mxu1 %v13816_v61  ;;  %v13727_v61 = vcombine.low %v1499_v2, %v1503_v37  ;;  %v12442_v6 = vcombine.high %v212_v54, %v216_v10  ;;  %v12441_v24 = vcombine.low %v212_v54, %v216_v10  ;;  %v52_v10 = vld [vmem:[%s19543_s1 + $0xd0] sm:$0xff] }
 0x30c   :  { %10678 = vmatpush2.bf16.msra.mxu0 %v13751_v53  ;;  %v80_v53 = vld [vmem:[%s19543_s1 + $0x1b0] sm:$0xff] }
 0x30d   :  { %v10400_v4 = vpop.f32.mrf.mxu1  ;;  %10645 = vmatmul.mubr.bf16.vlgmr.msra.gmra.mxu1 %v15377_v33  ;;  %10679 = vmatprep.subr.bf16.mxu0 %v13744_v57  ;;  %v208_v57 = vld [vmem:[%s19543_s1 + $0x5b0] sm:$0xff]  ;;  %v12306_v5 = vcombine.high %v76_v12, %v80_v53 }
 0x30e   :  { %v10401_v28 = vadd.f32 %v10400_v4, %v16482_v36  ;;  %10703 = vmatpush1.bf16.msra.mxu1 %v13815_v14  ;;  %10726 = vmatprep.mubr.bf16.mxu1 %v14000_v18  ;;  %v1563_v36 = vld [vmem:[%s19543_s1 + $0x3008] sm:$0xff]  ;;  %v204_v14 = vld [vmem:[%s19543_s1 + $0x590] sm:$0xff] }
 0x30f   :  { %v10402_v35 = vpop.f32.mrf.mxu1  ;;  %10704 = vmatprep.subr.bf16.mxu1 %v13808_v7  ;;  %v13792_v48 = vcombine.high %v1563_v36, %v1567_v38  ;;  %v13791_v60 = vcombine.low %v1563_v36, %v1567_v38  ;;  %v12434_v59 = vcombine.high %v204_v14, %v208_v57  ;;  %v72_v4 = vld [vmem:[%s19543_s1 + $0x170] sm:$0xff]  ;;  %v12433_v37 = vcombine.low %v204_v14, %v208_v57 }
 0x310   :  { %v10403_v49 = vadd.f32 %v10402_v35, %v16485_v52  ;;  %10680 = vmatpush2.bf16.msra.mxu0 %v13743_v27  ;;  %v84_v52 = vld [vmem:[%s19543_s1 + $0x1d0] sm:$0xff]  ;;  %v12298_v36 = vcombine.high %v68_v20, %v72_v4 }
 0x311   :  { %v10404_v40 = vpop.f32.mrf.mxu1  ;;  %10681 = vmatprep.subr.bf16.mxu0 %v13736_v63  ;;  %v12314_v1 = vcombine.high %v84_v52, %v88_v51  ;;  %v12313_v7 = vcombine.low %v84_v52, %v88_v51  ;;  %v200_v63 = vld [vmem:[%s19543_s1 + $0x570] sm:$0xff] }
 0x312   :  { %10705 = vmatpush1.bf16.msra.mxu1 %v13807_v17  ;;  %v196_v17 = vld [vmem:[%s19543_s1 + $0x550] sm:$0xff] }
 0x313   :  { %v10405_v46 = vpop.f32.mrf.mxu1  ;;  %10706 = vmatprep.subr.bf16.mxu1 %v13800_v19  ;;  %v12305_v19 = vcombine.low %v76_v12, %v80_v53  ;;  %v12426_v40 = vcombine.high %v196_v17, %v200_v63  ;;  %v12425_v52 = vcombine.low %v196_v17, %v200_v63  ;;  %v44_v57 = vld [vmem:[%s19543_s1 + $0x90] sm:$0xff] }
 0x314   :  { %10682 = vmatpush2.bf16.msra.mxu0 %v13735_v8  ;;  %v60_v8 = vld [vmem:[%s19543_s1 + $0x110] sm:$0xff]  ;;  %v12297_v46 = vcombine.low %v68_v20, %v72_v4 }
 0x315   :  { %10683 = vmatprep.subr.bf16.mxu0 %v13728_v34  ;;  %v188_v34 = vld [vmem:[%s19543_s1 + $0x510] sm:$0xff] }
 0x316   :  { %10707 = vmatpush1.bf16.msra.mxu1 %v13799_v42  ;;  %v36_v17 = vld [vmem:[%s19543_s1 + $0x50] sm:$0xff] }
 0x317   :  { %10708 = vmatprep.subr.bf16.mxu1 %v13792_v48  ;;  %v40_v63 = vld [vmem:[%s19543_s1 + $0x70] sm:$0xff] }
 0x318   :  { %10684 = vmatpush2.bf16.msra.mxu0 %v13727_v61  ;;  %v56_v61 = vld [vmem:[%s19543_s1 + $0xf0] sm:$0xff] }
 0x319   :  { %10735 = vmatprep.subr.bf16.mxu0 %v12314_v1  ;;  %v184_v1 = vld [vmem:[%s19543_s1 + $0x4f0] sm:$0xff]  ;;  %v12282_v53 = vcombine.high %v52_v10, %v56_v61 }
 0x31a   :  { %10709 = vmatpush1.bf16.msra.mxu1 %v13791_v60  ;;  %v180_v60 = vld [vmem:[%s19543_s1 + $0x4d0] sm:$0xff] }
 0x31b   :  { %10776 = vmatprep.subr.bf16.mxu1 %v12442_v6  ;;  %v10441_v27 = vpop.f32.mrf.mxu0  ;;  %10686 = vmatmul.mubr.bf16.vlgmr.msra.gmra.mxu0 %v15393_v45  ;;  %v12410_v14 = vcombine.high %v180_v60, %v184_v1  ;;  %v12409_v20 = vcombine.low %v180_v60, %v184_v1  ;;  %v280_v60 = vld [vmem:[%s19543_s1 + $0x7f0] sm:$0xff] }
 0x31c   :  { %v16684_v35 = vadd.f32 %v10441_v27, %v10401_v28  ;;  %10736 = vmatpush1.bf16.msra.mxu0 %v12313_v7  ;;  %v64_v28 = vld [vmem:[%s19543_s1 + $0x130] sm:$0xff]  ;;  %10767 = vmatprep.mubr.bf16.mxu0 %v14152_v9 }
 0x31d   :  { %13822 = vmatmul.mubr.msk.bf16.vlgmr.msra.gmra.mxu1 %vm9665_vm0, %v15451_v58  ;;  %v10443_v2 = vpop.f32.mrf.mxu0  ;;  %10737 = vmatprep.subr.bf16.mxu0 %v12306_v5  ;;  %v12290_v51 = vcombine.high %v60_v8, %v64_v28  ;;  %v12289_v6 = vcombine.low %v60_v8, %v64_v28  ;;  %v48_v7 = vld [vmem:[%s19543_s1 + $0xb0] sm:$0xff] }
 0x31e   :  { %10777 = vmatpush1.bf16.msra.mxu1 %v12441_v24  ;;  %v16688_v38 = vadd.f32 %v10443_v2, %v10403_v49  ;;  %v192_v49 = vld [vmem:[%s19543_s1 + $0x530] sm:$0xff]  ;;  %10808 = vmatprep.mubr.bf16.mxu1 %v14163_v13  ;;  %v12274_v4 = vcombine.high %v44_v57, %v48_v7 }
 0x31f   :  { %10778 = vmatprep.subr.bf16.mxu1 %v12434_v59  ;;  %v10445_v42 = vpop.f32.mrf.mxu0  ;;  %v12418_v54 = vcombine.high %v188_v34, %v192_v49  ;;  %v12417_v12 = vcombine.low %v188_v34, %v192_v49  ;;  %v172_v24 = vld [vmem:[%s19543_s1 + $0x490] sm:$0xff]  ;;  %v12281_v59 = vcombine.low %v52_v10, %v56_v61 }
 0x320   :  { %10738 = vmatpush1.bf16.msra.mxu0 %v12305_v19  ;;  %v176_v5 = vld [vmem:[%s19543_s1 + $0x4b0] sm:$0xff] }
 0x321   :  { %v10446_v48 = vpop.f32.mrf.mxu0  ;;  %10739 = vmatprep.subr.bf16.mxu0 %v12298_v36  ;;  %v12402_v27 = vcombine.high %v172_v24, %v176_v5  ;;  %v164_v19 = vld [vmem:[%s19543_s1 + $0x450] sm:$0xff]  ;;  %v12401_v36 = vcombine.low %v172_v24, %v176_v5 }
 0x322   :  { %10779 = vmatpush1.bf16.msra.mxu1 %v12433_v37  ;;  %v168_v2 = vld [vmem:[%s19543_s1 + $0x470] sm:$0xff]  ;;  %v12273_v37 = vcombine.low %v44_v57, %v48_v7 }
 0x323   :  { %10780 = vmatprep.subr.bf16.mxu1 %v12426_v40  ;;  %v12266_v40 = vcombine.high %v36_v17, %v40_v63  ;;  %v12394_v8 = vcombine.high %v164_v19, %v168_v2  ;;  %v28_v28 = vld [vmem:[%s19543_s1 + $0x10] sm:$0xff]  ;;  %v12393_v48 = vcombine.low %v164_v19, %v168_v2 }
 0x324   :  { %10740 = vmatpush1.bf16.msra.mxu0 %v12297_v46  ;;  %v32_v42 = vld [vmem:[%s19543_s1 + $0x30] sm:$0xff]  ;;  %v12265_v46 = vcombine.low %v36_v17, %v40_v63 }
 0x325   :  { %10741 = vmatprep.subr.bf16.mxu0 %v12290_v51  ;;  %v156_v34 = vld [vmem:[%s19543_s1 + $0x410] sm:$0xff]  ;;  %v12257_v1 = vcombine.low %v28_v28, %v32_v42 }
 0x326   :  { %10781 = vmatpush1.bf16.msra.mxu1 %v12425_v52  ;;  %v160_v49 = vld [vmem:[%s19543_s1 + $0x430] sm:$0xff]  ;;  %v12258_v52 = vcombine.high %v28_v28, %v32_v42 }
 0x327   :  { %10782 = vmatprep.subr.bf16.mxu1 %v12418_v54  ;;  %v12386_v51 = vcombine.high %v156_v34, %v160_v49  ;;  %v148_v54 = vld [vmem:[%s19543_s1 + $0x3d0] sm:$0xff] }
 0x328   :  { %10742 = vmatpush1.bf16.msra.mxu0 %v12289_v6  ;;  %v152_v10 = vld [vmem:[%s19543_s1 + $0x3f0] sm:$0xff]  ;;  %v12385_v6 = vcombine.low %v156_v34, %v160_v49 }
 0x329   :  { %10743 = vmatprep.subr.bf16.mxu0 %v12282_v53  ;;  %v276_v61 = vld [vmem:[%s19543_s1 + $0x7d0] sm:$0xff]  ;;  %v12377_v5 = vcombine.low %v148_v54, %v152_v10 }
 0x32a   :  { %10783 = vmatpush1.bf16.msra.mxu1 %v12417_v12  ;;  %v12378_v12 = vcombine.high %v148_v54, %v152_v10  ;;  %v12506_v53 = vcombine.high %v276_v61, %v280_v60  ;;  %v144_v57 = vld [vmem:[%s19543_s1 + $0x3b0] sm:$0xff] }
 0x32b   :  { %10784 = vmatprep.subr.bf16.mxu1 %v12410_v14  ;;  %v140_v14 = vld [vmem:[%s19543_s1 + $0x390] sm:$0xff] }
 0x32c   :  { %10744 = vmatpush1.bf16.msra.mxu0 %v12281_v59  ;;  %v268_v7 = vld [vmem:[%s19543_s1 + $0x790] sm:$0xff]  ;;  %v12505_v59 = vcombine.low %v276_v61, %v280_v60  ;;  %v12369_v2 = vcombine.low %v140_v14, %v144_v57 }
 0x32d   :  { %10745 = vmatprep.subr.bf16.mxu0 %v12274_v4  ;;  %v272_v24 = vld [vmem:[%s19543_s1 + $0x7b0] sm:$0xff] }
 0x32e   :  { %10785 = vmatpush1.bf16.msra.mxu1 %v12409_v20  ;;  %v12370_v20 = vcombine.high %v140_v14, %v144_v57  ;;  %v12498_v4 = vcombine.high %v268_v7, %v272_v24  ;;  %v136_v17 = vld [vmem:[%s19543_s1 + $0x370] sm:$0xff] }
 0x32f   :  { %10786 = vmatprep.subr.bf16.mxu1 %v12402_v27  ;;  %v132_v27 = vld [vmem:[%s19543_s1 + $0x350] sm:$0xff] }
 0x330   :  { %10746 = vmatpush1.bf16.msra.mxu0 %v12273_v37  ;;  %v260_v63 = vld [vmem:[%s19543_s1 + $0x750] sm:$0xff]  ;;  %v12497_v37 = vcombine.low %v268_v7, %v272_v24  ;;  %v12361_v49 = vcombine.low %v132_v27, %v136_v17 }
 0x331   :  { %10747 = vmatprep.subr.bf16.mxu0 %v12266_v40  ;;  %v264_v19 = vld [vmem:[%s19543_s1 + $0x770] sm:$0xff] }
 0x332   :  { %10787 = vmatpush1.bf16.msra.mxu1 %v12401_v36  ;;  %v12362_v36 = vcombine.high %v132_v27, %v136_v17  ;;  %v12490_v40 = vcombine.high %v260_v63, %v264_v19  ;;  %v128_v28 = vld [vmem:[%s19543_s1 + $0x330] sm:$0xff] }
 0x333   :  { %10788 = vmatprep.subr.bf16.mxu1 %v12394_v8  ;;  %v124_v8 = vld [vmem:[%s19543_s1 + $0x310] sm:$0xff] }
 0x334   :  { %10748 = vmatpush1.bf16.msra.mxu0 %v12265_v46  ;;  %v252_v42 = vld [vmem:[%s19543_s1 + $0x710] sm:$0xff]  ;;  %v12489_v46 = vcombine.low %v260_v63, %v264_v19  ;;  %v12353_v60 = vcombine.low %v124_v8, %v128_v28 }
 0x335   :  { %10749 = vmatprep.subr.bf16.mxu0 %v12258_v52  ;;  %v256_v34 = vld [vmem:[%s19543_s1 + $0x730] sm:$0xff] }
 0x336   :  { %10789 = vmatpush1.bf16.msra.mxu1 %v12393_v48  ;;  %v12354_v48 = vcombine.high %v124_v8, %v128_v28  ;;  %v12482_v52 = vcombine.high %v252_v42, %v256_v34  ;;  %v120_v54 = vld [vmem:[%s19543_s1 + $0x2f0] sm:$0xff] }
 0x337   :  { %10790 = vmatprep.subr.bf16.mxu1 %v12386_v51  ;;  %v116_v51 = vld [vmem:[%s19543_s1 + $0x2d0] sm:$0xff] }
 0x338   :  { %10750 = vmatpush1.bf16.msra.mxu0 %v12257_v1  ;;  %v244_v10 = vld [vmem:[%s19543_s1 + $0x6d0] sm:$0xff]  ;;  %v12481_v1 = vcombine.low %v252_v42, %v256_v34  ;;  %v12345_v24 = vcombine.low %v116_v51, %v120_v54 }
 0x339   :  { %10751 = vmatprep.subr.bf16.mxu0 %v12378_v12  ;;  %v248_v61 = vld [vmem:[%s19543_s1 + $0x6f0] sm:$0xff] }
 0x33a   :  { %10791 = vmatpush1.bf16.msra.mxu1 %v12385_v6  ;;  %v12346_v6 = vcombine.high %v116_v51, %v120_v54  ;;  %v12474_v12 = vcombine.high %v244_v10, %v248_v61  ;;  %v112_v14 = vld [vmem:[%s19543_s1 + $0x2b0] sm:$0xff] }
 0x33b   :  { %10792 = vmatprep.subr.bf16.mxu1 %v12506_v53  ;;  %v108_v53 = vld [vmem:[%s19543_s1 + $0x290] sm:$0xff] }
 0x33c   :  { %10752 = vmatpush2.bf16.msra.mxu0 %v12377_v5  ;;  %v236_v57 = vld [vmem:[%s19543_s1 + $0x690] sm:$0xff]  ;;  %v12473_v5 = vcombine.low %v244_v10, %v248_v61 }
 0x33d   :  { %10753 = vmatprep.subr.bf16.mxu0 %v12370_v20  ;;  %v240_v7 = vld [vmem:[%s19543_s1 + $0x6b0] sm:$0xff] }
 0x33e   :  { %10793 = vmatpush2.bf16.msra.mxu1 %v12505_v59  ;;  %v12338_v59 = vcombine.high %v108_v53, %v112_v14  ;;  %v12466_v20 = vcombine.high %v236_v57, %v240_v7  ;;  %v104_v27 = vld [vmem:[%s19543_s1 + $0x270] sm:$0xff] }
 0x33f   :  { %10794 = vmatprep.subr.bf16.mxu1 %v12498_v4  ;;  %v100_v4 = vld [vmem:[%s19543_s1 + $0x250] sm:$0xff] }
 0x340   :  { %10754 = vmatpush2.bf16.msra.mxu0 %v12369_v2  ;;  %v228_v17 = vld [vmem:[%s19543_s1 + $0x650] sm:$0xff]  ;;  %v12337_v2 = vcombine.low %v108_v53, %v112_v14 }
 0x341   :  { %10755 = vmatprep.subr.bf16.mxu0 %v12362_v36  ;;  %v232_v63 = vld [vmem:[%s19543_s1 + $0x670] sm:$0xff]  ;;  %v12465_v36 = vcombine.low %v236_v57, %v240_v7 }
 0x342   :  { %10795 = vmatpush2.bf16.msra.mxu1 %v12497_v37  ;;  %v12458_v28 = vcombine.high %v228_v17, %v232_v63  ;;  %v92_v42 = vld [vmem:[%s19543_s1 + $0x210] sm:$0xff]  ;;  %v12457_v51 = vcombine.low %v228_v17, %v232_v63 }
 0x343   :  { %10796 = vmatprep.subr.bf16.mxu1 %v12490_v40  ;;  %v12330_v40 = vcombine.high %v100_v4, %v104_v27  ;;  %v96_v34 = vld [vmem:[%s19543_s1 + $0x230] sm:$0xff] }
 0x344   :  { %10756 = vmatpush2.bf16.msra.mxu0 %v12361_v49  ;;  %v12322_v54 = vcombine.high %v92_v42, %v96_v34  ;;  %v332_v7 = vld [vmem:[%s19543_s1 + $0x990] sm:$0xff] }
 0x345   :  { %10757 = vmatprep.subr.bf16.mxu0 %v12354_v48  ;;  %v324_v63 = vld [vmem:[%s19543_s1 + $0x950] sm:$0xff] }
 0x346   :  { %10797 = vmatpush2.bf16.msra.mxu1 %v12489_v46  ;;  %v224_v46 = vld [vmem:[%s19543_s1 + $0x630] sm:$0xff] }
 0x347   :  { %10798 = vmatprep.subr.bf16.mxu1 %v12482_v52  ;;  %v12329_v52 = vcombine.low %v100_v4, %v104_v27 }
 0x348   :  { %10758 = vmatpush2.bf16.msra.mxu0 %v12353_v60  ;;  %v344_v60 = vld [vmem:[%s19543_s1 + $0x9f0] sm:$0xff] }
 0x349   :  { %10759 = vmatprep.subr.bf16.mxu0 %v12346_v6  ;;  %v472_v6 = vld [vmem:[%s19543_s1 + $0xdf0] sm:$0xff] }
 0x34a   :  { %10799 = vmatpush2.bf16.msra.mxu1 %v12481_v1  ;;  %v468_v1 = vld [vmem:[%s19543_s1 + $0xdd0] sm:$0xff] }
 0x34b   :  { %10800 = vmatprep.subr.bf16.mxu1 %v12474_v12  ;;  %v12321_v12 = vcombine.low %v92_v42, %v96_v34  ;;  %v12698_v57 = vcombine.high %v468_v1, %v472_v6  ;;  %v12697_v4 = vcombine.low %v468_v1, %v472_v6  ;;  %v308_v6 = vld [vmem:[%s19543_s1 + $0x8d0] sm:$0xff] }
 0x34c   :  { %10760 = vmatpush2.bf16.msra.mxu0 %v12345_v24  ;;  %v336_v24 = vld [vmem:[%s19543_s1 + $0x9b0] sm:$0xff] }
 0x34d   :  { %v10482_v19 = vpop.f32.mrf.mxu1  ;;  %10761 = vmatprep.subr.bf16.mxu0 %v12338_v59  ;;  %v464_v59 = vld [vmem:[%s19543_s1 + $0xdb0] sm:$0xff]  ;;  %v12562_v27 = vcombine.high %v332_v7, %v336_v24 }
 0x34e   :  { %v10483_v37 = vadd.f32 %v10482_v19, %v16684_v35  ;;  %10801 = vmatpush2.bf16.msra.mxu1 %v12473_v5  ;;  %v220_v35 = vld [vmem:[%s19543_s1 + $0x610] sm:$0xff] }
 0x34f   :  { %v10484_v8 = vpop.f32.mrf.mxu1  ;;  %10802 = vmatprep.subr.bf16.mxu1 %v12466_v20  ;;  %v12450_v61 = vcombine.high %v220_v35, %v224_v46  ;;  %v12449_v53 = vcombine.low %v220_v35, %v224_v46  ;;  %v460_v5 = vld [vmem:[%s19543_s1 + $0xd90] sm:$0xff] }
 0x350   :  { %v10485_v49 = vadd.f32 %v10484_v8, %v16688_v38  ;;  %10762 = vmatpush2.bf16.msra.mxu0 %v12337_v2  ;;  %v340_v38 = vld [vmem:[%s19543_s1 + $0x9d0] sm:$0xff]  ;;  %v12690_v17 = vcombine.high %v460_v5, %v464_v59  ;;  %v12689_v34 = vcombine.low %v460_v5, %v464_v59 }
 0x351   :  { %v10486_v48 = vpop.f32.mrf.mxu1  ;;  %10763 = vmatprep.subr.bf16.mxu0 %v12330_v40  ;;  %v12570_v14 = vcombine.high %v340_v38, %v344_v60  ;;  %v12569_v20 = vcombine.low %v340_v38, %v344_v60  ;;  %v328_v19 = vld [vmem:[%s19543_s1 + $0x970] sm:$0xff] }
 0x352   :  { %10803 = vmatpush2.bf16.msra.mxu1 %v12465_v36  ;;  %v452_v36 = vld [vmem:[%s19543_s1 + $0xd50] sm:$0xff]  ;;  %v12554_v35 = vcombine.high %v324_v63, %v328_v19 }
 0x353   :  { %v10487_v10 = vpop.f32.mrf.mxu1  ;;  %10804 = vmatprep.subr.bf16.mxu1 %v12458_v28  ;;  %v456_v40 = vld [vmem:[%s19543_s1 + $0xd70] sm:$0xff]  ;;  %v12561_v28 = vcombine.low %v332_v7, %v336_v24 }
 0x354   :  { %10764 = vmatpush2.bf16.msra.mxu0 %v12329_v52  ;;  %v12682_v48 = vcombine.high %v452_v36, %v456_v40  ;;  %v316_v52 = vld [vmem:[%s19543_s1 + $0x910] sm:$0xff]  ;;  %v12553_v10 = vcombine.low %v324_v63, %v328_v19  ;;  %v12681_v38 = vcombine.low %v452_v36, %v456_v40 }
 0x355   :  { %10765 = vmatprep.subr.bf16.mxu0 %v12322_v54  ;;  %v444_v54 = vld [vmem:[%s19543_s1 + $0xd10] sm:$0xff] }
 0x356   :  { %10805 = vmatpush2.bf16.msra.mxu1 %v12457_v51  ;;  %v300_v59 = vld [vmem:[%s19543_s1 + $0x890] sm:$0xff] }
 0x357   :  { %10806 = vmatprep.subr.bf16.mxu1 %v12450_v61  ;;  %v292_v36 = vld [vmem:[%s19543_s1 + $0x850] sm:$0xff] }
 0x358   :  { %10766 = vmatpush2.bf16.msra.mxu0 %v12321_v12  ;;  %v312_v12 = vld [vmem:[%s19543_s1 + $0x8f0] sm:$0xff] }
 0x359   :  { %10817 = vmatprep.subr.bf16.mxu0 %v12570_v14  ;;  %v440_v14 = vld [vmem:[%s19543_s1 + $0xcf0] sm:$0xff]  ;;  %v12538_v24 = vcombine.high %v308_v6, %v312_v12 }
 0x35a   :  { %10807 = vmatpush2.bf16.msra.mxu1 %v12449_v53  ;;  %v436_v53 = vld [vmem:[%s19543_s1 + $0xcd0] sm:$0xff] }
 0x35b   :  { %10858 = vmatprep.subr.bf16.mxu1 %v12698_v57  ;;  %v10523_v2 = vpop.f32.mrf.mxu0  ;;  %10768 = vmatmul.mubr.bf16.vlgmr.msra.gmra.mxu0 %v14271_v22  ;;  %v12666_v5 = vcombine.high %v436_v53, %v440_v14  ;;  %v12665_v63 = vcombine.low %v436_v53, %v440_v14  ;;  %v296_v40 = vld [vmem:[%s19543_s1 + $0x870] sm:$0xff] }
 0x35c   :  { %v16887_v8 = vadd.f32 %v10523_v2, %v10483_v37  ;;  %10818 = vmatpush1.bf16.msra.mxu0 %v12569_v20  ;;  %v320_v37 = vld [vmem:[%s19543_s1 + $0x930] sm:$0xff]  ;;  %10849 = vmatprep.mubr.bf16.mxu0 %v14286_v29 }
 0x35d   :  { %10809 = vmatmul.mubr.bf16.vlgmr.msra.gmra.mxu1 %v14290_v30  ;;  %v10525_v42 = vpop.f32.mrf.mxu0  ;;  %10819 = vmatprep.subr.bf16.mxu0 %v12562_v27  ;;  %v12546_v60 = vcombine.high %v316_v52, %v320_v37  ;;  %v12545_v57 = vcombine.low %v316_v52, %v320_v37  ;;  %v304_v20 = vld [vmem:[%s19543_s1 + $0x8b0] sm:$0xff] }
 0x35e   :  { %10859 = vmatpush1.bf16.msra.mxu1 %v12697_v4  ;;  %v16890_v46 = vadd.f32 %v10525_v42, %v10485_v49  ;;  %v448_v49 = vld [vmem:[%s19543_s1 + $0xd30] sm:$0xff]  ;;  %10890 = vmatprep.mubr.bf16.mxu1 %v14307_v39  ;;  %v12530_v19 = vcombine.high %v300_v59, %v304_v20 }
 0x35f   :  { %10860 = vmatprep.subr.bf16.mxu1 %v12690_v17  ;;  %v10527_v51 = vpop.f32.mrf.mxu0  ;;  %v12674_v1 = vcombine.high %v444_v54, %v448_v49  ;;  %v12673_v7 = vcombine.low %v444_v54, %v448_v49  ;;  %v428_v4 = vld [vmem:[%s19543_s1 + $0xc90] sm:$0xff]  ;;  %v12537_v17 = vcombine.low %v308_v6, %v312_v12 }
 0x360   :  { %10820 = vmatpush1.bf16.msra.mxu0 %v12561_v28  ;;  %v432_v27 = vld [vmem:[%s19543_s1 + $0xcb0] sm:$0xff] }
 0x361   :  { %v10528_v61 = vpop.f32.mrf.mxu0  ;;  %10821 = vmatprep.subr.bf16.mxu0 %v12554_v35  ;;  %v12658_v2 = vcombine.high %v428_v4, %v432_v27  ;;  %v420_v28 = vld [vmem:[%s19543_s1 + $0xc50] sm:$0xff]  ;;  %v12657_v35 = vcombine.low %v428_v4, %v432_v27 }
 0x362   :  { %10861 = vmatpush1.bf16.msra.mxu1 %v12689_v34  ;;  %v424_v42 = vld [vmem:[%s19543_s1 + $0xc70] sm:$0xff]  ;;  %v12529_v34 = vcombine.low %v300_v59, %v304_v20 }
 0x363   :  { %10862 = vmatprep.subr.bf16.mxu1 %v12682_v48  ;;  %v12522_v48 = vcombine.high %v292_v36, %v296_v40  ;;  %v12650_v52 = vcombine.high %v420_v28, %v424_v42  ;;  %v284_v37 = vld [vmem:[%s19543_s1 + $0x810] sm:$0xff]  ;;  %v12649_v61 = vcombine.low %v420_v28, %v424_v42 }
 0x364   :  { %10822 = vmatpush1.bf16.msra.mxu0 %v12553_v10  ;;  %v288_v51 = vld [vmem:[%s19543_s1 + $0x830] sm:$0xff]  ;;  %v12521_v10 = vcombine.low %v292_v36, %v296_v40 }
 0x365   :  { %10823 = vmatprep.subr.bf16.mxu0 %v12546_v60  ;;  %v412_v54 = vld [vmem:[%s19543_s1 + $0xc10] sm:$0xff]  ;;  %v12513_v14 = vcombine.low %v284_v37, %v288_v51 }
 0x366   :  { %10863 = vmatpush1.bf16.msra.mxu1 %v12681_v38  ;;  %v416_v49 = vld [vmem:[%s19543_s1 + $0xc30] sm:$0xff]  ;;  %v12514_v38 = vcombine.high %v284_v37, %v288_v51 }
 0x367   :  { %10864 = vmatprep.subr.bf16.mxu1 %v12674_v1  ;;  %v12642_v60 = vcombine.high %v412_v54, %v416_v49  ;;  %v404_v1 = vld [vmem:[%s19543_s1 + $0xbd0] sm:$0xff] }
 0x368   :  { %10824 = vmatpush1.bf16.msra.mxu0 %v12545_v57  ;;  %v408_v6 = vld [vmem:[%s19543_s1 + $0xbf0] sm:$0xff]  ;;  %v12641_v57 = vcombine.low %v412_v54, %v416_v49 }
 0x369   :  { %10825 = vmatprep.subr.bf16.mxu0 %v12538_v24  ;;  %v532_v12 = vld [vmem:[%s19543_s1 + $0xfd0] sm:$0xff]  ;;  %v12633_v27 = vcombine.low %v404_v1, %v408_v6 }
 0x36a   :  { %10865 = vmatpush1.bf16.msra.mxu1 %v12673_v7  ;;  %v536_v53 = vld [vmem:[%s19543_s1 + $0xff0] sm:$0xff]  ;;  %v12634_v7 = vcombine.high %v404_v1, %v408_v6 }
 0x36b   :  { %10866 = vmatprep.subr.bf16.mxu1 %v12666_v5  ;;  %v12762_v24 = vcombine.high %v532_v12, %v536_v53  ;;  %v396_v5 = vld [vmem:[%s19543_s1 + $0xb90] sm:$0xff] }
 0x36c   :  { %10826 = vmatpush1.bf16.msra.mxu0 %v12537_v17  ;;  %v400_v59 = vld [vmem:[%s19543_s1 + $0xbb0] sm:$0xff]  ;;  %v12761_v17 = vcombine.low %v532_v12, %v536_v53 }
 0x36d   :  { %10827 = vmatprep.subr.bf16.mxu0 %v12530_v19  ;;  %v524_v20 = vld [vmem:[%s19543_s1 + $0xf90] sm:$0xff]  ;;  %v12625_v42 = vcombine.low %v396_v5, %v400_v59 }
 0x36e   :  { %10867 = vmatpush1.bf16.msra.mxu1 %v12665_v63  ;;  %v528_v4 = vld [vmem:[%s19543_s1 + $0xfb0] sm:$0xff]  ;;  %v12626_v63 = vcombine.high %v396_v5, %v400_v59 }
 0x36f   :  { %10868 = vmatprep.subr.bf16.mxu1 %v12658_v2  ;;  %v12754_v19 = vcombine.high %v524_v20, %v528_v4  ;;  %v388_v2 = vld [vmem:[%s19543_s1 + $0xb50] sm:$0xff] }
 0x370   :  { %10828 = vmatpush1.bf16.msra.mxu0 %v12529_v34  ;;  %v392_v36 = vld [vmem:[%s19543_s1 + $0xb70] sm:$0xff]  ;;  %v12753_v34 = vcombine.low %v524_v20, %v528_v4 }
 0x371   :  { %10829 = vmatprep.subr.bf16.mxu0 %v12522_v48  ;;  %v516_v40 = vld [vmem:[%s19543_s1 + $0xf50] sm:$0xff]  ;;  %v12617_v49 = vcombine.low %v388_v2, %v392_v36 }
 0x372   :  { %10869 = vmatpush1.bf16.msra.mxu1 %v12657_v35  ;;  %v520_v28 = vld [vmem:[%s19543_s1 + $0xf70] sm:$0xff]  ;;  %v12618_v35 = vcombine.high %v388_v2, %v392_v36 }
 0x373   :  { %10870 = vmatprep.subr.bf16.mxu1 %v12650_v52  ;;  %v12746_v48 = vcombine.high %v516_v40, %v520_v28  ;;  %v380_v52 = vld [vmem:[%s19543_s1 + $0xb10] sm:$0xff] }
 0x374   :  { %10830 = vmatpush1.bf16.msra.mxu0 %v12521_v10  ;;  %v384_v37 = vld [vmem:[%s19543_s1 + $0xb30] sm:$0xff]  ;;  %v12745_v10 = vcombine.low %v516_v40, %v520_v28 }
 0x375   :  { %10831 = vmatprep.subr.bf16.mxu0 %v12514_v38  ;;  %v508_v51 = vld [vmem:[%s19543_s1 + $0xf10] sm:$0xff]  ;;  %v12609_v53 = vcombine.low %v380_v52, %v384_v37 }
 0x376   :  { %10871 = vmatpush1.bf16.msra.mxu1 %v12649_v61  ;;  %v512_v54 = vld [vmem:[%s19543_s1 + $0xf30] sm:$0xff]  ;;  %v12610_v61 = vcombine.high %v380_v52, %v384_v37 }
 0x377   :  { %10872 = vmatprep.subr.bf16.mxu1 %v12642_v60  ;;  %v12738_v38 = vcombine.high %v508_v51, %v512_v54  ;;  %v372_v60 = vld [vmem:[%s19543_s1 + $0xad0] sm:$0xff] }
 0x378   :  { %10832 = vmatpush1.bf16.msra.mxu0 %v12513_v14  ;;  %v376_v1 = vld [vmem:[%s19543_s1 + $0xaf0] sm:$0xff]  ;;  %v12737_v14 = vcombine.low %v508_v51, %v512_v54 }
 0x379   :  { %10833 = vmatprep.subr.bf16.mxu0 %v12634_v7  ;;  %v500_v6 = vld [vmem:[%s19543_s1 + $0xed0] sm:$0xff]  ;;  %v12601_v4 = vcombine.low %v372_v60, %v376_v1 }
 0x37a   :  { %10873 = vmatpush1.bf16.msra.mxu1 %v12641_v57  ;;  %v504_v12 = vld [vmem:[%s19543_s1 + $0xef0] sm:$0xff]  ;;  %v12602_v57 = vcombine.high %v372_v60, %v376_v1 }
 0x37b   :  { %10874 = vmatprep.subr.bf16.mxu1 %v12762_v24  ;;  %v12730_v7 = vcombine.high %v500_v6, %v504_v12  ;;  %v364_v24 = vld [vmem:[%s19543_s1 + $0xa90] sm:$0xff] }
 0x37c   :  { %10834 = vmatpush2.bf16.msra.mxu0 %v12633_v27  ;;  %v368_v5 = vld [vmem:[%s19543_s1 + $0xab0] sm:$0xff]  ;;  %v12729_v27 = vcombine.low %v500_v6, %v504_v12 }
 0x37d   :  { %10835 = vmatprep.subr.bf16.mxu0 %v12626_v63  ;;  %v492_v59 = vld [vmem:[%s19543_s1 + $0xe90] sm:$0xff] }
 0x37e   :  { %10875 = vmatpush2.bf16.msra.mxu1 %v12761_v17  ;;  %v496_v20 = vld [vmem:[%s19543_s1 + $0xeb0] sm:$0xff]  ;;  %v12594_v17 = vcombine.high %v364_v24, %v368_v5 }
 0x37f   :  { %10876 = vmatprep.subr.bf16.mxu1 %v12754_v19  ;;  %v12722_v63 = vcombine.high %v492_v59, %v496_v20  ;;  %v356_v19 = vld [vmem:[%s19543_s1 + $0xa50] sm:$0xff] }
 0x380   :  { %10836 = vmatpush2.bf16.msra.mxu0 %v12625_v42  ;;  %v360_v2 = vld [vmem:[%s19543_s1 + $0xa70] sm:$0xff]  ;;  %v12593_v42 = vcombine.low %v364_v24, %v368_v5 }
 0x381   :  { %10837 = vmatprep.subr.bf16.mxu0 %v12618_v35  ;;  %v484_v36 = vld [vmem:[%s19543_s1 + $0xe50] sm:$0xff]  ;;  %v12721_v35 = vcombine.low %v492_v59, %v496_v20 }
 0x382   :  { %10877 = vmatpush2.bf16.msra.mxu1 %v12753_v34  ;;  %v488_v40 = vld [vmem:[%s19543_s1 + $0xe70] sm:$0xff] }
 0x383   :  { %10878 = vmatprep.subr.bf16.mxu1 %v12746_v48  ;;  %v12586_v48 = vcombine.high %v356_v19, %v360_v2  ;;  %v12714_v37 = vcombine.high %v484_v36, %v488_v40  ;;  %v348_v51 = vld [vmem:[%s19543_s1 + $0xa10] sm:$0xff]  ;;  %v12713_v60 = vcombine.low %v484_v36, %v488_v40 }
 0x384   :  { %10838 = vmatpush2.bf16.msra.mxu0 %v12617_v49  ;;  %v352_v54 = vld [vmem:[%s19543_s1 + $0xa30] sm:$0xff] }
 0x385   :  { %10839 = vmatprep.subr.bf16.mxu0 %v12610_v61  ;;  %v12578_v1 = vcombine.high %v348_v51, %v352_v54  ;;  %v588_v20 = vld [vmem:[%s19543_s1 + $0x1190] sm:$0xff] }
 0x386   :  { %10879 = vmatpush2.bf16.msra.mxu1 %v12745_v10  ;;  %v480_v10 = vld [vmem:[%s19543_s1 + $0xe30] sm:$0xff] }
 0x387   :  { %10880 = vmatprep.subr.bf16.mxu1 %v12738_v38  ;;  %v12585_v38 = vcombine.low %v356_v19, %v360_v2  ;;  %v580_v40 = vld [vmem:[%s19543_s1 + $0x1150] sm:$0xff] }
 0x388   :  { %10840 = vmatpush2.bf16.msra.mxu0 %v12609_v53  ;;  %v600_v53 = vld [vmem:[%s19543_s1 + $0x11f0] sm:$0xff] }
 0x389   :  { %10841 = vmatprep.subr.bf16.mxu0 %v12602_v57  ;;  %v728_v57 = vld [vmem:[%s19543_s1 + $0x15f0] sm:$0xff] }
 0x38a   :  { %10881 = vmatpush2.bf16.msra.mxu1 %v12737_v14  ;;  %v724_v14 = vld [vmem:[%s19543_s1 + $0x15d0] sm:$0xff] }
 0x38b   :  { %10882 = vmatprep.subr.bf16.mxu1 %v12730_v7  ;;  %v12577_v7 = vcombine.low %v348_v51, %v352_v54  ;;  %v12954_v59 = vcombine.high %v724_v14, %v728_v57  ;;  %v12953_v19 = vcombine.low %v724_v14, %v728_v57  ;;  %v564_v57 = vld [vmem:[%s19543_s1 + $0x10d0] sm:$0xff] }
 0x38c   :  { %10842 = vmatpush2.bf16.msra.mxu0 %v12601_v4  ;;  %v592_v4 = vld [vmem:[%s19543_s1 + $0x11b0] sm:$0xff] }
 0x38d   :  { %v10564_v28 = vpop.f32.mrf.mxu1  ;;  %10843 = vmatprep.subr.bf16.mxu0 %v12594_v17  ;;  %v720_v17 = vld [vmem:[%s19543_s1 + $0x15b0] sm:$0xff]  ;;  %v12818_v2 = vcombine.high %v588_v20, %v592_v4 }
 0x38e   :  { %v10565_v34 = vadd.f32 %v10564_v28, %v16887_v8  ;;  %10883 = vmatpush2.bf16.msra.mxu1 %v12729_v27  ;;  %v476_v8 = vld [vmem:[%s19543_s1 + $0xe10] sm:$0xff] }
 0x38f   :  { %v10566_v52 = vpop.f32.mrf.mxu1  ;;  %10884 = vmatprep.subr.bf16.mxu1 %v12722_v63  ;;  %v12706_v12 = vcombine.high %v476_v8, %v480_v10  ;;  %v12705_v24 = vcombine.low %v476_v8, %v480_v10  ;;  %v716_v27 = vld [vmem:[%s19543_s1 + $0x1590] sm:$0xff] }
 0x390   :  { %v10567_v49 = vadd.f32 %v10566_v52, %v16890_v46  ;;  %10844 = vmatpush2.bf16.msra.mxu0 %v12593_v42  ;;  %v596_v46 = vld [vmem:[%s19543_s1 + $0x11d0] sm:$0xff]  ;;  %v12946_v36 = vcombine.high %v716_v27, %v720_v17  ;;  %v12945_v54 = vcombine.low %v716_v27, %v720_v17 }
 0x391   :  { %v10568_v61 = vpop.f32.mrf.mxu1  ;;  %10845 = vmatprep.subr.bf16.mxu0 %v12586_v48  ;;  %v12826_v5 = vcombine.high %v596_v46, %v600_v53  ;;  %v12825_v63 = vcombine.low %v596_v46, %v600_v53  ;;  %v584_v28 = vld [vmem:[%s19543_s1 + $0x1170] sm:$0xff] }
 0x392   :  { %10885 = vmatpush2.bf16.msra.mxu1 %v12721_v35  ;;  %v708_v35 = vld [vmem:[%s19543_s1 + $0x1550] sm:$0xff]  ;;  %v12810_v8 = vcombine.high %v580_v40, %v584_v28 }
 0x393   :  { %v10569_v6 = vpop.f32.mrf.mxu1  ;;  %10886 = vmatprep.subr.bf16.mxu1 %v12714_v37  ;;  %v712_v48 = vld [vmem:[%s19543_s1 + $0x1570] sm:$0xff]  ;;  %v12817_v37 = vcombine.low %v588_v20, %v592_v4 }
 0x394   :  { %10846 = vmatpush2.bf16.msra.mxu0 %v12585_v38  ;;  %v12938_v61 = vcombine.high %v708_v35, %v712_v48  ;;  %v572_v38 = vld [vmem:[%s19543_s1 + $0x1110] sm:$0xff]  ;;  %v12809_v6 = vcombine.low %v580_v40, %v584_v28  ;;  %v12937_v46 = vcombine.low %v708_v35, %v712_v48 }
 0x395   :  { %10847 = vmatprep.subr.bf16.mxu0 %v12578_v1  ;;  %v700_v1 = vld [vmem:[%s19543_s1 + $0x1510] sm:$0xff] }
 0x396   :  { %10887 = vmatpush2.bf16.msra.mxu1 %v12713_v60  ;;  %v556_v17 = vld [vmem:[%s19543_s1 + $0x1090] sm:$0xff] }
 0x397   :  { %10888 = vmatprep.subr.bf16.mxu1 %v12706_v12  ;;  %v548_v35 = vld [vmem:[%s19543_s1 + $0x1050] sm:$0xff] }
 0x398   :  { %10848 = vmatpush2.bf16.msra.mxu0 %v12577_v7  ;;  %v568_v7 = vld [vmem:[%s19543_s1 + $0x10f0] sm:$0xff] }
 0x399   :  { %10899 = vmatprep.subr.bf16.mxu0 %v12826_v5  ;;  %v696_v5 = vld [vmem:[%s19543_s1 + $0x14f0] sm:$0xff]  ;;  %v12794_v4 = vcombine.high %v564_v57, %v568_v7 }
 0x39a   :  { %10889 = vmatpush2.bf16.msra.mxu1 %v12705_v24  ;;  %v692_v24 = vld [vmem:[%s19543_s1 + $0x14d0] sm:$0xff] }
 0x39b   :  { %10940 = vmatprep.subr.bf16.mxu1 %v12954_v59  ;;  %v10605_v42 = vpop.f32.mrf.mxu0  ;;  %10850 = vmatmul.mubr.bf16.vlgmr.msra.gmra.mxu0 %v14493_v47  ;;  %v12922_v27 = vcombine.high %v692_v24, %v696_v5  ;;  %v12921_v40 = vcombine.low %v692_v24, %v696_v5  ;;  %v552_v48 = vld [vmem:[%s19543_s1 + $0x1070] sm:$0xff] }
 0x39c   :  { %v17089_v52 = vadd.f32 %v10605_v42, %v10565_v34  ;;  %10900 = vmatpush1.bf16.msra.mxu0 %v12825_v63  ;;  %v576_v34 = vld [vmem:[%s19543_s1 + $0x1130] sm:$0xff]  ;;  %10931 = vmatprep.mubr.bf16.mxu0 %v14508_v55 }
 0x39d   :  { %10891 = vmatmul.mubr.bf16.vlgmr.msra.gmra.mxu1 %v14512_v56  ;;  %v10607_v51 = vpop.f32.mrf.mxu0  ;;  %10901 = vmatprep.subr.bf16.mxu0 %v12818_v2  ;;  %v12802_v53 = vcombine.high %v572_v38, %v576_v34  ;;  %v12801_v59 = vcombine.low %v572_v38, %v576_v34  ;;  %v560_v63 = vld [vmem:[%s19543_s1 + $0x10b0] sm:$0xff] }
 0x39e   :  { %10941 = vmatpush1.bf16.msra.mxu1 %v12953_v19  ;;  %v17092_v10 = vadd.f32 %v10607_v51, %v10567_v49  ;;  %v704_v49 = vld [vmem:[%s19543_s1 + $0x1530] sm:$0xff]  ;;  %10972 = vmatprep.mubr.bf16.mxu1 %v14529_v3  ;;  %v12786_v28 = vcombine.high %v556_v17, %v560_v63 }
 0x39f   :  { %10942 = vmatprep.subr.bf16.mxu1 %v12946_v36  ;;  %v10609_v60 = vpop.f32.mrf.mxu0  ;;  %v12930_v14 = vcombine.high %v700_v1, %v704_v49  ;;  %v12929_v20 = vcombine.low %v700_v1, %v704_v49  ;;  %v684_v19 = vld [vmem:[%s19543_s1 + $0x1490] sm:$0xff]  ;;  %v12793_v36 = vcombine.low %v564_v57, %v568_v7 }
 0x3a0   :  { %10902 = vmatpush1.bf16.msra.mxu0 %v12817_v37  ;;  %v688_v2 = vld [vmem:[%s19543_s1 + $0x14b0] sm:$0xff] }
 0x3a1   :  { %v10610_v12 = vpop.f32.mrf.mxu0  ;;  %10903 = vmatprep.subr.bf16.mxu0 %v12810_v8  ;;  %v12914_v42 = vcombine.high %v684_v19, %v688_v2  ;;  %v676_v37 = vld [vmem:[%s19543_s1 + $0x1450] sm:$0xff]  ;;  %v12913_v8 = vcombine.low %v684_v19, %v688_v2 }
 0x3a2   :  { %10943 = vmatpush1.bf16.msra.mxu1 %v12945_v54  ;;  %v680_v51 = vld [vmem:[%s19543_s1 + $0x1470] sm:$0xff]  ;;  %v12785_v54 = vcombine.low %v556_v17, %v560_v63 }
 0x3a3   :  { %10944 = vmatprep.subr.bf16.mxu1 %v12938_v61  ;;  %v12778_v61 = vcombine.high %v548_v35, %v552_v48  ;;  %v12906_v38 = vcombine.high %v676_v37, %v680_v51  ;;  %v540_v34 = vld [vmem:[%s19543_s1 + $0x1010] sm:$0xff]  ;;  %v12905_v12 = vcombine.low %v676_v37, %v680_v51 }
 0x3a4   :  { %10904 = vmatpush1.bf16.msra.mxu0 %v12809_v6  ;;  %v544_v60 = vld [vmem:[%s19543_s1 + $0x1030] sm:$0xff]  ;;  %v12777_v6 = vcombine.low %v548_v35, %v552_v48 }
 0x3a5   :  { %10905 = vmatprep.subr.bf16.mxu0 %v12802_v53  ;;  %v668_v1 = vld [vmem:[%s19543_s1 + $0x1410] sm:$0xff]  ;;  %v12769_v5 = vcombine.low %v540_v34, %v544_v60 }
 0x3a6   :  { %10945 = vmatpush1.bf16.msra.mxu1 %v12937_v46  ;;  %v672_v49 = vld [vmem:[%s19543_s1 + $0x1430] sm:$0xff]  ;;  %v12770_v46 = vcombine.high %v540_v34, %v544_v60 }
 0x3a7   :  { %10946 = vmatprep.subr.bf16.mxu1 %v12930_v14  ;;  %v12898_v53 = vcombine.high %v668_v1, %v672_v49  ;;  %v660_v14 = vld [vmem:[%s19543_s1 + $0x13d0] sm:$0xff] }
 0x3a8   :  { %10906 = vmatpush1.bf16.msra.mxu0 %v12801_v59  ;;  %v664_v57 = vld [vmem:[%s19543_s1 + $0x13f0] sm:$0xff]  ;;  %v12897_v59 = vcombine.low %v668_v1, %v672_v49 }
 0x3a9   :  { %10907 = vmatprep.subr.bf16.mxu0 %v12794_v4  ;;  %v788_v7 = vld [vmem:[%s19543_s1 + $0x17d0] sm:$0xff]  ;;  %v12889_v2 = vcombine.low %v660_v14, %v664_v57 }
 0x3aa   :  { %10947 = vmatpush1.bf16.msra.mxu1 %v12929_v20  ;;  %v792_v24 = vld [vmem:[%s19543_s1 + $0x17f0] sm:$0xff]  ;;  %v12890_v20 = vcombine.high %v660_v14, %v664_v57 }
 0x3ab   :  { %10948 = vmatprep.subr.bf16.mxu1 %v12922_v27  ;;  %v13018_v4 = vcombine.high %v788_v7, %v792_v24  ;;  %v652_v27 = vld [vmem:[%s19543_s1 + $0x1390] sm:$0xff] }
 0x3ac   :  { %10908 = vmatpush1.bf16.msra.mxu0 %v12793_v36  ;;  %v656_v17 = vld [vmem:[%s19543_s1 + $0x13b0] sm:$0xff]  ;;  %v13017_v36 = vcombine.low %v788_v7, %v792_v24 }
 0x3ad   :  { %10909 = vmatprep.subr.bf16.mxu0 %v12786_v28  ;;  %v780_v63 = vld [vmem:[%s19543_s1 + $0x1790] sm:$0xff]  ;;  %v12881_v51 = vcombine.low %v652_v27, %v656_v17 }
 0x3ae   :  { %10949 = vmatpush1.bf16.msra.mxu1 %v12921_v40  ;;  %v784_v19 = vld [vmem:[%s19543_s1 + $0x17b0] sm:$0xff]  ;;  %v12882_v40 = vcombine.high %v652_v27, %v656_v17 }
 0x3af   :  { %10950 = vmatprep.subr.bf16.mxu1 %v12914_v42  ;;  %v13010_v28 = vcombine.high %v780_v63, %v784_v19  ;;  %v644_v42 = vld [vmem:[%s19543_s1 + $0x1350] sm:$0xff] }
 0x3b0   :  { %10910 = vmatpush1.bf16.msra.mxu0 %v12785_v54  ;;  %v648_v35 = vld [vmem:[%s19543_s1 + $0x1370] sm:$0xff]  ;;  %v13009_v54 = vcombine.low %v780_v63, %v784_v19 }
 0x3b1   :  { %10911 = vmatprep.subr.bf16.mxu0 %v12778_v61  ;;  %v772_v48 = vld [vmem:[%s19543_s1 + $0x1750] sm:$0xff]  ;;  %v12873_v49 = vcombine.low %v644_v42, %v648_v35 }
 0x3b2   :  { %10951 = vmatpush1.bf16.msra.mxu1 %v12913_v8  ;;  %v776_v37 = vld [vmem:[%s19543_s1 + $0x1770] sm:$0xff]  ;;  %v12874_v8 = vcombine.high %v644_v42, %v648_v35 }
 0x3b3   :  { %10952 = vmatprep.subr.bf16.mxu1 %v12906_v38  ;;  %v13002_v61 = vcombine.high %v772_v48, %v776_v37  ;;  %v636_v38 = vld [vmem:[%s19543_s1 + $0x1310] sm:$0xff] }
 0x3b4   :  { %10912 = vmatpush1.bf16.msra.mxu0 %v12777_v6  ;;  %v640_v34 = vld [vmem:[%s19543_s1 + $0x1330] sm:$0xff]  ;;  %v13001_v6 = vcombine.low %v772_v48, %v776_v37 }
 0x3b5   :  { %10913 = vmatprep.subr.bf16.mxu0 %v12770_v46  ;;  %v764_v60 = vld [vmem:[%s19543_s1 + $0x1710] sm:$0xff]  ;;  %v12865_v24 = vcombine.low %v636_v38, %v640_v34 }
 0x3b6   :  { %10953 = vmatpush1.bf16.msra.mxu1 %v12905_v12  ;;  %v768_v1 = vld [vmem:[%s19543_s1 + $0x1730] sm:$0xff]  ;;  %v12866_v12 = vcombine.high %v636_v38, %v640_v34 }
 0x3b7   :  { %10954 = vmatprep.subr.bf16.mxu1 %v12898_v53  ;;  %v12994_v46 = vcombine.high %v764_v60, %v768_v1  ;;  %v628_v53 = vld [vmem:[%s19543_s1 + $0x12d0] sm:$0xff] }
 0x3b8   :  { %10914 = vmatpush1.bf16.msra.mxu0 %v12769_v5  ;;  %v632_v14 = vld [vmem:[%s19543_s1 + $0x12f0] sm:$0xff]  ;;  %v12993_v5 = vcombine.low %v764_v60, %v768_v1 }
 0x3b9   :  { %10915 = vmatprep.subr.bf16.mxu0 %v12890_v20  ;;  %v756_v57 = vld [vmem:[%s19543_s1 + $0x16d0] sm:$0xff]  ;;  %v12857_v19 = vcombine.low %v628_v53, %v632_v14 }
 0x3ba   :  { %10955 = vmatpush1.bf16.msra.mxu1 %v12897_v59  ;;  %v760_v7 = vld [vmem:[%s19543_s1 + $0x16f0] sm:$0xff]  ;;  %v12858_v59 = vcombine.high %v628_v53, %v632_v14 }
 0x3bb   :  { %10956 = vmatprep.subr.bf16.mxu1 %v13018_v4  ;;  %v12986_v20 = vcombine.high %v756_v57, %v760_v7  ;;  %v620_v4 = vld [vmem:[%s19543_s1 + $0x1290] sm:$0xff] }
 0x3bc   :  { %10916 = vmatpush2.bf16.msra.mxu0 %v12889_v2  ;;  %v624_v27 = vld [vmem:[%s19543_s1 + $0x12b0] sm:$0xff]  ;;  %v12985_v2 = vcombine.low %v756_v57, %v760_v7 }
 0x3bd   :  { %10917 = vmatprep.subr.bf16.mxu0 %v12882_v40  ;;  %v748_v17 = vld [vmem:[%s19543_s1 + $0x1690] sm:$0xff] }
 0x3be   :  { %10957 = vmatpush2.bf16.msra.mxu1 %v13017_v36  ;;  %v752_v63 = vld [vmem:[%s19543_s1 + $0x16b0] sm:$0xff]  ;;  %v12850_v36 = vcombine.high %v620_v4, %v624_v27 }
 0x3bf   :  { %10958 = vmatprep.subr.bf16.mxu1 %v13010_v28  ;;  %v12978_v40 = vcombine.high %v748_v17, %v752_v63  ;;  %v612_v28 = vld [vmem:[%s19543_s1 + $0x1250] sm:$0xff] }
 0x3c0   :  { %10918 = vmatpush2.bf16.msra.mxu0 %v12881_v51  ;;  %v616_v42 = vld [vmem:[%s19543_s1 + $0x1270] sm:$0xff]  ;;  %v12849_v51 = vcombine.low %v620_v4, %v624_v27 }
 0x3c1   :  { %10919 = vmatprep.subr.bf16.mxu0 %v12874_v8  ;;  %v740_v35 = vld [vmem:[%s19543_s1 + $0x1650] sm:$0xff]  ;;  %v12977_v8 = vcombine.low %v748_v17, %v752_v63 }
 0x3c2   :  { %10959 = vmatpush2.bf16.msra.mxu1 %v13009_v54  ;;  %v744_v48 = vld [vmem:[%s19543_s1 + $0x1670] sm:$0xff] }
 0x3c3   :  { %10960 = vmatprep.subr.bf16.mxu1 %v13002_v61  ;;  %v12842_v61 = vcombine.high %v612_v28, %v616_v42  ;;  %v12970_v34 = vcombine.high %v740_v35, %v744_v48  ;;  %v604_v60 = vld [vmem:[%s19543_s1 + $0x1210] sm:$0xff]  ;;  %v12969_v53 = vcombine.low %v740_v35, %v744_v48 }
 0x3c4   :  { %10920 = vmatpush2.bf16.msra.mxu0 %v12873_v49  ;;  %v608_v1 = vld [vmem:[%s19543_s1 + $0x1230] sm:$0xff] }
 0x3c5   :  { %10921 = vmatprep.subr.bf16.mxu0 %v12866_v12  ;;  %v12834_v14 = vcombine.high %v604_v60, %v608_v1  ;;  %v844_v63 = vld [vmem:[%s19543_s1 + $0x1990] sm:$0xff] }
 0x3c6   :  { %10961 = vmatpush2.bf16.msra.mxu1 %v13001_v6  ;;  %v736_v6 = vld [vmem:[%s19543_s1 + $0x1630] sm:$0xff] }
 0x3c7   :  { %10962 = vmatprep.subr.bf16.mxu1 %v12994_v46  ;;  %v12841_v46 = vcombine.low %v612_v28, %v616_v42  ;;  %v836_v48 = vld [vmem:[%s19543_s1 + $0x1950] sm:$0xff] }
 0x3c8   :  { %10922 = vmatpush2.bf16.msra.mxu0 %v12865_v24  ;;  %v856_v24 = vld [vmem:[%s19543_s1 + $0x19f0] sm:$0xff] }
 0x3c9   :  { %10923 = vmatprep.subr.bf16.mxu0 %v12858_v59  ;;  %v984_v59 = vld [vmem:[%s19543_s1 + $0x1df0] sm:$0xff] }
 0x3ca   :  { %10963 = vmatpush2.bf16.msra.mxu1 %v12993_v5  ;;  %v980_v5 = vld [vmem:[%s19543_s1 + $0x1dd0] sm:$0xff] }
 0x3cb   :  { %10964 = vmatprep.subr.bf16.mxu1 %v12986_v20  ;;  %v12833_v20 = vcombine.low %v604_v60, %v608_v1  ;;  %v13210_v17 = vcombine.high %v980_v5, %v984_v59  ;;  %v13209_v28 = vcombine.low %v980_v5, %v984_v59 }
 0x3cc   :  { %10924 = vmatpush2.bf16.msra.mxu0 %v12857_v19  ;;  %v848_v19 = vld [vmem:[%s19543_s1 + $0x19b0] sm:$0xff] }
 0x3cd   :  { %v10646_v37 = vpop.f32.mrf.mxu1  ;;  %10925 = vmatprep.subr.bf16.mxu0 %v12850_v36  ;;  %v976_v36 = vld [vmem:[%s19543_s1 + $0x1db0] sm:$0xff]  ;;  %v13074_v42 = vcombine.high %v844_v63, %v848_v19  ;;  %v13073_v60 = vcombine.low %v844_v63, %v848_v19 }
 0x3ce   :  { %v10647_v54 = vadd.f32 %v10646_v37, %v17089_v52  ;;  %10965 = vmatpush2.bf16.msra.mxu1 %v12985_v2  ;;  %v732_v52 = vld [vmem:[%s19543_s1 + $0x1610] sm:$0xff] }
 0x3cf   :  { %v10648_v38 = vpop.f32.mrf.mxu1  ;;  %10966 = vmatprep.subr.bf16.mxu1 %v12978_v40  ;;  %v12962_v7 = vcombine.high %v732_v52, %v736_v6  ;;  %v12961_v4 = vcombine.low %v732_v52, %v736_v6  ;;  %v972_v2 = vld [vmem:[%s19543_s1 + $0x1d90] sm:$0xff] }
 0x3d0   :  { %v10649_v49 = vadd.f32 %v10648_v38, %v17092_v10  ;;  %10926 = vmatpush2.bf16.msra.mxu0 %v12849_v51  ;;  %v852_v10 = vld [vmem:[%s19543_s1 + $0x19d0] sm:$0xff]  ;;  %v13202_v35 = vcombine.high %v972_v2, %v976_v36  ;;  %v13201_v52 = vcombine.low %v972_v2, %v976_v36 }
 0x3d1   :  { %v10650_v12 = vpop.f32.mrf.mxu1  ;;  %10927 = vmatprep.subr.bf16.mxu0 %v12842_v61  ;;  %v13082_v27 = vcombine.high %v852_v10, %v856_v24  ;;  %v13081_v40 = vcombine.low %v852_v10, %v856_v24  ;;  %v840_v37 = vld [vmem:[%s19543_s1 + $0x1970] sm:$0xff] }
 0x3d2   :  { %10967 = vmatpush2.bf16.msra.mxu1 %v12977_v8  ;;  %v964_v8 = vld [vmem:[%s19543_s1 + $0x1d50] sm:$0xff]  ;;  %v13066_v6 = vcombine.high %v836_v48, %v840_v37  ;;  %v13065_v59 = vcombine.low %v836_v48, %v840_v37 }
 0x3d3   :  { %v10651_v57 = vpop.f32.mrf.mxu1  ;;  %10968 = vmatprep.subr.bf16.mxu1 %v12970_v34  ;;  %v968_v61 = vld [vmem:[%s19543_s1 + $0x1d70] sm:$0xff] }
 0x3d4   :  { %10928 = vmatpush2.bf16.msra.mxu0 %v12841_v46  ;;  %v832_v57 = vld [vmem:[%s19543_s1 + $0x1930] sm:$0xff] }
 0x3d5   :  { %10929 = vmatprep.subr.bf16.mxu0 %v12834_v14  ;;  %v13194_v14 = vcombine.high %v964_v8, %v968_v61  ;;  %v956_v10 = vld [vmem:[%s19543_s1 + $0x1d10] sm:$0xff] }
 0x3d6   :  { %10969 = vmatpush2.bf16.msra.mxu1 %v12969_v53  ;;  %v820_v19 = vld [vmem:[%s19543_s1 + $0x18d0] sm:$0xff] }
 0x3d7   :  { %10970 = vmatprep.subr.bf16.mxu1 %v12962_v7  ;;  %v824_v2 = vld [vmem:[%s19543_s1 + $0x18f0] sm:$0xff] }
 0x3d8   :  { %10930 = vmatpush2.bf16.msra.mxu0 %v12833_v20  ;;  %v948_v36 = vld [vmem:[%s19543_s1 + $0x1cd0] sm:$0xff] }
 0x3d9   :  { %10981 = vmatprep.subr.bf16.mxu0 %v13082_v27  ;;  %v812_v37 = vld [vmem:[%s19543_s1 + $0x1890] sm:$0xff] }
 0x3da   :  { %10971 = vmatpush2.bf16.msra.mxu1 %v12961_v4  ;;  %v13193_v4 = vcombine.low %v964_v8, %v968_v61  ;;  %v940_v8 = vld [vmem:[%s19543_s1 + $0x1c90] sm:$0xff] }
 0x3db   :  { %11022 = vmatprep.subr.bf16.mxu1 %v13210_v17  ;;  %v10687_v51 = vpop.f32.mrf.mxu0  ;;  %10932 = vmatmul.mubr.bf16.vlgmr.msra.gmra.mxu0 %v14711_v21  ;;  %v944_v61 = vld [vmem:[%s19543_s1 + $0x1cb0] sm:$0xff] }
 0x3dc   :  { %v10688_v38 = vadd.f32 %v10687_v51, %v10647_v54  ;;  %10982 = vmatpush1.bf16.msra.mxu0 %v13081_v40  ;;  %v828_v54 = vld [vmem:[%s19543_s1 + $0x1910] sm:$0xff]  ;;  %11013 = vmatprep.mubr.bf16.mxu0 %v14726_v31 }
 0x3dd   :  { %v10728_v34 = vpop.f32.mrf.mxu1  ;;  %10973 = vmatmul.mubr.bf16.vlgmr.msra.gmra.mxu1 %v14730_v32  ;;  %v10689_v1 = vpop.f32.mrf.mxu0  ;;  %10983 = vmatprep.subr.bf16.mxu0 %v13074_v42  ;;  %v13058_v27 = vcombine.high %v828_v54, %v832_v57  ;;  %v952_v40 = vld [vmem:[%s19543_s1 + $0x1cf0] sm:$0xff] }
 0x3de   :  { %11023 = vmatpush1.bf16.msra.mxu1 %v13209_v28  ;;  %v17292_v12 = vadd.f32 %v10728_v34, %v10688_v38  ;;  %v10690_v46 = vadd.f32 %v10689_v1, %v10649_v49  ;;  %v960_v49 = vld [vmem:[%s19543_s1 + $0x1d30] sm:$0xff]  ;;  %11054 = vmatprep.mubr.bf16.mxu1 %v14747_v44  ;;  %v13057_v28 = vcombine.low %v828_v54, %v832_v57 }
 0x3df   :  { %v10730_v53 = vpop.f32.mrf.mxu1  ;;  %11024 = vmatprep.subr.bf16.mxu1 %v13202_v35  ;;  %v10691_v7 = vpop.f32.mrf.mxu0  ;;  %v13186_v63 = vcombine.high %v956_v10, %v960_v49  ;;  %v13185_v42 = vcombine.low %v956_v10, %v960_v49  ;;  %v13050_v35 = vcombine.high %v820_v19, %v824_v2  ;;  %v13178_v48 = vcombine.high %v948_v36, %v952_v40  ;;  %v816_v51 = vld [vmem:[%s19543_s1 + $0x18b0] sm:$0xff] }
 0x3e0   :  { %v17308_v24 = vadd.f32 %v10730_v53, %v10690_v46  ;;  %10984 = vmatpush1.bf16.msra.mxu0 %v13073_v60  ;;  %v13049_v38 = vcombine.low %v820_v19, %v824_v2  ;;  %v13177_v34 = vcombine.low %v948_v36, %v952_v40  ;;  %v13042_v60 = vcombine.high %v812_v37, %v816_v51  ;;  %v932_v46 = vld [vmem:[%s19543_s1 + $0x1c50] sm:$0xff] }
 0x3e1   :  { %v10732_v5 = vpop.f32.mrf.mxu1  ;;  %v10692_v20 = vpop.f32.mrf.mxu0  ;;  %10985 = vmatprep.subr.bf16.mxu0 %v13066_v6  ;;  %v13170_v1 = vcombine.high %v940_v8, %v944_v61  ;;  %v808_v6 = vld [vmem:[%s19543_s1 + $0x1870] sm:$0xff]  ;;  %v13169_v54 = vcombine.low %v940_v8, %v944_v61 }
 0x3e2   :  { %11025 = vmatpush1.bf16.msra.mxu1 %v13201_v52  ;;  %v804_v52 = vld [vmem:[%s19543_s1 + $0x1850] sm:$0xff] }
 0x3e3   :  { %v10733_v17 = vpop.f32.mrf.mxu1  ;;  %11026 = vmatprep.subr.bf16.mxu1 %v13194_v14  ;;  %v936_v53 = vld [vmem:[%s19543_s1 + $0x1c70] sm:$0xff]  ;;  %v13041_v14 = vcombine.low %v812_v37, %v816_v51  ;;  %v13034_v57 = vcombine.high %v804_v52, %v808_v6  ;;  %v13033_v20 = vcombine.low %v804_v52, %v808_v6 }
 0x3e4   :  { %10986 = vmatpush1.bf16.msra.mxu0 %v13065_v59  ;;  %v13162_v7 = vcombine.high %v932_v46, %v936_v53  ;;  %v796_v10 = vld [vmem:[%s19543_s1 + $0x1810] sm:$0xff] }
 0x3e5   :  { %10987 = vmatprep.subr.bf16.mxu0 %v13058_v27  ;;  %v800_v49 = vld [vmem:[%s19543_s1 + $0x1830] sm:$0xff] }
 0x3e6   :  { %11027 = vmatpush1.bf16.msra.mxu1 %v13193_v4  ;;  %v924_v5 = vld [vmem:[%s19543_s1 + $0x1c10] sm:$0xff]  ;;  %v13161_v4 = vcombine.low %v932_v46, %v936_v53  ;;  %v13026_v27 = vcombine.high %v796_v10, %v800_v49  ;;  %v13025_v40 = vcombine.low %v796_v10, %v800_v49 }
 0x3e7   :  { %11028 = vmatprep.subr.bf16.mxu1 %v13186_v63  ;;  %v928_v59 = vld [vmem:[%s19543_s1 + $0x1c30] sm:$0xff] }
 0x3e8   :  { %10988 = vmatpush1.bf16.msra.mxu0 %v13057_v28  ;;  %v13154_v17 = vcombine.high %v924_v5, %v928_v59  ;;  %v916_v63 = vld [vmem:[%s19543_s1 + $0x1bd0] sm:$0xff]  ;;  %v13153_v28 = vcombine.low %v924_v5, %v928_v59 }
 0x3e9   :  { %10989 = vmatprep.subr.bf16.mxu0 %v13050_v35  ;;  %v920_v19 = vld [vmem:[%s19543_s1 + $0x1bf0] sm:$0xff] }
 0x3ea   :  { %11029 = vmatpush1.bf16.msra.mxu1 %v13185_v42  ;;  %v1044_v2 = vld [vmem:[%s19543_s1 + $0x1fd0] sm:$0xff]  ;;  %v13146_v42 = vcombine.high %v916_v63, %v920_v19  ;;  %v13145_v61 = vcombine.low %v916_v63, %v920_v19 }
 0x3eb   :  { %11030 = vmatprep.subr.bf16.mxu1 %v13178_v48  ;;  %v1048_v36 = vld [vmem:[%s19543_s1 + $0x1ff0] sm:$0xff] }
 0x3ec   :  { %10990 = vmatpush1.bf16.msra.mxu0 %v13049_v38  ;;  %v13274_v35 = vcombine.high %v1044_v2, %v1048_v36  ;;  %v908_v48 = vld [vmem:[%s19543_s1 + $0x1b90] sm:$0xff]  ;;  %v13273_v38 = vcombine.low %v1044_v2, %v1048_v36 }
 0x3ed   :  { %10991 = vmatprep.subr.bf16.mxu0 %v13042_v60  ;;  %v912_v37 = vld [vmem:[%s19543_s1 + $0x1bb0] sm:$0xff] }
 0x3ee   :  { %11031 = vmatpush1.bf16.msra.mxu1 %v13177_v34  ;;  %v1036_v51 = vld [vmem:[%s19543_s1 + $0x1f90] sm:$0xff]  ;;  %v13138_v34 = vcombine.high %v908_v48, %v912_v37  ;;  %v13137_v53 = vcombine.low %v908_v48, %v912_v37 }
 0x3ef   :  { %11032 = vmatprep.subr.bf16.mxu1 %v13170_v1  ;;  %v1040_v8 = vld [vmem:[%s19543_s1 + $0x1fb0] sm:$0xff] }
 0x3f0   :  { %10992 = vmatpush1.bf16.msra.mxu0 %v13041_v14  ;;  %v13266_v60 = vcombine.high %v1036_v51, %v1040_v8  ;;  %v900_v1 = vld [vmem:[%s19543_s1 + $0x1b50] sm:$0xff]  ;;  %v13265_v14 = vcombine.low %v1036_v51, %v1040_v8 }
 0x3f1   :  { %10993 = vmatprep.subr.bf16.mxu0 %v13034_v57  ;;  %v904_v52 = vld [vmem:[%s19543_s1 + $0x1b70] sm:$0xff] }
 0x3f2   :  { %11033 = vmatpush1.bf16.msra.mxu1 %v13169_v54  ;;  %v1028_v6 = vld [vmem:[%s19543_s1 + $0x1f50] sm:$0xff]  ;;  %v13130_v54 = vcombine.high %v900_v1, %v904_v52  ;;  %v13129_v59 = vcombine.low %v900_v1, %v904_v52 }
 0x3f3   :  { %11034 = vmatprep.subr.bf16.mxu1 %v13162_v7  ;;  %v1032_v46 = vld [vmem:[%s19543_s1 + $0x1f70] sm:$0xff] }
 0x3f4   :  { %10994 = vmatpush1.bf16.msra.mxu0 %v13033_v20  ;;  %v13258_v57 = vcombine.high %v1028_v6, %v1032_v46  ;;  %v892_v7 = vld [vmem:[%s19543_s1 + $0x1b10] sm:$0xff]  ;;  %v13257_v20 = vcombine.low %v1028_v6, %v1032_v46 }
 0x3f5   :  { %10995 = vmatprep.subr.bf16.mxu0 %v13026_v27  ;;  %v896_v10 = vld [vmem:[%s19543_s1 + $0x1b30] sm:$0xff] }
 0x3f6   :  { %11035 = vmatpush1.bf16.msra.mxu1 %v13161_v4  ;;  %v1020_v49 = vld [vmem:[%s19543_s1 + $0x1f10] sm:$0xff]  ;;  %v13122_v4 = vcombine.high %v892_v7, %v896_v10  ;;  %v13121_v36 = vcombine.low %v892_v7, %v896_v10 }
 0x3f7   :  { %11036 = vmatprep.subr.bf16.mxu1 %v13154_v17  ;;  %v1024_v5 = vld [vmem:[%s19543_s1 + $0x1f30] sm:$0xff] }
 0x3f8   :  { %10996 = vmatpush1.bf16.msra.mxu0 %v13025_v40  ;;  %v13250_v27 = vcombine.high %v1020_v49, %v1024_v5  ;;  %v884_v17 = vld [vmem:[%s19543_s1 + $0x1ad0] sm:$0xff]  ;;  %v13249_v40 = vcombine.low %v1020_v49, %v1024_v5 }
 0x3f9   :  { %10997 = vmatprep.subr.bf16.mxu0 %v13146_v42  ;;  %v888_v63 = vld [vmem:[%s19543_s1 + $0x1af0] sm:$0xff] }
 0x3fa   :  { %11037 = vmatpush1.bf16.msra.mxu1 %v13153_v28  ;;  %v1012_v19 = vld [vmem:[%s19543_s1 + $0x1ed0] sm:$0xff]  ;;  %v13114_v28 = vcombine.high %v884_v17, %v888_v63  ;;  %v13113_v8 = vcombine.low %v884_v17, %v888_v63 }
 0x3fb   :  { %11038 = vmatprep.subr.bf16.mxu1 %v13274_v35  ;;  %v1016_v2 = vld [vmem:[%s19543_s1 + $0x1ef0] sm:$0xff] }
 0x3fc   :  { %10998 = vmatpush2.bf16.msra.mxu0 %v13145_v61  ;;  %v13242_v42 = vcombine.high %v1012_v19, %v1016_v2  ;;  %v876_v35 = vld [vmem:[%s19543_s1 + $0x1a90] sm:$0xff]  ;;  %v13241_v61 = vcombine.low %v1012_v19, %v1016_v2 }
 0x3fd   :  { %10999 = vmatprep.subr.bf16.mxu0 %v13138_v34  ;;  %v880_v48 = vld [vmem:[%s19543_s1 + $0x1ab0] sm:$0xff] }
 0x3fe   :  { %11039 = vmatpush2.bf16.msra.mxu1 %v13273_v38  ;;  %v1004_v37 = vld [vmem:[%s19543_s1 + $0x1e90] sm:$0xff]  ;;  %v13106_v38 = vcombine.high %v876_v35, %v880_v48  ;;  %v13105_v46 = vcombine.low %v876_v35, %v880_v48  ;;  %v1618_v35 = vsub.s32 5, %v14099_v43 }
 0x3ff   :  { %11040 = vmatprep.subr.bf16.mxu1 %v13266_v60  ;;  %v1008_v51 = vld [vmem:[%s19543_s1 + $0x1eb0] sm:$0xff] }
 0x400   :  { %11000 = vmatpush2.bf16.msra.mxu0 %v13137_v53  ;;  %v13234_v34 = vcombine.high %v1004_v37, %v1008_v51  ;;  %v868_v60 = vld [vmem:[%s19543_s1 + $0x1a50] sm:$0xff]  ;;  %v13233_v53 = vcombine.low %v1004_v37, %v1008_v51 }
 0x401   :  { %11001 = vmatprep.subr.bf16.mxu0 %v13130_v54  ;;  %v872_v1 = vld [vmem:[%s19543_s1 + $0x1a70] sm:$0xff] }
 0x402   :  { %11041 = vmatpush2.bf16.msra.mxu1 %v13265_v14  ;;  %v996_v52 = vld [vmem:[%s19543_s1 + $0x1e50] sm:$0xff]  ;;  %v13098_v14 = vcombine.high %v868_v60, %v872_v1  ;;  %v13097_v5 = vcombine.low %v868_v60, %v872_v1 }
 0x403   :  { %11042 = vmatprep.subr.bf16.mxu1 %v13258_v57  ;;  %v1000_v6 = vld [vmem:[%s19543_s1 + $0x1e70] sm:$0xff] }
 0x404   :  { %11002 = vmatpush2.bf16.msra.mxu0 %v13129_v59  ;;  %v13226_v54 = vcombine.high %v996_v52, %v1000_v6  ;;  %v860_v57 = vld [vmem:[%s19543_s1 + $0x1a10] sm:$0xff]  ;;  %v13225_v59 = vcombine.low %v996_v52, %v1000_v6 }
 0x405   :  { %11003 = vmatprep.subr.bf16.mxu0 %v13122_v4  ;;  %v864_v7 = vld [vmem:[%s19543_s1 + $0x1a30] sm:$0xff] }
 0x406   :  { %11043 = vmatpush2.bf16.msra.mxu1 %v13257_v20  ;;  %v988_v10 = vld [vmem:[%s19543_s1 + $0x1e10] sm:$0xff]  ;;  %v13090_v20 = vcombine.high %v860_v57, %v864_v7  ;;  %v13089_v2 = vcombine.low %v860_v57, %v864_v7 }
 0x407   :  { %11044 = vmatprep.subr.bf16.mxu1 %v13250_v27  ;;  %v992_v49 = vld [vmem:[%s19543_s1 + $0x1e30] sm:$0xff] }
 0x408   :  { %11004 = vmatpush2.bf16.msra.mxu0 %v13121_v36  ;;  %v13218_v4 = vcombine.high %v988_v10, %v992_v49  ;;  %v1108_v27 = vld [vmem:[%s19543_s1 + $0x21d0] sm:$0xff]  ;;  %v1614_v36 = vsub.s32 4, %v14099_v43 }
 0x409   :  { %11005 = vmatprep.subr.bf16.mxu0 %v13114_v28  ;;  %v1112_v17 = vld [vmem:[%s19543_s1 + $0x21f0] sm:$0xff] }
 0x40a   :  { %11045 = vmatpush2.bf16.msra.mxu1 %v13249_v40  ;;  %v1236_v63 = vld [vmem:[%s19543_s1 + $0x25d0] sm:$0xff]  ;;  %v13217_v40 = vcombine.low %v988_v10, %v992_v49  ;;  %v13338_v28 = vcombine.high %v1108_v27, %v1112_v17 }
 0x40b   :  { %11046 = vmatprep.subr.bf16.mxu1 %v13242_v42  ;;  %v1240_v19 = vld [vmem:[%s19543_s1 + $0x25f0] sm:$0xff] }
 0x40c   :  { %11006 = vmatpush2.bf16.msra.mxu0 %v13113_v8  ;;  %v13466_v42 = vcombine.high %v1236_v63, %v1240_v19  ;;  %v1100_v48 = vld [vmem:[%s19543_s1 + $0x2190] sm:$0xff]  ;;  %v13465_v60 = vcombine.low %v1236_v63, %v1240_v19 }
 0x40d   :  { %11007 = vmatprep.subr.bf16.mxu0 %v13106_v38  ;;  %v1104_v37 = vld [vmem:[%s19543_s1 + $0x21b0] sm:$0xff] }
 0x40e   :  { %11047 = vmatpush2.bf16.msra.mxu1 %v13241_v61  ;;  %v1228_v51 = vld [vmem:[%s19543_s1 + $0x2590] sm:$0xff]  ;;  %v13975_v61 = vld [vmem:[%s19544_s2] sm:$0xff]  ;;  %v13330_v1 = vcombine.high %v1100_v48, %v1104_v37  ;;  %v13329_v49 = vcombine.low %v1100_v48, %v1104_v37 }
 0x40f   :  { %11048 = vmatprep.subr.bf16.mxu1 %v13234_v34  ;;  %v1232_v8 = vld [vmem:[%s19543_s1 + $0x25b0] sm:$0xff]  ;;  %v1615_v38 = vrot.slane %v13975_v61, %v1614_v36  ;;  %v13337_v34 = vcombine.low %v1108_v27, %v1112_v17  ;;  %v1619_v52 = vrot.slane %v13975_v61, %v1618_v35 }
 0x410   :  { %11008 = vmatpush2.bf16.msra.mxu0 %v13105_v46  ;;  %v13458_v6 = vcombine.high %v1228_v51, %v1232_v8  ;;  %v1092_v46 = vld [vmem:[%s19543_s1 + $0x2150] sm:$0xff] }
 0x411   :  { %11009 = vmatprep.subr.bf16.mxu0 %v13098_v14  ;;  %v1224_v57 = vld [vmem:[%s19543_s1 + $0x2570] sm:$0xff] }
 0x412   :  { %11049 = vmatpush2.bf16.msra.mxu1 %v13233_v53  ;;  %v1096_v53 = vld [vmem:[%s19543_s1 + $0x2170] sm:$0xff] }
 0x413   :  { %11050 = vmatprep.subr.bf16.mxu1 %v13226_v54  ;;  %v1220_v54 = vld [vmem:[%s19543_s1 + $0x2550] sm:$0xff]  ;;  %v13321_v48 = vcombine.low %v1092_v46, %v1096_v53 }
 0x414   :  { %11010 = vmatpush2.bf16.msra.mxu0 %v13097_v5  ;;  %v13450_v63 = vcombine.high %v1220_v54, %v1224_v57  ;;  %v1084_v19 = vld [vmem:[%s19543_s1 + $0x2110] sm:$0xff] }
 0x415   :  { %11011 = vmatprep.subr.bf16.mxu0 %v13090_v20  ;;  %v13322_v20 = vcombine.high %v1092_v46, %v1096_v53 }
 0x416   :  { %11051 = vmatpush2.bf16.msra.mxu1 %v13225_v59  ;;  %v13457_v59 = vcombine.low %v1228_v51, %v1232_v8  ;;  %v13449_v51 = vcombine.low %v1220_v54, %v1224_v57  ;;  %v1068_v54 = vld [vmem:[%s19543_s1 + $0x2090] sm:$0xff] }
 0x417   :  { %11052 = vmatprep.subr.bf16.mxu1 %v13218_v4  ;;  %v1072_v57 = vld [vmem:[%s19543_s1 + $0x20b0] sm:$0xff] }
 0x418   :  { %11012 = vmatpush2.bf16.msra.mxu0 %v13089_v2  ;;  %v1088_v2 = vld [vmem:[%s19543_s1 + $0x2130] sm:$0xff] }
 0x419   :  { %11063 = vmatprep.subr.bf16.mxu0 %v13338_v28  ;;  %v1216_v28 = vld [vmem:[%s19543_s1 + $0x2530] sm:$0xff]  ;;  %v13314_v8 = vcombine.high %v1084_v19, %v1088_v2 }
 0x41a   :  { %11053 = vmatpush2.bf16.msra.mxu1 %v13217_v40  ;;  %v1212_v40 = vld [vmem:[%s19543_s1 + $0x2510] sm:$0xff] }
 0x41b   :  { %11104 = vmatprep.subr.bf16.mxu1 %v13466_v42  ;;  %v10769_v14 = vpop.f32.mrf.mxu0  ;;  %11014 = vmatmul.mubr.bf16.vlgmr.msra.gmra.mxu0 %v14934_v11  ;;  %v13441_v46 = vcombine.low %v1212_v40, %v1216_v28 }
 0x41c   :  { %v10770_v7 = vadd.f32 %v10769_v14, %v1615_v38  ;;  %11064 = vmatpush1.bf16.msra.mxu0 %v13337_v34  ;;  %11095 = vmatprep.mubr.bf16.mxu0 %v14953_v23  ;;  %v13442_v38 = vcombine.high %v1212_v40, %v1216_v28  ;;  %v1076_v34 = vld [vmem:[%s19543_s1 + $0x20d0] sm:$0xff] }
 0x41d   :  { %v10810_v10 = vpop.f32.mrf.mxu1  ;;  %11055 = vmatmul.mubr.bf16.vlgmr.msra.gmra.mxu1 %v14957_v26  ;;  %v10771_v5 = vpop.f32.mrf.mxu0  ;;  %11065 = vmatprep.subr.bf16.mxu0 %v13330_v1  ;;  %v1204_v1 = vld [vmem:[%s19543_s1 + $0x24d0] sm:$0xff] }
 0x41e   :  { %11105 = vmatpush1.bf16.msra.mxu1 %v13465_v60  ;;  %v17497_v4 = vadd.f32 %v10810_v10, %v10770_v7  ;;  %v10772_v27 = vadd.f32 %v10771_v5, %v1619_v52  ;;  %11136 = vmatprep.mubr.bf16.mxu1 %v14974_v41  ;;  %v1080_v60 = vld [vmem:[%s19543_s1 + $0x20f0] sm:$0xff] }
 0x41f   :  { %v10812_v17 = vpop.f32.mrf.mxu1  ;;  %11106 = vmatprep.subr.bf16.mxu1 %v13458_v6  ;;  %v10773_v36 = vpop.f32.mrf.mxu0  ;;  %v1208_v52 = vld [vmem:[%s19543_s1 + $0x24f0] sm:$0xff]  ;;  %v13313_v6 = vcombine.low %v1084_v19, %v1088_v2  ;;  %v13306_v53 = vcombine.high %v1076_v34, %v1080_v60  ;;  %v13297_v2 = vcombine.low %v1068_v54, %v1072_v57 }
 0x420   :  { %v17513_v42 = vadd.f32 %v10812_v17, %v10772_v27  ;;  %11066 = vmatpush1.bf16.msra.mxu0 %v13329_v49  ;;  %v13434_v14 = vcombine.high %v1204_v1, %v1208_v52  ;;  %v1196_v7 = vld [vmem:[%s19543_s1 + $0x2490] sm:$0xff]  ;;  %v13305_v49 = vcombine.low %v1076_v34, %v1080_v60  ;;  %v13433_v5 = vcombine.low %v1204_v1, %v1208_v52 }
 0x421   :  { %v10814_v35 = vpop.f32.mrf.mxu1  ;;  %v10774_v37 = vpop.f32.mrf.mxu0  ;;  %11067 = vmatprep.subr.bf16.mxu0 %v13322_v20  ;;  %v1200_v10 = vld [vmem:[%s19543_s1 + $0x24b0] sm:$0xff] }
 0x422   :  { %11107 = vmatpush1.bf16.msra.mxu1 %v13457_v59  ;;  %v13298_v59 = vcombine.high %v1068_v54, %v1072_v57  ;;  %v13426_v20 = vcombine.high %v1196_v7, %v1200_v10  ;;  %v1060_v27 = vld [vmem:[%s19543_s1 + $0x2050] sm:$0xff]  ;;  %v13425_v36 = vcombine.low %v1196_v7, %v1200_v10 }
 0x423   :  { %v10815_v61 = vpop.f32.mrf.mxu1  ;;  %11108 = vmatprep.subr.bf16.mxu1 %v13450_v63  ;;  %v1064_v17 = vld [vmem:[%s19543_s1 + $0x2070] sm:$0xff] }
 0x424   :  { %11068 = vmatpush1.bf16.msra.mxu0 %v13321_v48  ;;  %v1188_v63 = vld [vmem:[%s19543_s1 + $0x2450] sm:$0xff]  ;;  %v13290_v40 = vcombine.high %v1060_v27, %v1064_v17 }
 0x425   :  { %11069 = vmatprep.subr.bf16.mxu0 %v13314_v8  ;;  %v1192_v19 = vld [vmem:[%s19543_s1 + $0x2470] sm:$0xff]  ;;  %v13289_v8 = vcombine.low %v1060_v27, %v1064_v17 }
 0x426   :  { %11109 = vmatpush1.bf16.msra.mxu1 %v13449_v51  ;;  %v13418_v28 = vcombine.high %v1188_v63, %v1192_v19  ;;  %v1052_v35 = vld [vmem:[%s19543_s1 + $0x2010] sm:$0xff]  ;;  %v13417_v61 = vcombine.low %v1188_v63, %v1192_v19 }
 0x427   :  { %11110 = vmatprep.subr.bf16.mxu1 %v13442_v38  ;;  %v1056_v48 = vld [vmem:[%s19543_s1 + $0x2030] sm:$0xff] }
 0x428   :  { %11070 = vmatpush1.bf16.msra.mxu0 %v13313_v6  ;;  %v1180_v37 = vld [vmem:[%s19543_s1 + $0x2410] sm:$0xff]  ;;  %v13282_v38 = vcombine.high %v1052_v35, %v1056_v48 }
 0x429   :  { %11071 = vmatprep.subr.bf16.mxu0 %v13306_v53  ;;  %v1184_v51 = vld [vmem:[%s19543_s1 + $0x2430] sm:$0xff] }
 0x42a   :  { %11111 = vmatpush1.bf16.msra.mxu1 %v13441_v46  ;;  %v13410_v34 = vcombine.high %v1180_v37, %v1184_v51  ;;  %v1172_v60 = vld [vmem:[%s19543_s1 + $0x23d0] sm:$0xff]  ;;  %v13281_v46 = vcombine.low %v1052_v35, %v1056_v48  ;;  %v13409_v53 = vcombine.low %v1180_v37, %v1184_v51 }
 0x42b   :  { %11112 = vmatprep.subr.bf16.mxu1 %v13434_v14  ;;  %v1176_v1 = vld [vmem:[%s19543_s1 + $0x23f0] sm:$0xff] }
 0x42c   :  { %11072 = vmatpush1.bf16.msra.mxu0 %v13305_v49  ;;  %v1300_v52 = vld [vmem:[%s19543_s1 + $0x27d0] sm:$0xff]  ;;  %v13402_v14 = vcombine.high %v1172_v60, %v1176_v1 }
 0x42d   :  { %11073 = vmatprep.subr.bf16.mxu0 %v13298_v59  ;;  %v1304_v6 = vld [vmem:[%s19543_s1 + $0x27f0] sm:$0xff] }
 0x42e   :  { %11113 = vmatpush1.bf16.msra.mxu1 %v13433_v5  ;;  %v13530_v54 = vcombine.high %v1300_v52, %v1304_v6  ;;  %v1164_v57 = vld [vmem:[%s19543_s1 + $0x2390] sm:$0xff]  ;;  %v13401_v5 = vcombine.low %v1172_v60, %v1176_v1  ;;  %v13529_v59 = vcombine.low %v1300_v52, %v1304_v6 }
 0x42f   :  { %11114 = vmatprep.subr.bf16.mxu1 %v13426_v20  ;;  %v1168_v7 = vld [vmem:[%s19543_s1 + $0x23b0] sm:$0xff] }
 0x430   :  { %11074 = vmatpush1.bf16.msra.mxu0 %v13297_v2  ;;  %v1292_v10 = vld [vmem:[%s19543_s1 + $0x2790] sm:$0xff]  ;;  %v13394_v20 = vcombine.high %v1164_v57, %v1168_v7 }
 0x431   :  { %11075 = vmatprep.subr.bf16.mxu0 %v13290_v40  ;;  %v1296_v49 = vld [vmem:[%s19543_s1 + $0x27b0] sm:$0xff] }
 0x432   :  { %11115 = vmatpush1.bf16.msra.mxu1 %v13425_v36  ;;  %v13522_v27 = vcombine.high %v1292_v10, %v1296_v49  ;;  %v1156_v17 = vld [vmem:[%s19543_s1 + $0x2350] sm:$0xff]  ;;  %v13393_v36 = vcombine.low %v1164_v57, %v1168_v7  ;;  %v13521_v40 = vcombine.low %v1292_v10, %v1296_v49 }
 0x433   :  { %11116 = vmatprep.subr.bf16.mxu1 %v13418_v28  ;;  %v1160_v63 = vld [vmem:[%s19543_s1 + $0x2370] sm:$0xff] }
 0x434   :  { %11076 = vmatpush1.bf16.msra.mxu0 %v13289_v8  ;;  %v1284_v19 = vld [vmem:[%s19543_s1 + $0x2750] sm:$0xff]  ;;  %v13386_v28 = vcombine.high %v1156_v17, %v1160_v63 }
 0x435   :  { %11077 = vmatprep.subr.bf16.mxu0 %v13282_v38  ;;  %v1288_v2 = vld [vmem:[%s19543_s1 + $0x2770] sm:$0xff] }
 0x436   :  { %11117 = vmatpush1.bf16.msra.mxu1 %v13417_v61  ;;  %v13514_v35 = vcombine.high %v1284_v19, %v1288_v2  ;;  %v1148_v48 = vld [vmem:[%s19543_s1 + $0x2310] sm:$0xff]  ;;  %v13385_v61 = vcombine.low %v1156_v17, %v1160_v63  ;;  %v13513_v38 = vcombine.low %v1284_v19, %v1288_v2 }
 0x437   :  { %11118 = vmatprep.subr.bf16.mxu1 %v13410_v34  ;;  %v1152_v37 = vld [vmem:[%s19543_s1 + $0x2330] sm:$0xff] }
 0x438   :  { %11078 = vmatpush1.bf16.msra.mxu0 %v13281_v46  ;;  %v1276_v51 = vld [vmem:[%s19543_s1 + $0x2710] sm:$0xff]  ;;  %v13378_v34 = vcombine.high %v1148_v48, %v1152_v37 }
 0x439   :  { %11079 = vmatprep.subr.bf16.mxu0 %v13402_v14  ;;  %v1280_v8 = vld [vmem:[%s19543_s1 + $0x2730] sm:$0xff] }
 0x43a   :  { %11119 = vmatpush1.bf16.msra.mxu1 %v13409_v53  ;;  %v13506_v60 = vcombine.high %v1276_v51, %v1280_v8  ;;  %v1140_v1 = vld [vmem:[%s19543_s1 + $0x22d0] sm:$0xff]  ;;  %v13377_v53 = vcombine.low %v1148_v48, %v1152_v37  ;;  %v13505_v14 = vcombine.low %v1276_v51, %v1280_v8 }
 0x43b   :  { %11120 = vmatprep.subr.bf16.mxu1 %v13530_v54  ;;  %v1144_v52 = vld [vmem:[%s19543_s1 + $0x22f0] sm:$0xff] }
 0x43c   :  { %11080 = vmatpush2.bf16.msra.mxu0 %v13401_v5  ;;  %v1268_v6 = vld [vmem:[%s19543_s1 + $0x26d0] sm:$0xff]  ;;  %v13370_v54 = vcombine.high %v1140_v1, %v1144_v52 }
 0x43d   :  { %11081 = vmatprep.subr.bf16.mxu0 %v13394_v20  ;;  %v1272_v46 = vld [vmem:[%s19543_s1 + $0x26f0] sm:$0xff] }
 0x43e   :  { %11121 = vmatpush2.bf16.msra.mxu1 %v13529_v59  ;;  %v13498_v57 = vcombine.high %v1268_v6, %v1272_v46  ;;  %v1132_v7 = vld [vmem:[%s19543_s1 + $0x2290] sm:$0xff]  ;;  %v13369_v59 = vcombine.low %v1140_v1, %v1144_v52  ;;  %v13497_v20 = vcombine.low %v1268_v6, %v1272_v46 }
 0x43f   :  { %11122 = vmatprep.subr.bf16.mxu1 %v13522_v27  ;;  %v1136_v10 = vld [vmem:[%s19543_s1 + $0x22b0] sm:$0xff] }
 0x440   :  { %11082 = vmatpush2.bf16.msra.mxu0 %v13393_v36  ;;  %v1260_v49 = vld [vmem:[%s19543_s1 + $0x2690] sm:$0xff]  ;;  %v13362_v27 = vcombine.high %v1132_v7, %v1136_v10 }
 0x441   :  { %11083 = vmatprep.subr.bf16.mxu0 %v13386_v28  ;;  %v1264_v5 = vld [vmem:[%s19543_s1 + $0x26b0] sm:$0xff] }
 0x442   :  { %11123 = vmatpush2.bf16.msra.mxu1 %v13521_v40  ;;  %v13490_v17 = vcombine.high %v1260_v49, %v1264_v5  ;;  %v1124_v63 = vld [vmem:[%s19543_s1 + $0x2250] sm:$0xff]  ;;  %v13361_v40 = vcombine.low %v1132_v7, %v1136_v10  ;;  %v13489_v28 = vcombine.low %v1260_v49, %v1264_v5 }
 0x443   :  { %11124 = vmatprep.subr.bf16.mxu1 %v13514_v35  ;;  %v1128_v19 = vld [vmem:[%s19543_s1 + $0x2270] sm:$0xff] }
 0x444   :  { %11084 = vmatpush2.bf16.msra.mxu0 %v13385_v61  ;;  %v1252_v2 = vld [vmem:[%s19543_s1 + $0x2650] sm:$0xff]  ;;  %v13354_v35 = vcombine.high %v1124_v63, %v1128_v19 }
 0x445   :  { %11085 = vmatprep.subr.bf16.mxu0 %v13378_v34  ;;  %v1256_v36 = vld [vmem:[%s19543_s1 + $0x2670] sm:$0xff] }
 0x446   :  { %11125 = vmatpush2.bf16.msra.mxu1 %v13513_v38  ;;  %v13482_v48 = vcombine.high %v1252_v2, %v1256_v36  ;;  %v1116_v37 = vld [vmem:[%s19543_s1 + $0x2210] sm:$0xff]  ;;  %v13353_v38 = vcombine.low %v1124_v63, %v1128_v19  ;;  %v13481_v34 = vcombine.low %v1252_v2, %v1256_v36 }
 0x447   :  { %11126 = vmatprep.subr.bf16.mxu1 %v13506_v60  ;;  %v1120_v51 = vld [vmem:[%s19543_s1 + $0x2230] sm:$0xff] }
 0x448   :  { %11086 = vmatpush2.bf16.msra.mxu0 %v13377_v53  ;;  %v1244_v8 = vld [vmem:[%s19543_s1 + $0x2610] sm:$0xff]  ;;  %v13346_v60 = vcombine.high %v1116_v37, %v1120_v51 }
 0x449   :  { %11087 = vmatprep.subr.bf16.mxu0 %v13370_v54  ;;  %v1248_v61 = vld [vmem:[%s19543_s1 + $0x2630] sm:$0xff] }
 0x44a   :  { %11127 = vmatpush2.bf16.msra.mxu1 %v13505_v14  ;;  %v13474_v1 = vcombine.high %v1244_v8, %v1248_v61  ;;  %v1364_v52 = vld [vmem:[%s19543_s1 + $0x29d0] sm:$0xff]  ;;  %v13345_v14 = vcombine.low %v1116_v37, %v1120_v51  ;;  %v13473_v54 = vcombine.low %v1244_v8, %v1248_v61 }
 0x44b   :  { %11128 = vmatprep.subr.bf16.mxu1 %v13498_v57  ;;  %v1368_v6 = vld [vmem:[%s19543_s1 + $0x29f0] sm:$0xff] }
 0x44c   :  { %11088 = vmatpush2.bf16.msra.mxu0 %v13369_v59  ;;  %v1492_v46 = vld [vmem:[%s19543_s1 + $0x2dd0] sm:$0xff]  ;;  %v13594_v57 = vcombine.high %v1364_v52, %v1368_v6 }
 0x44d   :  { %11089 = vmatprep.subr.bf16.mxu0 %v13362_v27  ;;  %v1496_v53 = vld [vmem:[%s19543_s1 + $0x2df0] sm:$0xff] }
 0x44e   :  { %11129 = vmatpush2.bf16.msra.mxu1 %v13497_v20  ;;  %v13722_v7 = vcombine.high %v1492_v46, %v1496_v53  ;;  %v1356_v10 = vld [vmem:[%s19543_s1 + $0x2990] sm:$0xff]  ;;  %v13593_v20 = vcombine.low %v1364_v52, %v1368_v6  ;;  %v13721_v27 = vcombine.low %v1492_v46, %v1496_v53 }
 0x44f   :  { %11130 = vmatprep.subr.bf16.mxu1 %v13490_v17  ;;  %v1360_v49 = vld [vmem:[%s19543_s1 + $0x29b0] sm:$0xff] }
 0x450   :  { %11090 = vmatpush2.bf16.msra.mxu0 %v13361_v40  ;;  %v1484_v5 = vld [vmem:[%s19543_s1 + $0x2d90] sm:$0xff]  ;;  %v13586_v17 = vcombine.high %v1356_v10, %v1360_v49  ;;  %v13585_v37 = vcombine.low %v1356_v10, %v1360_v49 }
 0x451   :  { %11091 = vmatprep.subr.bf16.mxu0 %v13354_v35  ;;  %v1488_v59 = vld [vmem:[%s19543_s1 + $0x2db0] sm:$0xff] }
 0x452   :  { %11131 = vmatpush2.bf16.msra.mxu1 %v13489_v28  ;;  %v13714_v63 = vcombine.high %v1484_v5, %v1488_v59  ;;  %v1348_v19 = vld [vmem:[%s19543_s1 + $0x2950] sm:$0xff]  ;;  %v13713_v8 = vcombine.low %v1484_v5, %v1488_v59 }
 0x453   :  { %11132 = vmatprep.subr.bf16.mxu1 %v13482_v48  ;;  %v1352_v2 = vld [vmem:[%s19543_s1 + $0x2970] sm:$0xff] }
 0x454   :  { %11092 = vmatpush2.bf16.msra.mxu0 %v13353_v38  ;;  %v1476_v40 = vld [vmem:[%s19543_s1 + $0x2d50] sm:$0xff]  ;;  %v13578_v61 = vcombine.high %v1348_v19, %v1352_v2 }
 0x455   :  { %11093 = vmatprep.subr.bf16.mxu0 %v13346_v60  ;;  %v1480_v28 = vld [vmem:[%s19543_s1 + $0x2d70] sm:$0xff] }
 0x456   :  { %11133 = vmatpush2.bf16.msra.mxu1 %v13481_v34  ;;  %v1344_v52 = vld [vmem:[%s19543_s1 + $0x2930] sm:$0xff] }
 0x457   :  { %11134 = vmatprep.subr.bf16.mxu1 %v13474_v1  ;;  %v13706_v1 = vcombine.high %v1476_v40, %v1480_v28  ;;  %v1468_v46 = vld [vmem:[%s19543_s1 + $0x2d10] sm:$0xff] }
 0x458   :  { %11094 = vmatpush2.bf16.msra.mxu0 %v13345_v14  ;;  %v1332_v59 = vld [vmem:[%s19543_s1 + $0x28d0] sm:$0xff] }
 0x459   :  { %11145 = vmatprep.subr.bf16.mxu0 %v13594_v57 }
 0x45a   :  { %11135 = vmatpush2.bf16.msra.mxu1 %v13473_v54  ;;  %v13577_v54 = vcombine.low %v1348_v19, %v1352_v2 }
 0x45b   :  { %11186 = vmatprep.subr.bf16.mxu1 %v13722_v7  ;;  %v10851_v36 = vpop.f32.mrf.mxu0  ;;  %11096 = vmatmul.mubr.bf16.vlgmr.msra.gmra.mxu0 %v15160_v50  ;;  %v13705_v7 = vcombine.low %v1476_v40, %v1480_v28  ;;  %v1324_v40 = vld [vmem:[%s19543_s1 + $0x2890] sm:$0xff] }
 0x45c   :  { %v10852_v35 = vadd.f32 %v10851_v36, %v17497_v4  ;;  %11146 = vmatpush1.bf16.msra.mxu0 %v13593_v20  ;;  %v1340_v4 = vld [vmem:[%s19543_s1 + $0x2910] sm:$0xff]  ;;  %11177 = vmatprep.mubr.bf16.mxu0 %v15175_v62 }
 0x45d   :  { %v10892_v48 = vpop.f32.mrf.mxu1  ;;  %11137 = vmatmul.mubr.bf16.vlgmr.msra.gmra.mxu1 %v15179_v0  ;;  %v10853_v51 = vpop.f32.mrf.mxu0  ;;  %11147 = vmatprep.subr.bf16.mxu0 %v13586_v17  ;;  %v13570_v10 = vcombine.high %v1340_v4, %v1344_v52  ;;  %v1336_v20 = vld [vmem:[%s19543_s1 + $0x28f0] sm:$0xff] }
 0x45e   :  { %11187 = vmatpush1.bf16.msra.mxu1 %v13721_v27  ;;  %v17698_v38 = vadd.f32 %v10892_v48, %v10852_v35  ;;  %v10854_v34 = vadd.f32 %v10853_v51, %v17513_v42  ;;  %v1472_v42 = vld [vmem:[%s19543_s1 + $0x2d30] sm:$0xff]  ;;  %11218 = vmatprep.mubr.bf16.mxu1 %v15196_v15  ;;  %v13562_v2 = vcombine.high %v1332_v59, %v1336_v20 }
 0x45f   :  { %v10894_v60 = vpop.f32.mrf.mxu1  ;;  %11188 = vmatprep.subr.bf16.mxu1 %v13714_v63  ;;  %v10855_v6 = vpop.f32.mrf.mxu0  ;;  %v13698_v5 = vcombine.high %v1468_v46, %v1472_v42  ;;  %v1460_v27 = vld [vmem:[%s19543_s1 + $0x2cd0] sm:$0xff]  ;;  %v13569_v63 = vcombine.low %v1340_v4, %v1344_v52  ;;  %v13697_v19 = vcombine.low %v1468_v46, %v1472_v42 }
 0x460   :  { %v17715_v53 = vadd.f32 %v10894_v60, %v10854_v34  ;;  %11148 = vmatpush1.bf16.msra.mxu0 %v13585_v37  ;;  %v1464_v17 = vld [vmem:[%s19543_s1 + $0x2cf0] sm:$0xff]  ;;  %v13561_v37 = vcombine.low %v1332_v59, %v1336_v20 }
 0x461   :  { %v10896_v14 = vpop.f32.mrf.mxu1  ;;  %v10856_v57 = vpop.f32.mrf.mxu0  ;;  %11149 = vmatprep.subr.bf16.mxu0 %v13578_v61  ;;  %v13690_v36 = vcombine.high %v1460_v27, %v1464_v17  ;;  %v1328_v28 = vld [vmem:[%s19543_s1 + $0x28b0] sm:$0xff]  ;;  %v13689_v51 = vcombine.low %v1460_v27, %v1464_v17 }
 0x462   :  { %11189 = vmatpush1.bf16.msra.mxu1 %v13713_v8  ;;  %v1452_v35 = vld [vmem:[%s19543_s1 + $0x2c90] sm:$0xff]  ;;  %v13554_v8 = vcombine.high %v1324_v40, %v1328_v28  ;;  %v13553_v52 = vcombine.low %v1324_v40, %v1328_v28 }
 0x463   :  { %v10897_v49 = vpop.f32.mrf.mxu1  ;;  %11190 = vmatprep.subr.bf16.mxu1 %v13706_v1  ;;  %v1456_v48 = vld [vmem:[%s19543_s1 + $0x2cb0] sm:$0xff] }
 0x464   :  { %11150 = vmatpush1.bf16.msra.mxu0 %v13577_v54  ;;  %v13682_v61 = vcombine.high %v1452_v35, %v1456_v48  ;;  %v1316_v34 = vld [vmem:[%s19543_s1 + $0x2850] sm:$0xff]  ;;  %v13681_v6 = vcombine.low %v1452_v35, %v1456_v48 }
 0x465   :  { %11151 = vmatprep.subr.bf16.mxu0 %v13570_v10  ;;  %v1320_v60 = vld [vmem:[%s19543_s1 + $0x2870] sm:$0xff] }
 0x466   :  { %11191 = vmatpush1.bf16.msra.mxu1 %v13705_v7  ;;  %v1444_v1 = vld [vmem:[%s19543_s1 + $0x2c50] sm:$0xff]  ;;  %v13546_v46 = vcombine.high %v1316_v34, %v1320_v60  ;;  %v13545_v10 = vcombine.low %v1316_v34, %v1320_v60 }
 0x467   :  { %11192 = vmatprep.subr.bf16.mxu1 %v13698_v5  ;;  %v1448_v4 = vld [vmem:[%s19543_s1 + $0x2c70] sm:$0xff] }
 0x468   :  { %11152 = vmatpush1.bf16.msra.mxu0 %v13569_v63  ;;  %v13674_v42 = vcombine.high %v1444_v1, %v1448_v4  ;;  %v1308_v14 = vld [vmem:[%s19543_s1 + $0x2810] sm:$0xff]  ;;  %v13673_v49 = vcombine.low %v1444_v1, %v1448_v4 }
 0x469   :  { %11153 = vmatprep.subr.bf16.mxu0 %v13562_v2  ;;  %v1312_v54 = vld [vmem:[%s19543_s1 + $0x2830] sm:$0xff] }
 0x46a   :  { %11193 = vmatpush1.bf16.msra.mxu1 %v13697_v19  ;;  %v1436_v57 = vld [vmem:[%s19543_s1 + $0x2c10] sm:$0xff]  ;;  %v13538_v5 = vcombine.high %v1308_v14, %v1312_v54  ;;  %v13537_v19 = vcombine.low %v1308_v14, %v1312_v54 }
 0x46b   :  { %11194 = vmatprep.subr.bf16.mxu1 %v13690_v36  ;;  %v1440_v7 = vld [vmem:[%s19543_s1 + $0x2c30] sm:$0xff] }
 0x46c   :  { %11154 = vmatpush1.bf16.msra.mxu0 %v13561_v37  ;;  %v13666_v59 = vcombine.high %v1436_v57, %v1440_v7  ;;  %v1428_v20 = vld [vmem:[%s19543_s1 + $0x2bd0] sm:$0xff]  ;;  %v13665_v2 = vcombine.low %v1436_v57, %v1440_v7 }
 0x46d   :  { %11155 = vmatprep.subr.bf16.mxu0 %v13554_v8  ;;  %v1432_v27 = vld [vmem:[%s19543_s1 + $0x2bf0] sm:$0xff] }
 0x46e   :  { %11195 = vmatpush1.bf16.msra.mxu1 %v13689_v51  ;;  %v1556_v17 = vld [vmem:[%s19543_s1 + $0x2fd0] sm:$0xff]  ;;  %v13658_v36 = vcombine.high %v1428_v20, %v1432_v27  ;;  %v13657_v51 = vcombine.low %v1428_v20, %v1432_v27 }
 0x46f   :  { %11196 = vmatprep.subr.bf16.mxu1 %v13682_v61  ;;  %v1560_v63 = vld [vmem:[%s19543_s1 + $0x2ff0] sm:$0xff] }
 0x470   :  { %11156 = vmatpush1.bf16.msra.mxu0 %v13553_v52  ;;  %v13786_v40 = vcombine.high %v1556_v17, %v1560_v63  ;;  %v1420_v28 = vld [vmem:[%s19543_s1 + $0x2b90] sm:$0xff]  ;;  %v13785_v8 = vcombine.low %v1556_v17, %v1560_v63 }
 0x471   :  { %11157 = vmatprep.subr.bf16.mxu0 %v13546_v46  ;;  %v1424_v35 = vld [vmem:[%s19543_s1 + $0x2bb0] sm:$0xff] }
 0x472   :  { %11197 = vmatpush1.bf16.msra.mxu1 %v13681_v6  ;;  %v1548_v48 = vld [vmem:[%s19543_s1 + $0x2f90] sm:$0xff]  ;;  %v13650_v61 = vcombine.high %v1420_v28, %v1424_v35  ;;  %v13649_v6 = vcombine.low %v1420_v28, %v1424_v35 }
 0x473   :  { %11198 = vmatprep.subr.bf16.mxu1 %v13674_v42  ;;  %v1552_v37 = vld [vmem:[%s19543_s1 + $0x2fb0] sm:$0xff] }
 0x474   :  { %11158 = vmatpush1.bf16.msra.mxu0 %v13545_v10  ;;  %v13778_v34 = vcombine.high %v1548_v48, %v1552_v37  ;;  %v1412_v60 = vld [vmem:[%s19543_s1 + $0x2b50] sm:$0xff]  ;;  %v13777_v46 = vcombine.low %v1548_v48, %v1552_v37 }
 0x475   :  { %11159 = vmatprep.subr.bf16.mxu0 %v13538_v5  ;;  %v1416_v1 = vld [vmem:[%s19543_s1 + $0x2b70] sm:$0xff] }
 0x476   :  { %11199 = vmatpush1.bf16.msra.mxu1 %v13673_v49  ;;  %v1540_v4 = vld [vmem:[%s19543_s1 + $0x2f50] sm:$0xff]  ;;  %v13642_v42 = vcombine.high %v1412_v60, %v1416_v1  ;;  %v13641_v49 = vcombine.low %v1412_v60, %v1416_v1 }
 0x477   :  { %11200 = vmatprep.subr.bf16.mxu1 %v13666_v59  ;;  %v1544_v52 = vld [vmem:[%s19543_s1 + $0x2f70] sm:$0xff] }
 0x478   :  { %11160 = vmatpush1.bf16.msra.mxu0 %v13537_v19  ;;  %v13770_v14 = vcombine.high %v1540_v4, %v1544_v52  ;;  %v1404_v54 = vld [vmem:[%s19543_s1 + $0x2b10] sm:$0xff]  ;;  %v13769_v5 = vcombine.low %v1540_v4, %v1544_v52 }
 0x479   :  { %11161 = vmatprep.subr.bf16.mxu0 %v13658_v36  ;;  %v1408_v57 = vld [vmem:[%s19543_s1 + $0x2b30] sm:$0xff] }
 0x47a   :  { %11201 = vmatpush1.bf16.msra.mxu1 %v13665_v2  ;;  %v1532_v7 = vld [vmem:[%s19543_s1 + $0x2f10] sm:$0xff]  ;;  %v13634_v59 = vcombine.high %v1404_v54, %v1408_v57  ;;  %v13633_v2 = vcombine.low %v1404_v54, %v1408_v57 }
 0x47b   :  { %11202 = vmatprep.subr.bf16.mxu1 %v13786_v40  ;;  %v1536_v10 = vld [vmem:[%s19543_s1 + $0x2f30] sm:$0xff] }
 0x47c   :  { %11162 = vmatpush2.bf16.msra.mxu0 %v13657_v51  ;;  %v13762_v20 = vcombine.high %v1532_v7, %v1536_v10  ;;  %v1396_v27 = vld [vmem:[%s19543_s1 + $0x2ad0] sm:$0xff]  ;;  %v13761_v36 = vcombine.low %v1532_v7, %v1536_v10 }
 0x47d   :  { %11163 = vmatprep.subr.bf16.mxu0 %v13650_v61  ;;  %v1400_v17 = vld [vmem:[%s19543_s1 + $0x2af0] sm:$0xff] }
 0x47e   :  { %11203 = vmatpush2.bf16.msra.mxu1 %v13785_v8  ;;  %v1524_v63 = vld [vmem:[%s19543_s1 + $0x2ed0] sm:$0xff]  ;;  %v13626_v40 = vcombine.high %v1396_v27, %v1400_v17  ;;  %v13625_v8 = vcombine.low %v1396_v27, %v1400_v17 }
 0x47f   :  { %11204 = vmatprep.subr.bf16.mxu1 %v13778_v34  ;;  %v1528_v19 = vld [vmem:[%s19543_s1 + $0x2ef0] sm:$0xff] }
 0x480   :  { %11164 = vmatpush2.bf16.msra.mxu0 %v13649_v6  ;;  %v13754_v28 = vcombine.high %v1524_v63, %v1528_v19  ;;  %v1388_v35 = vld [vmem:[%s19543_s1 + $0x2a90] sm:$0xff]  ;;  %v13753_v61 = vcombine.low %v1524_v63, %v1528_v19  ;;  %v85_v19 = vld [vmem:[%s19543_s1 + $0x1d8] sm:$0xff] }
 0x481   :  { %11165 = vmatprep.subr.bf16.mxu0 %v13642_v42  ;;  %v1392_v48 = vld [vmem:[%s19543_s1 + $0x2ab0] sm:$0xff] }
 0x482   :  { %11205 = vmatpush2.bf16.msra.mxu1 %v13777_v46  ;;  %v1516_v37 = vld [vmem:[%s19543_s1 + $0x2e90] sm:$0xff]  ;;  %v13618_v34 = vcombine.high %v1388_v35, %v1392_v48  ;;  %v13617_v46 = vcombine.low %v1388_v35, %v1392_v48 }
 0x483   :  { %11206 = vmatprep.subr.bf16.mxu1 %v13770_v14  ;;  %v1520_v51 = vld [vmem:[%s19543_s1 + $0x2eb0] sm:$0xff] }
 0x484   :  { %11166 = vmatpush2.bf16.msra.mxu0 %v13641_v49  ;;  %v13746_v60 = vcombine.high %v1516_v37, %v1520_v51  ;;  %v1380_v1 = vld [vmem:[%s19543_s1 + $0x2a50] sm:$0xff]  ;;  %v13745_v42 = vcombine.low %v1516_v37, %v1520_v51  ;;  %v77_v51 = vld [vmem:[%s19543_s1 + $0x198] sm:$0xff] }
 0x485   :  { %11167 = vmatprep.subr.bf16.mxu0 %v13634_v59  ;;  %v1384_v4 = vld [vmem:[%s19543_s1 + $0x2a70] sm:$0xff] }
 0x486   :  { %11207 = vmatpush2.bf16.msra.mxu1 %v13769_v5  ;;  %v1508_v52 = vld [vmem:[%s19543_s1 + $0x2e50] sm:$0xff]  ;;  %v13610_v14 = vcombine.high %v1380_v1, %v1384_v4  ;;  %v13609_v5 = vcombine.low %v1380_v1, %v1384_v4 }
 0x487   :  { %11208 = vmatprep.subr.bf16.mxu1 %v13762_v20  ;;  %v1512_v6 = vld [vmem:[%s19543_s1 + $0x2e70] sm:$0xff] }
 0x488   :  { %11168 = vmatpush2.bf16.msra.mxu0 %v13633_v2  ;;  %v13738_v54 = vcombine.high %v1508_v52, %v1512_v6  ;;  %v1372_v57 = vld [vmem:[%s19543_s1 + $0x2a10] sm:$0xff]  ;;  %v13737_v59 = vcombine.low %v1508_v52, %v1512_v6  ;;  %v89_v2 = vld [vmem:[%s19543_s1 + $0x1f8] sm:$0xff] }
 0x489   :  { %11169 = vmatprep.subr.bf16.mxu0 %v13626_v40  ;;  %v1376_v7 = vld [vmem:[%s19543_s1 + $0x2a30] sm:$0xff]  ;;  %v12316_v35 = vcombine.high %v85_v19, %v89_v2 }
 0x48a   :  { %11209 = vmatpush2.bf16.msra.mxu1 %v13761_v36  ;;  %v1500_v10 = vld [vmem:[%s19543_s1 + $0x2e10] sm:$0xff]  ;;  %v13602_v20 = vcombine.high %v1372_v57, %v1376_v7  ;;  %v13601_v36 = vcombine.low %v1372_v57, %v1376_v7 }
 0x48b   :  { %11210 = vmatprep.subr.bf16.mxu1 %v13754_v28  ;;  %v1504_v49 = vld [vmem:[%s19543_s1 + $0x2e30] sm:$0xff] }
 0x48c   :  { %11170 = vmatpush2.bf16.msra.mxu0 %v13625_v8  ;;  %v13730_v27 = vcombine.high %v1500_v10, %v1504_v49  ;;  %v1588_v17 = vld [vmem:[%s19543_s1 + $0x30d0] sm:$0xff]  ;;  %v13729_v40 = vcombine.low %v1500_v10, %v1504_v49  ;;  %v81_v8 = vld [vmem:[%s19543_s1 + $0x1b8] sm:$0xff] }
 0x48d   :  { %11171 = vmatprep.subr.bf16.mxu0 %v13618_v34  ;;  %v1592_v63 = vld [vmem:[%s19543_s1 + $0x30f0] sm:$0xff]  ;;  %v12315_v34 = vcombine.low %v85_v19, %v89_v2  ;;  %v12308_v1 = vcombine.high %v77_v51, %v81_v8  ;;  %v12307_v10 = vcombine.low %v77_v51, %v81_v8  ;;  %v61_v19 = vld [vmem:[%s19543_s1 + $0x118] sm:$0xff] }
 0x48e   :  { %11211 = vmatpush2.bf16.msra.mxu1 %v13753_v61  ;;  %v13818_v28 = vcombine.high %v1588_v17, %v1592_v63  ;;  %v1580_v48 = vld [vmem:[%s19543_s1 + $0x3090] sm:$0xff]  ;;  %v13817_v61 = vcombine.low %v1588_v17, %v1592_v63  ;;  %v213_v8 = vld [vmem:[%s19543_s1 + $0x5d8] sm:$0xff] }
 0x48f   :  { %11212 = vmatprep.subr.bf16.mxu1 %v13746_v60  ;;  %v1584_v37 = vld [vmem:[%s19543_s1 + $0x30b0] sm:$0xff] }
 0x490   :  { %11172 = vmatpush2.bf16.msra.mxu0 %v13617_v46  ;;  %v13810_v60 = vcombine.high %v1580_v48, %v1584_v37  ;;  %v1572_v4 = vld [vmem:[%s19543_s1 + $0x3050] sm:$0xff]  ;;  %v69_v46 = vld [vmem:[%s19543_s1 + $0x158] sm:$0xff]  ;;  %v13809_v57 = vcombine.low %v1580_v48, %v1584_v37 }
 0x491   :  { %11173 = vmatprep.subr.bf16.mxu0 %v13610_v14  ;;  %v1576_v52 = vld [vmem:[%s19543_s1 + $0x3070] sm:$0xff] }
 0x492   :  { %11213 = vmatpush2.bf16.msra.mxu1 %v13745_v42  ;;  %v73_v42 = vld [vmem:[%s19543_s1 + $0x178] sm:$0xff]  ;;  %v13802_v49 = vcombine.high %v1572_v4, %v1576_v52  ;;  %v1568_v17 = vld [vmem:[%s19543_s1 + $0x3030] sm:$0xff] }
 0x493   :  { %11214 = vmatprep.subr.bf16.mxu1 %v13738_v54 }
 0x494   :  { %11174 = vmatpush2.bf16.msra.mxu0 %v13609_v5 }
 0x495   :  { %11175 = vmatprep.subr.bf16.mxu0 %v13602_v20 }
 0x496   :  { %11215 = vmatpush2.bf16.msra.mxu1 %v13737_v59 }
 0x497   :  { %11216 = vmatprep.subr.bf16.mxu1 %v13730_v27  ;;  %v12300_v27 = vcombine.high %v69_v46, %v73_v42 }
 0x498   :  { %11176 = vmatpush2.bf16.msra.mxu0 %v13601_v36 }
 0x499   :  { %11235 = vmatprep.subr.bf16.mxu0 %v13818_v28 }
 0x49a   :  { %11217 = vmatpush2.bf16.msra.mxu1 %v13729_v40  ;;  %v13801_v40 = vcombine.low %v1572_v4, %v1576_v52 }
 0x49b   :  { %11268 = vmatprep.subr.bf16.mxu1 %v12316_v35  ;;  %v10933_v6 = vpop.f32.mrf.mxu0  ;;  %11178 = vmatmul.mubr.bf16.vlgmr.msra.gmra.mxu0 %v15377_v33  ;;  %v12299_v35 = vcombine.low %v69_v46, %v73_v42  ;;  %v209_v46 = vld [vmem:[%s19543_s1 + $0x5b8] sm:$0xff] }
 0x49c   :  { %v10934_v14 = vadd.f32 %v10933_v6, %v17698_v38  ;;  %11236 = vmatpush1.bf16.msra.mxu0 %v13817_v61  ;;  %v1564_v38 = vld [vmem:[%s19543_s1 + $0x3010] sm:$0xff]  ;;  %11259 = vmatprep.mubr.bf16.mxu0 %v14000_v18  ;;  %v53_v61 = vld [vmem:[%s19543_s1 + $0xd8] sm:$0xff] }
 0x49d   :  { %v10974_v54 = vpop.f32.mrf.mxu1  ;;  %11219 = vmatmul.mubr.bf16.vlgmr.msra.gmra.mxu1 %v15393_v45  ;;  %v10935_v7 = vpop.f32.mrf.mxu0  ;;  %11237 = vmatprep.subr.bf16.mxu0 %v13810_v60  ;;  %v13794_v48 = vcombine.high %v1564_v38, %v1568_v17  ;;  %v13793_v60 = vcombine.low %v1564_v38, %v1568_v17  ;;  %v205_v6 = vld [vmem:[%s19543_s1 + $0x598] sm:$0xff] }
 0x49e   :  { %11269 = vmatpush1.bf16.msra.mxu1 %v12315_v34  ;;  %v17900_v5 = vadd.f32 %v10974_v54, %v10934_v14  ;;  %v10936_v59 = vadd.f32 %v10935_v7, %v17715_v53  ;;  %v65_v53 = vld [vmem:[%s19543_s1 + $0x138] sm:$0xff]  ;;  %11300 = vmatprep.mubr.bf16.mxu1 %v14152_v9  ;;  %v12436_v7 = vcombine.high %v205_v6, %v209_v46 }
 0x49f   :  { %v10976_v20 = vpop.f32.mrf.mxu1  ;;  %11270 = vmatprep.subr.bf16.mxu1 %v12308_v1  ;;  %v10937_v63 = vpop.f32.mrf.mxu0  ;;  %v12292_v51 = vcombine.high %v61_v19, %v65_v53  ;;  %v217_v9 = vld [vmem:[%s19543_s1 + $0x5f8] sm:$0xff]  ;;  %v12291_v1 = vcombine.low %v61_v19, %v65_v53  ;;  %v12435_v38 = vcombine.low %v205_v6, %v209_v46 }
 0x4a0   :  { %v17917_v2 = vadd.f32 %v10976_v20, %v10936_v59  ;;  %11238 = vmatpush1.bf16.msra.mxu0 %v13809_v57  ;;  %v57_v34 = vld [vmem:[%s19543_s1 + $0xf8] sm:$0xff]  ;;  %v12444_v4 = vcombine.high %v213_v8, %v217_v9  ;;  %v12443_v54 = vcombine.low %v213_v8, %v217_v9 }
 0x4a1   :  { %v10978_v36 = vpop.f32.mrf.mxu1  ;;  %v10938_v28 = vpop.f32.mrf.mxu0  ;;  %11239 = vmatprep.subr.bf16.mxu0 %v13802_v49  ;;  %v12284_v52 = vcombine.high %v53_v61, %v57_v34  ;;  %v45_v42 = vld [vmem:[%s19543_s1 + $0x98] sm:$0xff]  ;;  %v12283_v57 = vcombine.low %v53_v61, %v57_v34 }
 0x4a2   :  { %11271 = vmatpush1.bf16.msra.mxu1 %v12307_v10  ;;  %v49_v14 = vld [vmem:[%s19543_s1 + $0xb8] sm:$0xff] }
 0x4a3   :  { %v10979_v37 = vpop.f32.mrf.mxu1  ;;  %11272 = vmatprep.subr.bf16.mxu1 %v12300_v27  ;;  %v12276_v10 = vcombine.high %v45_v42, %v49_v14  ;;  %v197_v49 = vld [vmem:[%s19543_s1 + $0x558] sm:$0xff]  ;;  %v12275_v17 = vcombine.low %v45_v42, %v49_v14 }
 0x4a4   :  { %11240 = vmatpush1.bf16.msra.mxu0 %v13801_v40  ;;  %v201_v59 = vld [vmem:[%s19543_s1 + $0x578] sm:$0xff] }
 0x4a5   :  { %11241 = vmatprep.subr.bf16.mxu0 %v13794_v48  ;;  %v37_v20 = vld [vmem:[%s19543_s1 + $0x58] sm:$0xff]  ;;  %v12428_v63 = vcombine.high %v197_v49, %v201_v59  ;;  %v12427_v28 = vcombine.low %v197_v49, %v201_v59 }
 0x4a6   :  { %11273 = vmatpush1.bf16.msra.mxu1 %v12299_v35  ;;  %v41_v27 = vld [vmem:[%s19543_s1 + $0x78] sm:$0xff] }
 0x4a7   :  { %11274 = vmatprep.subr.bf16.mxu1 %v12292_v51  ;;  %v12268_v19 = vcombine.high %v37_v20, %v41_v27  ;;  %v189_v53 = vld [vmem:[%s19543_s1 + $0x518] sm:$0xff]  ;;  %v12267_v35 = vcombine.low %v37_v20, %v41_v27 }
 0x4a8   :  { %11242 = vmatpush1.bf16.msra.mxu0 %v13793_v60  ;;  %v193_v36 = vld [vmem:[%s19543_s1 + $0x538] sm:$0xff] }
 0x4a9   :  { %11309 = vmatprep.subr.bf16.mxu0 %v12444_v4  ;;  %v29_v40 = vld [vmem:[%s19543_s1 + $0x18] sm:$0xff]  ;;  %v12420_v48 = vcombine.high %v189_v53, %v193_v36  ;;  %v12419_v34 = vcombine.low %v189_v53, %v193_v36 }
 0x4aa   :  { %11275 = vmatpush1.bf16.msra.mxu1 %v12291_v1  ;;  %v181_v51 = vld [vmem:[%s19543_s1 + $0x4d8] sm:$0xff] }
 0x4ab   :  { %11276 = vmatprep.subr.bf16.mxu1 %v12284_v52  ;;  %13823 = vmatmul.mubr.msk.bf16.vlgmr.msra.gmra.mxu0 %vm9665_vm0, %v15451_v58  ;;  %v185_v8 = vld [vmem:[%s19543_s1 + $0x4f8] sm:$0xff] }
 0x4ac   :  { %11310 = vmatpush1.bf16.msra.mxu0 %v12443_v54  ;;  %11341 = vmatprep.mubr.bf16.mxu0 %v14163_v13  ;;  %v33_v13 = vld [vmem:[%s19543_s1 + $0x38] sm:$0xff]  ;;  %v12412_v1 = vcombine.high %v181_v51, %v185_v8  ;;  %v12411_v14 = vcombine.low %v181_v51, %v185_v8 }
 0x4ad   :  { %11311 = vmatprep.subr.bf16.mxu0 %v12436_v7  ;;  %v12260_v37 = vcombine.high %v29_v40, %v33_v13  ;;  %v149_v9 = vld [vmem:[%s19543_s1 + $0x3d8] sm:$0xff]  ;;  %v12259_v60 = vcombine.low %v29_v40, %v33_v13 }
 0x4ae   :  { %11277 = vmatpush1.bf16.msra.mxu1 %v12283_v57  ;;  %v153_v61 = vld [vmem:[%s19543_s1 + $0x3f8] sm:$0xff] }
 0x4af   :  { %11278 = vmatprep.subr.bf16.mxu1 %v12276_v10  ;;  %v12380_v4 = vcombine.high %v149_v9, %v153_v61  ;;  %v173_v52 = vld [vmem:[%s19543_s1 + $0x498] sm:$0xff]  ;;  %v12379_v54 = vcombine.low %v149_v9, %v153_v61 }
 0x4b0   :  { %11312 = vmatpush1.bf16.msra.mxu0 %v12435_v38  ;;  %v177_v6 = vld [vmem:[%s19543_s1 + $0x4b8] sm:$0xff] }
 0x4b1   :  { %11313 = vmatprep.subr.bf16.mxu0 %v12428_v63  ;;  %v141_v46 = vld [vmem:[%s19543_s1 + $0x398] sm:$0xff]  ;;  %v12404_v57 = vcombine.high %v173_v52, %v177_v6  ;;  %v12403_v27 = vcombine.low %v173_v52, %v177_v6 }
 0x4b2   :  { %11279 = vmatpush1.bf16.msra.mxu1 %v12275_v17  ;;  %v145_v42 = vld [vmem:[%s19543_s1 + $0x3b8] sm:$0xff] }
 0x4b3   :  { %11280 = vmatprep.subr.bf16.mxu1 %v12268_v19  ;;  %v12372_v7 = vcombine.high %v141_v46, %v145_v42  ;;  %v165_v10 = vld [vmem:[%s19543_s1 + $0x458] sm:$0xff]  ;;  %v12371_v38 = vcombine.low %v141_v46, %v145_v42 }
 0x4b4   :  { %11314 = vmatpush1.bf16.msra.mxu0 %v12427_v28  ;;  %v169_v49 = vld [vmem:[%s19543_s1 + $0x478] sm:$0xff] }
 0x4b5   :  { %11315 = vmatprep.subr.bf16.mxu0 %v12420_v48  ;;  %v133_v59 = vld [vmem:[%s19543_s1 + $0x358] sm:$0xff]  ;;  %v12396_v17 = vcombine.high %v165_v10, %v169_v49  ;;  %v12395_v13 = vcombine.low %v165_v10, %v169_v49 }
 0x4b6   :  { %11281 = vmatpush1.bf16.msra.mxu1 %v12267_v35  ;;  %v137_v20 = vld [vmem:[%s19543_s1 + $0x378] sm:$0xff] }
 0x4b7   :  { %11282 = vmatprep.subr.bf16.mxu1 %v12260_v37  ;;  %v12364_v63 = vcombine.high %v133_v59, %v137_v20  ;;  %v157_v19 = vld [vmem:[%s19543_s1 + $0x418] sm:$0xff]  ;;  %v12363_v28 = vcombine.low %v133_v59, %v137_v20 }
 0x4b8   :  { %11316 = vmatpush1.bf16.msra.mxu0 %v12419_v34  ;;  %v161_v53 = vld [vmem:[%s19543_s1 + $0x438] sm:$0xff] }
 0x4b9   :  { %11317 = vmatprep.subr.bf16.mxu0 %v12412_v1  ;;  %v125_v36 = vld [vmem:[%s19543_s1 + $0x318] sm:$0xff]  ;;  %v12388_v35 = vcombine.high %v157_v19, %v161_v53  ;;  %v12387_v61 = vcombine.low %v157_v19, %v161_v53 }
 0x4ba   :  { %11283 = vmatpush1.bf16.msra.mxu1 %v12259_v60  ;;  %v129_v40 = vld [vmem:[%s19543_s1 + $0x338] sm:$0xff] }
 0x4bb   :  { %11284 = vmatprep.subr.bf16.mxu1 %v12380_v4  ;;  %v12356_v48 = vcombine.high %v125_v36, %v129_v40  ;;  %v277_v37 = vld [vmem:[%s19543_s1 + $0x7d8] sm:$0xff]  ;;  %v12355_v34 = vcombine.low %v125_v36, %v129_v40 }
 0x4bc   :  { %11318 = vmatpush1.bf16.msra.mxu0 %v12411_v14  ;;  %v281_v51 = vld [vmem:[%s19543_s1 + $0x7f8] sm:$0xff] }
 0x4bd   :  { %11319 = vmatprep.subr.bf16.mxu0 %v12404_v57  ;;  %v117_v8 = vld [vmem:[%s19543_s1 + $0x2d8] sm:$0xff]  ;;  %v12508_v60 = vcombine.high %v277_v37, %v281_v51  ;;  %v12507_v42 = vcombine.low %v277_v37, %v281_v51 }
 0x4be   :  { %11285 = vmatpush2.bf16.msra.mxu1 %v12379_v54  ;;  %v121_v9 = vld [vmem:[%s19543_s1 + $0x2f8] sm:$0xff] }
 0x4bf   :  { %11286 = vmatprep.subr.bf16.mxu1 %v12372_v7  ;;  %v12348_v1 = vcombine.high %v117_v8, %v121_v9  ;;  %v269_v4 = vld [vmem:[%s19543_s1 + $0x798] sm:$0xff]  ;;  %v12347_v14 = vcombine.low %v117_v8, %v121_v9 }
 0x4c0   :  { %11320 = vmatpush1.bf16.msra.mxu0 %v12403_v27  ;;  %v273_v52 = vld [vmem:[%s19543_s1 + $0x7b8] sm:$0xff] }
 0x4c1   :  { %11321 = vmatprep.subr.bf16.mxu0 %v12396_v17  ;;  %v109_v6 = vld [vmem:[%s19543_s1 + $0x298] sm:$0xff]  ;;  %v12500_v54 = vcombine.high %v269_v4, %v273_v52  ;;  %v12499_v20 = vcombine.low %v269_v4, %v273_v52 }
 0x4c2   :  { %11287 = vmatpush2.bf16.msra.mxu1 %v12371_v38  ;;  %v113_v46 = vld [vmem:[%s19543_s1 + $0x2b8] sm:$0xff] }
 0x4c3   :  { %11288 = vmatprep.subr.bf16.mxu1 %v12364_v63  ;;  %v12340_v57 = vcombine.high %v109_v6, %v113_v46  ;;  %v261_v7 = vld [vmem:[%s19543_s1 + $0x758] sm:$0xff]  ;;  %v12339_v27 = vcombine.low %v109_v6, %v113_v46 }
 0x4c4   :  { %11322 = vmatpush1.bf16.msra.mxu0 %v12395_v13  ;;  %v265_v10 = vld [vmem:[%s19543_s1 + $0x778] sm:$0xff] }
 0x4c5   :  { %11323 = vmatprep.subr.bf16.mxu0 %v12388_v35  ;;  %v101_v49 = vld [vmem:[%s19543_s1 + $0x258] sm:$0xff]  ;;  %v12492_v38 = vcombine.high %v261_v7, %v265_v10  ;;  %v12491_v40 = vcombine.low %v261_v7, %v265_v10 }
 0x4c6   :  { %11289 = vmatpush2.bf16.msra.mxu1 %v12363_v28  ;;  %v105_v59 = vld [vmem:[%s19543_s1 + $0x278] sm:$0xff] }
 0x4c7   :  { %11290 = vmatprep.subr.bf16.mxu1 %v12356_v48  ;;  %v12332_v17 = vcombine.high %v101_v49, %v105_v59  ;;  %v253_v63 = vld [vmem:[%s19543_s1 + $0x718] sm:$0xff]  ;;  %v12331_v13 = vcombine.low %v101_v49, %v105_v59 }
 0x4c8   :  { %11324 = vmatpush1.bf16.msra.mxu0 %v12387_v61  ;;  %v257_v19 = vld [vmem:[%s19543_s1 + $0x738] sm:$0xff] }
 0x4c9   :  { %11325 = vmatprep.subr.bf16.mxu0 %v12508_v60  ;;  %v93_v53 = vld [vmem:[%s19543_s1 + $0x218] sm:$0xff]  ;;  %v12484_v28 = vcombine.high %v253_v63, %v257_v19  ;;  %v12483_v9 = vcombine.low %v253_v63, %v257_v19 }
 0x4ca   :  { %11291 = vmatpush2.bf16.msra.mxu1 %v12355_v34  ;;  %v97_v36 = vld [vmem:[%s19543_s1 + $0x238] sm:$0xff] }
 0x4cb   :  { %11292 = vmatprep.subr.bf16.mxu1 %v12348_v1  ;;  %v12324_v35 = vcombine.high %v93_v53, %v97_v36  ;;  %v245_v48 = vld [vmem:[%s19543_s1 + $0x6d8] sm:$0xff]  ;;  %v12323_v61 = vcombine.low %v93_v53, %v97_v36 }
 0x4cc   :  { %11326 = vmatpush2.bf16.msra.mxu0 %v12507_v42  ;;  %v249_v37 = vld [vmem:[%s19543_s1 + $0x6f8] sm:$0xff] }
 0x4cd   :  { %11327 = vmatprep.subr.bf16.mxu0 %v12500_v54  ;;  %v341_v51 = vld [vmem:[%s19543_s1 + $0x9d8] sm:$0xff]  ;;  %v12476_v34 = vcombine.high %v245_v48, %v249_v37  ;;  %v12475_v46 = vcombine.low %v245_v48, %v249_v37 }
 0x4ce   :  { %11293 = vmatpush2.bf16.msra.mxu1 %v12347_v14  ;;  %v345_v8 = vld [vmem:[%s19543_s1 + $0x9f8] sm:$0xff] }
 0x4cf   :  { %11294 = vmatprep.subr.bf16.mxu1 %v12340_v57  ;;  %v12572_v60 = vcombine.high %v341_v51, %v345_v8  ;;  %v237_v1 = vld [vmem:[%s19543_s1 + $0x698] sm:$0xff]  ;;  %v12571_v42 = vcombine.low %v341_v51, %v345_v8 }
 0x4d0   :  { %11328 = vmatpush2.bf16.msra.mxu0 %v12499_v20  ;;  %v241_v4 = vld [vmem:[%s19543_s1 + $0x6b8] sm:$0xff] }
 0x4d1   :  { %11329 = vmatprep.subr.bf16.mxu0 %v12492_v38  ;;  %v333_v52 = vld [vmem:[%s19543_s1 + $0x998] sm:$0xff]  ;;  %v12468_v14 = vcombine.high %v237_v1, %v241_v4  ;;  %v12467_v38 = vcombine.low %v237_v1, %v241_v4 }
 0x4d2   :  { %11295 = vmatpush2.bf16.msra.mxu1 %v12339_v27  ;;  %v337_v6 = vld [vmem:[%s19543_s1 + $0x9b8] sm:$0xff] }
 0x4d3   :  { %11296 = vmatprep.subr.bf16.mxu1 %v12332_v17  ;;  %v12564_v54 = vcombine.high %v333_v52, %v337_v6  ;;  %v229_v57 = vld [vmem:[%s19543_s1 + $0x658] sm:$0xff]  ;;  %v12563_v63 = vcombine.low %v333_v52, %v337_v6 }
 0x4d4   :  { %11330 = vmatpush2.bf16.msra.mxu0 %v12491_v40  ;;  %v233_v7 = vld [vmem:[%s19543_s1 + $0x678] sm:$0xff] }
 0x4d5   :  { %11331 = vmatprep.subr.bf16.mxu0 %v12484_v28  ;;  %v325_v49 = vld [vmem:[%s19543_s1 + $0x958] sm:$0xff]  ;;  %v12460_v19 = vcombine.high %v229_v57, %v233_v7  ;;  %v12459_v51 = vcombine.low %v229_v57, %v233_v7 }
 0x4d6   :  { %11297 = vmatpush2.bf16.msra.mxu1 %v12331_v13  ;;  %v329_v59 = vld [vmem:[%s19543_s1 + $0x978] sm:$0xff] }
 0x4d7   :  { %11298 = vmatprep.subr.bf16.mxu1 %v12324_v35  ;;  %v12556_v13 = vcombine.high %v325_v49, %v329_v59  ;;  %v317_v35 = vld [vmem:[%s19543_s1 + $0x918] sm:$0xff] }
 0x4d8   :  { %11332 = vmatpush2.bf16.msra.mxu0 %v12483_v9  ;;  %v12555_v9 = vcombine.low %v325_v49, %v329_v59  ;;  %v473_v1 = vld [vmem:[%s19543_s1 + $0xdf8] sm:$0xff] }
 0x4d9   :  { %11333 = vmatprep.subr.bf16.mxu0 %v12476_v34  ;;  %v309_v4 = vld [vmem:[%s19543_s1 + $0x8d8] sm:$0xff] }
 0x4da   :  { %11299 = vmatpush2.bf16.msra.mxu1 %v12323_v61  ;;  %v313_v52 = vld [vmem:[%s19543_s1 + $0x8f8] sm:$0xff] }
 0x4db   :  { %11350 = vmatprep.subr.bf16.mxu1 %v12572_v60  ;;  %v11015_v10 = vpop.f32.mrf.mxu0  ;;  %v469_v60 = vld [vmem:[%s19543_s1 + $0xdd8] sm:$0xff]  ;;  %v12539_v59 = vcombine.low %v309_v4, %v313_v52 }
 0x4dc   :  { %v11016_v20 = vadd.f32 %v11015_v10, %v17900_v5  ;;  %11334 = vmatpush2.bf16.msra.mxu0 %v12475_v46  ;;  %v221_v5 = vld [vmem:[%s19543_s1 + $0x618] sm:$0xff]  ;;  %v12699_v49 = vcombine.low %v469_v60, %v473_v1 }
 0x4dd   :  { %v11056_v27 = vpop.f32.mrf.mxu1  ;;  %11301 = vmatmul.mubr.bf16.vlgmr.msra.gmra.mxu1 %v14271_v22  ;;  %v11017_v17 = vpop.f32.mrf.mxu0  ;;  %11335 = vmatprep.subr.bf16.mxu0 %v12468_v14  ;;  %v225_v22 = vld [vmem:[%s19543_s1 + $0x638] sm:$0xff]  ;;  %v12540_v14 = vcombine.high %v309_v4, %v313_v52 }
 0x4de   :  { %11351 = vmatpush1.bf16.msra.mxu1 %v12571_v42  ;;  %v18104_v53 = vadd.f32 %v11056_v27, %v11016_v20  ;;  %v11018_v36 = vadd.f32 %v11017_v17, %v17917_v2  ;;  %11382 = vmatprep.mubr.bf16.mxu1 %v14286_v29  ;;  %v321_v2 = vld [vmem:[%s19543_s1 + $0x938] sm:$0xff]  ;;  %v12452_v61 = vcombine.high %v221_v5, %v225_v22 }
 0x4df   :  { %v11058_v40 = vpop.f32.mrf.mxu1  ;;  %11352 = vmatprep.subr.bf16.mxu1 %v12564_v54  ;;  %v11019_v28 = vpop.f32.mrf.mxu0  ;;  %v12548_v34 = vcombine.high %v317_v35, %v321_v2  ;;  %v12451_v6 = vcombine.low %v221_v5, %v225_v22  ;;  %v12547_v46 = vcombine.low %v317_v35, %v321_v2  ;;  %v12700_v42 = vcombine.high %v469_v60, %v473_v1  ;;  %v461_v54 = vld [vmem:[%s19543_s1 + $0xd98] sm:$0xff] }
 0x4e0   :  { %v18120_v48 = vadd.f32 %v11058_v40, %v11018_v36  ;;  %11336 = vmatpush2.bf16.msra.mxu0 %v12467_v38  ;;  %v465_v57 = vld [vmem:[%s19543_s1 + $0xdb8] sm:$0xff] }
 0x4e1   :  { %v11060_v37 = vpop.f32.mrf.mxu1  ;;  %v11020_v8 = vpop.f32.mrf.mxu0  ;;  %11337 = vmatprep.subr.bf16.mxu0 %v12460_v19  ;;  %v301_v7 = vld [vmem:[%s19543_s1 + $0x898] sm:$0xff]  ;;  %v12692_v20 = vcombine.high %v461_v54, %v465_v57  ;;  %v12691_v36 = vcombine.low %v461_v54, %v465_v57 }
 0x4e2   :  { %11353 = vmatpush1.bf16.msra.mxu1 %v12563_v63  ;;  %v305_v10 = vld [vmem:[%s19543_s1 + $0x8b8] sm:$0xff] }
 0x4e3   :  { %v11061_v29 = vpop.f32.mrf.mxu1  ;;  %11354 = vmatprep.subr.bf16.mxu1 %v12556_v13  ;;  %v12532_v27 = vcombine.high %v301_v7, %v305_v10  ;;  %v453_v38 = vld [vmem:[%s19543_s1 + $0xd58] sm:$0xff]  ;;  %v12531_v40 = vcombine.low %v301_v7, %v305_v10 }
 0x4e4   :  { %11338 = vmatpush2.bf16.msra.mxu0 %v12459_v51  ;;  %v457_v17 = vld [vmem:[%s19543_s1 + $0xd78] sm:$0xff] }
 0x4e5   :  { %11339 = vmatprep.subr.bf16.mxu0 %v12452_v61  ;;  %v293_v63 = vld [vmem:[%s19543_s1 + $0x858] sm:$0xff]  ;;  %v12684_v13 = vcombine.high %v453_v38, %v457_v17  ;;  %v12683_v35 = vcombine.low %v453_v38, %v457_v17 }
 0x4e6   :  { %11355 = vmatpush1.bf16.msra.mxu1 %v12555_v9  ;;  %v297_v19 = vld [vmem:[%s19543_s1 + $0x878] sm:$0xff] }
 0x4e7   :  { %11356 = vmatprep.subr.bf16.mxu1 %v12548_v34  ;;  %v12524_v5 = vcombine.high %v293_v63, %v297_v19  ;;  %v449_v22 = vld [vmem:[%s19543_s1 + $0xd38] sm:$0xff]  ;;  %v12523_v2 = vcombine.low %v293_v63, %v297_v19 }
 0x4e8   :  { %11340 = vmatpush2.bf16.msra.mxu0 %v12451_v6  ;;  %v285_v28 = vld [vmem:[%s19543_s1 + $0x818] sm:$0xff] }
 0x4e9   :  { %11391 = vmatprep.subr.bf16.mxu0 %v12700_v42  ;;  %v437_v8 = vld [vmem:[%s19543_s1 + $0xcd8] sm:$0xff] }
 0x4ea   :  { %11357 = vmatpush1.bf16.msra.mxu1 %v12547_v46  ;;  %v441_v9 = vld [vmem:[%s19543_s1 + $0xcf8] sm:$0xff] }
 0x4eb   :  { %11358 = vmatprep.subr.bf16.mxu1 %v12540_v14  ;;  %11342 = vmatmul.mubr.bf16.vlgmr.msra.gmra.mxu0 %v14290_v30  ;;  %v445_v30 = vld [vmem:[%s19543_s1 + $0xd18] sm:$0xff]  ;;  %v12668_v1 = vcombine.high %v437_v8, %v441_v9  ;;  %v12667_v14 = vcombine.low %v437_v8, %v441_v9 }
 0x4ec   :  { %11392 = vmatpush1.bf16.msra.mxu0 %v12699_v49  ;;  %11423 = vmatprep.mubr.bf16.mxu0 %v14307_v39  ;;  %v289_v39 = vld [vmem:[%s19543_s1 + $0x838] sm:$0xff]  ;;  %v12676_v37 = vcombine.high %v445_v30, %v449_v22  ;;  %v12675_v34 = vcombine.low %v445_v30, %v449_v22 }
 0x4ed   :  { %11393 = vmatprep.subr.bf16.mxu0 %v12692_v20  ;;  %v12516_v51 = vcombine.high %v285_v28, %v289_v39  ;;  %v405_v61 = vld [vmem:[%s19543_s1 + $0xbd8] sm:$0xff]  ;;  %v12515_v60 = vcombine.low %v285_v28, %v289_v39 }
 0x4ee   :  { %11359 = vmatpush1.bf16.msra.mxu1 %v12539_v59  ;;  %v409_v29 = vld [vmem:[%s19543_s1 + $0xbf8] sm:$0xff] }
 0x4ef   :  { %11360 = vmatprep.subr.bf16.mxu1 %v12532_v27  ;;  %v12636_v4 = vcombine.high %v405_v61, %v409_v29  ;;  %v429_v52 = vld [vmem:[%s19543_s1 + $0xc98] sm:$0xff]  ;;  %v12635_v54 = vcombine.low %v405_v61, %v409_v29 }
 0x4f0   :  { %11394 = vmatpush1.bf16.msra.mxu0 %v12691_v36  ;;  %v433_v6 = vld [vmem:[%s19543_s1 + $0xcb8] sm:$0xff] }
 0x4f1   :  { %11395 = vmatprep.subr.bf16.mxu0 %v12684_v13  ;;  %v397_v46 = vld [vmem:[%s19543_s1 + $0xb98] sm:$0xff]  ;;  %v12660_v57 = vcombine.high %v429_v52, %v433_v6  ;;  %v12659_v27 = vcombine.low %v429_v52, %v433_v6 }
 0x4f2   :  { %11361 = vmatpush1.bf16.msra.mxu1 %v12531_v40  ;;  %v401_v42 = vld [vmem:[%s19543_s1 + $0xbb8] sm:$0xff] }
 0x4f3   :  { %11362 = vmatprep.subr.bf16.mxu1 %v12524_v5  ;;  %v12628_v7 = vcombine.high %v397_v46, %v401_v42  ;;  %v421_v10 = vld [vmem:[%s19543_s1 + $0xc58] sm:$0xff]  ;;  %v12627_v38 = vcombine.low %v397_v46, %v401_v42 }
 0x4f4   :  { %11396 = vmatpush1.bf16.msra.mxu0 %v12683_v35  ;;  %v425_v49 = vld [vmem:[%s19543_s1 + $0xc78] sm:$0xff] }
 0x4f5   :  { %11397 = vmatprep.subr.bf16.mxu0 %v12676_v37  ;;  %v389_v59 = vld [vmem:[%s19543_s1 + $0xb58] sm:$0xff]  ;;  %v12652_v17 = vcombine.high %v421_v10, %v425_v49  ;;  %v12651_v5 = vcombine.low %v421_v10, %v425_v49 }
 0x4f6   :  { %11363 = vmatpush1.bf16.msra.mxu1 %v12523_v2  ;;  %v393_v20 = vld [vmem:[%s19543_s1 + $0xb78] sm:$0xff] }
 0x4f7   :  { %11364 = vmatprep.subr.bf16.mxu1 %v12516_v51  ;;  %v12620_v63 = vcombine.high %v389_v59, %v393_v20  ;;  %v413_v19 = vld [vmem:[%s19543_s1 + $0xc18] sm:$0xff]  ;;  %v12619_v30 = vcombine.low %v389_v59, %v393_v20 }
 0x4f8   :  { %11398 = vmatpush1.bf16.msra.mxu0 %v12675_v34  ;;  %v417_v36 = vld [vmem:[%s19543_s1 + $0xc38] sm:$0xff] }
 0x4f9   :  { %11399 = vmatprep.subr.bf16.mxu0 %v12668_v1  ;;  %v381_v40 = vld [vmem:[%s19543_s1 + $0xb18] sm:$0xff]  ;;  %v12644_v22 = vcombine.high %v413_v19, %v417_v36  ;;  %v12643_v51 = vcombine.low %v413_v19, %v417_v36 }
 0x4fa   :  { %11365 = vmatpush1.bf16.msra.mxu1 %v12515_v60  ;;  %v385_v13 = vld [vmem:[%s19543_s1 + $0xb38] sm:$0xff] }
 0x4fb   :  { %11366 = vmatprep.subr.bf16.mxu1 %v12636_v4  ;;  %v12612_v28 = vcombine.high %v381_v40, %v385_v13  ;;  %v533_v39 = vld [vmem:[%s19543_s1 + $0xfd8] sm:$0xff]  ;;  %v12611_v8 = vcombine.low %v381_v40, %v385_v13 }
 0x4fc   :  { %11400 = vmatpush1.bf16.msra.mxu0 %v12667_v14  ;;  %v537_v35 = vld [vmem:[%s19543_s1 + $0xff8] sm:$0xff] }
 0x4fd   :  { %11401 = vmatprep.subr.bf16.mxu0 %v12660_v57  ;;  %v373_v2 = vld [vmem:[%s19543_s1 + $0xad8] sm:$0xff]  ;;  %v12764_v9 = vcombine.high %v533_v39, %v537_v35  ;;  %v12763_v4 = vcombine.low %v533_v39, %v537_v35 }
 0x4fe   :  { %11367 = vmatpush2.bf16.msra.mxu1 %v12635_v54  ;;  %v377_v37 = vld [vmem:[%s19543_s1 + $0xaf8] sm:$0xff] }
 0x4ff   :  { %11368 = vmatprep.subr.bf16.mxu1 %v12628_v7  ;;  %v12604_v61 = vcombine.high %v373_v2, %v377_v37  ;;  %v525_v29 = vld [vmem:[%s19543_s1 + $0xf98] sm:$0xff]  ;;  %v12603_v52 = vcombine.low %v373_v2, %v377_v37 }
 0x500   :  { %11402 = vmatpush1.bf16.msra.mxu0 %v12659_v27  ;;  %v529_v34 = vld [vmem:[%s19543_s1 + $0xfb8] sm:$0xff] }
 0x501   :  { %11403 = vmatprep.subr.bf16.mxu0 %v12652_v17  ;;  %v365_v60 = vld [vmem:[%s19543_s1 + $0xa98] sm:$0xff]  ;;  %v12756_v6 = vcombine.high %v525_v29, %v529_v34  ;;  %v12755_v7 = vcombine.low %v525_v29, %v529_v34 }
 0x502   :  { %11369 = vmatpush2.bf16.msra.mxu1 %v12627_v38  ;;  %v369_v1 = vld [vmem:[%s19543_s1 + $0xab8] sm:$0xff] }
 0x503   :  { %11370 = vmatprep.subr.bf16.mxu1 %v12620_v63  ;;  %v12596_v46 = vcombine.high %v365_v60, %v369_v1  ;;  %v517_v42 = vld [vmem:[%s19543_s1 + $0xf58] sm:$0xff]  ;;  %v12595_v10 = vcombine.low %v365_v60, %v369_v1 }
 0x504   :  { %11404 = vmatpush1.bf16.msra.mxu0 %v12651_v5  ;;  %v521_v14 = vld [vmem:[%s19543_s1 + $0xf78] sm:$0xff] }
 0x505   :  { %11405 = vmatprep.subr.bf16.mxu0 %v12644_v22  ;;  %v357_v54 = vld [vmem:[%s19543_s1 + $0xa58] sm:$0xff]  ;;  %v12748_v49 = vcombine.high %v517_v42, %v521_v14  ;;  %v12747_v63 = vcombine.low %v517_v42, %v521_v14 }
 0x506   :  { %11371 = vmatpush2.bf16.msra.mxu1 %v12619_v30  ;;  %v361_v57 = vld [vmem:[%s19543_s1 + $0xa78] sm:$0xff] }
 0x507   :  { %11372 = vmatprep.subr.bf16.mxu1 %v12612_v28  ;;  %v12588_v59 = vcombine.high %v357_v54, %v361_v57  ;;  %v509_v20 = vld [vmem:[%s19543_s1 + $0xf18] sm:$0xff]  ;;  %v12587_v19 = vcombine.low %v357_v54, %v361_v57 }
 0x508   :  { %11406 = vmatpush1.bf16.msra.mxu0 %v12643_v51  ;;  %v513_v27 = vld [vmem:[%s19543_s1 + $0xf38] sm:$0xff] }
 0x509   :  { %11407 = vmatprep.subr.bf16.mxu0 %v12764_v9  ;;  %v349_v38 = vld [vmem:[%s19543_s1 + $0xa18] sm:$0xff]  ;;  %v12740_v36 = vcombine.high %v509_v20, %v513_v27  ;;  %v12739_v28 = vcombine.low %v509_v20, %v513_v27 }
 0x50a   :  { %11373 = vmatpush2.bf16.msra.mxu1 %v12611_v8  ;;  %v353_v17 = vld [vmem:[%s19543_s1 + $0xa38] sm:$0xff] }
 0x50b   :  { %11374 = vmatprep.subr.bf16.mxu1 %v12604_v61  ;;  %v12580_v40 = vcombine.high %v349_v38, %v353_v17  ;;  %v501_v13 = vld [vmem:[%s19543_s1 + $0xed8] sm:$0xff]  ;;  %v12579_v39 = vcombine.low %v349_v38, %v353_v17 }
 0x50c   :  { %11408 = vmatpush2.bf16.msra.mxu0 %v12763_v4  ;;  %v505_v5 = vld [vmem:[%s19543_s1 + $0xef8] sm:$0xff] }
 0x50d   :  { %11409 = vmatprep.subr.bf16.mxu0 %v12756_v6  ;;  %v597_v30 = vld [vmem:[%s19543_s1 + $0x11d8] sm:$0xff]  ;;  %v12732_v35 = vcombine.high %v501_v13, %v505_v5  ;;  %v12731_v61 = vcombine.low %v501_v13, %v505_v5 }
 0x50e   :  { %11375 = vmatpush2.bf16.msra.mxu1 %v12603_v52  ;;  %v601_v22 = vld [vmem:[%s19543_s1 + $0x11f8] sm:$0xff] }
 0x50f   :  { %11376 = vmatprep.subr.bf16.mxu1 %v12596_v46  ;;  %v12828_v2 = vcombine.high %v597_v30, %v601_v22  ;;  %v493_v37 = vld [vmem:[%s19543_s1 + $0xe98] sm:$0xff]  ;;  %v12827_v29 = vcombine.low %v597_v30, %v601_v22 }
 0x510   :  { %11410 = vmatpush2.bf16.msra.mxu0 %v12755_v7  ;;  %v497_v51 = vld [vmem:[%s19543_s1 + $0xeb8] sm:$0xff] }
 0x511   :  { %11411 = vmatprep.subr.bf16.mxu0 %v12748_v49  ;;  %v589_v8 = vld [vmem:[%s19543_s1 + $0x1198] sm:$0xff]  ;;  %v12724_v34 = vcombine.high %v493_v37, %v497_v51  ;;  %v12723_v54 = vcombine.low %v493_v37, %v497_v51 }
 0x512   :  { %11377 = vmatpush2.bf16.msra.mxu1 %v12595_v10  ;;  %v593_v9 = vld [vmem:[%s19543_s1 + $0x11b8] sm:$0xff] }
 0x513   :  { %11378 = vmatprep.subr.bf16.mxu1 %v12588_v59  ;;  %v12820_v60 = vcombine.high %v589_v8, %v593_v9  ;;  %v485_v1 = vld [vmem:[%s19543_s1 + $0xe58] sm:$0xff]  ;;  %v12819_v7 = vcombine.low %v589_v8, %v593_v9 }
 0x514   :  { %11412 = vmatpush2.bf16.msra.mxu0 %v12747_v63  ;;  %v489_v4 = vld [vmem:[%s19543_s1 + $0xe78] sm:$0xff] }
 0x515   :  { %11413 = vmatprep.subr.bf16.mxu0 %v12740_v36  ;;  %v581_v6 = vld [vmem:[%s19543_s1 + $0x1158] sm:$0xff]  ;;  %v12716_v10 = vcombine.high %v485_v1, %v489_v4  ;;  %v12715_v36 = vcombine.low %v485_v1, %v489_v4 }
 0x516   :  { %11379 = vmatpush2.bf16.msra.mxu1 %v12587_v19  ;;  %v585_v46 = vld [vmem:[%s19543_s1 + $0x1178] sm:$0xff] }
 0x517   :  { %11380 = vmatprep.subr.bf16.mxu1 %v12580_v40  ;;  %v12812_v27 = vcombine.high %v581_v6, %v585_v46  ;;  %v573_v17 = vld [vmem:[%s19543_s1 + $0x1118] sm:$0xff]  ;;  %v12811_v13 = vcombine.low %v581_v6, %v585_v46 }
 0x518   :  { %11414 = vmatpush2.bf16.msra.mxu0 %v12739_v28  ;;  %v725_v22 = vld [vmem:[%s19543_s1 + $0x15d8] sm:$0xff] }
 0x519   :  { %11415 = vmatprep.subr.bf16.mxu0 %v12732_v35  ;;  %v729_v28 = vld [vmem:[%s19543_s1 + $0x15f8] sm:$0xff] }
 0x51a   :  { %11381 = vmatpush2.bf16.msra.mxu1 %v12579_v39  ;;  %v565_v39 = vld [vmem:[%s19543_s1 + $0x10d8] sm:$0xff]  ;;  %v12956_v51 = vcombine.high %v725_v22, %v729_v28 }
 0x51b   :  { %11432 = vmatprep.subr.bf16.mxu1 %v12828_v2  ;;  %v11097_v52 = vpop.f32.mrf.mxu0  ;;  %v569_v35 = vld [vmem:[%s19543_s1 + $0x10f8] sm:$0xff] }
 0x51c   :  { %v11098_v42 = vadd.f32 %v11097_v52, %v18104_v53  ;;  %11416 = vmatpush2.bf16.msra.mxu0 %v12731_v61  ;;  %v477_v53 = vld [vmem:[%s19543_s1 + $0xe18] sm:$0xff]  ;;  %v12796_v8 = vcombine.high %v565_v39, %v569_v35  ;;  %v12795_v1 = vcombine.low %v565_v39, %v569_v35 }
 0x51d   :  { %v11138_v14 = vpop.f32.mrf.mxu1  ;;  %11383 = vmatmul.mubr.bf16.vlgmr.msra.gmra.mxu1 %v14493_v47  ;;  %v11099_v57 = vpop.f32.mrf.mxu0  ;;  %11417 = vmatprep.subr.bf16.mxu0 %v12724_v34  ;;  %v481_v47 = vld [vmem:[%s19543_s1 + $0xe38] sm:$0xff] }
 0x51e   :  { %11433 = vmatpush1.bf16.msra.mxu1 %v12827_v29  ;;  %v18306_v49 = vadd.f32 %v11138_v14, %v11098_v42  ;;  %v11100_v59 = vadd.f32 %v11099_v57, %v18120_v48  ;;  %11464 = vmatprep.mubr.bf16.mxu1 %v14508_v55  ;;  %v577_v48 = vld [vmem:[%s19543_s1 + $0x1138] sm:$0xff]  ;;  %v12708_v5 = vcombine.high %v477_v53, %v481_v47 }
 0x51f   :  { %v11140_v20 = vpop.f32.mrf.mxu1  ;;  %11434 = vmatprep.subr.bf16.mxu1 %v12820_v60  ;;  %v11101_v38 = vpop.f32.mrf.mxu0  ;;  %v12804_v30 = vcombine.high %v573_v17, %v577_v48  ;;  %v12707_v2 = vcombine.low %v477_v53, %v481_v47  ;;  %v12803_v37 = vcombine.low %v573_v17, %v577_v48  ;;  %v717_v9 = vld [vmem:[%s19543_s1 + $0x1598] sm:$0xff]  ;;  %v12955_v60 = vcombine.low %v725_v22, %v729_v28 }
 0x520   :  { %v18322_v63 = vadd.f32 %v11140_v20, %v11100_v59  ;;  %11418 = vmatpush2.bf16.msra.mxu0 %v12723_v54  ;;  %v721_v61 = vld [vmem:[%s19543_s1 + $0x15b8] sm:$0xff] }
 0x521   :  { %v11142_v19 = vpop.f32.mrf.mxu1  ;;  %v11102_v40 = vpop.f32.mrf.mxu0  ;;  %11419 = vmatprep.subr.bf16.mxu0 %v12716_v10  ;;  %v557_v29 = vld [vmem:[%s19543_s1 + $0x1098] sm:$0xff]  ;;  %v12948_v4 = vcombine.high %v717_v9, %v721_v61  ;;  %v12947_v54 = vcombine.low %v717_v9, %v721_v61 }
 0x522   :  { %11435 = vmatpush1.bf16.msra.mxu1 %v12819_v7  ;;  %v561_v34 = vld [vmem:[%s19543_s1 + $0x10b8] sm:$0xff] }
 0x523   :  { %v11143_v55 = vpop.f32.mrf.mxu1  ;;  %11436 = vmatprep.subr.bf16.mxu1 %v12812_v27  ;;  %v12788_v52 = vcombine.high %v557_v29, %v561_v34  ;;  %v709_v6 = vld [vmem:[%s19543_s1 + $0x1558] sm:$0xff]  ;;  %v12787_v57 = vcombine.low %v557_v29, %v561_v34 }
 0x524   :  { %11420 = vmatpush2.bf16.msra.mxu0 %v12715_v36  ;;  %v713_v46 = vld [vmem:[%s19543_s1 + $0x1578] sm:$0xff] }
 0x525   :  { %11421 = vmatprep.subr.bf16.mxu0 %v12708_v5  ;;  %v549_v42 = vld [vmem:[%s19543_s1 + $0x1058] sm:$0xff]  ;;  %v12940_v7 = vcombine.high %v709_v6, %v713_v46  ;;  %v12939_v27 = vcombine.low %v709_v6, %v713_v46 }
 0x526   :  { %11437 = vmatpush1.bf16.msra.mxu1 %v12811_v13  ;;  %v553_v14 = vld [vmem:[%s19543_s1 + $0x1078] sm:$0xff] }
 0x527   :  { %11438 = vmatprep.subr.bf16.mxu1 %v12804_v30  ;;  %v12780_v10 = vcombine.high %v549_v42, %v553_v14  ;;  %v705_v59 = vld [vmem:[%s19543_s1 + $0x1538] sm:$0xff]  ;;  %v12779_v53 = vcombine.low %v549_v42, %v553_v14 }
 0x528   :  { %11422 = vmatpush2.bf16.msra.mxu0 %v12707_v2  ;;  %v541_v20 = vld [vmem:[%s19543_s1 + $0x1018] sm:$0xff] }
 0x529   :  { %11473 = vmatprep.subr.bf16.mxu0 %v12956_v51  ;;  %v693_v17 = vld [vmem:[%s19543_s1 + $0x14d8] sm:$0xff] }
 0x52a   :  { %11439 = vmatpush1.bf16.msra.mxu1 %v12803_v37  ;;  %v697_v48 = vld [vmem:[%s19543_s1 + $0x14f8] sm:$0xff] }
 0x52b   :  { %11440 = vmatprep.subr.bf16.mxu1 %v12796_v8  ;;  %11424 = vmatmul.mubr.bf16.vlgmr.msra.gmra.mxu0 %v14512_v56  ;;  %v701_v56 = vld [vmem:[%s19543_s1 + $0x1518] sm:$0xff]  ;;  %v12924_v5 = vcombine.high %v693_v17, %v697_v48  ;;  %v12923_v35 = vcombine.low %v693_v17, %v697_v48 }
 0x52c   :  { %11474 = vmatpush1.bf16.msra.mxu0 %v12955_v60  ;;  %11505 = vmatprep.mubr.bf16.mxu0 %v14529_v3  ;;  %v545_v3 = vld [vmem:[%s19543_s1 + $0x1038] sm:$0xff]  ;;  %v12932_v47 = vcombine.high %v701_v56, %v705_v59  ;;  %v12931_v40 = vcombine.low %v701_v56, %v705_v59 }
 0x52d   :  { %11475 = vmatprep.subr.bf16.mxu0 %v12948_v4  ;;  %v12772_v38 = vcombine.high %v541_v20, %v545_v3  ;;  %v661_v19 = vld [vmem:[%s19543_s1 + $0x13d8] sm:$0xff]  ;;  %v12771_v13 = vcombine.low %v541_v20, %v545_v3 }
 0x52e   :  { %11441 = vmatpush1.bf16.msra.mxu1 %v12795_v1  ;;  %v665_v36 = vld [vmem:[%s19543_s1 + $0x13f8] sm:$0xff] }
 0x52f   :  { %11442 = vmatprep.subr.bf16.mxu1 %v12788_v52  ;;  %v12892_v55 = vcombine.high %v661_v19, %v665_v36  ;;  %v685_v30 = vld [vmem:[%s19543_s1 + $0x1498] sm:$0xff]  ;;  %v12891_v2 = vcombine.low %v661_v19, %v665_v36 }
 0x530   :  { %11476 = vmatpush1.bf16.msra.mxu0 %v12947_v54  ;;  %v689_v22 = vld [vmem:[%s19543_s1 + $0x14b8] sm:$0xff] }
 0x531   :  { %11477 = vmatprep.subr.bf16.mxu0 %v12940_v7  ;;  %v653_v28 = vld [vmem:[%s19543_s1 + $0x1398] sm:$0xff]  ;;  %v12916_v37 = vcombine.high %v685_v30, %v689_v22  ;;  %v12915_v34 = vcombine.low %v685_v30, %v689_v22 }
 0x532   :  { %11443 = vmatpush1.bf16.msra.mxu1 %v12787_v57  ;;  %v657_v39 = vld [vmem:[%s19543_s1 + $0x13b8] sm:$0xff] }
 0x533   :  { %11444 = vmatprep.subr.bf16.mxu1 %v12780_v10  ;;  %v12884_v51 = vcombine.high %v653_v28, %v657_v39  ;;  %v677_v8 = vld [vmem:[%s19543_s1 + $0x1458] sm:$0xff]  ;;  %v12883_v60 = vcombine.low %v653_v28, %v657_v39 }
 0x534   :  { %11478 = vmatpush1.bf16.msra.mxu0 %v12939_v27  ;;  %v681_v9 = vld [vmem:[%s19543_s1 + $0x1478] sm:$0xff] }
 0x535   :  { %11479 = vmatprep.subr.bf16.mxu0 %v12932_v47  ;;  %v645_v61 = vld [vmem:[%s19543_s1 + $0x1358] sm:$0xff]  ;;  %v12908_v1 = vcombine.high %v677_v8, %v681_v9  ;;  %v12907_v14 = vcombine.low %v677_v8, %v681_v9 }
 0x536   :  { %11445 = vmatpush1.bf16.msra.mxu1 %v12779_v53  ;;  %v649_v29 = vld [vmem:[%s19543_s1 + $0x1378] sm:$0xff] }
 0x537   :  { %11446 = vmatprep.subr.bf16.mxu1 %v12772_v38  ;;  %v12876_v4 = vcombine.high %v645_v61, %v649_v29  ;;  %v669_v52 = vld [vmem:[%s19543_s1 + $0x1418] sm:$0xff]  ;;  %v12875_v54 = vcombine.low %v645_v61, %v649_v29 }
 0x538   :  { %11480 = vmatpush1.bf16.msra.mxu0 %v12931_v40  ;;  %v673_v6 = vld [vmem:[%s19543_s1 + $0x1438] sm:$0xff] }
 0x539   :  { %11481 = vmatprep.subr.bf16.mxu0 %v12924_v5  ;;  %v637_v46 = vld [vmem:[%s19543_s1 + $0x1318] sm:$0xff]  ;;  %v12900_v57 = vcombine.high %v669_v52, %v673_v6  ;;  %v12899_v3 = vcombine.low %v669_v52, %v673_v6 }
 0x53a   :  { %11447 = vmatpush1.bf16.msra.mxu1 %v12771_v13  ;;  %v641_v42 = vld [vmem:[%s19543_s1 + $0x1338] sm:$0xff] }
 0x53b   :  { %11448 = vmatprep.subr.bf16.mxu1 %v12892_v55  ;;  %v12868_v7 = vcombine.high %v637_v46, %v641_v42  ;;  %v789_v10 = vld [vmem:[%s19543_s1 + $0x17d8] sm:$0xff]  ;;  %v12867_v27 = vcombine.low %v637_v46, %v641_v42 }
 0x53c   :  { %11482 = vmatpush1.bf16.msra.mxu0 %v12923_v35  ;;  %v793_v56 = vld [vmem:[%s19543_s1 + $0x17f8] sm:$0xff] }
 0x53d   :  { %11483 = vmatprep.subr.bf16.mxu0 %v12916_v37  ;;  %v629_v59 = vld [vmem:[%s19543_s1 + $0x12d8] sm:$0xff]  ;;  %v13020_v53 = vcombine.high %v789_v10, %v793_v56  ;;  %v13019_v36 = vcombine.low %v789_v10, %v793_v56 }
 0x53e   :  { %11449 = vmatpush2.bf16.msra.mxu1 %v12891_v2  ;;  %v633_v20 = vld [vmem:[%s19543_s1 + $0x12f8] sm:$0xff] }
 0x53f   :  { %11450 = vmatprep.subr.bf16.mxu1 %v12884_v51  ;;  %v12860_v47 = vcombine.high %v629_v59, %v633_v20  ;;  %v781_v38 = vld [vmem:[%s19543_s1 + $0x1798] sm:$0xff]  ;;  %v12859_v40 = vcombine.low %v629_v59, %v633_v20 }
 0x540   :  { %11484 = vmatpush1.bf16.msra.mxu0 %v12915_v34  ;;  %v785_v17 = vld [vmem:[%s19543_s1 + $0x17b8] sm:$0xff] }
 0x541   :  { %11485 = vmatprep.subr.bf16.mxu0 %v12908_v1  ;;  %v621_v48 = vld [vmem:[%s19543_s1 + $0x1298] sm:$0xff]  ;;  %v13012_v13 = vcombine.high %v781_v38, %v785_v17  ;;  %v13011_v39 = vcombine.low %v781_v38, %v785_v17 }
 0x542   :  { %11451 = vmatpush2.bf16.msra.mxu1 %v12883_v60  ;;  %v625_v19 = vld [vmem:[%s19543_s1 + $0x12b8] sm:$0xff] }
 0x543   :  { %11452 = vmatprep.subr.bf16.mxu1 %v12876_v4  ;;  %v12852_v5 = vcombine.high %v621_v48, %v625_v19  ;;  %v773_v55 = vld [vmem:[%s19543_s1 + $0x1758] sm:$0xff]  ;;  %v12851_v35 = vcombine.low %v621_v48, %v625_v19 }
 0x544   :  { %11486 = vmatpush1.bf16.msra.mxu0 %v12907_v14  ;;  %v777_v30 = vld [vmem:[%s19543_s1 + $0x1778] sm:$0xff] }
 0x545   :  { %11487 = vmatprep.subr.bf16.mxu0 %v12900_v57  ;;  %v613_v22 = vld [vmem:[%s19543_s1 + $0x1258] sm:$0xff]  ;;  %v13004_v2 = vcombine.high %v773_v55, %v777_v30  ;;  %v13003_v29 = vcombine.low %v773_v55, %v777_v30 }
 0x546   :  { %11453 = vmatpush2.bf16.msra.mxu1 %v12875_v54  ;;  %v617_v28 = vld [vmem:[%s19543_s1 + $0x1278] sm:$0xff] }
 0x547   :  { %11454 = vmatprep.subr.bf16.mxu1 %v12868_v7  ;;  %v12844_v37 = vcombine.high %v613_v22, %v617_v28  ;;  %v765_v51 = vld [vmem:[%s19543_s1 + $0x1718] sm:$0xff]  ;;  %v12843_v34 = vcombine.low %v613_v22, %v617_v28 }
 0x548   :  { %11488 = vmatpush1.bf16.msra.mxu0 %v12899_v3  ;;  %v769_v8 = vld [vmem:[%s19543_s1 + $0x1738] sm:$0xff] }
 0x549   :  { %11489 = vmatprep.subr.bf16.mxu0 %v13020_v53  ;;  %v605_v9 = vld [vmem:[%s19543_s1 + $0x1218] sm:$0xff]  ;;  %v12996_v60 = vcombine.high %v765_v51, %v769_v8  ;;  %v12995_v42 = vcombine.low %v765_v51, %v769_v8 }
 0x54a   :  { %11455 = vmatpush2.bf16.msra.mxu1 %v12867_v27  ;;  %v609_v61 = vld [vmem:[%s19543_s1 + $0x1238] sm:$0xff] }
 0x54b   :  { %11456 = vmatprep.subr.bf16.mxu1 %v12860_v47  ;;  %v12836_v1 = vcombine.high %v605_v9, %v609_v61  ;;  %v757_v4 = vld [vmem:[%s19543_s1 + $0x16d8] sm:$0xff]  ;;  %v12835_v14 = vcombine.low %v605_v9, %v609_v61 }
 0x54c   :  { %11490 = vmatpush2.bf16.msra.mxu0 %v13019_v36  ;;  %v761_v52 = vld [vmem:[%s19543_s1 + $0x16f8] sm:$0xff] }
 0x54d   :  { %11491 = vmatprep.subr.bf16.mxu0 %v13012_v13  ;;  %v853_v6 = vld [vmem:[%s19543_s1 + $0x19d8] sm:$0xff]  ;;  %v12988_v54 = vcombine.high %v757_v4, %v761_v52  ;;  %v12987_v20 = vcombine.low %v757_v4, %v761_v52 }
 0x54e   :  { %11457 = vmatpush2.bf16.msra.mxu1 %v12859_v40  ;;  %v857_v46 = vld [vmem:[%s19543_s1 + $0x19f8] sm:$0xff] }
 0x54f   :  { %11458 = vmatprep.subr.bf16.mxu1 %v12852_v5  ;;  %v13084_v57 = vcombine.high %v853_v6, %v857_v46  ;;  %v749_v7 = vld [vmem:[%s19543_s1 + $0x1698] sm:$0xff]  ;;  %v13083_v3 = vcombine.low %v853_v6, %v857_v46 }
 0x550   :  { %11492 = vmatpush2.bf16.msra.mxu0 %v13011_v39  ;;  %v753_v10 = vld [vmem:[%s19543_s1 + $0x16b8] sm:$0xff] }
 0x551   :  { %11493 = vmatprep.subr.bf16.mxu0 %v13004_v2  ;;  %v845_v56 = vld [vmem:[%s19543_s1 + $0x1998] sm:$0xff]  ;;  %v12980_v27 = vcombine.high %v749_v7, %v753_v10  ;;  %v12979_v13 = vcombine.low %v749_v7, %v753_v10 }
 0x552   :  { %11459 = vmatpush2.bf16.msra.mxu1 %v12851_v35  ;;  %v849_v59 = vld [vmem:[%s19543_s1 + $0x19b8] sm:$0xff] }
 0x553   :  { %11460 = vmatprep.subr.bf16.mxu1 %v12844_v37  ;;  %v13076_v53 = vcombine.high %v845_v56, %v849_v59  ;;  %v741_v47 = vld [vmem:[%s19543_s1 + $0x1658] sm:$0xff]  ;;  %v13075_v55 = vcombine.low %v845_v56, %v849_v59 }
 0x554   :  { %11494 = vmatpush2.bf16.msra.mxu0 %v13003_v29  ;;  %v745_v38 = vld [vmem:[%s19543_s1 + $0x1678] sm:$0xff] }
 0x555   :  { %11495 = vmatprep.subr.bf16.mxu0 %v12996_v60  ;;  %v837_v48 = vld [vmem:[%s19543_s1 + $0x1958] sm:$0xff]  ;;  %v12972_v30 = vcombine.high %v741_v47, %v745_v38  ;;  %v12971_v9 = vcombine.low %v741_v47, %v745_v38 }
 0x556   :  { %11461 = vmatpush2.bf16.msra.mxu1 %v12843_v34  ;;  %v841_v19 = vld [vmem:[%s19543_s1 + $0x1978] sm:$0xff] }
 0x557   :  { %11462 = vmatprep.subr.bf16.mxu1 %v12836_v1  ;;  %v13068_v35 = vcombine.high %v837_v48, %v841_v19  ;;  %v829_v37 = vld [vmem:[%s19543_s1 + $0x1918] sm:$0xff]  ;;  %v13067_v29 = vcombine.low %v837_v48, %v841_v19 }
 0x558   :  { %11496 = vmatpush2.bf16.msra.mxu0 %v12995_v42  ;;  %v981_v1 = vld [vmem:[%s19543_s1 + $0x1dd8] sm:$0xff] }
 0x559   :  { %11497 = vmatprep.subr.bf16.mxu0 %v12988_v54  ;;  %v985_v4 = vld [vmem:[%s19543_s1 + $0x1df8] sm:$0xff] }
 0x55a   :  { %11463 = vmatpush2.bf16.msra.mxu1 %v12835_v14  ;;  %v821_v52 = vld [vmem:[%s19543_s1 + $0x18d8] sm:$0xff]  ;;  %v13212_v14 = vcombine.high %v981_v1, %v985_v4  ;;  %v13211_v59 = vcombine.low %v981_v1, %v985_v4 }
 0x55b   :  { %11514 = vmatprep.subr.bf16.mxu1 %v13084_v57  ;;  %v11179_v17 = vpop.f32.mrf.mxu0  ;;  %v825_v6 = vld [vmem:[%s19543_s1 + $0x18f8] sm:$0xff] }
 0x55c   :  { %v11180_v36 = vadd.f32 %v11179_v17, %v18306_v49  ;;  %11498 = vmatpush2.bf16.msra.mxu0 %v12987_v20  ;;  %v733_v49 = vld [vmem:[%s19543_s1 + $0x1618] sm:$0xff]  ;;  %v13052_v54 = vcombine.high %v821_v52, %v825_v6  ;;  %v13051_v20 = vcombine.low %v821_v52, %v825_v6 }
 0x55d   :  { %v11220_v40 = vpop.f32.mrf.mxu1  ;;  %11465 = vmatmul.mubr.bf16.vlgmr.msra.gmra.mxu1 %v14711_v21  ;;  %v11181_v5 = vpop.f32.mrf.mxu0  ;;  %11499 = vmatprep.subr.bf16.mxu0 %v12980_v27  ;;  %v737_v21 = vld [vmem:[%s19543_s1 + $0x1638] sm:$0xff] }
 0x55e   :  { %11515 = vmatpush1.bf16.msra.mxu1 %v13083_v3  ;;  %v11221_v22 = vadd.f32 %v11220_v40, %v11180_v36  ;;  %v11182_v28 = vadd.f32 %v11181_v5, %v18322_v63  ;;  %11546 = vmatprep.mubr.bf16.mxu1 %v14726_v31  ;;  %v833_v63 = vld [vmem:[%s19543_s1 + $0x1938] sm:$0xff]  ;;  %v12964_v34 = vcombine.high %v733_v49, %v737_v21 }
 0x55f   :  { %v11222_v39 = vpop.f32.mrf.mxu1  ;;  %11516 = vmatprep.subr.bf16.mxu1 %v13076_v53  ;;  %v11183_v2 = vpop.f32.mrf.mxu0  ;;  %v13060_v31 = vcombine.high %v829_v37, %v833_v63  ;;  %v12963_v46 = vcombine.low %v733_v49, %v737_v21  ;;  %v13059_v42 = vcombine.low %v829_v37, %v833_v63  ;;  %v973_v57 = vld [vmem:[%s19543_s1 + $0x1d98] sm:$0xff] }
 0x560   :  { %v11223_v51 = vadd.f32 %v11222_v39, %v11182_v28  ;;  %11500 = vmatpush2.bf16.msra.mxu0 %v12979_v13  ;;  %v977_v7 = vld [vmem:[%s19543_s1 + $0x1db8] sm:$0xff] }
 0x561   :  { %v11224_v8 = vpop.f32.mrf.mxu1  ;;  %v11184_v61 = vpop.f32.mrf.mxu0  ;;  %11501 = vmatprep.subr.bf16.mxu0 %v12972_v30  ;;  %v813_v10 = vld [vmem:[%s19543_s1 + $0x1898] sm:$0xff]  ;;  %v13204_v3 = vcombine.high %v973_v57, %v977_v7  ;;  %v13203_v36 = vcombine.low %v973_v57, %v977_v7 }
 0x562   :  { %11517 = vmatpush1.bf16.msra.mxu1 %v13075_v55  ;;  %v817_v56 = vld [vmem:[%s19543_s1 + $0x18b8] sm:$0xff] }
 0x563   :  { %v11225_v60 = vpop.f32.mrf.mxu1  ;;  %11518 = vmatprep.subr.bf16.mxu1 %v13068_v35  ;;  %v13044_v27 = vcombine.high %v813_v10, %v817_v56  ;;  %v965_v53 = vld [vmem:[%s19543_s1 + $0x1d58] sm:$0xff]  ;;  %v13043_v13 = vcombine.low %v813_v10, %v817_v56 }
 0x564   :  { %11502 = vmatpush2.bf16.msra.mxu0 %v12971_v9  ;;  %v969_v47 = vld [vmem:[%s19543_s1 + $0x1d78] sm:$0xff] }
 0x565   :  { %11503 = vmatprep.subr.bf16.mxu0 %v12964_v34  ;;  %v805_v17 = vld [vmem:[%s19543_s1 + $0x1858] sm:$0xff]  ;;  %v13196_v5 = vcombine.high %v965_v53, %v969_v47  ;;  %v13195_v35 = vcombine.low %v965_v53, %v969_v47 }
 0x566   :  { %11519 = vmatpush1.bf16.msra.mxu1 %v13067_v29  ;;  %v809_v48 = vld [vmem:[%s19543_s1 + $0x1878] sm:$0xff] }
 0x567   :  { %11520 = vmatprep.subr.bf16.mxu1 %v13060_v31  ;;  %v13036_v55 = vcombine.high %v805_v17, %v809_v48  ;;  %v957_v30 = vld [vmem:[%s19543_s1 + $0x1d18] sm:$0xff]  ;;  %v13035_v21 = vcombine.low %v805_v17, %v809_v48 }
 0x568   :  { %11504 = vmatpush2.bf16.msra.mxu0 %v12963_v46  ;;  %v801_v39 = vld [vmem:[%s19543_s1 + $0x1838] sm:$0xff] }
 0x569   :  { %11555 = vmatprep.subr.bf16.mxu0 %v13212_v14  ;;  %v949_v63 = vld [vmem:[%s19543_s1 + $0x1cd8] sm:$0xff] }
 0x56a   :  { %11521 = vmatpush1.bf16.msra.mxu1 %v13059_v42  ;;  %v917_v8 = vld [vmem:[%s19543_s1 + $0x1bd8] sm:$0xff] }
 0x56b   :  { %11522 = vmatprep.subr.bf16.mxu1 %v13052_v54  ;;  %v11261_v38 = vpop.f32.mrf.mxu0  ;;  %11506 = vmatmul.mubr.bf16.vlgmr.msra.gmra.mxu0 %v14730_v32  ;;  %v921_v9 = vld [vmem:[%s19543_s1 + $0x1bf8] sm:$0xff] }
 0x56c   :  { %v18559_v19 = vadd.f32 %v11261_v38, %v11221_v22  ;;  %11556 = vmatpush1.bf16.msra.mxu0 %v13211_v59  ;;  %11587 = vmatprep.mubr.bf16.mxu0 %v14747_v44  ;;  %v961_v22 = vld [vmem:[%s19543_s1 + $0x1d38] sm:$0xff]  ;;  %v13148_v60 = vcombine.high %v917_v8, %v921_v9  ;;  %v13147_v46 = vcombine.low %v917_v8, %v921_v9 }
 0x56d   :  { %v11263_v40 = vpop.f32.mrf.mxu0  ;;  %11557 = vmatprep.subr.bf16.mxu0 %v13204_v3  ;;  %v797_v44 = vld [vmem:[%s19543_s1 + $0x1818] sm:$0xff]  ;;  %v13188_v2 = vcombine.high %v957_v30, %v961_v22  ;;  %v13187_v61 = vcombine.low %v957_v30, %v961_v22 }
 0x56e   :  { %11523 = vmatpush1.bf16.msra.mxu1 %v13051_v20  ;;  %v18562_v32 = vadd.f32 %v11263_v40, %v11223_v51  ;;  %v13028_v37 = vcombine.high %v797_v44, %v801_v39  ;;  %v953_v51 = vld [vmem:[%s19543_s1 + $0x1cf8] sm:$0xff]  ;;  %v13027_v29 = vcombine.low %v797_v44, %v801_v39 }
 0x56f   :  { %11524 = vmatprep.subr.bf16.mxu1 %v13044_v27  ;;  %v11265_v28 = vpop.f32.mrf.mxu0  ;;  %v13180_v34 = vcombine.high %v949_v63, %v953_v51  ;;  %v941_v31 = vld [vmem:[%s19543_s1 + $0x1c98] sm:$0xff]  ;;  %v13179_v6 = vcombine.low %v949_v63, %v953_v51 }
 0x570   :  { %11558 = vmatpush1.bf16.msra.mxu0 %v13203_v36  ;;  %v945_v1 = vld [vmem:[%s19543_s1 + $0x1cb8] sm:$0xff] }
 0x571   :  { %v11266_v49 = vpop.f32.mrf.mxu0  ;;  %11559 = vmatprep.subr.bf16.mxu0 %v13196_v5  ;;  %v909_v4 = vld [vmem:[%s19543_s1 + $0x1b98] sm:$0xff]  ;;  %v13172_v42 = vcombine.high %v941_v31, %v945_v1  ;;  %v13171_v56 = vcombine.low %v941_v31, %v945_v1 }
 0x572   :  { %11525 = vmatpush1.bf16.msra.mxu1 %v13043_v13  ;;  %v913_v52 = vld [vmem:[%s19543_s1 + $0x1bb8] sm:$0xff] }
 0x573   :  { %11526 = vmatprep.subr.bf16.mxu1 %v13036_v55  ;;  %v13140_v14 = vcombine.high %v909_v4, %v913_v52  ;;  %v933_v54 = vld [vmem:[%s19543_s1 + $0x1c58] sm:$0xff]  ;;  %v13139_v59 = vcombine.low %v909_v4, %v913_v52 }
 0x574   :  { %11560 = vmatpush1.bf16.msra.mxu0 %v13195_v35  ;;  %v937_v57 = vld [vmem:[%s19543_s1 + $0x1c78] sm:$0xff] }
 0x575   :  { %11561 = vmatprep.subr.bf16.mxu0 %v13188_v2  ;;  %v901_v7 = vld [vmem:[%s19543_s1 + $0x1b58] sm:$0xff]  ;;  %v13164_v20 = vcombine.high %v933_v54, %v937_v57  ;;  %v13163_v17 = vcombine.low %v933_v54, %v937_v57 }
 0x576   :  { %11527 = vmatpush1.bf16.msra.mxu1 %v13035_v21  ;;  %v905_v10 = vld [vmem:[%s19543_s1 + $0x1b78] sm:$0xff] }
 0x577   :  { %11528 = vmatprep.subr.bf16.mxu1 %v13028_v37  ;;  %v13132_v3 = vcombine.high %v901_v7, %v905_v10  ;;  %v925_v27 = vld [vmem:[%s19543_s1 + $0x1c18] sm:$0xff]  ;;  %v13131_v48 = vcombine.low %v901_v7, %v905_v10 }
 0x578   :  { %11562 = vmatpush1.bf16.msra.mxu0 %v13187_v61  ;;  %v929_v53 = vld [vmem:[%s19543_s1 + $0x1c38] sm:$0xff] }
 0x579   :  { %11563 = vmatprep.subr.bf16.mxu0 %v13180_v34  ;;  %v893_v47 = vld [vmem:[%s19543_s1 + $0x1b18] sm:$0xff]  ;;  %v13156_v36 = vcombine.high %v925_v27, %v929_v53  ;;  %v13155_v22 = vcombine.low %v925_v27, %v929_v53 }
 0x57a   :  { %11529 = vmatpush1.bf16.msra.mxu1 %v13027_v29  ;;  %v897_v38 = vld [vmem:[%s19543_s1 + $0x1b38] sm:$0xff] }
 0x57b   :  { %11530 = vmatprep.subr.bf16.mxu1 %v13148_v60  ;;  %v13124_v40 = vcombine.high %v893_v47, %v897_v38  ;;  %v1045_v13 = vld [vmem:[%s19543_s1 + $0x1fd8] sm:$0xff]  ;;  %v13123_v28 = vcombine.low %v893_v47, %v897_v38 }
 0x57c   :  { %11564 = vmatpush1.bf16.msra.mxu0 %v13179_v6  ;;  %v1049_v5 = vld [vmem:[%s19543_s1 + $0x1ff8] sm:$0xff] }
 0x57d   :  { %11565 = vmatprep.subr.bf16.mxu0 %v13172_v42  ;;  %v885_v55 = vld [vmem:[%s19543_s1 + $0x1ad8] sm:$0xff]  ;;  %v13276_v44 = vcombine.high %v1045_v13, %v1049_v5  ;;  %v13275_v37 = vcombine.low %v1045_v13, %v1049_v5 }
 0x57e   :  { %11531 = vmatpush2.bf16.msra.mxu1 %v13147_v46  ;;  %v889_v30 = vld [vmem:[%s19543_s1 + $0x1af8] sm:$0xff] }
 0x57f   :  { %11532 = vmatprep.subr.bf16.mxu1 %v13140_v14  ;;  %v13116_v39 = vcombine.high %v885_v55, %v889_v30  ;;  %v1037_v35 = vld [vmem:[%s19543_s1 + $0x1f98] sm:$0xff]  ;;  %v13115_v63 = vcombine.low %v885_v55, %v889_v30 }
 0x580   :  { %11566 = vmatpush1.bf16.msra.mxu0 %v13171_v56  ;;  %v1041_v49 = vld [vmem:[%s19543_s1 + $0x1fb8] sm:$0xff] }
 0x581   :  { %11567 = vmatprep.subr.bf16.mxu0 %v13164_v20  ;;  %v877_v21 = vld [vmem:[%s19543_s1 + $0x1a98] sm:$0xff]  ;;  %v13268_v51 = vcombine.high %v1037_v35, %v1041_v49  ;;  %v13267_v60 = vcombine.low %v1037_v35, %v1041_v49 }
 0x582   :  { %11533 = vmatpush2.bf16.msra.mxu1 %v13139_v59  ;;  %v881_v2 = vld [vmem:[%s19543_s1 + $0x1ab8] sm:$0xff] }
 0x583   :  { %11534 = vmatprep.subr.bf16.mxu1 %v13132_v3  ;;  %v13108_v8 = vcombine.high %v877_v21, %v881_v2  ;;  %v1029_v9 = vld [vmem:[%s19543_s1 + $0x1f58] sm:$0xff]  ;;  %v13107_v31 = vcombine.low %v877_v21, %v881_v2 }
 0x584   :  { %11568 = vmatpush1.bf16.msra.mxu0 %v13163_v17  ;;  %v1033_v61 = vld [vmem:[%s19543_s1 + $0x1f78] sm:$0xff] }
 0x585   :  { %11569 = vmatprep.subr.bf16.mxu0 %v13156_v36  ;;  %v869_v29 = vld [vmem:[%s19543_s1 + $0x1a58] sm:$0xff]  ;;  %v13260_v1 = vcombine.high %v1029_v9, %v1033_v61  ;;  %v13259_v14 = vcombine.low %v1029_v9, %v1033_v61 }
 0x586   :  { %11535 = vmatpush2.bf16.msra.mxu1 %v13131_v48  ;;  %v873_v34 = vld [vmem:[%s19543_s1 + $0x1a78] sm:$0xff] }
 0x587   :  { %11536 = vmatprep.subr.bf16.mxu1 %v13124_v40  ;;  %v13100_v4 = vcombine.high %v869_v29, %v873_v34  ;;  %v1021_v52 = vld [vmem:[%s19543_s1 + $0x1f18] sm:$0xff]  ;;  %v13099_v54 = vcombine.low %v869_v29, %v873_v34 }
 0x588   :  { %11570 = vmatpush1.bf16.msra.mxu0 %v13155_v22  ;;  %v1025_v6 = vld [vmem:[%s19543_s1 + $0x1f38] sm:$0xff] }
 0x589   :  { %11571 = vmatprep.subr.bf16.mxu0 %v13276_v44  ;;  %v861_v46 = vld [vmem:[%s19543_s1 + $0x1a18] sm:$0xff]  ;;  %v13252_v57 = vcombine.high %v1021_v52, %v1025_v6  ;;  %v13251_v3 = vcombine.low %v1021_v52, %v1025_v6 }
 0x58a   :  { %11537 = vmatpush2.bf16.msra.mxu1 %v13123_v28  ;;  %v865_v42 = vld [vmem:[%s19543_s1 + $0x1a38] sm:$0xff] }
 0x58b   :  { %11538 = vmatprep.subr.bf16.mxu1 %v13116_v39  ;;  %v13092_v7 = vcombine.high %v861_v46, %v865_v42  ;;  %v1013_v10 = vld [vmem:[%s19543_s1 + $0x1ed8] sm:$0xff]  ;;  %v13091_v27 = vcombine.low %v861_v46, %v865_v42  ;;  %v1626_v46 = vsub.s32 7, %v14099_v43 }
 0x58c   :  { %11572 = vmatpush2.bf16.msra.mxu0 %v13275_v37  ;;  %v1017_v56 = vld [vmem:[%s19543_s1 + $0x1ef8] sm:$0xff] }
 0x58d   :  { %11573 = vmatprep.subr.bf16.mxu0 %v13268_v51  ;;  %v1109_v59 = vld [vmem:[%s19543_s1 + $0x21d8] sm:$0xff]  ;;  %v13244_v53 = vcombine.high %v1013_v10, %v1017_v56  ;;  %v13243_v40 = vcombine.low %v1013_v10, %v1017_v56 }
 0x58e   :  { %11539 = vmatpush2.bf16.msra.mxu1 %v13115_v63  ;;  %v1113_v20 = vld [vmem:[%s19543_s1 + $0x21f8] sm:$0xff] }
 0x58f   :  { %11540 = vmatprep.subr.bf16.mxu1 %v13108_v8  ;;  %v13340_v47 = vcombine.high %v1109_v59, %v1113_v20  ;;  %v1005_v38 = vld [vmem:[%s19543_s1 + $0x1e98] sm:$0xff]  ;;  %v13339_v13 = vcombine.low %v1109_v59, %v1113_v20 }
 0x590   :  { %11574 = vmatpush2.bf16.msra.mxu0 %v13267_v60  ;;  %v1009_v17 = vld [vmem:[%s19543_s1 + $0x1eb8] sm:$0xff]  ;;  %v1622_v60 = vsub.s32 6, %v14099_v43 }
 0x591   :  { %11575 = vmatprep.subr.bf16.mxu0 %v13260_v1  ;;  %v1101_v48 = vld [vmem:[%s19543_s1 + $0x2198] sm:$0xff]  ;;  %v13236_v5 = vcombine.high %v1005_v38, %v1009_v17  ;;  %v13235_v35 = vcombine.low %v1005_v38, %v1009_v17 }
 0x592   :  { %11541 = vmatpush2.bf16.msra.mxu1 %v13107_v31  ;;  %v1105_v36 = vld [vmem:[%s19543_s1 + $0x21b8] sm:$0xff] }
 0x593   :  { %11542 = vmatprep.subr.bf16.mxu1 %v13100_v4  ;;  %v13332_v55 = vcombine.high %v1101_v48, %v1105_v36  ;;  %v997_v30 = vld [vmem:[%s19543_s1 + $0x1e58] sm:$0xff]  ;;  %v13331_v49 = vcombine.low %v1101_v48, %v1105_v36 }
 0x594   :  { %11576 = vmatpush2.bf16.msra.mxu0 %v13259_v14  ;;  %v1001_v22 = vld [vmem:[%s19543_s1 + $0x1e78] sm:$0xff] }
 0x595   :  { %11577 = vmatprep.subr.bf16.mxu0 %v13252_v57  ;;  %v1093_v28 = vld [vmem:[%s19543_s1 + $0x2158] sm:$0xff]  ;;  %v13228_v21 = vcombine.high %v997_v30, %v1001_v22  ;;  %v13227_v61 = vcombine.low %v997_v30, %v1001_v22  ;;  %v13976_v57 = vld [vmem:[%s19544_s2] sm:$0xff] }
 0x596   :  { %11543 = vmatpush2.bf16.msra.mxu1 %v13099_v54  ;;  %v1097_v44 = vld [vmem:[%s19543_s1 + $0x2178] sm:$0xff] }
 0x597   :  { %11544 = vmatprep.subr.bf16.mxu1 %v13092_v7  ;;  %v13324_v37 = vcombine.high %v1093_v28, %v1097_v44  ;;  %v989_v63 = vld [vmem:[%s19543_s1 + $0x1e18] sm:$0xff]  ;;  %v13323_v29 = vcombine.low %v1093_v28, %v1097_v44  ;;  %v1623_v7 = vrot.slane %v13976_v57, %v1622_v60 }
 0x598   :  { %11578 = vmatpush2.bf16.msra.mxu0 %v13251_v3  ;;  %v993_v51 = vld [vmem:[%s19543_s1 + $0x1e38] sm:$0xff]  ;;  %v1627_v3 = vrot.slane %v13976_v57, %v1626_v46 }
 0x599   :  { %11579 = vmatprep.subr.bf16.mxu0 %v13244_v53  ;;  %v1089_v8 = vld [vmem:[%s19543_s1 + $0x2138] sm:$0xff]  ;;  %v13220_v34 = vcombine.high %v989_v63, %v993_v51  ;;  %v13219_v42 = vcombine.low %v989_v63, %v993_v51 }
 0x59a   :  { %11545 = vmatpush2.bf16.msra.mxu1 %v13091_v27  ;;  %v1237_v1 = vld [vmem:[%s19543_s1 + $0x25d8] sm:$0xff] }
 0x59b   :  { %11596 = vmatprep.subr.bf16.mxu1 %v13340_v47  ;;  %v1241_v4 = vld [vmem:[%s19543_s1 + $0x25f8] sm:$0xff] }
 0x59c   :  { %11580 = vmatpush2.bf16.msra.mxu0 %v13243_v40  ;;  %v1077_v52 = vld [vmem:[%s19543_s1 + $0x20d8] sm:$0xff]  ;;  %v13468_v54 = vcombine.high %v1237_v1, %v1241_v4  ;;  %v13467_v27 = vcombine.low %v1237_v1, %v1241_v4 }
 0x59d   :  { %v11302_v39 = vpop.f32.mrf.mxu1  ;;  %11547 = vmatmul.mubr.bf16.vlgmr.msra.gmra.mxu1 %v14934_v11  ;;  %11581 = vmatprep.subr.bf16.mxu0 %v13236_v5  ;;  %v1085_v11 = vld [vmem:[%s19543_s1 + $0x2118] sm:$0xff] }
 0x59e   :  { %11597 = vmatpush1.bf16.msra.mxu1 %v13339_v13  ;;  %11628 = vmatprep.mubr.bf16.mxu1 %v14953_v23  ;;  %v13316_v23 = vcombine.high %v1085_v11, %v1089_v8  ;;  %v1081_v6 = vld [vmem:[%s19543_s1 + $0x20f8] sm:$0xff]  ;;  %v13315_v14 = vcombine.low %v1085_v11, %v1089_v8  ;;  %v11303_v38 = vadd.f32 %v11302_v39, %v1623_v7 }
 0x59f   :  { %v11304_v2 = vpop.f32.mrf.mxu1  ;;  %11598 = vmatprep.subr.bf16.mxu1 %v13332_v55  ;;  %v13308_v10 = vcombine.high %v1077_v52, %v1081_v6  ;;  %v1229_v56 = vld [vmem:[%s19543_s1 + $0x2598] sm:$0xff]  ;;  %v13307_v53 = vcombine.low %v1077_v52, %v1081_v6 }
 0x5a0   :  { %11582 = vmatpush2.bf16.msra.mxu0 %v13235_v35  ;;  %v1233_v43 = vld [vmem:[%s19543_s1 + $0x25b8] sm:$0xff]  ;;  %v11305_v55 = vadd.f32 %v11304_v2, %v1627_v3 }
 0x5a1   :  { %v11306_v9 = vpop.f32.mrf.mxu1  ;;  %11583 = vmatprep.subr.bf16.mxu0 %v13228_v21  ;;  %v1069_v59 = vld [vmem:[%s19543_s1 + $0x2098] sm:$0xff]  ;;  %v13460_v47 = vcombine.high %v1229_v56, %v1233_v43  ;;  %v13459_v22 = vcombine.low %v1229_v56, %v1233_v43 }
 0x5a2   :  { %11599 = vmatpush1.bf16.msra.mxu1 %v13331_v49  ;;  %v1073_v20 = vld [vmem:[%s19543_s1 + $0x20b8] sm:$0xff] }
 0x5a3   :  { %v11307_v31 = vpop.f32.mrf.mxu1  ;;  %11600 = vmatprep.subr.bf16.mxu1 %v13324_v37  ;;  %v13300_v17 = vcombine.high %v1069_v59, %v1073_v20  ;;  %v1221_v48 = vld [vmem:[%s19543_s1 + $0x2558] sm:$0xff]  ;;  %v13299_v44 = vcombine.low %v1069_v59, %v1073_v20 }
 0x5a4   :  { %11584 = vmatpush2.bf16.msra.mxu0 %v13227_v61  ;;  %v1225_v36 = vld [vmem:[%s19543_s1 + $0x2578] sm:$0xff] }
 0x5a5   :  { %11585 = vmatprep.subr.bf16.mxu0 %v13220_v34  ;;  %v1061_v13 = vld [vmem:[%s19543_s1 + $0x2058] sm:$0xff]  ;;  %v13451_v63 = vcombine.low %v1221_v48, %v1225_v36 }
 0x5a6   :  { %11601 = vmatpush1.bf16.msra.mxu1 %v13323_v29  ;;  %v1065_v5 = vld [vmem:[%s19543_s1 + $0x2078] sm:$0xff] }
 0x5a7   :  { %11602 = vmatprep.subr.bf16.mxu1 %v13316_v23  ;;  %v13292_v35 = vcombine.high %v1061_v13, %v1065_v5  ;;  %v1213_v49 = vld [vmem:[%s19543_s1 + $0x2518] sm:$0xff]  ;;  %v13291_v11 = vcombine.low %v1061_v13, %v1065_v5 }
 0x5a8   :  { %11586 = vmatpush2.bf16.msra.mxu0 %v13219_v42  ;;  %v1217_v21 = vld [vmem:[%s19543_s1 + $0x2538] sm:$0xff] }
 0x5a9   :  { %11637 = vmatprep.subr.bf16.mxu0 %v13468_v54  ;;  %v1057_v37 = vld [vmem:[%s19543_s1 + $0x2038] sm:$0xff]  ;;  %v13444_v8 = vcombine.high %v1213_v49, %v1217_v21  ;;  %v13443_v31 = vcombine.low %v1213_v49, %v1217_v21 }
 0x5aa   :  { %11603 = vmatpush1.bf16.msra.mxu1 %v13315_v14  ;;  %v1205_v61 = vld [vmem:[%s19543_s1 + $0x24d8] sm:$0xff] }
 0x5ab   :  { %11604 = vmatprep.subr.bf16.mxu1 %v13308_v10  ;;  %v11343_v40 = vpop.f32.mrf.mxu0  ;;  %11588 = vmatmul.mubr.bf16.vlgmr.msra.gmra.mxu0 %v14957_v26  ;;  %v13452_v26 = vcombine.high %v1221_v48, %v1225_v36  ;;  %v1209_v29 = vld [vmem:[%s19543_s1 + $0x24f8] sm:$0xff] }
 0x5ac   :  { %v18764_v30 = vadd.f32 %v11343_v40, %v11303_v38  ;;  %11638 = vmatpush1.bf16.msra.mxu0 %v13467_v27  ;;  %11669 = vmatprep.mubr.bf16.mxu0 %v14974_v41  ;;  %v1053_v41 = vld [vmem:[%s19543_s1 + $0x2018] sm:$0xff]  ;;  %v13436_v1 = vcombine.high %v1205_v61, %v1209_v29  ;;  %v13435_v14 = vcombine.low %v1205_v61, %v1209_v29 }
 0x5ad   :  { %v11345_v28 = vpop.f32.mrf.mxu0  ;;  %11639 = vmatprep.subr.bf16.mxu0 %v13460_v47  ;;  %v13284_v9 = vcombine.high %v1053_v41, %v1057_v37  ;;  %v1173_v34 = vld [vmem:[%s19543_s1 + $0x23d8] sm:$0xff]  ;;  %v13283_v23 = vcombine.low %v1053_v41, %v1057_v37 }
 0x5ae   :  { %11605 = vmatpush1.bf16.msra.mxu1 %v13307_v53  ;;  %v18767_v39 = vadd.f32 %v11345_v28, %v11305_v55  ;;  %v1177_v60 = vld [vmem:[%s19543_s1 + $0x23f8] sm:$0xff] }
 0x5af   :  { %11606 = vmatprep.subr.bf16.mxu1 %v13300_v17  ;;  %v11347_v2 = vpop.f32.mrf.mxu0  ;;  %v13404_v4 = vcombine.high %v1173_v34, %v1177_v60  ;;  %v1197_v52 = vld [vmem:[%s19543_s1 + $0x2498] sm:$0xff]  ;;  %v13403_v54 = vcombine.low %v1173_v34, %v1177_v60 }
 0x5b0   :  { %11640 = vmatpush1.bf16.msra.mxu0 %v13459_v22  ;;  %v1201_v6 = vld [vmem:[%s19543_s1 + $0x24b8] sm:$0xff] }
 0x5b1   :  { %v11348_v51 = vpop.f32.mrf.mxu0  ;;  %11641 = vmatprep.subr.bf16.mxu0 %v13452_v26  ;;  %v1165_v46 = vld [vmem:[%s19543_s1 + $0x2398] sm:$0xff]  ;;  %v13428_v57 = vcombine.high %v1197_v52, %v1201_v6  ;;  %v13427_v20 = vcombine.low %v1197_v52, %v1201_v6 }
 0x5b2   :  { %11607 = vmatpush1.bf16.msra.mxu1 %v13299_v44  ;;  %v1169_v42 = vld [vmem:[%s19543_s1 + $0x23b8] sm:$0xff] }
 0x5b3   :  { %11608 = vmatprep.subr.bf16.mxu1 %v13292_v35  ;;  %v13396_v7 = vcombine.high %v1165_v46, %v1169_v42  ;;  %v1189_v10 = vld [vmem:[%s19543_s1 + $0x2458] sm:$0xff]  ;;  %v13395_v3 = vcombine.low %v1165_v46, %v1169_v42 }
 0x5b4   :  { %11642 = vmatpush1.bf16.msra.mxu0 %v13451_v63  ;;  %v1193_v56 = vld [vmem:[%s19543_s1 + $0x2478] sm:$0xff] }
 0x5b5   :  { %11643 = vmatprep.subr.bf16.mxu0 %v13444_v8  ;;  %v1157_v43 = vld [vmem:[%s19543_s1 + $0x2358] sm:$0xff]  ;;  %v13420_v27 = vcombine.high %v1189_v10, %v1193_v56  ;;  %v13419_v36 = vcombine.low %v1189_v10, %v1193_v56 }
 0x5b6   :  { %11609 = vmatpush1.bf16.msra.mxu1 %v13291_v11  ;;  %v1161_v59 = vld [vmem:[%s19543_s1 + $0x2378] sm:$0xff] }
 0x5b7   :  { %11610 = vmatprep.subr.bf16.mxu1 %v13284_v9  ;;  %v13388_v53 = vcombine.high %v1157_v43, %v1161_v59  ;;  %v1181_v47 = vld [vmem:[%s19543_s1 + $0x2418] sm:$0xff]  ;;  %v13387_v40 = vcombine.low %v1157_v43, %v1161_v59 }
 0x5b8   :  { %11644 = vmatpush1.bf16.msra.mxu0 %v13443_v31  ;;  %v1185_v38 = vld [vmem:[%s19543_s1 + $0x2438] sm:$0xff] }
 0x5b9   :  { %11645 = vmatprep.subr.bf16.mxu0 %v13436_v1  ;;  %v1149_v17 = vld [vmem:[%s19543_s1 + $0x2318] sm:$0xff]  ;;  %v13412_v13 = vcombine.high %v1181_v47, %v1185_v38  ;;  %v13411_v26 = vcombine.low %v1181_v47, %v1185_v38 }
 0x5ba   :  { %11611 = vmatpush1.bf16.msra.mxu1 %v13283_v23  ;;  %v1153_v48 = vld [vmem:[%s19543_s1 + $0x2338] sm:$0xff] }
 0x5bb   :  { %11612 = vmatprep.subr.bf16.mxu1 %v13404_v4  ;;  %v13380_v5 = vcombine.high %v1149_v17, %v1153_v48  ;;  %v1301_v55 = vld [vmem:[%s19543_s1 + $0x27d8] sm:$0xff]  ;;  %v13379_v35 = vcombine.low %v1149_v17, %v1153_v48 }
 0x5bc   :  { %11646 = vmatpush1.bf16.msra.mxu0 %v13435_v14  ;;  %v1305_v22 = vld [vmem:[%s19543_s1 + $0x27f8] sm:$0xff] }
 0x5bd   :  { %11647 = vmatprep.subr.bf16.mxu0 %v13428_v57  ;;  %v1141_v28 = vld [vmem:[%s19543_s1 + $0x22d8] sm:$0xff]  ;;  %v13532_v49 = vcombine.high %v1301_v55, %v1305_v22  ;;  %v13531_v51 = vcombine.low %v1301_v55, %v1305_v22 }
 0x5be   :  { %11613 = vmatpush2.bf16.msra.mxu1 %v13403_v54  ;;  %v1145_v44 = vld [vmem:[%s19543_s1 + $0x22f8] sm:$0xff] }
 0x5bf   :  { %11614 = vmatprep.subr.bf16.mxu1 %v13396_v7  ;;  %v13372_v21 = vcombine.high %v1141_v28, %v1145_v44  ;;  %v1293_v2 = vld [vmem:[%s19543_s1 + $0x2798] sm:$0xff]  ;;  %v13371_v11 = vcombine.low %v1141_v28, %v1145_v44 }
 0x5c0   :  { %11648 = vmatpush1.bf16.msra.mxu0 %v13427_v20  ;;  %v1297_v41 = vld [vmem:[%s19543_s1 + $0x27b8] sm:$0xff] }
 0x5c1   :  { %11649 = vmatprep.subr.bf16.mxu0 %v13420_v27  ;;  %v1133_v37 = vld [vmem:[%s19543_s1 + $0x2298] sm:$0xff]  ;;  %v13524_v8 = vcombine.high %v1293_v2, %v1297_v41  ;;  %v13523_v31 = vcombine.low %v1293_v2, %v1297_v41 }
 0x5c2   :  { %11615 = vmatpush2.bf16.msra.mxu1 %v13395_v3  ;;  %v1137_v63 = vld [vmem:[%s19543_s1 + $0x22b8] sm:$0xff] }
 0x5c3   :  { %11616 = vmatprep.subr.bf16.mxu1 %v13388_v53  ;;  %v13364_v9 = vcombine.high %v1133_v37, %v1137_v63  ;;  %v1285_v61 = vld [vmem:[%s19543_s1 + $0x2758] sm:$0xff]  ;;  %v13363_v23 = vcombine.low %v1133_v37, %v1137_v63 }
 0x5c4   :  { %11650 = vmatpush1.bf16.msra.mxu0 %v13419_v36  ;;  %v1289_v29 = vld [vmem:[%s19543_s1 + $0x2778] sm:$0xff] }
 0x5c5   :  { %11651 = vmatprep.subr.bf16.mxu0 %v13412_v13  ;;  %v1125_v34 = vld [vmem:[%s19543_s1 + $0x2258] sm:$0xff]  ;;  %v13516_v1 = vcombine.high %v1285_v61, %v1289_v29  ;;  %v13515_v14 = vcombine.low %v1285_v61, %v1289_v29 }
 0x5c6   :  { %11617 = vmatpush2.bf16.msra.mxu1 %v13387_v40  ;;  %v1129_v60 = vld [vmem:[%s19543_s1 + $0x2278] sm:$0xff] }
 0x5c7   :  { %11618 = vmatprep.subr.bf16.mxu1 %v13380_v5  ;;  %v13356_v4 = vcombine.high %v1125_v34, %v1129_v60  ;;  %v1277_v52 = vld [vmem:[%s19543_s1 + $0x2718] sm:$0xff]  ;;  %v13355_v54 = vcombine.low %v1125_v34, %v1129_v60 }
 0x5c8   :  { %11652 = vmatpush1.bf16.msra.mxu0 %v13411_v26  ;;  %v1281_v6 = vld [vmem:[%s19543_s1 + $0x2738] sm:$0xff] }
 0x5c9   :  { %11653 = vmatprep.subr.bf16.mxu0 %v13532_v49  ;;  %v1117_v46 = vld [vmem:[%s19543_s1 + $0x2218] sm:$0xff]  ;;  %v13508_v57 = vcombine.high %v1277_v52, %v1281_v6  ;;  %v13507_v20 = vcombine.low %v1277_v52, %v1281_v6 }
 0x5ca   :  { %11619 = vmatpush2.bf16.msra.mxu1 %v13379_v35  ;;  %v1121_v42 = vld [vmem:[%s19543_s1 + $0x2238] sm:$0xff] }
 0x5cb   :  { %11620 = vmatprep.subr.bf16.mxu1 %v13372_v21  ;;  %v13348_v7 = vcombine.high %v1117_v46, %v1121_v42  ;;  %v1269_v10 = vld [vmem:[%s19543_s1 + $0x26d8] sm:$0xff]  ;;  %v13347_v3 = vcombine.low %v1117_v46, %v1121_v42 }
 0x5cc   :  { %11654 = vmatpush2.bf16.msra.mxu0 %v13531_v51  ;;  %v1273_v56 = vld [vmem:[%s19543_s1 + $0x26f8] sm:$0xff] }
 0x5cd   :  { %11655 = vmatprep.subr.bf16.mxu0 %v13524_v8  ;;  %v1365_v43 = vld [vmem:[%s19543_s1 + $0x29d8] sm:$0xff]  ;;  %v13500_v27 = vcombine.high %v1269_v10, %v1273_v56  ;;  %v13499_v36 = vcombine.low %v1269_v10, %v1273_v56 }
 0x5ce   :  { %11621 = vmatpush2.bf16.msra.mxu1 %v13371_v11  ;;  %v1369_v59 = vld [vmem:[%s19543_s1 + $0x29f8] sm:$0xff] }
 0x5cf   :  { %11622 = vmatprep.subr.bf16.mxu1 %v13364_v9  ;;  %v13596_v53 = vcombine.high %v1365_v43, %v1369_v59  ;;  %v1261_v47 = vld [vmem:[%s19543_s1 + $0x2698] sm:$0xff]  ;;  %v13595_v40 = vcombine.low %v1365_v43, %v1369_v59 }
 0x5d0   :  { %11656 = vmatpush2.bf16.msra.mxu0 %v13523_v31  ;;  %v1265_v38 = vld [vmem:[%s19543_s1 + $0x26b8] sm:$0xff] }
 0x5d1   :  { %11657 = vmatprep.subr.bf16.mxu0 %v13516_v1  ;;  %v1357_v17 = vld [vmem:[%s19543_s1 + $0x2998] sm:$0xff]  ;;  %v13492_v13 = vcombine.high %v1261_v47, %v1265_v38  ;;  %v13491_v35 = vcombine.low %v1261_v47, %v1265_v38 }
 0x5d2   :  { %11623 = vmatpush2.bf16.msra.mxu1 %v13363_v23  ;;  %v1361_v48 = vld [vmem:[%s19543_s1 + $0x29b8] sm:$0xff] }
 0x5d3   :  { %11624 = vmatprep.subr.bf16.mxu1 %v13356_v4  ;;  %v13588_v5 = vcombine.high %v1357_v17, %v1361_v48  ;;  %v1253_v55 = vld [vmem:[%s19543_s1 + $0x2658] sm:$0xff]  ;;  %v13587_v21 = vcombine.low %v1357_v17, %v1361_v48 }
 0x5d4   :  { %11658 = vmatpush2.bf16.msra.mxu0 %v13515_v14  ;;  %v1257_v22 = vld [vmem:[%s19543_s1 + $0x2678] sm:$0xff] }
 0x5d5   :  { %11659 = vmatprep.subr.bf16.mxu0 %v13508_v57  ;;  %v1349_v28 = vld [vmem:[%s19543_s1 + $0x2958] sm:$0xff]  ;;  %v13484_v2 = vcombine.high %v1253_v55, %v1257_v22  ;;  %v13483_v9 = vcombine.low %v1253_v55, %v1257_v22 }
 0x5d6   :  { %11625 = vmatpush2.bf16.msra.mxu1 %v13355_v54  ;;  %v1353_v44 = vld [vmem:[%s19543_s1 + $0x2978] sm:$0xff] }
 0x5d7   :  { %11626 = vmatprep.subr.bf16.mxu1 %v13348_v7  ;;  %v13580_v37 = vcombine.high %v1349_v28, %v1353_v44  ;;  %v1245_v63 = vld [vmem:[%s19543_s1 + $0x2618] sm:$0xff]  ;;  %v13579_v61 = vcombine.low %v1349_v28, %v1353_v44 }
 0x5d8   :  { %11660 = vmatpush2.bf16.msra.mxu0 %v13507_v20  ;;  %v1249_v51 = vld [vmem:[%s19543_s1 + $0x2638] sm:$0xff] }
 0x5d9   :  { %11661 = vmatprep.subr.bf16.mxu0 %v13500_v27  ;;  %v1345_v11 = vld [vmem:[%s19543_s1 + $0x2938] sm:$0xff]  ;;  %v13476_v29 = vcombine.high %v1245_v63, %v1249_v51  ;;  %v13475_v1 = vcombine.low %v1245_v63, %v1249_v51 }
 0x5da   :  { %11627 = vmatpush2.bf16.msra.mxu1 %v13347_v3  ;;  %v1497_v60 = vld [vmem:[%s19543_s1 + $0x2df8] sm:$0xff] }
 0x5db   :  { %11678 = vmatprep.subr.bf16.mxu1 %v13596_v53  ;;  %v1333_v31 = vld [vmem:[%s19543_s1 + $0x28d8] sm:$0xff] }
 0x5dc   :  { %11662 = vmatpush2.bf16.msra.mxu0 %v13499_v36  ;;  %v1337_v23 = vld [vmem:[%s19543_s1 + $0x28f8] sm:$0xff] }
 0x5dd   :  { %v11384_v26 = vpop.f32.mrf.mxu1  ;;  %11629 = vmatmul.mubr.bf16.vlgmr.msra.gmra.mxu1 %v15160_v50  ;;  %11663 = vmatprep.subr.bf16.mxu0 %v13492_v13  ;;  %v13564_v6 = vcombine.high %v1333_v31, %v1337_v23  ;;  %v1485_v46 = vld [vmem:[%s19543_s1 + $0x2d98] sm:$0xff]  ;;  %v13563_v7 = vcombine.low %v1333_v31, %v1337_v23 }
 0x5de   :  { %v11385_v49 = vadd.f32 %v11384_v26, %v18764_v30  ;;  %11679 = vmatpush1.bf16.msra.mxu1 %v13595_v40  ;;  %11710 = vmatprep.mubr.bf16.mxu1 %v15175_v62  ;;  %v1341_v30 = vld [vmem:[%s19543_s1 + $0x2918] sm:$0xff] }
 0x5df   :  { %v11386_v41 = vpop.f32.mrf.mxu1  ;;  %11680 = vmatprep.subr.bf16.mxu1 %v13588_v5  ;;  %v13572_v62 = vcombine.high %v1341_v30, %v1345_v11  ;;  %v13571_v4 = vcombine.low %v1341_v30, %v1345_v11  ;;  %v1489_v42 = vld [vmem:[%s19543_s1 + $0x2db8] sm:$0xff] }
 0x5e0   :  { %v11387_v50 = vadd.f32 %v11386_v41, %v18767_v39  ;;  %11664 = vmatpush2.bf16.msra.mxu0 %v13491_v35  ;;  %v1493_v39 = vld [vmem:[%s19543_s1 + $0x2dd8] sm:$0xff]  ;;  %v13716_v10 = vcombine.high %v1485_v46, %v1489_v42  ;;  %v13715_v47 = vcombine.low %v1485_v46, %v1489_v42 }
 0x5e1   :  { %v11388_v8 = vpop.f32.mrf.mxu1  ;;  %11665 = vmatprep.subr.bf16.mxu0 %v13484_v2  ;;  %v13724_v52 = vcombine.high %v1493_v39, %v1497_v60  ;;  %v1325_v14 = vld [vmem:[%s19543_s1 + $0x2898] sm:$0xff]  ;;  %v13723_v57 = vcombine.low %v1493_v39, %v1497_v60 }
 0x5e2   :  { %11681 = vmatpush1.bf16.msra.mxu1 %v13587_v21  ;;  %v1329_v54 = vld [vmem:[%s19543_s1 + $0x28b8] sm:$0xff] }
 0x5e3   :  { %v11389_v34 = vpop.f32.mrf.mxu1  ;;  %11682 = vmatprep.subr.bf16.mxu1 %v13580_v37  ;;  %v13556_v56 = vcombine.high %v1325_v14, %v1329_v54  ;;  %v1477_v43 = vld [vmem:[%s19543_s1 + $0x2d58] sm:$0xff]  ;;  %v13555_v17 = vcombine.low %v1325_v14, %v1329_v54 }
 0x5e4   :  { %11666 = vmatpush2.bf16.msra.mxu0 %v13483_v9  ;;  %v1481_v59 = vld [vmem:[%s19543_s1 + $0x2d78] sm:$0xff] }
 0x5e5   :  { %11667 = vmatprep.subr.bf16.mxu0 %v13476_v29  ;;  %v1317_v3 = vld [vmem:[%s19543_s1 + $0x2858] sm:$0xff]  ;;  %v13708_v48 = vcombine.high %v1477_v43, %v1481_v59  ;;  %v13707_v22 = vcombine.low %v1477_v43, %v1481_v59 }
 0x5e6   :  { %11683 = vmatpush1.bf16.msra.mxu1 %v13579_v61  ;;  %v1321_v27 = vld [vmem:[%s19543_s1 + $0x2878] sm:$0xff] }
 0x5e7   :  { %11684 = vmatprep.subr.bf16.mxu1 %v13572_v62  ;;  %v13548_v36 = vcombine.high %v1317_v3, %v1321_v27  ;;  %v1469_v40 = vld [vmem:[%s19543_s1 + $0x2d18] sm:$0xff]  ;;  %v13547_v44 = vcombine.low %v1317_v3, %v1321_v27 }
 0x5e8   :  { %11668 = vmatpush2.bf16.msra.mxu0 %v13475_v1  ;;  %v1473_v13 = vld [vmem:[%s19543_s1 + $0x2d38] sm:$0xff] }
 0x5e9   :  { %11719 = vmatprep.subr.bf16.mxu0 %v13724_v52  ;;  %v1313_v55 = vld [vmem:[%s19543_s1 + $0x2838] sm:$0xff]  ;;  %v13700_v26 = vcombine.high %v1469_v40, %v1473_v13  ;;  %v13699_v37 = vcombine.low %v1469_v40, %v1473_v13 }
 0x5ea   :  { %11685 = vmatpush1.bf16.msra.mxu1 %v13571_v4  ;;  %v1465_v21 = vld [vmem:[%s19543_s1 + $0x2cf8] sm:$0xff] }
 0x5eb   :  { %11686 = vmatprep.subr.bf16.mxu1 %v13564_v6  ;;  %v11425_v20 = vpop.f32.mrf.mxu0  ;;  %11670 = vmatmul.mubr.bf16.vlgmr.msra.gmra.mxu0 %v15179_v0  ;;  %v1429_v2 = vld [vmem:[%s19543_s1 + $0x2bd8] sm:$0xff] }
 0x5ec   :  { %v18966_v53 = vadd.f32 %v11425_v20, %v11385_v49  ;;  %11720 = vmatpush1.bf16.msra.mxu0 %v13723_v57  ;;  %11751 = vmatprep.mubr.bf16.mxu0 %v15196_v15  ;;  %v1309_v15 = vld [vmem:[%s19543_s1 + $0x2818] sm:$0xff] }
 0x5ed   :  { %v11427_v38 = vpop.f32.mrf.mxu0  ;;  %11721 = vmatprep.subr.bf16.mxu0 %v13716_v10  ;;  %v13540_v35 = vcombine.high %v1309_v15, %v1313_v55  ;;  %v1461_v49 = vld [vmem:[%s19543_s1 + $0x2cd8] sm:$0xff]  ;;  %v13539_v63 = vcombine.low %v1309_v15, %v1313_v55 }
 0x5ee   :  { %11687 = vmatpush1.bf16.msra.mxu1 %v13563_v7  ;;  %v18969_v0 = vadd.f32 %v11427_v38, %v11387_v50  ;;  %v1433_v41 = vld [vmem:[%s19543_s1 + $0x2bf8] sm:$0xff]  ;;  %v13692_v51 = vcombine.high %v1461_v49, %v1465_v21  ;;  %v13691_v61 = vcombine.low %v1461_v49, %v1465_v21 }
 0x5ef   :  { %11688 = vmatprep.subr.bf16.mxu1 %v13556_v56  ;;  %v11429_v5 = vpop.f32.mrf.mxu0  ;;  %v13660_v50 = vcombine.high %v1429_v2, %v1433_v41  ;;  %v1453_v30 = vld [vmem:[%s19543_s1 + $0x2c98] sm:$0xff]  ;;  %v13659_v29 = vcombine.low %v1429_v2, %v1433_v41 }
 0x5f0   :  { %11722 = vmatpush1.bf16.msra.mxu0 %v13715_v47  ;;  %v1457_v11 = vld [vmem:[%s19543_s1 + $0x2cb8] sm:$0xff] }
 0x5f1   :  { %v11430_v28 = vpop.f32.mrf.mxu0  ;;  %11723 = vmatprep.subr.bf16.mxu0 %v13708_v48  ;;  %v1421_v8 = vld [vmem:[%s19543_s1 + $0x2b98] sm:$0xff]  ;;  %v13684_v34 = vcombine.high %v1453_v30, %v1457_v11  ;;  %v13683_v1 = vcombine.low %v1453_v30, %v1457_v11 }
 0x5f2   :  { %11689 = vmatpush1.bf16.msra.mxu1 %v13555_v17  ;;  %v1425_v9 = vld [vmem:[%s19543_s1 + $0x2bb8] sm:$0xff] }
 0x5f3   :  { %11690 = vmatprep.subr.bf16.mxu1 %v13548_v36  ;;  %v13652_v62 = vcombine.high %v1421_v8, %v1425_v9  ;;  %v1445_v39 = vld [vmem:[%s19543_s1 + $0x2c58] sm:$0xff]  ;;  %v13651_v4 = vcombine.low %v1421_v8, %v1425_v9 }
 0x5f4   :  { %11724 = vmatpush1.bf16.msra.mxu0 %v13707_v22  ;;  %v1449_v60 = vld [vmem:[%s19543_s1 + $0x2c78] sm:$0xff] }
 0x5f5   :  { %11725 = vmatprep.subr.bf16.mxu0 %v13700_v26  ;;  %v1413_v31 = vld [vmem:[%s19543_s1 + $0x2b58] sm:$0xff]  ;;  %v13676_v52 = vcombine.high %v1445_v39, %v1449_v60  ;;  %v13675_v57 = vcombine.low %v1445_v39, %v1449_v60 }
 0x5f6   :  { %11691 = vmatpush1.bf16.msra.mxu1 %v13547_v44  ;;  %v1417_v23 = vld [vmem:[%s19543_s1 + $0x2b78] sm:$0xff] }
 0x5f7   :  { %11692 = vmatprep.subr.bf16.mxu1 %v13540_v35  ;;  %v13644_v6 = vcombine.high %v1413_v31, %v1417_v23  ;;  %v1437_v46 = vld [vmem:[%s19543_s1 + $0x2c18] sm:$0xff]  ;;  %v13643_v7 = vcombine.low %v1413_v31, %v1417_v23 }
 0x5f8   :  { %11726 = vmatpush1.bf16.msra.mxu0 %v13699_v37  ;;  %v1441_v42 = vld [vmem:[%s19543_s1 + $0x2c38] sm:$0xff] }
 0x5f9   :  { %11727 = vmatprep.subr.bf16.mxu0 %v13692_v51  ;;  %v1405_v14 = vld [vmem:[%s19543_s1 + $0x2b18] sm:$0xff]  ;;  %v13668_v10 = vcombine.high %v1437_v46, %v1441_v42  ;;  %v13667_v27 = vcombine.low %v1437_v46, %v1441_v42 }
 0x5fa   :  { %11693 = vmatpush1.bf16.msra.mxu1 %v13539_v63  ;;  %v1409_v54 = vld [vmem:[%s19543_s1 + $0x2b38] sm:$0xff] }
 0x5fb   :  { %11694 = vmatprep.subr.bf16.mxu1 %v13660_v50  ;;  %v13636_v56 = vcombine.high %v1405_v14, %v1409_v54  ;;  %v1557_v43 = vld [vmem:[%s19543_s1 + $0x2fd8] sm:$0xff]  ;;  %v13635_v47 = vcombine.low %v1405_v14, %v1409_v54 }
 0x5fc   :  { %11728 = vmatpush1.bf16.msra.mxu0 %v13691_v61  ;;  %v1561_v59 = vld [vmem:[%s19543_s1 + $0x2ff8] sm:$0xff] }
 0x5fd   :  { %11729 = vmatprep.subr.bf16.mxu0 %v13684_v34  ;;  %v1397_v20 = vld [vmem:[%s19543_s1 + $0x2ad8] sm:$0xff]  ;;  %v13788_v38 = vcombine.high %v1557_v43, %v1561_v59  ;;  %v13787_v5 = vcombine.low %v1557_v43, %v1561_v59 }
 0x5fe   :  { %11695 = vmatpush2.bf16.msra.mxu1 %v13659_v29  ;;  %v1401_v3 = vld [vmem:[%s19543_s1 + $0x2af8] sm:$0xff] }
 0x5ff   :  { %11696 = vmatprep.subr.bf16.mxu1 %v13652_v62  ;;  %v13628_v17 = vcombine.high %v1397_v20, %v1401_v3  ;;  %v1549_v48 = vld [vmem:[%s19543_s1 + $0x2f98] sm:$0xff]  ;;  %v13627_v15 = vcombine.low %v1397_v20, %v1401_v3 }
 0x600   :  { %11730 = vmatpush1.bf16.msra.mxu0 %v13683_v1  ;;  %v1553_v36 = vld [vmem:[%s19543_s1 + $0x2fb8] sm:$0xff] }
 0x601   :  { %11731 = vmatprep.subr.bf16.mxu0 %v13676_v52  ;;  %v1389_v40 = vld [vmem:[%s19543_s1 + $0x2a98] sm:$0xff]  ;;  %v13780_v55 = vcombine.high %v1549_v48, %v1553_v36  ;;  %v13779_v49 = vcombine.low %v1549_v48, %v1553_v36 }
 0x602   :  { %11697 = vmatpush2.bf16.msra.mxu1 %v13651_v4  ;;  %v1393_v13 = vld [vmem:[%s19543_s1 + $0x2ab8] sm:$0xff] }
 0x603   :  { %11698 = vmatprep.subr.bf16.mxu1 %v13644_v6  ;;  %v13620_v22 = vcombine.high %v1389_v40, %v1393_v13  ;;  %v1541_v28 = vld [vmem:[%s19543_s1 + $0x2f58] sm:$0xff]  ;;  %v13619_v21 = vcombine.low %v1389_v40, %v1393_v13 }
 0x604   :  { %11732 = vmatpush1.bf16.msra.mxu0 %v13675_v57  ;;  %v1545_v44 = vld [vmem:[%s19543_s1 + $0x2f78] sm:$0xff] }
 0x605   :  { %11733 = vmatprep.subr.bf16.mxu0 %v13668_v10  ;;  %v1381_v26 = vld [vmem:[%s19543_s1 + $0x2a58] sm:$0xff]  ;;  %v13772_v2 = vcombine.high %v1541_v28, %v1545_v44  ;;  %v13771_v30 = vcombine.low %v1541_v28, %v1545_v44 }
 0x606   :  { %11699 = vmatpush2.bf16.msra.mxu1 %v13643_v7  ;;  %v1385_v35 = vld [vmem:[%s19543_s1 + $0x2a78] sm:$0xff] }
 0x607   :  { %11700 = vmatprep.subr.bf16.mxu1 %v13636_v56  ;;  %v13612_v41 = vcombine.high %v1381_v26, %v1385_v35  ;;  %v1533_v37 = vld [vmem:[%s19543_s1 + $0x2f18] sm:$0xff]  ;;  %v13611_v11 = vcombine.low %v1381_v26, %v1385_v35 }
 0x608   :  { %11734 = vmatpush1.bf16.msra.mxu0 %v13667_v27  ;;  %v1537_v63 = vld [vmem:[%s19543_s1 + $0x2f38] sm:$0xff] }
 0x609   :  { %11735 = vmatprep.subr.bf16.mxu0 %v13788_v38  ;;  %v1373_v51 = vld [vmem:[%s19543_s1 + $0x2a18] sm:$0xff]  ;;  %v13764_v8 = vcombine.high %v1533_v37, %v1537_v63  ;;  %v13763_v39 = vcombine.low %v1533_v37, %v1537_v63  ;;  %v11871_v63 = vld [vmem:[%s19545_s3 + $0x1f0] sm:$0xff] }
 0x60a   :  { %11701 = vmatpush2.bf16.msra.mxu1 %v13635_v47  ;;  %v1377_v50 = vld [vmem:[%s19543_s1 + $0x2a38] sm:$0xff] }
 0x60b   :  { %11702 = vmatprep.subr.bf16.mxu1 %v13628_v17  ;;  %v13604_v9 = vcombine.high %v1373_v51, %v1377_v50  ;;  %v1525_v61 = vld [vmem:[%s19543_s1 + $0x2ed8] sm:$0xff]  ;;  %v13603_v60 = vcombine.low %v1373_v51, %v1377_v50  ;;  %v11870_v50 = vld [vmem:[%s19545_s3 + $0x1e8] sm:$0xff] }
 0x60c   :  { %11736 = vmatpush2.bf16.msra.mxu0 %v13787_v5  ;;  %v1529_v29 = vld [vmem:[%s19543_s1 + $0x2ef8] sm:$0xff] }
 0x60d   :  { %11737 = vmatprep.subr.bf16.mxu0 %v13780_v55  ;;  %v1589_v34 = vld [vmem:[%s19543_s1 + $0x30d8] sm:$0xff]  ;;  %v13756_v31 = vcombine.high %v1525_v61, %v1529_v29  ;;  %v13755_v46 = vcombine.low %v1525_v61, %v1529_v29  ;;  %v11869_v61 = vld [vmem:[%s19545_s3 + $0x1e0] sm:$0xff] }
 0x60e   :  { %11703 = vmatpush2.bf16.msra.mxu1 %v13627_v15  ;;  %v1593_v62 = vld [vmem:[%s19543_s1 + $0x30f8] sm:$0xff]  ;;  %v11821_v29 = vld [vmem:[%s19545_s3 + $0x60] sm:$0xff] }
 0x60f   :  { %11704 = vmatprep.subr.bf16.mxu1 %v13620_v22  ;;  %v13820_v23 = vcombine.high %v1589_v34, %v1593_v62  ;;  %v1517_v1 = vld [vmem:[%s19543_s1 + $0x2e98] sm:$0xff]  ;;  %v13819_v42 = vcombine.low %v1589_v34, %v1593_v62  ;;  %v11853_v62 = vld [vmem:[%s19545_s3 + $0x160] sm:$0xff] }
 0x610   :  { %11738 = vmatpush2.bf16.msra.mxu0 %v13779_v49  ;;  %v1521_v4 = vld [vmem:[%s19543_s1 + $0x2eb8] sm:$0xff]  ;;  %v11802_v49 = vmax.f32 %v16078_v16, 0.0 }
 0x611   :  { %11739 = vmatprep.subr.bf16.mxu0 %v13772_v2  ;;  %v1581_v52 = vld [vmem:[%s19543_s1 + $0x3098] sm:$0xff]  ;;  %v13748_v14 = vcombine.high %v1517_v1, %v1521_v4  ;;  %v13747_v59 = vcombine.low %v1517_v1, %v1521_v4  ;;  %v11839_v2 = vld [vmem:[%s19545_s3 + $0xf0] sm:$0xff] }
 0x612   :  { %11705 = vmatpush2.bf16.msra.mxu1 %v13619_v21  ;;  %v1585_v6 = vld [vmem:[%s19543_s1 + $0x30b8] sm:$0xff]  ;;  %v11835_v1 = vld [vmem:[%s19545_s3 + $0xd0] sm:$0xff] }
 0x613   :  { %11706 = vmatprep.subr.bf16.mxu1 %v13612_v41  ;;  %v13812_v54 = vcombine.high %v1581_v52, %v1585_v6  ;;  %v1509_v57 = vld [vmem:[%s19543_s1 + $0x2e58] sm:$0xff]  ;;  %v13811_v3 = vcombine.low %v1581_v52, %v1585_v6  ;;  %v11804_v41 = vmax.f32 %v17308_v24, 0.0  ;;  %v11855_v24 = vld [vmem:[%s19545_s3 + $0x170] sm:$0xff] }
 0x614   :  { %11740 = vmatpush2.bf16.msra.mxu0 %v13771_v30  ;;  %v1513_v7 = vld [vmem:[%s19543_s1 + $0x2e78] sm:$0xff]  ;;  %v11822_v30 = vld [vmem:[%s19545_s3 + $0x68] sm:$0xff]  ;;  %v11867_v4 = vld [vmem:[%s19545_s3 + $0x1d0] sm:$0xff] }
 0x615   :  { %11741 = vmatprep.subr.bf16.mxu0 %v13764_v8  ;;  %v1573_v10 = vld [vmem:[%s19543_s1 + $0x3058] sm:$0xff]  ;;  %v13740_v27 = vcombine.high %v1509_v57, %v1513_v7  ;;  %v13739_v13 = vcombine.low %v1509_v57, %v1513_v7  ;;  %v11854_v8 = vld [vmem:[%s19545_s3 + $0x168] sm:$0xff]  ;;  %v11819_v52 = vld [vmem:[%s19545_s3 + $0x50] sm:$0xff] }
 0x616   :  { %11707 = vmatpush2.bf16.msra.mxu1 %v13611_v11  ;;  %v1577_v56 = vld [vmem:[%s19543_s1 + $0x3078] sm:$0xff]  ;;  %v11851_v6 = vld [vmem:[%s19545_s3 + $0x150] sm:$0xff]  ;;  %v11833_v57 = vld [vmem:[%s19545_s3 + $0xc0] sm:$0xff] }
 0x617   :  { %11708 = vmatprep.subr.bf16.mxu1 %v13604_v9  ;;  %v13804_v38 = vcombine.high %v1573_v10, %v1577_v56  ;;  %v1501_v17 = vld [vmem:[%s19543_s1 + $0x2e18] sm:$0xff]  ;;  %v13803_v5 = vcombine.low %v1573_v10, %v1577_v56  ;;  %v11837_v9 = vld [vmem:[%s19545_s3 + $0xe0] sm:$0xff] }
 0x618   :  { %11742 = vmatpush2.bf16.msra.mxu0 %v13763_v39  ;;  %v1505_v48 = vld [vmem:[%s19543_s1 + $0x2e38] sm:$0xff]  ;;  %v11865_v7 = vld [vmem:[%s19545_s3 + $0x1c0] sm:$0xff] }
 0x619   :  { %11743 = vmatprep.subr.bf16.mxu0 %v13756_v31  ;;  %v1569_v36 = vld [vmem:[%s19543_s1 + $0x3038] sm:$0xff]  ;;  %v13732_v15 = vcombine.high %v1501_v17, %v1505_v48  ;;  %v11817_v10 = vld [vmem:[%s19545_s3 + $0x40] sm:$0xff] }
 0x61a   :  { %11709 = vmatpush2.bf16.msra.mxu1 %v13603_v60  ;;  %v11840_v28 = vld [vmem:[%s19545_s3 + $0xf8] sm:$0xff]  ;;  %v11849_v56 = vld [vmem:[%s19545_s3 + $0x140] sm:$0xff] }
 0x61b   :  { %11768 = vmatprep.subr.bf16.mxu1 %v13820_v23  ;;  %v11872_v44 = vld [vmem:[%s19545_s3 + $0x1f8] sm:$0xff] }
 0x61c   :  { %11744 = vmatpush2.bf16.msra.mxu0 %v13755_v46  ;;  %v11824_v26 = vld [vmem:[%s19545_s3 + $0x78] sm:$0xff]  ;;  %v11834_v46 = vld [vmem:[%s19545_s3 + $0xc8] sm:$0xff] }
 0x61d   :  { %v11466_v43 = vpop.f32.mrf.mxu1  ;;  %11711 = vmatmul.mubr.bf16.vlgmr.msra.gmra.mxu1 %v15377_v33  ;;  %11745 = vmatprep.subr.bf16.mxu0 %v13748_v14  ;;  %v11856_v35 = vld [vmem:[%s19545_s3 + $0x178] sm:$0xff]  ;;  %v11818_v14 = vld [vmem:[%s19545_s3 + $0x48] sm:$0xff] }
 0x61e   :  { %v11467_v20 = vadd.f32 %v11466_v43, %v18966_v53  ;;  %11769 = vmatpush1.bf16.msra.mxu1 %v13819_v42  ;;  %11792 = vmatprep.mubr.bf16.mxu1 %v14000_v18  ;;  %v1565_v53 = vld [vmem:[%s19543_s1 + $0x3018] sm:$0xff]  ;;  %v11866_v42 = vld [vmem:[%s19545_s3 + $0x1c8] sm:$0xff] }
 0x61f   :  { %v11468_v47 = vpop.f32.mrf.mxu1  ;;  %11770 = vmatprep.subr.bf16.mxu1 %v13812_v54  ;;  %v13796_v18 = vcombine.high %v1565_v53, %v1569_v36  ;;  %v13795_v22 = vcombine.low %v1565_v53, %v1569_v36  ;;  %v11836_v39 = vld [vmem:[%s19545_s3 + $0xd8] sm:$0xff]  ;;  %v11850_v54 = vld [vmem:[%s19545_s3 + $0x148] sm:$0xff] }
 0x620   :  { %v11469_v33 = vadd.f32 %v11468_v47, %v18969_v0  ;;  %11746 = vmatpush2.bf16.msra.mxu0 %v13747_v59  ;;  %v13731_v0 = vcombine.low %v1501_v17, %v1505_v48  ;;  %v11868_v60 = vld [vmem:[%s19545_s3 + $0x1d8] sm:$0xff]  ;;  %v11863_v47 = vld [vmem:[%s19545_s3 + $0x1b0] sm:$0xff]  ;;  %v11830_v48 = vld [vmem:[%s19545_s3 + $0xa8] sm:$0xff] }
 0x621   :  { %v11470_v40 = vpop.f32.mrf.mxu1  ;;  %11747 = vmatprep.subr.bf16.mxu0 %v13740_v27  ;;  %v11820_v31 = vld [vmem:[%s19545_s3 + $0x58] sm:$0xff]  ;;  %v11831_v27 = vld [vmem:[%s19545_s3 + $0xb0] sm:$0xff]  ;;  %v11814_v53 = vld [vmem:[%s19545_s3 + $0x28] sm:$0xff] }
 0x622   :  { %11771 = vmatpush1.bf16.msra.mxu1 %v13811_v3  ;;  %v11852_v23 = vld [vmem:[%s19545_s3 + $0x158] sm:$0xff]  ;;  %v11847_v17 = vld [vmem:[%s19545_s3 + $0x130] sm:$0xff]  ;;  %v11846_v36 = vld [vmem:[%s19545_s3 + $0x128] sm:$0xff] }
 0x623   :  { %v11471_v55 = vpop.f32.mrf.mxu1  ;;  %11772 = vmatprep.subr.bf16.mxu1 %v13804_v38  ;;  %v11832_v43 = vld [vmem:[%s19545_s3 + $0xb8] sm:$0xff]  ;;  %v11815_v38 = vld [vmem:[%s19545_s3 + $0x30] sm:$0xff]  ;;  %v11829_v40 = vld [vmem:[%s19545_s3 + $0xa0] sm:$0xff] }
 0x624   :  { %11748 = vmatpush2.bf16.msra.mxu0 %v13739_v13  ;;  %v11864_v59 = vld [vmem:[%s19545_s3 + $0x1b8] sm:$0xff]  ;;  %v11861_v13 = vld [vmem:[%s19545_s3 + $0x1a0] sm:$0xff] }
 0x625   :  { %11749 = vmatprep.subr.bf16.mxu0 %v13732_v15  ;;  %v11848_v3 = vld [vmem:[%s19545_s3 + $0x138] sm:$0xff]  ;;  %v11845_v15 = vld [vmem:[%s19545_s3 + $0x120] sm:$0xff] }
 0x626   :  { %11773 = vmatpush1.bf16.msra.mxu1 %v13803_v5  ;;  %v11813_v5 = vld [vmem:[%s19545_s3 + $0x20] sm:$0xff]  ;;  %v11828_v55 = vld [vmem:[%s19545_s3 + $0x98] sm:$0xff] }
 0x627   :  { %11774 = vmatprep.subr.bf16.mxu1 %v13796_v18  ;;  %v11860_v18 = vld [vmem:[%s19545_s3 + $0x198] sm:$0xff] }
 0x628   :  { %11750 = vmatpush2.bf16.msra.mxu0 %v13731_v0  ;;  %v11812_v0 = vld [vmem:[%s19545_s3 + $0x18] sm:$0xff] }
 0x629   :  { %13826 = vmatprep.subr.mxu0 %v11840_v28  ;;  %v11827_v28 = vld [vmem:[%s19545_s3 + $0x90] sm:$0xff] }
 0x62a   :  { %11775 = vmatpush1.bf16.msra.mxu1 %v13795_v22  ;;  %v11844_v22 = vld [vmem:[%s19545_s3 + $0x118] sm:$0xff] }
 0x62b   :  { %13861 = vmatprep.subr.mxu1 %v11872_v44  ;;  %v11507_v21 = vpop.f32.mrf.mxu0  ;;  %11752 = vmatmul.mubr.bf16.vlgmr.msra.gmra.mxu0 %v15393_v45  ;;  %v11823_v45 = vld [vmem:[%s19545_s3 + $0x70] sm:$0xff] }
 0x62c   :  { %v19149_v37 = vadd.f32 %v11507_v21, %v11467_v20  ;;  %13827 = vmatpush3.msra.mxu0 %v11824_v26  ;;  %12008 = vmatprep.mubr.f32.mxu0 %v11802_v49  ;;  %v11816_v20 = vld [vmem:[%s19545_s3 + $0x38] sm:$0xff]  ;;  %v11859_v44 = vld [vmem:[%s19545_s3 + $0x190] sm:$0xff]  ;;  %v11826_v49 = vld [vmem:[%s19545_s3 + $0x88] sm:$0xff] }
 0x62d   :  { %13824 = vmatmul.mubr.msk.bf16.vlgmr.msra.gmra.mxu1 %vm9665_vm0, %v15451_v58  ;;  %v11509_v16 = vpop.f32.mrf.mxu0  ;;  %v11838_v58 = vld [vmem:[%s19545_s3 + $0xe8] sm:$0xff]  ;;  %13828 = vmatprep.subr.mxu0 %v11839_v2  ;;  %v11811_v26 = vld [vmem:[%s19545_s3 + $0x10] sm:$0xff] }
 0x62e   :  { %13862 = vmatpush3.msra.mxu1 %v11856_v35  ;;  %12078 = vmatprep.mubr.f32.mxu1 %v11804_v41  ;;  %v19165_v51 = vadd.f32 %v11509_v16, %v11469_v33  ;;  %v11862_v33 = vld [vmem:[%s19545_s3 + $0x1a8] sm:$0xff]  ;;  %v11843_v35 = vld [vmem:[%s19545_s3 + $0x110] sm:$0xff]  ;;  %v11809_v16 = vld [vmem:[%s19545_s3] sm:$0xff] }
 0x62f   :  { %13863 = vmatprep.subr.mxu1 %v11871_v63  ;;  %13829 = vmatpush3.msra.mxu0 %v11823_v45  ;;  %v11511_v11 = vpop.f32.mrf.mxu0  ;;  %v11858_v21 = vld [vmem:[%s19545_s3 + $0x188] sm:$0xff]  ;;  %v11825_v63 = vld [vmem:[%s19545_s3 + $0x80] sm:$0xff] }
 0x630   :  { %13864 = vmatpush3.msra.mxu1 %v11855_v24  ;;  %13830 = vmatprep.subr.mxu0 %v11838_v58  ;;  %v11810_v2 = vld [vmem:[%s19545_s3 + $0x8] sm:$0xff]  ;;  %v11857_v45 = vld [vmem:[%s19545_s3 + $0x180] sm:$0xff]  ;;  %v11801_v58 = vmax.f32 %v16075_v25, 0.0  ;;  %v11888_v11 = vld [vmem:[%s19545_s3 + $0x278] sm:$0xff] }
 0x631   :  { %13865 = vmatprep.subr.mxu1 %v11870_v50  ;;  %13831 = vmatpush3.msra.mxu0 %v11822_v30  ;;  %v11512_v34 = vpop.f32.mrf.mxu0  ;;  %v11842_v41 = vld [vmem:[%s19545_s3 + $0x108] sm:$0xff]  ;;  %v11841_v24 = vld [vmem:[%s19545_s3 + $0x100] sm:$0xff]  ;;  %v11904_v50 = vld [vmem:[%s19545_s3 + $0x2f8] sm:$0xff]  ;;  %v11803_v30 = vmax.f32 %v17292_v12, 0.0 }
 0x632   :  { %13866 = vmatpush3.msra.mxu1 %v11854_v8  ;;  %13832 = vmatprep.subr.mxu0 %v11837_v9  ;;  %v11806_v8 = vmax.f32 %v18562_v32, 0.0  ;;  %v11903_v25 = vld [vmem:[%s19545_s3 + $0x2f0] sm:$0xff]  ;;  %v11936_v9 = vld [vmem:[%s19545_s3 + $0x3f8] sm:$0xff]  ;;  %v11886_v34 = vld [vmem:[%s19545_s3 + $0x268] sm:$0xff] }
 0x633   :  { %13867 = vmatprep.subr.mxu1 %v11869_v61  ;;  %13833 = vmatpush3.msra.mxu0 %v11821_v29  ;;  %v11887_v12 = vld [vmem:[%s19545_s3 + $0x270] sm:$0xff]  ;;  %v11920_v32 = vld [vmem:[%s19545_s3 + $0x378] sm:$0xff]  ;;  %v11902_v61 = vld [vmem:[%s19545_s3 + $0x2e8] sm:$0xff] }
 0x634   :  { %13868 = vmatpush3.msra.mxu1 %v11853_v62  ;;  %13834 = vmatprep.subr.mxu0 %v11836_v39  ;;  %v11935_v29 = vld [vmem:[%s19545_s3 + $0x3f0] sm:$0xff]  ;;  %v11901_v39 = vld [vmem:[%s19545_s3 + $0x2e0] sm:$0xff] }
 0x635   :  { %13869 = vmatprep.subr.mxu1 %v11868_v60  ;;  %13835 = vmatpush3.msra.mxu0 %v11820_v31  ;;  %v11919_v62 = vld [vmem:[%s19545_s3 + $0x370] sm:$0xff]  ;;  %v11934_v60 = vld [vmem:[%s19545_s3 + $0x3e8] sm:$0xff]  ;;  %v11885_v31 = vld [vmem:[%s19545_s3 + $0x260] sm:$0xff] }
 0x636   :  { %13870 = vmatpush3.msra.mxu1 %v11852_v23  ;;  %13836 = vmatprep.subr.mxu0 %v11835_v1  ;;  %v11918_v23 = vld [vmem:[%s19545_s3 + $0x368] sm:$0xff]  ;;  %v11900_v1 = vld [vmem:[%s19545_s3 + $0x2d8] sm:$0xff] }
 0x637   :  { %13871 = vmatprep.subr.mxu1 %v11867_v4  ;;  %13837 = vmatpush3.msra.mxu0 %v11819_v52  ;;  %v11884_v4 = vld [vmem:[%s19545_s3 + $0x258] sm:$0xff]  ;;  %v11899_v52 = vld [vmem:[%s19545_s3 + $0x2d0] sm:$0xff] }
 0x638   :  { %13872 = vmatpush3.msra.mxu1 %v11851_v6  ;;  %13838 = vmatprep.subr.mxu0 %v11834_v46  ;;  %v11883_v6 = vld [vmem:[%s19545_s3 + $0x250] sm:$0xff]  ;;  %v11898_v46 = vld [vmem:[%s19545_s3 + $0x2c8] sm:$0xff] }
 0x639   :  { %13873 = vmatprep.subr.mxu1 %v11866_v42  ;;  %13839 = vmatpush3.msra.mxu0 %v11818_v14  ;;  %v11882_v42 = vld [vmem:[%s19545_s3 + $0x248] sm:$0xff]  ;;  %v11897_v14 = vld [vmem:[%s19545_s3 + $0x2c0] sm:$0xff] }
 0x63a   :  { %13874 = vmatpush3.msra.mxu1 %v11850_v54  ;;  %13840 = vmatprep.subr.mxu0 %v11833_v57  ;;  %v11881_v54 = vld [vmem:[%s19545_s3 + $0x240] sm:$0xff]  ;;  %v11896_v57 = vld [vmem:[%s19545_s3 + $0x2b8] sm:$0xff] }
 0x63b   :  { %13875 = vmatprep.subr.mxu1 %v11865_v7  ;;  %13841 = vmatpush3.msra.mxu0 %v11817_v10  ;;  %v11880_v7 = vld [vmem:[%s19545_s3 + $0x238] sm:$0xff] }
 0x63c   :  { %13876 = vmatpush3.msra.mxu1 %v11849_v56  ;;  %13842 = vmatprep.subr.mxu0 %v11832_v43  ;;  %v11895_v56 = vld [vmem:[%s19545_s3 + $0x2b0] sm:$0xff]  ;;  %v11933_v43 = vld [vmem:[%s19545_s3 + $0x3e0] sm:$0xff] }
 0x63d   :  { %13877 = vmatprep.subr.mxu1 %v11864_v59  ;;  %13843 = vmatpush3.msra.mxu0 %v11816_v20  ;;  %v11879_v20 = vld [vmem:[%s19545_s3 + $0x230] sm:$0xff] }
 0x63e   :  { %13878 = vmatpush3.msra.mxu1 %v11848_v3  ;;  %13844 = vmatprep.subr.mxu0 %v11831_v27  ;;  %v11917_v3 = vld [vmem:[%s19545_s3 + $0x360] sm:$0xff] }
 0x63f   :  { %13879 = vmatprep.subr.mxu1 %v11863_v47  ;;  %13845 = vmatpush3.msra.mxu0 %v11815_v38  ;;  %v11894_v47 = vld [vmem:[%s19545_s3 + $0x2a8] sm:$0xff] }
 0x640   :  { %13880 = vmatpush3.msra.mxu1 %v11847_v17  ;;  %13846 = vmatprep.subr.mxu0 %v11830_v48  ;;  %v11878_v17 = vld [vmem:[%s19545_s3 + $0x228] sm:$0xff]  ;;  %v11916_v48 = vld [vmem:[%s19545_s3 + $0x358] sm:$0xff] }
 0x641   :  { %13881 = vmatprep.subr.mxu1 %v11862_v33  ;;  %13847 = vmatpush3.msra.mxu0 %v11814_v53  ;;  %v11893_v53 = vld [vmem:[%s19545_s3 + $0x2a0] sm:$0xff] }
 0x642   :  { %13882 = vmatpush3.msra.mxu1 %v11846_v36  ;;  %13848 = vmatprep.subr.mxu0 %v11829_v40  ;;  %v11915_v36 = vld [vmem:[%s19545_s3 + $0x350] sm:$0xff]  ;;  %v11877_v40 = vld [vmem:[%s19545_s3 + $0x220] sm:$0xff] }
 0x643   :  { %13883 = vmatprep.subr.mxu1 %v11861_v13  ;;  %13849 = vmatpush3.msra.mxu0 %v11813_v5  ;;  %v11892_v13 = vld [vmem:[%s19545_s3 + $0x298] sm:$0xff] }
 0x644   :  { %13884 = vmatpush3.msra.mxu1 %v11845_v15  ;;  %13850 = vmatprep.subr.mxu0 %v11828_v55  ;;  %v11930_v15 = vld [vmem:[%s19545_s3 + $0x3c8] sm:$0xff] }
 0x645   :  { %13885 = vmatprep.subr.mxu1 %v11860_v18  ;;  %13851 = vmatpush3.msra.mxu0 %v11812_v0  ;;  %v11914_v55 = vld [vmem:[%s19545_s3 + $0x348] sm:$0xff]  ;;  %v11929_v18 = vld [vmem:[%s19545_s3 + $0x3c0] sm:$0xff]  ;;  %v11876_v0 = vld [vmem:[%s19545_s3 + $0x218] sm:$0xff] }
 0x646   :  { %13886 = vmatpush3.msra.mxu1 %v11844_v22  ;;  %13852 = vmatprep.subr.mxu0 %v11827_v28  ;;  %v11913_v22 = vld [vmem:[%s19545_s3 + $0x340] sm:$0xff]  ;;  %v11891_v28 = vld [vmem:[%s19545_s3 + $0x290] sm:$0xff] }
 0x647   :  { %13887 = vmatprep.subr.mxu1 %v11859_v44  ;;  %13853 = vmatpush3.msra.mxu0 %v11811_v26  ;;  %v11928_v44 = vld [vmem:[%s19545_s3 + $0x3b8] sm:$0xff]  ;;  %v11875_v26 = vld [vmem:[%s19545_s3 + $0x210] sm:$0xff] }
 0x648   :  { %13888 = vmatpush3.msra.mxu1 %v11843_v35  ;;  %13854 = vmatprep.subr.mxu0 %v11826_v49  ;;  %v11912_v35 = vld [vmem:[%s19545_s3 + $0x338] sm:$0xff]  ;;  %v11890_v49 = vld [vmem:[%s19545_s3 + $0x288] sm:$0xff] }
 0x649   :  { %13889 = vmatprep.subr.mxu1 %v11858_v21  ;;  %13855 = vmatpush3.msra.mxu0 %v11810_v2  ;;  %v11927_v21 = vld [vmem:[%s19545_s3 + $0x3b0] sm:$0xff]  ;;  %v11874_v2 = vld [vmem:[%s19545_s3 + $0x208] sm:$0xff] }
 0x64a   :  { %13890 = vmatpush3.msra.mxu1 %v11842_v41  ;;  %13856 = vmatprep.subr.mxu0 %v11825_v63  ;;  %v11911_v41 = vld [vmem:[%s19545_s3 + $0x330] sm:$0xff]  ;;  %v11889_v63 = vld [vmem:[%s19545_s3 + $0x280] sm:$0xff] }
 0x64b   :  { %13891 = vmatprep.subr.mxu1 %v11857_v45  ;;  %13857 = vmatpush3.msra.mxu0 %v11809_v16  ;;  %v11926_v45 = vld [vmem:[%s19545_s3 + $0x3a8] sm:$0xff]  ;;  %v11873_v16 = vld [vmem:[%s19545_s3 + $0x200] sm:$0xff] }
 0x64c   :  { %13892 = vmatpush3.msra.mxu1 %v11841_v24  ;;  %12009 = vmatmul.mubr.f32.vlgmr.msra.gmra.mxu0 %v11801_v58  ;;  %v11910_v24 = vld [vmem:[%s19545_s3 + $0x328] sm:$0xff]  ;;  %v11805_v58 = vmax.f32 %v18559_v19, 0.0 }
 0x64d   :  { %12079 = vmatmul.mubr.f32.vlgmr.msra.gmra.mxu1 %v11803_v30  ;;  %13896 = vmatprep.subr.mxu0 %v11904_v50 }
 0x64e   :  { %13897 = vmatpush3.msra.mxu0 %v11888_v11  ;;  %12148 = vmatprep.mubr.f32.mxu0 %v11806_v8  ;;  %v11925_v11 = vld [vmem:[%s19545_s3 + $0x3a0] sm:$0xff] }
 0x64f   :  { %13898 = vmatprep.subr.mxu0 %v11903_v25  ;;  %13931 = vmatprep.subr.mxu1 %v11936_v9  ;;  %v11909_v25 = vld [vmem:[%s19545_s3 + $0x320] sm:$0xff]  ;;  %v11924_v9 = vld [vmem:[%s19545_s3 + $0x398] sm:$0xff] }
 0x650   :  { %13899 = vmatpush3.msra.mxu0 %v11887_v12  ;;  %13932 = vmatpush3.msra.mxu1 %v11920_v32  ;;  %v11908_v32 = vld [vmem:[%s19545_s3 + $0x318] sm:$0xff] }
 0x651   :  { %13900 = vmatprep.subr.mxu0 %v11902_v61  ;;  %13933 = vmatprep.subr.mxu1 %v11935_v29  ;;  %v11923_v61 = vld [vmem:[%s19545_s3 + $0x390] sm:$0xff] }
 0x652   :  { %13901 = vmatpush3.msra.mxu0 %v11886_v34  ;;  %13934 = vmatpush3.msra.mxu1 %v11919_v62  ;;  %v11907_v34 = vld [vmem:[%s19545_s3 + $0x310] sm:$0xff]  ;;  %v11922_v62 = vld [vmem:[%s19545_s3 + $0x388] sm:$0xff] }
 0x653   :  { %13902 = vmatprep.subr.mxu0 %v11901_v39  ;;  %13935 = vmatprep.subr.mxu1 %v11934_v60  ;;  %v11906_v39 = vld [vmem:[%s19545_s3 + $0x308] sm:$0xff]  ;;  %v11921_v60 = vld [vmem:[%s19545_s3 + $0x380] sm:$0xff] }
 0x654   :  { %13903 = vmatpush3.msra.mxu0 %v11885_v31  ;;  %13936 = vmatpush3.msra.mxu1 %v11918_v23  ;;  %v11905_v31 = vld [vmem:[%s19545_s3 + $0x300] sm:$0xff] }
 0x655   :  { %13904 = vmatprep.subr.mxu0 %v11900_v1  ;;  %13937 = vmatprep.subr.mxu1 %v11933_v43 }
 0x656   :  { %13905 = vmatpush3.msra.mxu0 %v11884_v4  ;;  %13938 = vmatpush3.msra.mxu1 %v11917_v3 }
 0x657   :  { %13906 = vmatprep.subr.mxu0 %v11899_v52 }
 0x658   :  { %13907 = vmatpush3.msra.mxu0 %v11883_v6 }
 0x659   :  { %13908 = vmatprep.subr.mxu0 %v11898_v46 }
 0x65a   :  { %13909 = vmatpush3.msra.mxu0 %v11882_v42 }
 0x65b   :  { %13910 = vmatprep.subr.mxu0 %v11897_v14 }
 0x65c   :  { %13911 = vmatpush3.msra.mxu0 %v11881_v54 }
 0x65d   :  { %v11548_v10 = vpop.f32.mrf.mxu1  ;;  %13912 = vmatprep.subr.mxu0 %v11896_v57 }
 0x65e   :  { %v19414_v59 = vadd.f32 %v11548_v10, %v19149_v37  ;;  %13913 = vmatpush3.msra.mxu0 %v11880_v7  ;;  %v11932_v37 = vld [vmem:[%s19545_s3 + $0x3d8] sm:$0xff] }
 0x65f   :  { %v11550_v27 = vpop.f32.mrf.mxu1  ;;  %13914 = vmatprep.subr.mxu0 %v11895_v56  ;;  %13939 = vmatprep.subr.mxu1 %v11932_v37 }
 0x660   :  { %v19429_v38 = vadd.f32 %v11550_v27, %v19165_v51  ;;  %13915 = vmatpush3.msra.mxu0 %v11879_v20  ;;  %13940 = vmatpush3.msra.mxu1 %v11916_v48  ;;  %v11931_v51 = vld [vmem:[%s19545_s3 + $0x3d0] sm:$0xff] }
 0x661   :  { %v11552_v33 = vpop.f32.mrf.mxu1  ;;  %13916 = vmatprep.subr.mxu0 %v11894_v47  ;;  %13941 = vmatprep.subr.mxu1 %v11931_v51 }
 0x662   :  { %13917 = vmatpush3.msra.mxu0 %v11878_v17  ;;  %13942 = vmatpush3.msra.mxu1 %v11915_v36 }
 0x663   :  { %v11553_v5 = vpop.f32.mrf.mxu1  ;;  %13918 = vmatprep.subr.mxu0 %v11893_v53  ;;  %13943 = vmatprep.subr.mxu1 %v11930_v15 }
 0x664   :  { %13919 = vmatpush3.msra.mxu0 %v11877_v40  ;;  %13944 = vmatpush3.msra.mxu1 %v11914_v55 }
 0x665   :  { %13920 = vmatprep.subr.mxu0 %v11892_v13  ;;  %13945 = vmatprep.subr.mxu1 %v11929_v18  ;;  %v14001_v18 = vmov 6  }
 0x666   :  { %13921 = vmatpush3.msra.mxu0 %v11876_v0  ;;  %13946 = vmatpush3.msra.mxu1 %v11913_v22 }
 0x667   :  { %13922 = vmatprep.subr.mxu0 %v11891_v28  ;;  %13947 = vmatprep.subr.mxu1 %v11928_v44 }
 0x668   :  { %13923 = vmatpush3.msra.mxu0 %v11875_v26  ;;  %13948 = vmatpush3.msra.mxu1 %v11912_v35  ;;  %v13825_v35 = vld [vmem:[%s19546_s4] ss:$0 sm:$0xff]  ;;  %s13977_s4 = scalar_lea.vmem %s12245_s25, 32 }
 0x669   :  { %13924 = vmatprep.subr.mxu0 %v11890_v49  ;;  %13949 = vmatprep.subr.mxu1 %v11927_v21  ;;  %p13978_p0 = scmp.ne.s32.totalorder %s12245_s25, %s13977_s4  ;;  %p13983_p2 = scmp.lt.s32.totalorder %s13977_s4, %s13977_s4 }
 0x66a   :  { %13925 = vmatpush3.msra.mxu0 %v11874_v2  ;;  %13950 = vmatpush3.msra.mxu1 %v11911_v41 }
 0x66b   :  { %13926 = vmatprep.subr.mxu0 %v11889_v63  ;;  %v11589_v50 = vpop.f32.mrf.mxu0  ;;  %13951 = vmatprep.subr.mxu1 %v11926_v45  ;;  %p13984_p3 = por %p13983_p2, %p13982_p1 }
 0x66c   :  { %13927 = vmatpush3.msra.mxu0 %v11873_v16  ;;  %v11590_v30 = vadd.f32 %v11589_v50, %v19414_v59  ;;  %13952 = vmatpush3.msra.mxu1 %v11910_v24 }
 0x66d   :  { %12149 = vmatmul.mubr.f32.vlgmr.msra.gmra.mxu0 %v11805_v58  ;;  %v11591_v8 = vpop.f32.mrf.mxu0  ;;  %13953 = vmatprep.subr.mxu1 %v11925_v11  ;;  %p13985_p4 = pnand %p13984_p3, %p13978_p0 }
 0x66e   :  { %v11592_v19 = vadd.f32 %v11591_v8, %v19429_v38  ;;  %13954 = vmatpush3.msra.mxu1 %v11909_v25  ;;  %13970 = vset.pattern.permute.xlu0 %v14001_v18 }
 0x66f   :  { %v11593_v12 = vpop.f32.mrf.mxu0  ;;  %13955 = vmatprep.subr.mxu1 %v11924_v9 }
 0x670   :  { %13956 = vmatpush3.msra.mxu1 %v11908_v32 }
 0x671   :  { %v11594_v29 = vpop.f32.mrf.mxu0  ;;  %13957 = vmatprep.subr.mxu1 %v11923_v61 }
 0x672   :  { %13958 = vmatpush3.msra.mxu1 %v11907_v34 }
 0x673   :  { %13959 = vmatprep.subr.mxu1 %v11922_v62 }
 0x674   :  { %13960 = vmatpush3.msra.mxu1 %v11906_v39 }
 0x675   :  { %13961 = vmatprep.subr.mxu1 %v11921_v60 }
 0x676   :  { %13962 = vmatpush3.msra.mxu1 %v11905_v31 }
 0x69d   :  { %v11630_v23 = vpop.f32.mrf.mxu1 }
 0x69e   :  { %v11631_v1 = vadd.f32 %v11630_v23, %v11590_v30 }
 0x69f   :  { %v11632_v4 = vpop.f32.mrf.mxu1 }
 0x6a0   :  { %v11633_v52 = vadd.f32 %v11632_v4, %v11592_v19 }
 0x6a1   :  { %v11634_v6 = vpop.f32.mrf.mxu1 }
 0x6a3   :  { %v11635_v46 = vpop.f32.mrf.mxu1 }
 0x6ab   :  { %v11671_v42 = vpop.f32.mrf.mxu0 }
 0x6ac   :  { %v11672_v59 = vadd.f32 %v11671_v42, %v11631_v1 }
 0x6ad   :  { %v11673_v14 = vpop.f32.mrf.mxu0 }
 0x6ae   :  { %v11674_v20 = vadd.f32 %v11673_v14, %v11633_v52 }
 0x6af   :  { %v11675_v54 = vpop.f32.mrf.mxu0 }
 0x6b1   :  { %v11676_v57 = vpop.f32.mrf.mxu0 }
 0x6dd   :  { %v11712_v7 = vpop.f32.mrf.mxu1 }
 0x6de   :  { %v11713_v3 = vadd.f32 %v11712_v7, %v11672_v59 }
 0x6df   :  { %v11714_v10 = vpop.f32.mrf.mxu1 }
 0x6e0   :  { %v11715_v47 = vadd.f32 %v11714_v10, %v11674_v20 }
 0x6e1   :  { %v11716_v56 = vpop.f32.mrf.mxu1 }
 0x6e3   :  { %v11717_v43 = vpop.f32.mrf.mxu1 }
 0x6eb   :  { %v11753_v27 = vpop.f32.mrf.mxu0 }
 0x6ec   :  { %v11754_v37 = vadd.f32 %v11753_v27, %v11713_v3 }
 0x6ed   :  { %v11794_v38 = vpop.f32.mrf.mxu1  ;;  %v11755_v17 = vpop.f32.mrf.mxu0 }
 0x6ee   :  { %v11756_v48 = vadd.f32 %v11755_v17, %v11715_v47  ;;  %v11795_v53 = vadd.f32 %v11794_v38, %v11754_v37 }
 0x6ef   :  { %v11796_v33 = vpop.f32.mrf.mxu1  ;;  %v11757_v51 = vpop.f32.mrf.mxu0 }
 0x6f0   :  { %v11797_v36 = vadd.f32 %v11796_v33, %v11756_v48  ;;  %v11807_v55 = vmax.f32 %v11795_v53, 0.0 }
 0x6f1   :  { %v11798_v40 = vpop.f32.mrf.mxu1  ;;  %v11758_v13 = vpop.f32.mrf.mxu0 }
 0x6f2   :  { %v11808_v5 = vmax.f32 %v11797_v36, 0.0 }
 0x6f3   :  { %v11799_v15 = vpop.f32.mrf.mxu1 }
 0x6f4   :  { %12218 = vmatprep.mubr.f32.mxu1 %v11808_v5 }
 0x6f5   :  { %12219 = vmatmul.mubr.f32.vlgmr.msra.gmra.mxu1 %v11807_v55 }
 0x70c   :  { %v13858_v0 = vpop.f32.mrf.mxu0 }
 0x70d   :  { %v13893_v28 = vpop.f32.mrf.mxu1 }
 0x70e   :  { %v13859_v22 = vpop.f32.mrf.mxu0 }
 0x70f   :  { %v13860_v26 = vadd.f32 %v13859_v22, %v13858_v0  ;;  %v13894_v49 = vpop.f32.mrf.mxu1 }
 0x710   :  { %v13895_v41 = vadd.f32 %v13894_v49, %v13893_v28 }
 0x711   :  { %v12011_v2 = vadd.f32 %v13860_v26, %v13825_v35 }
 0x713   :  { %v12081_v16 = vadd.f32 %v13895_v41, %v12011_v2 }
 0x72d   :  { %v13928_v44 = vpop.f32.mrf.mxu0 }
 0x72f   :  { %v13929_v21 = vpop.f32.mrf.mxu0 }
 0x730   :  { %v13930_v63 = vadd.f32 %v13929_v21, %v13928_v44 }
 0x732   :  { %v12151_v58 = vadd.f32 %v13930_v63, %v12081_v16 }
 0x7b5   :  { %v13963_v45 = vpop.f32.mrf.mxu1 }
 0x7b7   :  { %v13964_v24 = vpop.f32.mrf.mxu1 }
 0x7b8   :  { %v13965_v50 = vadd.f32 %v13964_v24, %v13963_v45 }
 0x7ba   :  { %v12221_v30 = vadd.f32 %v13965_v50, %v12151_v58 }
 0x7bc   :  { %v12231_v11 = vsel %vm12230_vm1, %v12221_v30, 0.0 }
 0x7bd   :  { %12232 = vadd.xlane.f32.xlu0 %v12231_v11 }
 0x7d3   :  { %12226 = vperm.xlu0 %13970, %v12221_v30  }
 0x846   :  { %v12233_v8 = vpop.xlane.xlu0 %12232 }
 0x847   :  { %v12235_v19 = vmul.f32 0.16666667, %v12233_v8 }
 0x84e   :  { %v12227_v25 = vpop.permute.xlu0 %12226 }
 0x84f   :  { %v12229_v9 = vadd.f32 %v12227_v25, %v12221_v30 }
 0x851   :  { %v12236_v12 = vsub.f32 %v12229_v9, %v12235_v19 }
 0x853   :  { %12237 = vst.msk [vmem:[#allocation2] sm:$0x3] %vm12230_vm1, %v12236_v12 }
 0x854   :  { %13988 = shalt.err (!%p13985_p4)
}
 0x855   :  { %12247 = dma.vmem_to_hbm [thread:$0]  %s12245_s25, 32, %s19547_s5, [#allocation3]  }
 0x856   :  { %13997 = dma.done.wait [#allocation3], 32  }
 0x857   :  { %13998 = vsyncadd [#allocation3], 4294967264 }
 0x858   :  { %12251 = vsyncpa [#allocation3], 1 }

</bundles_post_ra>
